<compile_context>
chip_gen: v6e
topology: v6e:2x2x1
jax: 0.10.0
libtpu: 0.0.40
codegen_flags: <defaults>
</compile_context>

<pallas_src>
import functools

import jax
import jax.numpy as jnp
from jax import lax
from jax.experimental import pallas as pl
from jax.experimental.pallas import tpu as pltpu


def _ceil_to(x, m):
    return ((x + m - 1) // m) * m


def _query_vmem_capacity():
    try:
        return int(pltpu.get_tpu_info().vmem_capacity_bytes)
    except Exception:
        return 64 * 1024 * 1024            # conservative default (v7x per-core)


_VMEM_CAP = _query_vmem_capacity()
_VMEM_LIMIT = min((_VMEM_CAP * 3) // 4, 112 * 1024 * 1024)   # ~48 MiB v7x, ~96 MiB v5e/v6e
_BN_BLOCK_BUDGET = _VMEM_LIMIT // 4
_CONV_VMEM_BUDGET = (_VMEM_LIMIT * 3) // 4
_CONV_TM_MAX = 2048 if _VMEM_CAP >= (96 << 20) else 1024


def _conv_compute_dtype(c):
    # small channel counts: f32 (tiny data, best accuracy); large: bf16 feeding the MXU
    return jnp.float32 if c <= 128 else jnp.bfloat16


# ---------------------------------------------------------------------------
# Fused BatchNorm2d(train) + LeakyReLU(0.2) + per-sample channel mean.
# Reads native (N, C, HW), writes lane-dense NHWC-flat (N, HW, Cin_p).
# ---------------------------------------------------------------------------
def _bn_lrelu_kernel(x_ref, g_ref, b_ref, y_ref, m_ref, *, nb, hw, c_total, eps, slope):
    rows = g_ref.shape[0]                 # channels handled by this grid step
    rt = y_ref.shape[2]                   # lane width of the NHWC output block (mult of 128)

    # one-pass batch statistics (biased variance, training-mode BN) over (N, HW)
    s1 = jnp.zeros((rows, 1), jnp.float32)
    s2 = jnp.zeros((rows, 1), jnp.float32)
    for n in range(nb):
        xn = x_ref[n]                                     # (rows, hw) f32
        s1 = s1 + jnp.sum(xn, axis=1, keepdims=True)
        s2 = s2 + jnp.sum(xn * xn, axis=1, keepdims=True)
    inv = 1.0 / float(nb * hw)
    mu = s1 * inv
    var = jnp.maximum(s2 * inv - mu * mu, 0.0)
    scale = lax.rsqrt(var + eps) * g_ref[...]
    shift = b_ref[...] - mu * scale
    inv_hw = 1.0 / float(hw)

    needs_mask = (c_total % rows) != 0                    # last channel block straddles C
    if needs_mask:
        valid = c_total - pl.program_id(0) * rows
        row_id = lax.broadcasted_iota(jnp.int32, (rows, hw), 0)

    lane_n = lax.broadcasted_iota(jnp.int32, (rows, nb), 1)
    means = jnp.zeros((rows, nb), jnp.float32)
    zpad = jnp.zeros((rt - rows, hw), jnp.float32) if rt > rows else None

    for n in range(nb):
        bn = x_ref[n] * scale + shift
        act = jnp.where(bn >= 0.0, bn, slope * bn)        # LeakyReLU(0.2) ("in place")
        # the reference's mean(mean(x1u)) sees the ACTIVATED tensor (inplace lrelu)
        means = jnp.where(lane_n == n,
                          jnp.sum(act, axis=1, keepdims=True) * inv_hw, means)
        if needs_mask:
            act = jnp.where(row_id < valid, act, 0.0)     # keep padded channels finite/zero
        if zpad is not None:
            act = jnp.concatenate([act, zpad], axis=0)    # (rt, hw), sublane-aligned pad
        y_ref[n] = jnp.transpose(act).astype(y_ref.dtype)  # (hw, rt): lane-dense NHWC store
    m_ref[...] = means                                    # single store per block


def _pick_bn_rows(c, n, hw, out_itemsize):
    # channels per grid step: f32 input + activated output, double-buffered
    per_row = n * hw * (4 + out_itemsize) * 2
    budget_rows = max(1, _BN_BLOCK_BUDGET // per_row)
    if c <= 128 or c <= budget_rows:
        return c                           # single step (block dims == full dims)
    r = 128                                # blocked: must be a multiple of 128 (lane-dense y)
    while r * 2 <= budget_rows and r * 2 < c:
        r *= 2
    return r


def batchnorm_lrelu_nhwc(x, gamma, beta, *, eps=1e-5, slope=0.2, out_dtype=jnp.float32):
    """Returns (y, m): y = (N, H*W, Cin_p) activated NHWC-flat tensor, m = (N, C) means."""
    N, C, H, W = x.shape
    HW = H * W
    Cin_p = _ceil_to(C, 128)
    rows = _pick_bn_rows(C, N, HW, jnp.dtype(out_dtype).itemsize)
    rt = rows if rows % 128 == 0 else Cin_p
    grid_c = pl.cdiv(C, rows)

    xr = x.reshape(N, C, HW).astype(jnp.float32)          # free view, no transpose/pad of xu
    g2 = gamma.reshape(C, 1).astype(jnp.float32)
    b2 = beta.reshape(C, 1).astype(jnp.float32)

    y, m = pl.pallas_call(
        functools.partial(_bn_lrelu_kernel, nb=N, hw=HW, c_total=C, eps=eps, slope=slope),
        grid=(grid_c,),
        in_specs=[
            pl.BlockSpec((N, rows, HW), lambda i: (0, i, 0)),
            pl.BlockSpec((rows, 1), lambda i: (i, 0)),
            pl.BlockSpec((rows, 1), lambda i: (i, 0)),
        ],
        out_specs=(
            pl.BlockSpec((N, HW, rt), lambda i: (0, 0, i)),
            pl.BlockSpec((rows, N), lambda i: (i, 0)),
        ),
        out_shape=(
            jax.ShapeDtypeStruct((N, HW, Cin_p), out_dtype),
            jax.ShapeDtypeStruct((C, N), jnp.float32),
        ),
        compiler_params=pltpu.CompilerParams(
            dimension_semantics=("parallel",),
            vmem_limit_bytes=_VMEM_LIMIT),
    )(xr, g2, b2)
    return y, m.T


# ---------------------------------------------------------------------------
# 4x4 / stride-1 conv as a fused-im2col GEMM.
#  - slab stays VMEM-resident per sample; taps read as shifted windows (pl.ds)
#  - taps folded into the contraction dim (K = 16*Cin_p or 4*Cin_p)
#  - weights fully resident (constant index_map); optional Cout-block outer axis
#  - output written as (Cout, M) tiles -> NCHW result with no XLA transpose
# ---------------------------------------------------------------------------
def _conv4x4_kernel(x_ref, w_ref, b_ref, o_ref, *, tm, wr, fold_all):
    mi = pl.program_id(2)
    if fold_all:
        wins = []
        for kh in range(4):
            off = pl.multiple_of(mi * tm + kh * wr, 8)
            for kw in range(4):
                wins.append(x_ref[pl.ds(off + kw, tm), :])
        a = jnp.concatenate(wins, axis=1)                 # (tm, 16*Cin_p), lane-aligned
        acc = jnp.dot(a, w_ref[...], preferred_element_type=jnp.float32)
    else:
        parts = []
        for kh in range(4):
            off = pl.multiple_of(mi * tm + kh * wr, 8)
            a = jnp.concatenate(
                [x_ref[pl.ds(off + kw, tm), :] for kw in range(4)], axis=1)
            parts.append(jnp.dot(a, w_ref[kh], preferred_element_type=jnp.float32))
        acc = (parts[0] + parts[1]) + (parts[2] + parts[3])   # local accumulation, 1 store
    res = acc + b_ref[...]                                # (tm, cout_blk) f32
    o_ref[0] = jnp.transpose(res)                         # (cout_blk, tm): NCHW-friendly


def conv4x4(y_nhwc, H, W, w_taps, bias_row, *, pad, out_channels):
    """y_nhwc: (N, H*W, Cin_p) activation; w_taps: (16, Cin_p, Coutp); bias: (1, Coutp)."""
    N, HW, Cin_p = y_nhwc.shape
    Coutp = w_taps.shape[2]
    cdt = y_nhwc.dtype
    Hp, Wfull = H + 2 * pad, W + 2 * pad
    OH, OW = Hp - 3, Wfull - 3
    assert OH > 0 and OW > 0, "spatial size too small for a 4x4 conv"

    Wr = _ceil_to(Wfull, 8)                               # aligned row stride
    Mfull = OH * Wr
    nsteps = pl.cdiv(Mfull, _CONV_TM_MAX)
    tm = _ceil_to(pl.cdiv(Mfull, nsteps), 128)            # lane-dense transposed stores
    Mp = tm * nsteps
    Hx = max(Hp, pl.cdiv(Mp + 3 * Wr + 4, Wr))            # rows incl. tap over-reach slack
    S = Hx * Wr

    # TODO(synk): the conv's spatial zero-pad is still one XLA copy of the activation;
    # it could be folded into the BN epilogue with per-row strided stores.
    slab = jnp.pad(y_nhwc.reshape(N, H, W, Cin_p),
                   ((0, 0), (pad, Hx - H - pad), (pad, Wr - W - pad), (0, 0)))
    slab = slab.reshape(N * S, Cin_p)

    fold_all = (16 * Cin_p) <= 2048                       # fold all taps for narrow channels
    wmat = (w_taps.reshape(16 * Cin_p, Coutp) if fold_all
            else w_taps.reshape(4, 4 * Cin_p, Coutp))

    itemsize = jnp.dtype(cdt).itemsize
    aK = 16 * Cin_p if fold_all else 4 * Cin_p

    def _fits(nc):
        cb = Coutp // nc
        need = 2 * 16 * Cin_p * cb * itemsize             # weight block (double-buffered)
        need += 2 * S * Cin_p * itemsize                  # activation slab (double-buffered)
        need += 2 * cb * tm * 4                           # output block
        need += tm * aK * 4 + 2 * tm * cb * 4             # folded operand + result temps
        return need <= _CONV_VMEM_BUDGET

    ncb = 1                                               # Cout blocks (outermost grid axis)
    while (not _fits(ncb)) and (Coutp // 128) % (2 * ncb) == 0:
        ncb *= 2
    cout_blk = Coutp // ncb

    if fold_all:
        w_spec = pl.BlockSpec((16 * Cin_p, cout_blk), lambda j, n, mi: (0, j))
    else:
        w_spec = pl.BlockSpec((4, 4 * Cin_p, cout_blk), lambda j, n, mi: (0, 0, j))

    out = pl.pallas_call(
        functools.partial(_conv4x4_kernel, tm=tm, wr=Wr, fold_all=fold_all),
        grid=(ncb, N, nsteps),
        in_specs=[
            pl.BlockSpec((S, Cin_p), lambda j, n, mi: (n, 0)),    # slab resident across mi
            w_spec,                                               # weights resident across (n, mi)
            pl.BlockSpec((1, cout_blk), lambda j, n, mi: (0, j)),
        ],
        out_specs=pl.BlockSpec((1, cout_blk, tm), lambda j, n, mi: (n, j, mi)),
        out_shape=jax.ShapeDtypeStruct((N, Coutp, Mp), jnp.float32),
        compiler_params=pltpu.CompilerParams(
            dimension_semantics=("parallel", "parallel", "parallel"),
            vmem_limit_bytes=_VMEM_LIMIT),
    )(slab, wmat, bias_row)

    out = out[:, :out_channels, :Mfull].reshape(N, out_channels, OH, Wr)[:, :, :, :OW]
    return out


# ---------------------------------------------------------------------------
# FC2 + fused SELU, single whole-block grid step (tiny GEMM).
# ---------------------------------------------------------------------------
def _linear_selu_kernel(a_ref, w_ref, b_ref, o_ref):
    r = jnp.dot(a_ref[...], w_ref[...], preferred_element_type=jnp.float32) + b_ref[...]
    alpha = 1.6732632423543772
    scale = 1.0507009873554805
    o_ref[...] = scale * jnp.where(r > 0, r, alpha * (jnp.exp(jnp.minimum(r, 0.0)) - 1.0))


def linear_selu(a, w_padded, b_padded, n_out):
    B, K = a.shape
    Kp, Gp = w_padded.shape
    Bp = _ceil_to(B, 8)
    ap = jnp.pad(a.astype(jnp.float32), ((0, Bp - B), (0, Kp - K)))
    out = pl.pallas_call(
        _linear_selu_kernel,
        out_shape=jax.ShapeDtypeStruct((Bp, Gp), jnp.float32),
        compiler_params=pltpu.CompilerParams(vmem_limit_bytes=_VMEM_LIMIT),
    )(ap, w_padded, b_padded)
    return out[:B, :n_out]


# ---------------------------------------------------------------------------
# unitglobalnetup forward
# ---------------------------------------------------------------------------
def unitglobalnetup_forward(params, xu, xg, *, pad=0):
    N, C, H, W = xu.shape
    G = xg.shape[1]
    cdt = _conv_compute_dtype(C)
    # x1u = BN(xu); x3u = LeakyReLU(x1u) in-place -> x1u becomes the activated tensor.
    y_nhwc, chan_mean = batchnorm_lrelu_nhwc(
        xu, params["bn_g"], params["bn_b"], out_dtype=cdt)
    # TODO(synk): x1g = FC1(flat(xg)) is computed by the reference but never used; omitted.
    x4u = conv4x4(y_nhwc, H, W, params["conv_w"], params["conv_b"],
                  pad=pad, out_channels=C)
    # x3g = SELU(FC2(cat([spatial_mean(x1u), xg], dim=1)))
    a = jnp.concatenate([chan_mean, xg.astype(jnp.float32)], axis=1)
    x3g = linear_selu(a, params["fc2_w"], params["fc2_b"], G)
    return x4u, x3g


# ---------------------------------------------------------------------------
# Deterministic parameter init (weights stored tap-major, pre-padded, pre-cast).
# conv_w[t, ci, co]  ==  torch_conv.weight[co, ci, kh, kw] with t = kh*4 + kw.
# fc2_w is the pre-transposed ((C+G) x G) matrix, rows ordered [mean(x1u), xg].
# ---------------------------------------------------------------------------
def init_params(key, input_size, output_size):
    C, G = input_size, output_size
    cdt = _conv_compute_dtype(C)
    Cin_p = _ceil_to(C, 128)
    Coutp = _ceil_to(C, 128)
    Kfc, Kfcp, Gp = C + G, _ceil_to(C + G, 128), _ceil_to(G, 128)
    k = jax.random.split(key, 8)

    def _w(kk, shape, fan_in):
        return jax.random.normal(kk, shape, jnp.float32) / jnp.sqrt(float(fan_in))

    conv_w = _w(k[0], (16, C, C), C * 16)
    conv_w = jnp.pad(conv_w, ((0, 0), (0, Cin_p - C), (0, Coutp - C))).astype(cdt)
    conv_b = jnp.pad(0.01 * jax.random.normal(k[1], (1, C), jnp.float32),
                     ((0, 0), (0, Coutp - C)))
    fc2_w = jnp.pad(_w(k[2], (Kfc, G), Kfc), ((0, Kfcp - Kfc), (0, Gp - G)))
    fc2_b = jnp.pad(0.01 * jax.random.normal(k[3], (1, G), jnp.float32),
                    ((0, 0), (0, Gp - G)))
    return {
        "bn_g": 1.0 + 0.1 * jax.random.normal(k[4], (C,), jnp.float32),
        "bn_b": 0.1 * jax.random.normal(k[5], (C,), jnp.float32),
        "conv_w": conv_w,
        "conv_b": conv_b,
        "fc2_w": fc2_w,
        "fc2_b": fc2_b,
        # FC1 parameters exist in the reference module but its output is dead code.
        "fc1_w": _w(k[6], (G, G), G),
        "fc1_b": 0.01 * jax.random.normal(k[7], (G,), jnp.float32),
    }


if __name__ == "__main__":
    key = jax.random.PRNGKey(0)
    kp, ku, kg = jax.random.split(key, 3)
    N, C, G, H, W, PAD = 2, 8, 16, 16, 16, 1     # input_size=8, output_size=16, pad=1
    params = init_params(kp, C, G)
    xu = jax.random.normal(ku, (N, C, H, W), jnp.float32)
    xg = jax.random.normal(kg, (N, G), jnp.float32)

    fwd = jax.jit(functools.partial(unitglobalnetup_forward, pad=PAD))
    x4u, x3g = jax.block_until_ready(fwd(params, xu, xg))

    assert x4u.shape == (N, C, H + 2 * PAD - 3, W + 2 * PAD - 3), x4u.shape
    assert x3g.shape == (N, G), x3g.shape
    assert bool(jnp.all(jnp.isfinite(x4u))) and bool(jnp.all(jnp.isfinite(x3g)))
    print("KERNEL_OK")
</pallas_src>

<mosaic_0001>
module attributes {stable_mosaic.version = 11 : i64} {
  func.func @_bn_lrelu_kernel(%arg0: i32, %arg1: memref<2x8x256xf32, #tpu.memory_space<vmem>>, %arg2: memref<8x1xf32, #tpu.memory_space<vmem>>, %arg3: memref<8x1xf32, #tpu.memory_space<vmem>>, %arg4: memref<2x256x128xf32, #tpu.memory_space<vmem>>, %arg5: memref<8x2xf32, #tpu.memory_space<vmem>>) attributes {dimension_semantics = [#tpu.dimension_semantics<parallel>], iteration_bounds = array<i64: 1>, scalar_prefetch = 0 : i64, scratch_operands = 0 : i64, tpu.core_type = #tpu.core_type<tc>, window_params = [{transform_indices = @transform_0, window_bounds = array<i64: 2, 8, 256>}, {transform_indices = @transform_1, window_bounds = array<i64: 8, 1>}, {transform_indices = @transform_2, window_bounds = array<i64: 8, 1>}, {transform_indices = @transform_3, window_bounds = array<i64: 2, 256, 128>}, {transform_indices = @transform_4, window_bounds = array<i64: 8, 2>}]} {
    %cst = arith.constant 0.000000e+00 : f32
    %0 = vector.broadcast %cst : f32 to vector<8x1xf32>
    %cst_0 = arith.constant 0.000000e+00 : f32
    %1 = vector.broadcast %cst_0 : f32 to vector<8x1xf32>
    %c0 = arith.constant 0 : index
    %c0_1 = arith.constant 0 : index
    %c0_2 = arith.constant 0 : index
    %2 = vector.load %arg1[%c0, %c0_1, %c0_2] : memref<2x8x256xf32, #tpu.memory_space<vmem>>, vector<1x8x256xf32>
    %3 = vector.shape_cast %2 : vector<1x8x256xf32> to vector<8x256xf32>
    %cst_3 = arith.constant dense<0.000000e+00> : vector<8xf32>
    %4 = vector.multi_reduction <add>, %3, %cst_3 [1] : vector<8x256xf32> to vector<8xf32>
    %5 = vector.shape_cast %4 : vector<8xf32> to vector<8x1xf32>
    %6 = arith.addf %0, %5 : vector<8x1xf32>
    %7 = arith.mulf %3, %3 : vector<8x256xf32>
    %cst_4 = arith.constant dense<0.000000e+00> : vector<8xf32>
    %8 = vector.multi_reduction <add>, %7, %cst_4 [1] : vector<8x256xf32> to vector<8xf32>
    %9 = vector.shape_cast %8 : vector<8xf32> to vector<8x1xf32>
    %10 = arith.addf %1, %9 : vector<8x1xf32>
    %c1 = arith.constant 1 : index
    %c0_5 = arith.constant 0 : index
    %c0_6 = arith.constant 0 : index
    %11 = vector.load %arg1[%c1, %c0_5, %c0_6] : memref<2x8x256xf32, #tpu.memory_space<vmem>>, vector<1x8x256xf32>
    %12 = vector.shape_cast %11 : vector<1x8x256xf32> to vector<8x256xf32>
    %cst_7 = arith.constant dense<0.000000e+00> : vector<8xf32>
    %13 = vector.multi_reduction <add>, %12, %cst_7 [1] : vector<8x256xf32> to vector<8xf32>
    %14 = vector.shape_cast %13 : vector<8xf32> to vector<8x1xf32>
    %15 = arith.addf %6, %14 : vector<8x1xf32>
    %16 = arith.mulf %12, %12 : vector<8x256xf32>
    %cst_8 = arith.constant dense<0.000000e+00> : vector<8xf32>
    %17 = vector.multi_reduction <add>, %16, %cst_8 [1] : vector<8x256xf32> to vector<8xf32>
    %18 = vector.shape_cast %17 : vector<8xf32> to vector<8x1xf32>
    %19 = arith.addf %10, %18 : vector<8x1xf32>
    %cst_9 = arith.constant 0.001953125 : f32
    %20 = vector.broadcast %cst_9 : f32 to vector<8x1xf32>
    %21 = arith.mulf %15, %20 : vector<8x1xf32>
    %cst_10 = arith.constant 0.001953125 : f32
    %22 = vector.broadcast %cst_10 : f32 to vector<8x1xf32>
    %23 = arith.mulf %19, %22 : vector<8x1xf32>
    %24 = arith.mulf %21, %21 : vector<8x1xf32>
    %25 = arith.subf %23, %24 : vector<8x1xf32>
    %cst_11 = arith.constant 0.000000e+00 : f32
    %26 = vector.broadcast %cst_11 : f32 to vector<8x1xf32>
    %27 = arith.maximumf %25, %26 : vector<8x1xf32>
    %cst_12 = arith.constant 9.99999974E-6 : f32
    %28 = vector.broadcast %cst_12 : f32 to vector<8x1xf32>
    %29 = arith.addf %27, %28 : vector<8x1xf32>
    %30 = math.rsqrt %29 : vector<8x1xf32>
    %c0_13 = arith.constant 0 : index
    %c0_14 = arith.constant 0 : index
    %31 = vector.load %arg2[%c0_13, %c0_14] : memref<8x1xf32, #tpu.memory_space<vmem>>, vector<8x1xf32>
    %32 = arith.mulf %30, %31 : vector<8x1xf32>
    %c0_15 = arith.constant 0 : index
    %c0_16 = arith.constant 0 : index
    %33 = vector.load %arg3[%c0_15, %c0_16] : memref<8x1xf32, #tpu.memory_space<vmem>>, vector<8x1xf32>
    %34 = arith.mulf %21, %32 : vector<8x1xf32>
    %35 = arith.subf %33, %34 : vector<8x1xf32>
    %36 = tpu.iota {dimensions = array<i32: 1>} : vector<8x2xi32>
    %cst_17 = arith.constant 0.000000e+00 : f32
    %37 = vector.broadcast %cst_17 : f32 to vector<8x2xf32>
    %cst_18 = arith.constant 0.000000e+00 : f32
    %38 = vector.broadcast %cst_18 : f32 to vector<120x256xf32>
    %c0_19 = arith.constant 0 : index
    %c0_20 = arith.constant 0 : index
    %c0_21 = arith.constant 0 : index
    %39 = vector.load %arg1[%c0_19, %c0_20, %c0_21] : memref<2x8x256xf32, #tpu.memory_space<vmem>>, vector<1x8x256xf32>
    %40 = vector.shape_cast %39 : vector<1x8x256xf32> to vector<8x256xf32>
    %41 = vector.broadcast %32 : vector<8x1xf32> to vector<8x256xf32>
    %42 = arith.mulf %40, %41 : vector<8x256xf32>
    %43 = vector.broadcast %35 : vector<8x1xf32> to vector<8x256xf32>
    %44 = arith.addf %42, %43 : vector<8x256xf32>
    %cst_22 = arith.constant 0.000000e+00 : f32
    %45 = vector.broadcast %cst_22 : f32 to vector<8x256xf32>
    %46 = arith.cmpf oge, %44, %45 : vector<8x256xf32>
    %cst_23 = arith.constant 2.000000e-01 : f32
    %47 = vector.broadcast %cst_23 : f32 to vector<8x256xf32>
    %48 = arith.mulf %47, %44 : vector<8x256xf32>
    %49 = arith.select %46, %44, %48 : vector<8x256xi1>, vector<8x256xf32>
    %c0_i32 = arith.constant 0 : i32
    %50 = vector.broadcast %c0_i32 : i32 to vector<8x2xi32>
    %51 = arith.cmpi eq, %36, %50 : vector<8x2xi32>
    %cst_24 = arith.constant dense<0.000000e+00> : vector<8xf32>
    %52 = vector.multi_reduction <add>, %49, %cst_24 [1] : vector<8x256xf32> to vector<8xf32>
    %53 = vector.shape_cast %52 : vector<8xf32> to vector<8x1xf32>
    %cst_25 = arith.constant 3.906250e-03 : f32
    %54 = vector.broadcast %cst_25 : f32 to vector<8x1xf32>
    %55 = arith.mulf %53, %54 : vector<8x1xf32>
    %56 = vector.shape_cast %55 : vector<8x1xf32> to vector<8x1xf32>
    %57 = vector.broadcast %56 : vector<8x1xf32> to vector<8x2xf32>
    %58 = arith.select %51, %57, %37 : vector<8x2xi1>, vector<8x2xf32>
    %59 = tpu.concatenate %49, %38 in 0 : vector<8x256xf32>, vector<120x256xf32> -> vector<128x256xf32>
    %60 = tpu.transpose %59, [1, 0] : vector<128x256xf32> -> vector<256x128xf32>
    %c0_26 = arith.constant 0 : index
    %c0_27 = arith.constant 0 : index
    %c0_28 = arith.constant 0 : index
    %61 = vector.load %arg4[%c0_26, %c0_27, %c0_28] : memref<2x256x128xf32, #tpu.memory_space<vmem>>, vector<1x256x128xf32>
    %62 = vector.shape_cast %61 : vector<1x256x128xf32> to vector<256x128xf32>
    %63 = vector.shape_cast %60 : vector<256x128xf32> to vector<1x256x128xf32>
    tpu.vector_store %arg4[%c0_26, %c0_27, %c0_28], %63 {strides = array<i32>} : memref<2x256x128xf32, #tpu.memory_space<vmem>>, vector<1x256x128xf32>,
    %c1_29 = arith.constant 1 : index
    %c0_30 = arith.constant 0 : index
    %c0_31 = arith.constant 0 : index
    %64 = vector.load %arg1[%c1_29, %c0_30, %c0_31] : memref<2x8x256xf32, #tpu.memory_space<vmem>>, vector<1x8x256xf32>
    %65 = vector.shape_cast %64 : vector<1x8x256xf32> to vector<8x256xf32>
    %66 = vector.broadcast %32 : vector<8x1xf32> to vector<8x256xf32>
    %67 = arith.mulf %65, %66 : vector<8x256xf32>
    %68 = vector.broadcast %35 : vector<8x1xf32> to vector<8x256xf32>
    %69 = arith.addf %67, %68 : vector<8x256xf32>
    %cst_32 = arith.constant 0.000000e+00 : f32
    %70 = vector.broadcast %cst_32 : f32 to vector<8x256xf32>
    %71 = arith.cmpf oge, %69, %70 : vector<8x256xf32>
    %cst_33 = arith.constant 2.000000e-01 : f32
    %72 = vector.broadcast %cst_33 : f32 to vector<8x256xf32>
    %73 = arith.mulf %72, %69 : vector<8x256xf32>
    %74 = arith.select %71, %69, %73 : vector<8x256xi1>, vector<8x256xf32>
    %c1_i32 = arith.constant 1 : i32
    %75 = vector.broadcast %c1_i32 : i32 to vector<8x2xi32>
    %76 = arith.cmpi eq, %36, %75 : vector<8x2xi32>
    %cst_34 = arith.constant dense<0.000000e+00> : vector<8xf32>
    %77 = vector.multi_reduction <add>, %74, %cst_34 [1] : vector<8x256xf32> to vector<8xf32>
    %78 = vector.shape_cast %77 : vector<8xf32> to vector<8x1xf32>
    %cst_35 = arith.constant 3.906250e-03 : f32
    %79 = vector.broadcast %cst_35 : f32 to vector<8x1xf32>
    %80 = arith.mulf %78, %79 : vector<8x1xf32>
    %81 = vector.shape_cast %80 : vector<8x1xf32> to vector<8x1xf32>
    %82 = vector.broadcast %81 : vector<8x1xf32> to vector<8x2xf32>
    %83 = arith.select %76, %82, %58 : vector<8x2xi1>, vector<8x2xf32>
    %84 = tpu.concatenate %74, %38 in 0 : vector<8x256xf32>, vector<120x256xf32> -> vector<128x256xf32>
    %85 = tpu.transpose %84, [1, 0] : vector<128x256xf32> -> vector<256x128xf32>
    %c1_36 = arith.constant 1 : index
    %c0_37 = arith.constant 0 : index
    %c0_38 = arith.constant 0 : index
    %86 = vector.load %arg4[%c1_36, %c0_37, %c0_38] : memref<2x256x128xf32, #tpu.memory_space<vmem>>, vector<1x256x128xf32>
    %87 = vector.shape_cast %86 : vector<1x256x128xf32> to vector<256x128xf32>
    %88 = vector.shape_cast %85 : vector<256x128xf32> to vector<1x256x128xf32>
    tpu.vector_store %arg4[%c1_36, %c0_37, %c0_38], %88 {strides = array<i32>} : memref<2x256x128xf32, #tpu.memory_space<vmem>>, vector<1x256x128xf32>,
    %c0_39 = arith.constant 0 : index
    %c0_40 = arith.constant 0 : index
    %89 = vector.load %arg5[%c0_39, %c0_40] : memref<8x2xf32, #tpu.memory_space<vmem>>, vector<8x2xf32>
    tpu.vector_store %arg5[%c0_39, %c0_40], %83 {strides = array<i32>} : memref<8x2xf32, #tpu.memory_space<vmem>>, vector<8x2xf32>,
    return
  }
  func.func @transform_0(%arg0: i32) -> (i32, i32, i32) {
    %c0_i32 = arith.constant 0 : i32
    %c0_i32_0 = arith.constant 0 : i32
    %c0_i32_1 = arith.constant 0 : i32
    return %c0_i32, %arg0, %c0_i32_0 : i32, i32, i32
  }
  func.func @transform_1(%arg0: i32) -> (i32, i32) {
    %c0_i32 = arith.constant 0 : i32
    %c0_i32_0 = arith.constant 0 : i32
    return %arg0, %c0_i32 : i32, i32
  }
  func.func @transform_2(%arg0: i32) -> (i32, i32) {
    %c0_i32 = arith.constant 0 : i32
    %c0_i32_0 = arith.constant 0 : i32
    return %arg0, %c0_i32 : i32, i32
  }
  func.func @transform_3(%arg0: i32) -> (i32, i32, i32) {
    %c0_i32 = arith.constant 0 : i32
    %c0_i32_0 = arith.constant 0 : i32
    %c0_i32_1 = arith.constant 0 : i32
    return %c0_i32, %c0_i32_0, %arg0 : i32, i32, i32
  }
  func.func @transform_4(%arg0: i32) -> (i32, i32) {
    %c0_i32 = arith.constant 0 : i32
    %c0_i32_0 = arith.constant 0 : i32
    return %arg0, %c0_i32 : i32, i32
  }
}

module attributes {stable_mosaic.version = 11 : i64} {
  func.func @_conv4x4_kernel(%arg0: i32, %arg1: i32, %arg2: i32, %arg3: memref<480x128xf32, #tpu.memory_space<vmem>>, %arg4: memref<2048x128xf32, #tpu.memory_space<vmem>>, %arg5: memref<1x128xf32, #tpu.memory_space<vmem>>, %arg6: memref<1x128x384xf32, #tpu.memory_space<vmem>>) attributes {dimension_semantics = [#tpu.dimension_semantics<parallel>, #tpu.dimension_semantics<parallel>, #tpu.dimension_semantics<parallel>], iteration_bounds = array<i64: 1, 2, 1>, scalar_prefetch = 0 : i64, scratch_operands = 0 : i64, tpu.core_type = #tpu.core_type<tc>, window_params = [{transform_indices = @transform_0, window_bounds = array<i64: 480, 128>}, {transform_indices = @transform_1, window_bounds = array<i64: 2048, 128>}, {transform_indices = @transform_2, window_bounds = array<i64: 1, 128>}, {transform_indices = @transform_3, window_bounds = array<i64: 1, 128, 384>}]} {
    %c384_i32 = arith.constant 384 : i32
    %0 = arith.muli %arg2, %c384_i32 : i32
    %c0_i32 = arith.constant 0 : i32
    %1 = arith.addi %0, %c0_i32 : i32
    %2 = tpu.assume_multiple %1, 8 : i32
    %c0_i32_0 = arith.constant 0 : i32
    %3 = arith.addi %2, %c0_i32_0 : i32
    %4 = arith.index_cast %3 : i32 to index
    %c0 = arith.constant 0 : index
    %5 = vector.load %arg3[%4, %c0] : memref<480x128xf32, #tpu.memory_space<vmem>>, vector<384x128xf32>
    %c1_i32 = arith.constant 1 : i32
    %6 = arith.addi %2, %c1_i32 : i32
    %7 = arith.index_cast %6 : i32 to index
    %c0_1 = arith.constant 0 : index
    %8 = vector.load %arg3[%7, %c0_1] : memref<480x128xf32, #tpu.memory_space<vmem>>, vector<384x128xf32>
    %c2_i32 = arith.constant 2 : i32
    %9 = arith.addi %2, %c2_i32 : i32
    %10 = arith.index_cast %9 : i32 to index
    %c0_2 = arith.constant 0 : index
    %11 = vector.load %arg3[%10, %c0_2] : memref<480x128xf32, #tpu.memory_space<vmem>>, vector<384x128xf32>
    %c3_i32 = arith.constant 3 : i32
    %12 = arith.addi %2, %c3_i32 : i32
    %13 = arith.index_cast %12 : i32 to index
    %c0_3 = arith.constant 0 : index
    %14 = vector.load %arg3[%13, %c0_3] : memref<480x128xf32, #tpu.memory_space<vmem>>, vector<384x128xf32>
    %c384_i32_4 = arith.constant 384 : i32
    %15 = arith.muli %arg2, %c384_i32_4 : i32
    %c24_i32 = arith.constant 24 : i32
    %16 = arith.addi %15, %c24_i32 : i32
    %17 = tpu.assume_multiple %16, 8 : i32
    %c0_i32_5 = arith.constant 0 : i32
    %18 = arith.addi %17, %c0_i32_5 : i32
    %19 = arith.index_cast %18 : i32 to index
    %c0_6 = arith.constant 0 : index
    %20 = vector.load %arg3[%19, %c0_6] : memref<480x128xf32, #tpu.memory_space<vmem>>, vector<384x128xf32>
    %c1_i32_7 = arith.constant 1 : i32
    %21 = arith.addi %17, %c1_i32_7 : i32
    %22 = arith.index_cast %21 : i32 to index
    %c0_8 = arith.constant 0 : index
    %23 = vector.load %arg3[%22, %c0_8] : memref<480x128xf32, #tpu.memory_space<vmem>>, vector<384x128xf32>
    %c2_i32_9 = arith.constant 2 : i32
    %24 = arith.addi %17, %c2_i32_9 : i32
    %25 = arith.index_cast %24 : i32 to index
    %c0_10 = arith.constant 0 : index
    %26 = vector.load %arg3[%25, %c0_10] : memref<480x128xf32, #tpu.memory_space<vmem>>, vector<384x128xf32>
    %c3_i32_11 = arith.constant 3 : i32
    %27 = arith.addi %17, %c3_i32_11 : i32
    %28 = arith.index_cast %27 : i32 to index
    %c0_12 = arith.constant 0 : index
    %29 = vector.load %arg3[%28, %c0_12] : memref<480x128xf32, #tpu.memory_space<vmem>>, vector<384x128xf32>
    %c384_i32_13 = arith.constant 384 : i32
    %30 = arith.muli %arg2, %c384_i32_13 : i32
    %c48_i32 = arith.constant 48 : i32
    %31 = arith.addi %30, %c48_i32 : i32
    %32 = tpu.assume_multiple %31, 8 : i32
    %c0_i32_14 = arith.constant 0 : i32
    %33 = arith.addi %32, %c0_i32_14 : i32
    %34 = arith.index_cast %33 : i32 to index
    %c0_15 = arith.constant 0 : index
    %35 = vector.load %arg3[%34, %c0_15] : memref<480x128xf32, #tpu.memory_space<vmem>>, vector<384x128xf32>
    %c1_i32_16 = arith.constant 1 : i32
    %36 = arith.addi %32, %c1_i32_16 : i32
    %37 = arith.index_cast %36 : i32 to index
    %c0_17 = arith.constant 0 : index
    %38 = vector.load %arg3[%37, %c0_17] : memref<480x128xf32, #tpu.memory_space<vmem>>, vector<384x128xf32>
    %c2_i32_18 = arith.constant 2 : i32
    %39 = arith.addi %32, %c2_i32_18 : i32
    %40 = arith.index_cast %39 : i32 to index
    %c0_19 = arith.constant 0 : index
    %41 = vector.load %arg3[%40, %c0_19] : memref<480x128xf32, #tpu.memory_space<vmem>>, vector<384x128xf32>
    %c3_i32_20 = arith.constant 3 : i32
    %42 = arith.addi %32, %c3_i32_20 : i32
    %43 = arith.index_cast %42 : i32 to index
    %c0_21 = arith.constant 0 : index
    %44 = vector.load %arg3[%43, %c0_21] : memref<480x128xf32, #tpu.memory_space<vmem>>, vector<384x128xf32>
    %c384_i32_22 = arith.constant 384 : i32
    %45 = arith.muli %arg2, %c384_i32_22 : i32
    %c72_i32 = arith.constant 72 : i32
    %46 = arith.addi %45, %c72_i32 : i32
    %47 = tpu.assume_multiple %46, 8 : i32
    %c0_i32_23 = arith.constant 0 : i32
    %48 = arith.addi %47, %c0_i32_23 : i32
    %49 = arith.index_cast %48 : i32 to index
    %c0_24 = arith.constant 0 : index
    %50 = vector.load %arg3[%49, %c0_24] : memref<480x128xf32, #tpu.memory_space<vmem>>, vector<384x128xf32>
    %c1_i32_25 = arith.constant 1 : i32
    %51 = arith.addi %47, %c1_i32_25 : i32
    %52 = arith.index_cast %51 : i32 to index
    %c0_26 = arith.constant 0 : index
    %53 = vector.load %arg3[%52, %c0_26] : memref<480x128xf32, #tpu.memory_space<vmem>>, vector<384x128xf32>
    %c2_i32_27 = arith.constant 2 : i32
    %54 = arith.addi %47, %c2_i32_27 : i32
    %55 = arith.index_cast %54 : i32 to index
    %c0_28 = arith.constant 0 : index
    %56 = vector.load %arg3[%55, %c0_28] : memref<480x128xf32, #tpu.memory_space<vmem>>, vector<384x128xf32>
    %c3_i32_29 = arith.constant 3 : i32
    %57 = arith.addi %47, %c3_i32_29 : i32
    %58 = arith.index_cast %57 : i32 to index
    %c0_30 = arith.constant 0 : index
    %59 = vector.load %arg3[%58, %c0_30] : memref<480x128xf32, #tpu.memory_space<vmem>>, vector<384x128xf32>
    %60 = tpu.concatenate %5, %8, %11, %14, %20, %23, %26, %29, %35, %38, %41, %44, %50, %53, %56, %59 in 1 : vector<384x128xf32>, vector<384x128xf32>, vector<384x128xf32>, vector<384x128xf32>, vector<384x128xf32>, vector<384x128xf32>, vector<384x128xf32>, vector<384x128xf32>, vector<384x128xf32>, vector<384x128xf32>, vector<384x128xf32>, vector<384x128xf32>, vector<384x128xf32>, vector<384x128xf32>, vector<384x128xf32>, vector<384x128xf32> -> vector<384x2048xf32>
    %c0_31 = arith.constant 0 : index
    %c0_32 = arith.constant 0 : index
    %61 = vector.load %arg4[%c0_31, %c0_32] : memref<2048x128xf32, #tpu.memory_space<vmem>>, vector<2048x128xf32>
    %cst = arith.constant dense<0.000000e+00> : vector<384x128xf32>
    %62 = tpu.matmul %60, %61, %cst {dimension_numbers = #tpu.dot_dimension_numbers<[1], [0], [0], [1], [0, 0, 1, 1], [], []>} : vector<384x2048xf32>, vector<2048x128xf32>, vector<384x128xf32> -> vector<384x128xf32>
    %c0_33 = arith.constant 0 : index
    %c0_34 = arith.constant 0 : index
    %63 = vector.load %arg5[%c0_33, %c0_34] : memref<1x128xf32, #tpu.memory_space<vmem>>, vector<1x128xf32>
    %64 = vector.broadcast %63 : vector<1x128xf32> to vector<384x128xf32>
    %65 = arith.addf %62, %64 : vector<384x128xf32>
    %66 = tpu.transpose %65, [1, 0] : vector<384x128xf32> -> vector<128x384xf32>
    %c0_35 = arith.constant 0 : index
    %c0_36 = arith.constant 0 : index
    %c0_37 = arith.constant 0 : index
    %67 = vector.load %arg6[%c0_35, %c0_36, %c0_37] : memref<1x128x384xf32, #tpu.memory_space<vmem>>, vector<1x128x384xf32>
    %68 = vector.shape_cast %67 : vector<1x128x384xf32> to vector<128x384xf32>
    %69 = vector.shape_cast %66 : vector<128x384xf32> to vector<1x128x384xf32>
    tpu.vector_store %arg6[%c0_35, %c0_36, %c0_37], %69 {strides = array<i32>} : memref<1x128x384xf32, #tpu.memory_space<vmem>>, vector<1x128x384xf32>,
    return
  }
  func.func @transform_0(%arg0: i32, %arg1: i32, %arg2: i32) -> (i32, i32) {
    %c0_i32 = arith.constant 0 : i32
    %c0_i32_0 = arith.constant 0 : i32
    return %arg1, %c0_i32 : i32, i32
  }
  func.func @transform_1(%arg0: i32, %arg1: i32, %arg2: i32) -> (i32, i32) {
    %c0_i32 = arith.constant 0 : i32
    %c0_i32_0 = arith.constant 0 : i32
    return %c0_i32, %arg0 : i32, i32
  }
  func.func @transform_2(%arg0: i32, %arg1: i32, %arg2: i32) -> (i32, i32) {
    %c0_i32 = arith.constant 0 : i32
    %c0_i32_0 = arith.constant 0 : i32
    return %c0_i32, %arg0 : i32, i32
  }
  func.func @transform_3(%arg0: i32, %arg1: i32, %arg2: i32) -> (i32, i32, i32) {
    %c0_i32 = arith.constant 0 : i32
    return %arg1, %arg0, %arg2 : i32, i32, i32
  }
}

module attributes {stable_mosaic.version = 11 : i64} {
  func.func @_linear_selu_kernel(%arg0: memref<8x128xf32, #tpu.memory_space<vmem>>, %arg1: memref<128x128xf32, #tpu.memory_space<vmem>>, %arg2: memref<1x128xf32, #tpu.memory_space<vmem>>, %arg3: memref<8x128xf32, #tpu.memory_space<vmem>>) attributes {dimension_semantics = [], scalar_prefetch = 0 : i64, scratch_operands = 0 : i64, tpu.core_type = #tpu.core_type<tc>} {
    %c0 = arith.constant 0 : index
    %c0_0 = arith.constant 0 : index
    %0 = vector.load %arg0[%c0, %c0_0] : memref<8x128xf32, #tpu.memory_space<vmem>>, vector<8x128xf32>
    %c0_1 = arith.constant 0 : index
    %c0_2 = arith.constant 0 : index
    %1 = vector.load %arg1[%c0_1, %c0_2] : memref<128x128xf32, #tpu.memory_space<vmem>>, vector<128x128xf32>
    %cst = arith.constant dense<0.000000e+00> : vector<8x128xf32>
    %2 = tpu.matmul %0, %1, %cst {dimension_numbers = #tpu.dot_dimension_numbers<[1], [0], [0], [1], [0, 0, 1, 1], [], []>} : vector<8x128xf32>, vector<128x128xf32>, vector<8x128xf32> -> vector<8x128xf32>
    %c0_3 = arith.constant 0 : index
    %c0_4 = arith.constant 0 : index
    %3 = vector.load %arg2[%c0_3, %c0_4] : memref<1x128xf32, #tpu.memory_space<vmem>>, vector<1x128xf32>
    %4 = vector.broadcast %3 : vector<1x128xf32> to vector<8x128xf32>
    %5 = arith.addf %2, %4 : vector<8x128xf32>
    %cst_5 = arith.constant 0.000000e+00 : f32
    %6 = vector.broadcast %cst_5 : f32 to vector<8x128xf32>
    %7 = arith.cmpf ogt, %5, %6 : vector<8x128xf32>
    %cst_6 = arith.constant 0.000000e+00 : f32
    %8 = vector.broadcast %cst_6 : f32 to vector<8x128xf32>
    %9 = arith.minimumf %5, %8 : vector<8x128xf32>
    %10 = math.exp %9 : vector<8x128xf32>
    %cst_7 = arith.constant 1.000000e+00 : f32
    %11 = vector.broadcast %cst_7 : f32 to vector<8x128xf32>
    %12 = arith.subf %10, %11 : vector<8x128xf32>
    %cst_8 = arith.constant 1.67326319 : f32
    %13 = vector.broadcast %cst_8 : f32 to vector<8x128xf32>
    %14 = arith.mulf %13, %12 : vector<8x128xf32>
    %15 = arith.select %7, %5, %14 : vector<8x128xi1>, vector<8x128xf32>
    %cst_9 = arith.constant 1.05070102 : f32
    %16 = vector.broadcast %cst_9 : f32 to vector<8x128xf32>
    %17 = arith.mulf %16, %15 : vector<8x128xf32>
    %c0_10 = arith.constant 0 : index
    %c0_11 = arith.constant 0 : index
    %18 = vector.load %arg3[%c0_10, %c0_11] : memref<8x128xf32, #tpu.memory_space<vmem>>, vector<8x128xf32>
    tpu.vector_store %arg3[%c0_10, %c0_11], %17 {strides = array<i32>} : memref<8x128xf32, #tpu.memory_space<vmem>>, vector<8x128xf32>,
    return
  }
}

</mosaic_0001>

<bundles_post_ra>
// kernel: unitglobalnetup_forward.5
= control target key start
LH: loop header
LB: loop body
LE: loop exit
PB: predicated region body
PF: predicated region fallthrough
CT: control target
= control target key end

     0   :  { %v179_v0 = vmov 0.0   ;;  %vm180_vm0 = vmmov 0   ;;  %s258_s1 = inlined_call_operand.vmem [shape: f32[128,128], index: 1, kind: input, shape index: {}]   ;;  %s259_s0 = inlined_call_operand.vmem [shape: f32[8,128], index: 0, kind: input, shape index: {}]   ;;  %s260_s2 = inlined_call_operand.vmem [shape: f32[1,128], index: 2, kind: input, shape index: {}]   ;;  %s261_s3 = inlined_call_operand.vmem [shape: f32[8,128], index: 3, kind: output, shape index: {}]  }
   0x1   :  { %140 = vmatprep.subr.mxu0 %v179_v0  ;;  %v30_v1 = vld [vmem:[%s258_s1 + $0x78] sm:$0xff]  ;;  %v29_v2 = vld [vmem:[%s258_s1 + $0x70] sm:$0xff]  ;;  %172 = vmatprep.mubr.msk.f32.mxu0 %vm180_vm0, %v179_v0  ;;  %v28_v3 = vld [vmem:[%s258_s1 + $0x68] sm:$0xff] }
   0x2   :  { %141 = vmatpush3.msra.mxu0 %v30_v1  ;;  %v27_v4 = vld [vmem:[%s258_s1 + $0x60] sm:$0xff]  ;;  %v26_v5 = vld [vmem:[%s258_s1 + $0x58] sm:$0xff]  ;;  %v25_v6 = vld [vmem:[%s258_s1 + $0x50] sm:$0xff] }
   0x3   :  { %142 = vmatprep.subr.mxu0 %v179_v0  ;;  %v24_v7 = vld [vmem:[%s258_s1 + $0x48] sm:$0xff]  ;;  %v23_v8 = vld [vmem:[%s258_s1 + $0x40] sm:$0xff]  ;;  %v22_v9 = vld [vmem:[%s258_s1 + $0x38] sm:$0xff] }
   0x4   :  { %143 = vmatpush3.msra.mxu0 %v29_v2  ;;  %v21_v10 = vld [vmem:[%s258_s1 + $0x30] sm:$0xff]  ;;  %v20_v11 = vld [vmem:[%s258_s1 + $0x28] sm:$0xff]  ;;  %v19_v12 = vld [vmem:[%s258_s1 + $0x20] sm:$0xff] }
   0x5   :  { %144 = vmatprep.subr.mxu0 %v179_v0  ;;  %v18_v13 = vld [vmem:[%s258_s1 + $0x18] sm:$0xff]  ;;  %v17_v14 = vld [vmem:[%s258_s1 + $0x10] sm:$0xff]  ;;  %v16_v15 = vld [vmem:[%s258_s1 + $0x8] sm:$0xff] }
   0x6   :  { %145 = vmatpush3.msra.mxu0 %v28_v3  ;;  %v15_v16 = vld [vmem:[%s258_s1] sm:$0xff] }
   0x7   :  { %146 = vmatprep.subr.mxu0 %v179_v0  ;;  %v14_v17 = vld [vmem:[%s259_s0] sm:$0xff] }
   0x8   :  { %147 = vmatpush3.msra.mxu0 %v27_v4  ;;  %v121_v18 = vld [vmem:[%s260_s2] ss:$0 sm:$0xff] }
   0x9   :  { %148 = vmatprep.subr.mxu0 %v179_v0 }
   0xa   :  { %149 = vmatpush3.msra.mxu0 %v26_v5 }
   0xb   :  { %150 = vmatprep.subr.mxu0 %v179_v0 }
   0xc   :  { %151 = vmatpush3.msra.mxu0 %v25_v6 }
   0xd   :  { %152 = vmatprep.subr.mxu0 %v179_v0 }
   0xe   :  { %153 = vmatpush3.msra.mxu0 %v24_v7 }
   0xf   :  { %154 = vmatprep.subr.mxu0 %v179_v0 }
  0x10   :  { %155 = vmatpush3.msra.mxu0 %v23_v8 }
  0x11   :  { %156 = vmatprep.subr.mxu0 %v179_v0 }
  0x12   :  { %157 = vmatpush3.msra.mxu0 %v22_v9 }
  0x13   :  { %158 = vmatprep.subr.mxu0 %v179_v0 }
  0x14   :  { %159 = vmatpush3.msra.mxu0 %v21_v10 }
  0x15   :  { %160 = vmatprep.subr.mxu0 %v179_v0 }
  0x16   :  { %161 = vmatpush3.msra.mxu0 %v20_v11 }
  0x17   :  { %162 = vmatprep.subr.mxu0 %v179_v0 }
  0x18   :  { %163 = vmatpush3.msra.mxu0 %v19_v12 }
  0x19   :  { %164 = vmatprep.subr.mxu0 %v179_v0 }
  0x1a   :  { %165 = vmatpush3.msra.mxu0 %v18_v13 }
  0x1b   :  { %166 = vmatprep.subr.mxu0 %v179_v0 }
  0x1c   :  { %167 = vmatpush3.msra.mxu0 %v17_v14 }
  0x1d   :  { %168 = vmatprep.subr.mxu0 %v179_v0 }
  0x1e   :  { %169 = vmatpush3.msra.mxu0 %v16_v15 }
  0x1f   :  { %170 = vmatprep.subr.mxu0 %v179_v0 }
  0x20   :  { %171 = vmatpush3.msra.mxu0 %v15_v16 }
  0x21   :  { %173 = vmatmul.mubr.f32.vlgmr.msra.gmra.mxu0 %v14_v17 }
  0xe1   :  { %v104_v19 = vpop.f32.mrf.mxu0 }
  0xe2   :  { %v105_v20 = vadd.f32 %v121_v18, %v104_v19 }
  0xe3   :  { %v174_v21 = vpop.f32.mrf.mxu0 }
  0xe4   :  { %v109_v22 = vmin.f32 %v105_v20, 0.0  ;;  %vm108_vm1 = vcmp.gt.f32.partialorder %v105_v20, 0.0 }
  0xe6   :  { %v110_v23 = vmul.f32 1.442695, %v109_v22 }
  0xe8   :  { %177 = vpow2.f32 %v110_v23 }
  0xf5   :  { %v178_v24 = vpop.eup %177 }
  0xf6   :  { %v122_v25 = vadd.f32 -1.0, %v178_v24 }
  0xf8   :  { %v113_v26 = vmul.f32 1.6732632, %v122_v25 }
  0xfa   :  { %v114_v27 = vsel %vm108_vm1, %v105_v20, %v113_v26 }
  0xfb   :  { %v115_v28 = vmul.f32 1.050701, %v114_v27 }
  0xfd   :  { %116 = vst [vmem:[%s261_s3] sm:$0xff] %v115_v28 }

// kernel: unitglobalnetup_forward.3
= control target key start
LH: loop header
LB: loop body
LE: loop exit
PB: predicated region body
PF: predicated region fallthrough
CT: control target
= control target key end

     0   :  { %v344_v12 = vmov 0   ;;  %vm292_vm6 = vcmask 15360   ;;  %s587_s0 = inlined_call_operand.vmem [shape: f32[2,8,256], index: 0, kind: input, shape index: {}]   ;;  %s588_s1 = inlined_call_operand.vmem [shape: f32[8,1], index: 1, kind: input, shape index: {}]   ;;  %s589_s2 = inlined_call_operand.vmem [shape: f32[8,1], index: 2, kind: input, shape index: {}]   ;;  %s590_s3 = inlined_call_operand.vmem [shape: f32[2,256,128], index: 3, kind: output, shape index: {0}]   ;;  %s591_s4 = inlined_call_operand.vmem [shape: f32[8,2], index: 4, kind: output, shape index: {1}]  }
   0x1   :  { %v16_v0 = vld [vmem:[%s587_s0] sm:$0xff]  ;;  %v17_v1 = vld [vmem:[%s587_s0 + $0x8] sm:$0xff]  ;;  %v302_v2 = vld [vmem:[%s587_s0 + $0x10] sm:$0xff]  ;;  %340 = vset.pattern.permute.xlu0 %v344_v12  ;;  %341 = vset.pattern.permute.xlu1 %v344_v12 }
   0x2   :  { %v18_v3 = vadd.f32 %v17_v1, %v16_v0  ;;  %v22_v4 = vmul.f32 %v16_v0, %v16_v0  ;;  %v23_v5 = vmul.f32 %v17_v1, %v17_v1  ;;  %v303_v6 = vld [vmem:[%s587_s0 + $0x18] sm:$0xff]  ;;  %v35_v7 = vmul.f32 %v302_v2, %v302_v2  ;;  %v48_v25 = vld [vmem:[%s588_s1] sm:$0xff] }
   0x3   :  { %v36_v8 = vmul.f32 %v303_v6, %v303_v6  ;;  %v31_v10 = vadd.f32 %v303_v6, %v302_v2  ;;  %v50_v28 = vld [vmem:[%s589_s2] sm:$0xff] }
   0x4   :  { %19 = vadd.xlane.f32.xlu0 %v18_v3  ;;  %v24_v9 = vadd.f32 %v23_v5, %v22_v4 }
   0x5   :  { %v37_v11 = vadd.f32 %v36_v8, %v35_v7 }
   0x6   :  { %25 = vadd.xlane.f32.xlu1 %v24_v9 }
   0x8   :  { %32 = vadd.xlane.f32.xlu0 %v31_v10 }
   0xa   :  { %38 = vadd.xlane.f32.xlu1 %v37_v11 }
  0x8d   :  { %v20_v13 = vpop.xlane.xlu0 %19 }
  0x8f   :  { %v26_v14 = vpop.xlane.xlu1 %25 }
  0x91   :  { %v33_v15 = vpop.xlane.xlu0 %32 }
  0x92   :  { %v34_v16 = vadd.f32 %v33_v15, %v20_v13 }
  0x93   :  { %v39_v17 = vpop.xlane.xlu1 %38 }
  0x94   :  { %v41_v18 = vmul.f32 0.001953125, %v34_v16  ;;  %v40_v19 = vadd.f32 %v39_v17, %v26_v14 }
  0x96   :  { %v43_v20 = vmul.f32 %v41_v18, %v41_v18  ;;  %v42_v21 = vmul.f32 0.001953125, %v40_v19  ;;  %v53_v19 = vlaneseq }
  0x98   :  { %v44_v22 = vsub.f32 %v42_v21, %v43_v20  ;;  %v54_v20 = vand.u32 127, %v53_v19 }
  0x9a   :  { %v45_v23 = vmax.f32 %v44_v22, 0.0  ;;  %vm75_vm4 = vcmp.eq.s32.totalorder %v54_v20, 0  ;;  %vm189_vm5 = vcmp.eq.s32.totalorder %v54_v20, 1 }
  0x9c   :  { %v46_v24 = vadd.f32 1e-05, %v45_v23 }
  0x9e   :  { %342 = vrsqrt.f32 %v46_v24 }
  0xab   :  { %v343_v26 = vpop.eup %342 }
  0xac   :  { %v49_v27 = vmul.f32 %v343_v26, %v48_v25 }
  0xae   :  { %57 = vperm.xlu0 %340, %v49_v27   ;;  %v51_v29 = vmul.f32 %v49_v27, %v41_v18 }
  0xb0   :  { %v52_v30 = vsub.f32 %v50_v28, %v51_v29 }
  0xb2   :  { %64 = vperm.xlu1 %341, %v52_v30  }
 0x129   :  { %v58_v31 = vpop.permute.xlu0 %57 }
 0x12a   :  { %v60_v32 = vmul.f32 %v58_v31, %v16_v0  ;;  %v61_v33 = vmul.f32 %v58_v31, %v17_v1  ;;  %v179_v42 = vmul.f32 %v302_v2, %v58_v31  ;;  %v180_v43 = vmul.f32 %v303_v6, %v58_v31 }
 0x12d   :  { %v65_v34 = vpop.permute.xlu1 %64 }
 0x12e   :  { %v68_v35 = vadd.f32 %v65_v34, %v61_v33  ;;  %v67_v36 = vadd.f32 %v65_v34, %v60_v32  ;;  %v181_v44 = vadd.f32 %v179_v42, %v65_v34  ;;  %v182_v45 = vadd.f32 %v180_v43, %v65_v34 }
 0x130   :  { %vm70_vm0 = vcmp.ge.f32.partialorder %v68_v35, 0.0  ;;  %v72_v37 = vmul.f32 0.2, %v68_v35  ;;  %vm69_vm1 = vcmp.ge.f32.partialorder %v67_v36, 0.0  ;;  %v71_v38 = vmul.f32 0.2, %v67_v36 }
 0x131   :  { %v185_v46 = vmul.f32 0.2, %v181_v44  ;;  %v186_v47 = vmul.f32 0.2, %v182_v45  ;;  %vm183_vm2 = vcmp.ge.f32.partialorder %v181_v44, 0.0  ;;  %vm184_vm3 = vcmp.ge.f32.partialorder %v182_v45, 0.0 }
 0x132   :  { %v74_v39 = vsel %vm70_vm0, %v68_v35, %v72_v37  ;;  %v73_v40 = vsel %vm69_vm1, %v67_v36, %v71_v38 }
 0x133   :  { %113 = vxpose.xlu1.b32.start.end [1/1] (short) %v74_v39, 128  ;;  %81 = vxpose.xlu0.b32.start.end [1/1] (short) %v73_v40, 128  ;;  %v76_v41 = vadd.f32 %v74_v39, %v73_v40  ;;  %v187_v48 = vsel %vm183_vm2, %v181_v44, %v185_v46  ;;  %v388_v49 = vsel %vm184_vm3, %v182_v45, %v186_v47 }
 0x134   :  { %v190_v50 = vadd.f32 %v388_v49, %v187_v48 }
 0x196   :  { %77 = vadd.xlane.f32.xlu1 %v76_v41 }
 0x19c   :  { %191 = vadd.xlane.f32.xlu0 %v190_v50 }
 0x1af   :  { %v129_v51 = vpop.trf.xlu1  ;;  %v97_v52 = vpop.trf.xlu0 }
 0x1b0   :  { %161 = vst [vmem:[%s590_s3 + $0x80] sm:$0xff] %v129_v51  ;;  %145 = vst [vmem:[%s590_s3] sm:$0xff] %v97_v52 }
 0x1b3   :  { %v130_v53 = vpop.trf.xlu1  ;;  %v98_v54 = vpop.trf.xlu0 }
 0x1b4   :  { %162 = vst [vmem:[%s590_s3 + $0x88] sm:$0xff] %v130_v53  ;;  %146 = vst [vmem:[%s590_s3 + $0x8] sm:$0xff] %v98_v54 }
 0x1b7   :  { %v131_v55 = vpop.trf.xlu1  ;;  %v99_v56 = vpop.trf.xlu0 }
 0x1b8   :  { %163 = vst [vmem:[%s590_s3 + $0x90] sm:$0xff] %v131_v55  ;;  %147 = vst [vmem:[%s590_s3 + $0x10] sm:$0xff] %v99_v56 }
 0x1bb   :  { %v132_v57 = vpop.trf.xlu1  ;;  %v100_v58 = vpop.trf.xlu0 }
 0x1bc   :  { %164 = vst [vmem:[%s590_s3 + $0x98] sm:$0xff] %v132_v57  ;;  %148 = vst [vmem:[%s590_s3 + $0x18] sm:$0xff] %v100_v58 }
 0x1bf   :  { %v133_v59 = vpop.trf.xlu1  ;;  %v101_v60 = vpop.trf.xlu0 }
 0x1c0   :  { %165 = vst [vmem:[%s590_s3 + $0xa0] sm:$0xff] %v133_v59  ;;  %149 = vst [vmem:[%s590_s3 + $0x20] sm:$0xff] %v101_v60 }
 0x1c3   :  { %v134_v61 = vpop.trf.xlu1  ;;  %v102_v62 = vpop.trf.xlu0 }
 0x1c4   :  { %166 = vst [vmem:[%s590_s3 + $0xa8] sm:$0xff] %v134_v61  ;;  %150 = vst [vmem:[%s590_s3 + $0x28] sm:$0xff] %v102_v62 }
 0x1c7   :  { %v135_v63 = vpop.trf.xlu1  ;;  %v103_v0 = vpop.trf.xlu0 }
 0x1c8   :  { %167 = vst [vmem:[%s590_s3 + $0xb0] sm:$0xff] %v135_v63  ;;  %151 = vst [vmem:[%s590_s3 + $0x30] sm:$0xff] %v103_v0 }
 0x1c9   :  { %195 = vxpose.xlu1.b32.start.end [1/1] (short) %v187_v48, 128 }
 0x1cb   :  { %v136_v1 = vpop.trf.xlu1  ;;  %v104_v2 = vpop.trf.xlu0 }
 0x1cc   :  { %168 = vst [vmem:[%s590_s3 + $0xb8] sm:$0xff] %v136_v1  ;;  %152 = vst [vmem:[%s590_s3 + $0x38] sm:$0xff] %v104_v2 }
 0x1cf   :  { %v137_v3 = vpop.trf.xlu1  ;;  %v105_v4 = vpop.trf.xlu0 }
 0x1d0   :  { %169 = vst [vmem:[%s590_s3 + $0xc0] sm:$0xff] %v137_v3  ;;  %153 = vst [vmem:[%s590_s3 + $0x40] sm:$0xff] %v105_v4 }
 0x1d3   :  { %v138_v5 = vpop.trf.xlu1  ;;  %v106_v6 = vpop.trf.xlu0 }
 0x1d4   :  { %170 = vst [vmem:[%s590_s3 + $0xc8] sm:$0xff] %v138_v5  ;;  %154 = vst [vmem:[%s590_s3 + $0x48] sm:$0xff] %v106_v6 }
 0x1d7   :  { %v139_v7 = vpop.trf.xlu1  ;;  %v107_v8 = vpop.trf.xlu0 }
 0x1d8   :  { %171 = vst [vmem:[%s590_s3 + $0xd0] sm:$0xff] %v139_v7  ;;  %155 = vst [vmem:[%s590_s3 + $0x50] sm:$0xff] %v107_v8 }
 0x1db   :  { %v140_v9 = vpop.trf.xlu1  ;;  %v108_v10 = vpop.trf.xlu0 }
 0x1dc   :  { %172 = vst [vmem:[%s590_s3 + $0xd8] sm:$0xff] %v140_v9  ;;  %156 = vst [vmem:[%s590_s3 + $0x58] sm:$0xff] %v108_v10 }
 0x1df   :  { %v141_v11 = vpop.trf.xlu1  ;;  %v109_v12 = vpop.trf.xlu0 }
 0x1e0   :  { %173 = vst [vmem:[%s590_s3 + $0xe0] sm:$0xff] %v141_v11  ;;  %157 = vst [vmem:[%s590_s3 + $0x60] sm:$0xff] %v109_v12 }
 0x1e3   :  { %v142_v13 = vpop.trf.xlu1  ;;  %v110_v14 = vpop.trf.xlu0 }
 0x1e4   :  { %174 = vst [vmem:[%s590_s3 + $0xe8] sm:$0xff] %v142_v13  ;;  %158 = vst [vmem:[%s590_s3 + $0x68] sm:$0xff] %v110_v14 }
 0x1e7   :  { %v143_v15 = vpop.trf.xlu1  ;;  %v111_v16 = vpop.trf.xlu0 }
 0x1e8   :  { %175 = vst [vmem:[%s590_s3 + $0xf0] sm:$0xff] %v143_v15  ;;  %159 = vst [vmem:[%s590_s3 + $0x70] sm:$0xff] %v111_v16 }
 0x1eb   :  { %v144_v17 = vpop.trf.xlu1  ;;  %v112_v18 = vpop.trf.xlu0 }
 0x1ec   :  { %176 = vst [vmem:[%s590_s3 + $0xf8] sm:$0xff] %v144_v17  ;;  %160 = vst [vmem:[%s590_s3 + $0x78] sm:$0xff] %v112_v18 }
 0x206   :  { %227 = vxpose.xlu1.b32.start.end [1/1] (short) %v388_v49, 128 }
 0x21f   :  { %v78_v21 = vpop.xlane.xlu1 %77 }
 0x220   :  { %v79_v22 = vmul.f32 0.00390625, %v78_v21 }
 0x222   :  { %v80_v25 = vsel %vm75_vm4, %v79_v22, 0.0 }
 0x225   :  { %v192_v23 = vpop.xlane.xlu0 %191 }
 0x226   :  { %v193_v24 = vmul.f32 0.00390625, %v192_v23 }
 0x228   :  { %v194_v26 = vsel %vm189_vm5, %v193_v24, %v80_v25 }
 0x229   :  { %293 = vst.msk [vmem:[%s591_s4] sm:$0xff] %vm292_vm6, %v194_v26 }
 0x245   :  { %v211_v27 = vpop.trf.xlu1 }
 0x246   :  { %306 = vst [vmem:[%s590_s3 + $0x100] sm:$0xff] %v211_v27 }
 0x249   :  { %v212_v28 = vpop.trf.xlu1 }
 0x24a   :  { %307 = vst [vmem:[%s590_s3 + $0x108] sm:$0xff] %v212_v28 }
 0x24d   :  { %v213_v29 = vpop.trf.xlu1 }
 0x24e   :  { %308 = vst [vmem:[%s590_s3 + $0x110] sm:$0xff] %v213_v29 }
 0x251   :  { %v214_v30 = vpop.trf.xlu1 }
 0x252   :  { %309 = vst [vmem:[%s590_s3 + $0x118] sm:$0xff] %v214_v30 }
 0x255   :  { %v215_v31 = vpop.trf.xlu1 }
 0x256   :  { %310 = vst [vmem:[%s590_s3 + $0x120] sm:$0xff] %v215_v31 }
 0x259   :  { %v216_v32 = vpop.trf.xlu1 }
 0x25a   :  { %311 = vst [vmem:[%s590_s3 + $0x128] sm:$0xff] %v216_v32 }
 0x25d   :  { %v217_v33 = vpop.trf.xlu1 }
 0x25e   :  { %312 = vst [vmem:[%s590_s3 + $0x130] sm:$0xff] %v217_v33 }
 0x261   :  { %v218_v34 = vpop.trf.xlu1 }
 0x262   :  { %313 = vst [vmem:[%s590_s3 + $0x138] sm:$0xff] %v218_v34 }
 0x265   :  { %v219_v35 = vpop.trf.xlu1 }
 0x266   :  { %314 = vst [vmem:[%s590_s3 + $0x140] sm:$0xff] %v219_v35 }
 0x269   :  { %v220_v36 = vpop.trf.xlu1 }
 0x26a   :  { %315 = vst [vmem:[%s590_s3 + $0x148] sm:$0xff] %v220_v36 }
 0x26d   :  { %v221_v37 = vpop.trf.xlu1 }
 0x26e   :  { %316 = vst [vmem:[%s590_s3 + $0x150] sm:$0xff] %v221_v37 }
 0x271   :  { %v222_v38 = vpop.trf.xlu1 }
 0x272   :  { %317 = vst [vmem:[%s590_s3 + $0x158] sm:$0xff] %v222_v38 }
 0x275   :  { %v223_v39 = vpop.trf.xlu1 }
 0x276   :  { %318 = vst [vmem:[%s590_s3 + $0x160] sm:$0xff] %v223_v39 }
 0x279   :  { %v224_v40 = vpop.trf.xlu1 }
 0x27a   :  { %319 = vst [vmem:[%s590_s3 + $0x168] sm:$0xff] %v224_v40 }
 0x27d   :  { %v225_v41 = vpop.trf.xlu1 }
 0x27e   :  { %320 = vst [vmem:[%s590_s3 + $0x170] sm:$0xff] %v225_v41 }
 0x281   :  { %v226_v42 = vpop.trf.xlu1 }
 0x282   :  { %321 = vst [vmem:[%s590_s3 + $0x178] sm:$0xff] %v226_v42 }
 0x285   :  { %v243_v43 = vpop.trf.xlu1 }
 0x286   :  { %322 = vst [vmem:[%s590_s3 + $0x180] sm:$0xff] %v243_v43 }
 0x289   :  { %v244_v44 = vpop.trf.xlu1 }
 0x28a   :  { %323 = vst [vmem:[%s590_s3 + $0x188] sm:$0xff] %v244_v44 }
 0x28d   :  { %v245_v45 = vpop.trf.xlu1 }
 0x28e   :  { %324 = vst [vmem:[%s590_s3 + $0x190] sm:$0xff] %v245_v45 }
 0x291   :  { %v246_v46 = vpop.trf.xlu1 }
 0x292   :  { %325 = vst [vmem:[%s590_s3 + $0x198] sm:$0xff] %v246_v46 }
 0x295   :  { %v247_v47 = vpop.trf.xlu1 }
 0x296   :  { %326 = vst [vmem:[%s590_s3 + $0x1a0] sm:$0xff] %v247_v47 }
 0x299   :  { %v248_v48 = vpop.trf.xlu1 }
 0x29a   :  { %327 = vst [vmem:[%s590_s3 + $0x1a8] sm:$0xff] %v248_v48 }
 0x29d   :  { %v249_v49 = vpop.trf.xlu1 }
 0x29e   :  { %328 = vst [vmem:[%s590_s3 + $0x1b0] sm:$0xff] %v249_v49 }
 0x2a1   :  { %v250_v50 = vpop.trf.xlu1 }
 0x2a2   :  { %329 = vst [vmem:[%s590_s3 + $0x1b8] sm:$0xff] %v250_v50 }
 0x2a5   :  { %v251_v51 = vpop.trf.xlu1 }
 0x2a6   :  { %330 = vst [vmem:[%s590_s3 + $0x1c0] sm:$0xff] %v251_v51 }
 0x2a9   :  { %v252_v52 = vpop.trf.xlu1 }
 0x2aa   :  { %331 = vst [vmem:[%s590_s3 + $0x1c8] sm:$0xff] %v252_v52 }
 0x2ad   :  { %v253_v53 = vpop.trf.xlu1 }
 0x2ae   :  { %332 = vst [vmem:[%s590_s3 + $0x1d0] sm:$0xff] %v253_v53 }
 0x2b1   :  { %v254_v54 = vpop.trf.xlu1 }
 0x2b2   :  { %333 = vst [vmem:[%s590_s3 + $0x1d8] sm:$0xff] %v254_v54 }
 0x2b5   :  { %v255_v55 = vpop.trf.xlu1 }
 0x2b6   :  { %334 = vst [vmem:[%s590_s3 + $0x1e0] sm:$0xff] %v255_v55 }
 0x2b9   :  { %v256_v56 = vpop.trf.xlu1 }
 0x2ba   :  { %335 = vst [vmem:[%s590_s3 + $0x1e8] sm:$0xff] %v256_v56 }
 0x2bd   :  { %v257_v57 = vpop.trf.xlu1 }
 0x2be   :  { %336 = vst [vmem:[%s590_s3 + $0x1f0] sm:$0xff] %v257_v57 }
 0x2c1   :  { %v258_v58 = vpop.trf.xlu1 }
 0x2c2   :  { %337 = vst [vmem:[%s590_s3 + $0x1f8] sm:$0xff] %v258_v58 }

// kernel: unitglobalnetup_forward.4
= control target key start
LH: loop header
LB: loop body
LE: loop exit
PB: predicated region body
PF: predicated region fallthrough
CT: control target
= control target key end

     0   :  { %8 = vsyncpa [#allocation3], 0  ;;  %s4926_s12 = smov 0   ;;  %s4928_s13 = smov 0   ;;  %s6552_s0 = inlined_call_operand.vmem [shape: f32[960,128], index: 0, kind: input, shape index: {}]   ;;  %s6553_s1 = inlined_call_operand.hbm [shape: f32[2048,128], index: 1, kind: input, shape index: {}]   ;;  %s6554_s2 = inlined_call_operand.vmem [shape: f32[1,128], index: 2, kind: input, shape index: {}]   ;;  %s6555_s3 = inlined_call_operand.vmem [shape: f32[2,128,384], index: 3, kind: output, shape index: {}]  }
   0x1   :  { %s4930_s14 = smov 0  }
   0x2 LB: > { %s4075_s15 = sadd.s32 4294967295, %s4900_s14   ;;  %s29_s16 = sadd.s32 1, %s4896_s13  ;;  %s4900_s14 = sphi %s4930_s14, %s14_s14   ;;  %s4896_s13 = sphi %s4928_s13, %s6564_s13   ;;  %s4892_s12 = sphi %s4926_s12, %s6563_s12  }
   0x3   : > { %p31_p0 = scmp.ge.s32.totalorder %s29_s16, 2  ;;  %p4077_p1 = scmp.ge.s32.totalorder %s4900_s14, 1 }
   0x4   : > { %p146_p2 = scmp.lt.s32.totalorder %s4900_s14, 3  ;;  %p4951_p4 = scmp.eq.s32.totalorder %s4075_s15, 0 }
   0x5   : > { %s6566_s16 = smov (%p31_p0, %s29_s16), 0  ;;  %s4902_s19 = smov [#allocation2]  }
   0x6   : > { %p4947_p3 = pnand %p4077_p1, %p146_p2  ;;  %s160_s20 = sshll.u32 %s4902_s19, 4  ;;  %s161_s20 = int_to_ptr.vmem [resolvable:$true] %s160_s20 }
   0x7   : > { %s4859_s21 = scalar_lea.vmem %s161_s20, 32768  ;;  %p4867_p11 = scmp.lt.s32.totalorder %s161_s20, %s161_s20 }
   0x8   : > { %p4813_p5 = pneg %p4947_p3  ;;  %p4860_p8 = scmp.ne.s32.totalorder %s161_s20, %s4859_s21 }
   0x9   : > { %p4868_p12 = scmp.lt.s32.totalorder %s4859_s21, %s4859_s21 }
   0xa   : > { %p4814_p6 = pnand %p4951_p4, %p4813_p5 }
   0xb   : > { %p4869_p13 = por %p4868_p12, %p4867_p11 }
   0xc   : > { %p4850_p7 = pneg %p4814_p6 }
   0xe   : > { %p4862_p9 = pnand %p4860_p8, %p4850_p7 }
  0x10   : > { %p4863_p10 = pneg %p4862_p9 }
  0x12   : > { %p4870_p0 = pnand %p4869_p13, %p4863_p10 }
  0x14   : > { %4873 = shalt.err (!%p4870_p0)
}
  0x15   : > { %s4903_s22 = smov 128   ;;  %s4904_s23 = smov 8  }
  0x16   : > { %4816 = dma.hbm_to_vmem [thread:$0]  (!%p4814_p6), %s6553_s1, 32768, %s161_s20, [#allocation3], %s4903_s22, %s4903_s22, %s4904_s23  }
  0x17   : > { %191 = sbr.rel (%p4947_p3) target bundleno = 1181 (0x49d), region = 32 }
  0x1c   : > { %4887 = dma.done.wait (%p4951_p4), [#allocation3], 32768  }
  0x1d   : > { %4889 = vsyncadd (%p4951_p4), [#allocation3], 4294934528  ;;  %v6556_v0 = vmov 0.0   ;;  %v1067_v1 = vld [vmem:[#allocation2 + $0x78] sm:$0xff]  ;;  %v1066_v3 = vld [vmem:[#allocation2 + $0x70] sm:$0xff]  ;;  %s227_s26 = smul.u32 60, %s4892_s12 }
  0x1e   : > { %1315 = vmatprep.subr.mxu0 %v6556_v0  ;;  %1620 = vmatprep.subr.mxu1 %v6556_v0  ;;  %v1099_v2 = vld [vmem:[#allocation2 + $0x178] sm:$0xff]  ;;  %v1098_v4 = vld [vmem:[#allocation2 + $0x170] sm:$0xff]  ;;  %v1065_v5 = vld [vmem:[#allocation2 + $0x68] sm:$0xff]  ;;  %p238_p2 = scmp.lt.s32.totalorder %s4892_s12, 1 }
  0x1f   : > { %1316 = vmatpush1.msra.mxu0 %v1067_v1  ;;  %1621 = vmatpush1.msra.mxu1 %v1099_v2  ;;  %v1097_v6 = vld [vmem:[#allocation2 + $0x168] sm:$0xff]  ;;  %v1064_v7 = vld [vmem:[#allocation2 + $0x60] sm:$0xff]  ;;  %v1063_v9 = vld [vmem:[#allocation2 + $0x58] sm:$0xff]  ;;  %p228_p1 = scmp.lt.s32.totalorder %s227_s26, 119 }
  0x20   : > { %1317 = vmatprep.subr.mxu0 %v6556_v0  ;;  %1622 = vmatprep.subr.mxu1 %v6556_v0  ;;  %v1096_v8 = vld [vmem:[#allocation2 + $0x160] sm:$0xff]  ;;  %v1095_v10 = vld [vmem:[#allocation2 + $0x158] sm:$0xff]  ;;  %v1062_v11 = vld [vmem:[#allocation2 + $0x50] sm:$0xff]  ;;  %s6570_s12 = smov (!%p238_p2, %s4892_s12), 1 }
  0x21   : > { %1318 = vmatpush1.msra.mxu0 %v1066_v3  ;;  %1623 = vmatpush1.msra.mxu1 %v1098_v4  ;;  %v1094_v12 = vld [vmem:[#allocation2 + $0x150] sm:$0xff]  ;;  %v1061_v13 = vld [vmem:[#allocation2 + $0x48] sm:$0xff]  ;;  %v1060_v15 = vld [vmem:[#allocation2 + $0x40] sm:$0xff]  ;;  %s6568_s26 = smov (!%p228_p1, %s227_s26), 119  ;;  %s4808_s8 = smul.u32 384, %s6570_s12 }
  0x22   : > { %1319 = vmatprep.subr.mxu0 %v6556_v0  ;;  %1624 = vmatprep.subr.mxu1 %v6556_v0  ;;  %v1093_v14 = vld [vmem:[#allocation2 + $0x148] sm:$0xff]  ;;  %v1092_v16 = vld [vmem:[#allocation2 + $0x140] sm:$0xff]  ;;  %v1059_v17 = vld [vmem:[#allocation2 + $0x38] sm:$0xff]  ;;  %s4083_s27 = sshll.u32 %s6568_s26, 3 }
  0x23   : > { %1320 = vmatpush1.msra.mxu0 %v1065_v5  ;;  %1625 = vmatpush1.msra.mxu1 %v1097_v6  ;;  %v1091_v18 = vld [vmem:[#allocation2 + $0x138] sm:$0xff]  ;;  %v1058_v19 = vld [vmem:[#allocation2 + $0x30] sm:$0xff]  ;;  %v1057_v21 = vld [vmem:[#allocation2 + $0x28] sm:$0xff]  ;;  %s5030_s30 = scalar_lea.vmem %s6552_s0, %s4083_s27  ;;  %s6477_s11 = scalar_lea.vmem %s6555_s3, %s4808_s8 }
  0x24   : > { %1321 = vmatprep.subr.mxu0 %v6556_v0  ;;  %1626 = vmatprep.subr.mxu1 %v6556_v0  ;;  %v1090_v20 = vld [vmem:[#allocation2 + $0x130] sm:$0xff]  ;;  %v1089_v22 = vld [vmem:[#allocation2 + $0x128] sm:$0xff]  ;;  %v1056_v23 = vld [vmem:[#allocation2 + $0x20] sm:$0xff] }
  0x25   : > { %1322 = vmatpush1.msra.mxu0 %v1064_v7  ;;  %1627 = vmatpush1.msra.mxu1 %v1096_v8  ;;  %v1088_v24 = vld [vmem:[#allocation2 + $0x120] sm:$0xff]  ;;  %v1055_v25 = vld [vmem:[#allocation2 + $0x18] sm:$0xff]  ;;  %v1054_v27 = vld [vmem:[#allocation2 + $0x10] sm:$0xff] }
  0x26   : > { %1323 = vmatprep.subr.mxu0 %v6556_v0  ;;  %1628 = vmatprep.subr.mxu1 %v6556_v0  ;;  %v1087_v26 = vld [vmem:[#allocation2 + $0x118] sm:$0xff]  ;;  %v1086_v28 = vld [vmem:[#allocation2 + $0x110] sm:$0xff]  ;;  %v1053_v29 = vld [vmem:[#allocation2 + $0x8] sm:$0xff] }
  0x27   : > { %1324 = vmatpush1.msra.mxu0 %v1063_v9  ;;  %1629 = vmatpush1.msra.mxu1 %v1095_v10  ;;  %v1085_v30 = vld [vmem:[#allocation2 + $0x108] sm:$0xff]  ;;  %v1052_v31 = vld [vmem:[#allocation2] sm:$0xff]  ;;  %v1083_v33 = vld [vmem:[#allocation2 + $0xf8] sm:$0xff] }
  0x28   : > { %1325 = vmatprep.subr.mxu0 %v6556_v0  ;;  %1630 = vmatprep.subr.mxu1 %v6556_v0  ;;  %v1084_v32 = vld [vmem:[#allocation2 + $0x100] sm:$0xff]  ;;  %v1115_v34 = vld [vmem:[#allocation2 + $0x1f8] sm:$0xff]  ;;  %v1082_v35 = vld [vmem:[#allocation2 + $0xf0] sm:$0xff] }
  0x29   : > { %1326 = vmatpush1.msra.mxu0 %v1062_v11  ;;  %1631 = vmatpush1.msra.mxu1 %v1094_v12  ;;  %v1114_v36 = vld [vmem:[#allocation2 + $0x1f0] sm:$0xff]  ;;  %v1081_v37 = vld [vmem:[#allocation2 + $0xe8] sm:$0xff]  ;;  %v1080_v39 = vld [vmem:[#allocation2 + $0xe0] sm:$0xff] }
  0x2a   : > { %1327 = vmatprep.subr.mxu0 %v6556_v0  ;;  %1632 = vmatprep.subr.mxu1 %v6556_v0  ;;  %v1113_v38 = vld [vmem:[#allocation2 + $0x1e8] sm:$0xff]  ;;  %v1112_v40 = vld [vmem:[#allocation2 + $0x1e0] sm:$0xff]  ;;  %v1079_v41 = vld [vmem:[#allocation2 + $0xd8] sm:$0xff] }
  0x2b   : > { %1328 = vmatpush1.msra.mxu0 %v1061_v13  ;;  %1633 = vmatpush1.msra.mxu1 %v1093_v14  ;;  %v1111_v42 = vld [vmem:[#allocation2 + $0x1d8] sm:$0xff]  ;;  %v1078_v43 = vld [vmem:[#allocation2 + $0xd0] sm:$0xff]  ;;  %v1077_v45 = vld [vmem:[#allocation2 + $0xc8] sm:$0xff] }
  0x2c   : > { %1329 = vmatprep.subr.mxu0 %v6556_v0  ;;  %1634 = vmatprep.subr.mxu1 %v6556_v0  ;;  %v1110_v44 = vld [vmem:[#allocation2 + $0x1d0] sm:$0xff]  ;;  %v1109_v46 = vld [vmem:[#allocation2 + $0x1c8] sm:$0xff]  ;;  %v1076_v47 = vld [vmem:[#allocation2 + $0xc0] sm:$0xff] }
  0x2d   : > { %1330 = vmatpush1.msra.mxu0 %v1060_v15  ;;  %1635 = vmatpush1.msra.mxu1 %v1092_v16  ;;  %v1108_v48 = vld [vmem:[#allocation2 + $0x1c0] sm:$0xff]  ;;  %v1075_v49 = vld [vmem:[#allocation2 + $0xb8] sm:$0xff]  ;;  %v1074_v51 = vld [vmem:[#allocation2 + $0xb0] sm:$0xff] }
  0x2e   : > { %1331 = vmatprep.subr.mxu0 %v6556_v0  ;;  %1636 = vmatprep.subr.mxu1 %v6556_v0  ;;  %v1107_v50 = vld [vmem:[#allocation2 + $0x1b8] sm:$0xff]  ;;  %v1106_v52 = vld [vmem:[#allocation2 + $0x1b0] sm:$0xff]  ;;  %v1073_v53 = vld [vmem:[#allocation2 + $0xa8] sm:$0xff] }
  0x2f   : > { %1332 = vmatpush1.msra.mxu0 %v1059_v17  ;;  %1637 = vmatpush1.msra.mxu1 %v1091_v18  ;;  %v1105_v54 = vld [vmem:[#allocation2 + $0x1a8] sm:$0xff]  ;;  %v1072_v55 = vld [vmem:[#allocation2 + $0xa0] sm:$0xff]  ;;  %v1071_v57 = vld [vmem:[#allocation2 + $0x98] sm:$0xff] }
  0x30   : > { %1333 = vmatprep.subr.mxu0 %v6556_v0  ;;  %1638 = vmatprep.subr.mxu1 %v6556_v0  ;;  %v1104_v56 = vld [vmem:[#allocation2 + $0x1a0] sm:$0xff]  ;;  %v1103_v58 = vld [vmem:[#allocation2 + $0x198] sm:$0xff]  ;;  %v1070_v59 = vld [vmem:[#allocation2 + $0x90] sm:$0xff] }
  0x31   : > { %1334 = vmatpush1.msra.mxu0 %v1058_v19  ;;  %1639 = vmatpush1.msra.mxu1 %v1090_v20  ;;  %v1102_v60 = vld [vmem:[#allocation2 + $0x190] sm:$0xff]  ;;  %v1069_v61 = vld [vmem:[#allocation2 + $0x88] sm:$0xff]  ;;  %v1068_v1 = vld [vmem:[#allocation2 + $0x80] sm:$0xff] }
  0x32   : > { %1335 = vmatprep.subr.mxu0 %v6556_v0  ;;  %1640 = vmatprep.subr.mxu1 %v6556_v0  ;;  %v1101_v62 = vld [vmem:[#allocation2 + $0x188] sm:$0xff]  ;;  %v254_v2 = vld [vmem:[%s5030_s30] sm:$0xff]  ;;  %v1131_v6 = vld [vmem:[#allocation2 + $0x278] sm:$0xff] }
  0x33   : > { %1336 = vmatpush1.msra.mxu0 %v1057_v21  ;;  %1641 = vmatpush1.msra.mxu1 %v1089_v22  ;;  %v4085_v63 = vld [vmem:[%s5030_s30 + $0x1] sm:$0xff]  ;;  %v4086_v7 = vld [vmem:[%s5030_s30 + $0x9] sm:$0xff]  ;;  %v1163_v8 = vld [vmem:[#allocation2 + $0x378] sm:$0xff] }
  0x34   : > { %1337 = vmatprep.subr.mxu0 %v6556_v0  ;;  %1642 = vmatprep.subr.mxu1 %v6556_v0  ;;  %v1100_v3 = vld [vmem:[#allocation2 + $0x180] sm:$0xff]  ;;  %v255_v9 = vld [vmem:[%s5030_s30 + $0x8] sm:$0xff]  ;;  %v4087_v12 = vld [vmem:[%s5030_s30 + $0x11] sm:$0xff] }
  0x35   : > { %1338 = vmatpush1.msra.mxu0 %v1056_v23  ;;  %1643 = vmatpush1.msra.mxu1 %v1088_v24  ;;  %v4181_v4 = vld [vmem:[%s5030_s30 + $0x3] sm:$0xff]  ;;  %v4182_v10 = vld [vmem:[%s5030_s30 + $0xb] sm:$0xff]  ;;  %v4183_v14 = vld [vmem:[%s5030_s30 + $0x13] sm:$0xff] }
  0x36   : > { %1339 = vmatprep.subr.mxu0 %v6556_v0  ;;  %1644 = vmatprep.subr.mxu1 %v6556_v0  ;;  %v4133_v5 = vld [vmem:[%s5030_s30 + $0x2] sm:$0xff]  ;;  %v4134_v11 = vld [vmem:[%s5030_s30 + $0xa] sm:$0xff]  ;;  %v4088_v17 = vld [vmem:[%s5030_s30 + $0x19] sm:$0xff] }
  0x37   : > { %1340 = vmatpush1.msra.mxu0 %v1055_v25  ;;  %1645 = vmatpush1.msra.mxu1 %v1087_v26  ;;  %v1130_v13 = vld [vmem:[#allocation2 + $0x270] sm:$0xff]  ;;  %v4184_v19 = vld [vmem:[%s5030_s30 + $0x1b] sm:$0xff]  ;;  %v1129_v20 = vld [vmem:[#allocation2 + $0x268] sm:$0xff] }
  0x38   : > { %1341 = vmatprep.subr.mxu0 %v6556_v0  ;;  %1646 = vmatprep.subr.mxu1 %v6556_v0  ;;  %v256_v15 = vld [vmem:[%s5030_s30 + $0x10] sm:$0xff]  ;;  %v257_v21 = vld [vmem:[%s5030_s30 + $0x18] sm:$0xff]  ;;  %v4089_v22 = vld [vmem:[%s5030_s30 + $0x21] sm:$0xff] }
  0x39   : > { %1342 = vmatpush1.msra.mxu0 %v1054_v27  ;;  %1647 = vmatpush1.msra.mxu1 %v1086_v28  ;;  %v1162_v16 = vld [vmem:[#allocation2 + $0x370] sm:$0xff]  ;;  %v1161_v23 = vld [vmem:[#allocation2 + $0x368] sm:$0xff]  ;;  %v4136_v24 = vld [vmem:[%s5030_s30 + $0x1a] sm:$0xff] }
  0x3a   : > { %1343 = vmatprep.subr.mxu0 %v6556_v0  ;;  %1648 = vmatprep.subr.mxu1 %v6556_v0  ;;  %v4135_v18 = vld [vmem:[%s5030_s30 + $0x12] sm:$0xff]  ;;  %v4185_v25 = vld [vmem:[%s5030_s30 + $0x23] sm:$0xff] }
  0x3b   : > { %1344 = vmatpush1.msra.mxu0 %v1053_v29  ;;  %1649 = vmatpush1.msra.mxu1 %v1085_v30  ;;  %v1128_v26 = vld [vmem:[#allocation2 + $0x260] sm:$0xff]  ;;  %v4090_v28 = vld [vmem:[%s5030_s30 + $0x29] sm:$0xff] }
  0x3c   : > { %1345 = vmatprep.subr.mxu0 %v6556_v0  ;;  %1650 = vmatprep.subr.mxu1 %v6556_v0  ;;  %v258_v27 = vld [vmem:[%s5030_s30 + $0x20] sm:$0xff] }
  0x3d   : > { %1346 = vmatpush1.msra.mxu0 %v1052_v31  ;;  %1651 = vmatpush1.msra.mxu1 %v1084_v32  ;;  %v1160_v29 = vld [vmem:[#allocation2 + $0x360] sm:$0xff]  ;;  %v4186_v31 = vld [vmem:[%s5030_s30 + $0x2b] sm:$0xff]  ;;  %v1127_v32 = vld [vmem:[#allocation2 + $0x258] sm:$0xff] }
  0x3e   : > { %1347 = vmatprep.subr.mxu0 %v6556_v0  ;;  %1652 = vmatprep.subr.mxu1 %v6556_v0  ;;  %v4137_v30 = vld [vmem:[%s5030_s30 + $0x22] sm:$0xff] }
  0x3f   : > { %1348 = vmatpush2.msra.mxu0 %v1083_v33  ;;  %1653 = vmatpush2.msra.mxu1 %v1115_v34  ;;  %v259_v33 = vld [vmem:[%s5030_s30 + $0x28] sm:$0xff]  ;;  %v4091_v34 = vld [vmem:[%s5030_s30 + $0x31] sm:$0xff] }
  0x40   : > { %1349 = vmatprep.subr.mxu0 %v6556_v0  ;;  %1654 = vmatprep.subr.mxu1 %v6556_v0 }
  0x41   : > { %1350 = vmatpush2.msra.mxu0 %v1082_v35  ;;  %1655 = vmatpush2.msra.mxu1 %v1114_v36  ;;  %v1159_v35 = vld [vmem:[#allocation2 + $0x358] sm:$0xff]  ;;  %v4138_v36 = vld [vmem:[%s5030_s30 + $0x2a] sm:$0xff] }
  0x42   : > { %1351 = vmatprep.subr.mxu0 %v6556_v0  ;;  %1656 = vmatprep.subr.mxu1 %v6556_v0 }
  0x43   : > { %1352 = vmatpush2.msra.mxu0 %v1081_v37  ;;  %1657 = vmatpush2.msra.mxu1 %v1113_v38  ;;  %v4187_v37 = vld [vmem:[%s5030_s30 + $0x33] sm:$0xff] }
  0x44   : > { %1353 = vmatprep.subr.mxu0 %v6556_v0  ;;  %1658 = vmatprep.subr.mxu1 %v6556_v0  ;;  %v1126_v38 = vld [vmem:[#allocation2 + $0x250] sm:$0xff] }
  0x45   : > { %1354 = vmatpush2.msra.mxu0 %v1080_v39  ;;  %1659 = vmatpush2.msra.mxu1 %v1112_v40  ;;  %v260_v39 = vld [vmem:[%s5030_s30 + $0x30] sm:$0xff]  ;;  %v4092_v40 = vld [vmem:[%s5030_s30 + $0x39] sm:$0xff] }
  0x46   : > { %1355 = vmatprep.subr.mxu0 %v6556_v0  ;;  %1660 = vmatprep.subr.mxu1 %v6556_v0 }
  0x47   : > { %1356 = vmatpush2.msra.mxu0 %v1079_v41  ;;  %1661 = vmatpush2.msra.mxu1 %v1111_v42  ;;  %v1158_v41 = vld [vmem:[#allocation2 + $0x350] sm:$0xff] }
  0x48   : > { %1357 = vmatprep.subr.mxu0 %v6556_v0  ;;  %1662 = vmatprep.subr.mxu1 %v6556_v0  ;;  %v4139_v42 = vld [vmem:[%s5030_s30 + $0x32] sm:$0xff] }
  0x49   : > { %1358 = vmatpush2.msra.mxu0 %v1078_v43  ;;  %1663 = vmatpush2.msra.mxu1 %v1110_v44  ;;  %v4188_v43 = vld [vmem:[%s5030_s30 + $0x3b] sm:$0xff]  ;;  %v1125_v44 = vld [vmem:[#allocation2 + $0x248] sm:$0xff] }
  0x4a   : > { %1359 = vmatprep.subr.mxu0 %v6556_v0  ;;  %1664 = vmatprep.subr.mxu1 %v6556_v0 }
  0x4b   : > { %1360 = vmatpush2.msra.mxu0 %v1077_v45  ;;  %1665 = vmatpush2.msra.mxu1 %v1109_v46  ;;  %v261_v45 = vld [vmem:[%s5030_s30 + $0x38] sm:$0xff]  ;;  %v4093_v46 = vld [vmem:[%s5030_s30 + $0x41] sm:$0xff] }
  0x4c   : > { %1361 = vmatprep.subr.mxu0 %v6556_v0  ;;  %1666 = vmatprep.subr.mxu1 %v6556_v0 }
  0x4d   : > { %1362 = vmatpush2.msra.mxu0 %v1076_v47  ;;  %1667 = vmatpush2.msra.mxu1 %v1108_v48  ;;  %v1157_v47 = vld [vmem:[#allocation2 + $0x348] sm:$0xff]  ;;  %v4140_v48 = vld [vmem:[%s5030_s30 + $0x3a] sm:$0xff] }
  0x4e   : > { %1363 = vmatprep.subr.mxu0 %v6556_v0  ;;  %1668 = vmatprep.subr.mxu1 %v6556_v0 }
  0x4f   : > { %1364 = vmatpush2.msra.mxu0 %v1075_v49  ;;  %1669 = vmatpush2.msra.mxu1 %v1107_v50  ;;  %v4189_v49 = vld [vmem:[%s5030_s30 + $0x43] sm:$0xff] }
  0x50   : > { %1365 = vmatprep.subr.mxu0 %v6556_v0  ;;  %1670 = vmatprep.subr.mxu1 %v6556_v0  ;;  %v1124_v50 = vld [vmem:[#allocation2 + $0x240] sm:$0xff] }
  0x51   : > { %1366 = vmatpush2.msra.mxu0 %v1074_v51  ;;  %1671 = vmatpush2.msra.mxu1 %v1106_v52  ;;  %v262_v51 = vld [vmem:[%s5030_s30 + $0x40] sm:$0xff]  ;;  %v4094_v52 = vld [vmem:[%s5030_s30 + $0x49] sm:$0xff] }
  0x52   : > { %1367 = vmatprep.subr.mxu0 %v6556_v0  ;;  %1672 = vmatprep.subr.mxu1 %v6556_v0 }
  0x53   : > { %1368 = vmatpush2.msra.mxu0 %v1073_v53  ;;  %1673 = vmatpush2.msra.mxu1 %v1105_v54  ;;  %v1156_v53 = vld [vmem:[#allocation2 + $0x340] sm:$0xff] }
  0x54   : > { %1369 = vmatprep.subr.mxu0 %v6556_v0  ;;  %1674 = vmatprep.subr.mxu1 %v6556_v0  ;;  %v4141_v54 = vld [vmem:[%s5030_s30 + $0x42] sm:$0xff] }
  0x55   : > { %1370 = vmatpush2.msra.mxu0 %v1072_v55  ;;  %1675 = vmatpush2.msra.mxu1 %v1104_v56  ;;  %v4190_v55 = vld [vmem:[%s5030_s30 + $0x4b] sm:$0xff]  ;;  %v1123_v56 = vld [vmem:[#allocation2 + $0x238] sm:$0xff] }
  0x56   : > { %1371 = vmatprep.subr.mxu0 %v6556_v0  ;;  %1676 = vmatprep.subr.mxu1 %v6556_v0 }
  0x57   : > { %1372 = vmatpush2.msra.mxu0 %v1071_v57  ;;  %1677 = vmatpush2.msra.mxu1 %v1103_v58  ;;  %v263_v57 = vld [vmem:[%s5030_s30 + $0x48] sm:$0xff]  ;;  %v4095_v58 = vld [vmem:[%s5030_s30 + $0x51] sm:$0xff] }
  0x58   : > { %1373 = vmatprep.subr.mxu0 %v6556_v0  ;;  %1678 = vmatprep.subr.mxu1 %v6556_v0 }
  0x59   : > { %1374 = vmatpush2.msra.mxu0 %v1070_v59  ;;  %1679 = vmatpush2.msra.mxu1 %v1102_v60  ;;  %v1155_v59 = vld [vmem:[#allocation2 + $0x338] sm:$0xff]  ;;  %v4142_v60 = vld [vmem:[%s5030_s30 + $0x4a] sm:$0xff] }
  0x5a   : > { %1375 = vmatprep.subr.mxu0 %v6556_v0  ;;  %1680 = vmatprep.subr.mxu1 %v6556_v0 }
  0x5b   : > { %1376 = vmatpush2.msra.mxu0 %v1069_v61  ;;  %1681 = vmatpush2.msra.mxu1 %v1101_v62  ;;  %v4191_v61 = vld [vmem:[%s5030_s30 + $0x53] sm:$0xff] }
  0x5c   : > { %1377 = vmatprep.subr.mxu0 %v6556_v0  ;;  %1379 = vmatprep.mubr.f32.mxu0 %v4085_v63  ;;  %v1122_v62 = vld [vmem:[#allocation2 + $0x230] sm:$0xff] }
  0x5d   : > { %1378 = vmatpush2.msra.mxu0 %v1068_v1  ;;  %1682 = vmatprep.subr.mxu1 %v6556_v0  ;;  %v264_v63 = vld [vmem:[%s5030_s30 + $0x50] sm:$0xff]  ;;  %v4096_v1 = vld [vmem:[%s5030_s30 + $0x59] sm:$0xff] }
  0x5e   : > { %1380 = vmatmul.mubr.f32.vlgmr.msra.gmra.mxu0 %v254_v2  ;;  %1683 = vmatpush2.msra.mxu1 %v1100_v3  ;;  %v1154_v2 = vld [vmem:[#allocation2 + $0x330] sm:$0xff] }
  0x5f   : > { %1684 = vmatprep.mubr.f32.mxu1 %v4181_v4  ;;  %1925 = vmatprep.subr.mxu0 %v6556_v0  ;;  %v4143_v3 = vld [vmem:[%s5030_s30 + $0x52] sm:$0xff]  ;;  %v4192_v4 = vld [vmem:[%s5030_s30 + $0x5b] sm:$0xff] }
  0x60   : > { %1685 = vmatmul.mubr.f32.vlgmr.msra.gmra.mxu1 %v4133_v5  ;;  %1926 = vmatpush1.msra.mxu0 %v1131_v6  ;;  %v1121_v5 = vld [vmem:[#allocation2 + $0x228] sm:$0xff]  ;;  %v265_v6 = vld [vmem:[%s5030_s30 + $0x58] sm:$0xff] }
  0x61   : > { %2230 = vmatprep.subr.mxu1 %v6556_v0  ;;  %1384 = vmatprep.mubr.f32.mxu0 %v4086_v7  ;;  %v4097_v7 = vld [vmem:[%s5030_s30 + $0x61] sm:$0xff] }
  0x62   : > { %2231 = vmatpush1.msra.mxu1 %v1163_v8  ;;  %1385 = vmatmul.mubr.f32.gmra.mxu0 %v255_v9  ;;  %v1153_v8 = vld [vmem:[#allocation2 + $0x328] sm:$0xff]  ;;  %v4144_v9 = vld [vmem:[%s5030_s30 + $0x5a] sm:$0xff] }
  0x63   : > { %1689 = vmatprep.mubr.f32.mxu1 %v4182_v10  ;;  %1927 = vmatprep.subr.mxu0 %v6556_v0  ;;  %v4193_v10 = vld [vmem:[%s5030_s30 + $0x63] sm:$0xff] }
  0x64   : > { %1690 = vmatmul.mubr.f32.gmra.mxu1 %v4134_v11  ;;  %1389 = vmatprep.mubr.f32.mxu0 %v4087_v12  ;;  %v1120_v11 = vld [vmem:[#allocation2 + $0x220] sm:$0xff] }
  0x65   : > { %1928 = vmatpush1.msra.mxu0 %v1130_v13  ;;  %1694 = vmatprep.mubr.f32.mxu1 %v4183_v14  ;;  %v266_v12 = vld [vmem:[%s5030_s30 + $0x60] sm:$0xff]  ;;  %v4098_v13 = vld [vmem:[%s5030_s30 + $0x69] sm:$0xff] }
  0x66   : > { %1390 = vmatmul.mubr.f32.gmra.mxu0 %v256_v15  ;;  %2232 = vmatprep.subr.mxu1 %v6556_v0  ;;  %v1152_v14 = vld [vmem:[#allocation2 + $0x320] sm:$0xff] }
  0x67   : > { %2233 = vmatpush1.msra.mxu1 %v1162_v16  ;;  %1394 = vmatprep.mubr.f32.mxu0 %v4088_v17  ;;  %v4145_v15 = vld [vmem:[%s5030_s30 + $0x62] sm:$0xff]  ;;  %v4194_v16 = vld [vmem:[%s5030_s30 + $0x6b] sm:$0xff]  ;;  %v1119_v17 = vld [vmem:[#allocation2 + $0x218] sm:$0xff] }
  0x68   : > { %1695 = vmatmul.mubr.f32.gmra.mxu1 %v4135_v18  ;;  %1929 = vmatprep.subr.mxu0 %v6556_v0  ;;  %v267_v18 = vld [vmem:[%s5030_s30 + $0x68] sm:$0xff] }
  0x69   : > { %1699 = vmatprep.mubr.f32.mxu1 %v4184_v19  ;;  %1930 = vmatpush1.msra.mxu0 %v1129_v20  ;;  %v4099_v19 = vld [vmem:[%s5030_s30 + $0x71] sm:$0xff] }
  0x6a   : > { %1395 = vmatmul.mubr.f32.gmra.mxu0 %v257_v21  ;;  %2234 = vmatprep.subr.mxu1 %v6556_v0  ;;  %v1151_v20 = vld [vmem:[#allocation2 + $0x318] sm:$0xff]  ;;  %v4146_v21 = vld [vmem:[%s5030_s30 + $0x6a] sm:$0xff] }
  0x6b   : > { %1399 = vmatprep.mubr.f32.mxu0 %v4089_v22  ;;  %2235 = vmatpush1.msra.mxu1 %v1161_v23  ;;  %v4195_v22 = vld [vmem:[%s5030_s30 + $0x73] sm:$0xff] }
  0x6c   : > { %1700 = vmatmul.mubr.f32.gmra.mxu1 %v4136_v24  ;;  %1931 = vmatprep.subr.mxu0 %v6556_v0  ;;  %v1118_v23 = vld [vmem:[#allocation2 + $0x210] sm:$0xff] }
  0x6d   : > { %1704 = vmatprep.mubr.f32.mxu1 %v4185_v25  ;;  %1932 = vmatpush1.msra.mxu0 %v1128_v26  ;;  %v268_v24 = vld [vmem:[%s5030_s30 + $0x70] sm:$0xff]  ;;  %v4100_v25 = vld [vmem:[%s5030_s30 + $0x79] sm:$0xff] }
  0x6e   : > { %1400 = vmatmul.mubr.f32.gmra.mxu0 %v258_v27  ;;  %2236 = vmatprep.subr.mxu1 %v6556_v0  ;;  %v1150_v26 = vld [vmem:[#allocation2 + $0x310] sm:$0xff] }
  0x6f   : > { %1404 = vmatprep.mubr.f32.mxu0 %v4090_v28  ;;  %2237 = vmatpush1.msra.mxu1 %v1160_v29  ;;  %v4147_v27 = vld [vmem:[%s5030_s30 + $0x72] sm:$0xff]  ;;  %v4196_v28 = vld [vmem:[%s5030_s30 + $0x7b] sm:$0xff]  ;;  %v1117_v29 = vld [vmem:[#allocation2 + $0x208] sm:$0xff] }
  0x70   : > { %1705 = vmatmul.mubr.f32.gmra.mxu1 %v4137_v30  ;;  %1933 = vmatprep.subr.mxu0 %v6556_v0  ;;  %v269_v30 = vld [vmem:[%s5030_s30 + $0x78] sm:$0xff] }
  0x71   : > { %1709 = vmatprep.mubr.f32.mxu1 %v4186_v31  ;;  %1934 = vmatpush1.msra.mxu0 %v1127_v32  ;;  %v4101_v31 = vld [vmem:[%s5030_s30 + $0x81] sm:$0xff] }
  0x72   : > { %1405 = vmatmul.mubr.f32.gmra.mxu0 %v259_v33  ;;  %2238 = vmatprep.subr.mxu1 %v6556_v0  ;;  %v1149_v32 = vld [vmem:[#allocation2 + $0x308] sm:$0xff]  ;;  %v4148_v33 = vld [vmem:[%s5030_s30 + $0x7a] sm:$0xff] }
  0x73   : > { %1409 = vmatprep.mubr.f32.mxu0 %v4091_v34  ;;  %2239 = vmatpush1.msra.mxu1 %v1159_v35  ;;  %v4197_v34 = vld [vmem:[%s5030_s30 + $0x83] sm:$0xff] }
  0x74   : > { %1710 = vmatmul.mubr.f32.gmra.mxu1 %v4138_v36  ;;  %1935 = vmatprep.subr.mxu0 %v6556_v0  ;;  %v1116_v35 = vld [vmem:[#allocation2 + $0x200] sm:$0xff] }
  0x75   : > { %1714 = vmatprep.mubr.f32.mxu1 %v4187_v37  ;;  %1936 = vmatpush1.msra.mxu0 %v1126_v38  ;;  %v270_v36 = vld [vmem:[%s5030_s30 + $0x80] sm:$0xff]  ;;  %v4102_v37 = vld [vmem:[%s5030_s30 + $0x89] sm:$0xff] }
  0x76   : > { %1410 = vmatmul.mubr.f32.gmra.mxu0 %v260_v39  ;;  %2240 = vmatprep.subr.mxu1 %v6556_v0  ;;  %v1148_v38 = vld [vmem:[#allocation2 + $0x300] sm:$0xff] }
  0x77   : > { %1414 = vmatprep.mubr.f32.mxu0 %v4092_v40  ;;  %2241 = vmatpush1.msra.mxu1 %v1158_v41  ;;  %v4149_v39 = vld [vmem:[%s5030_s30 + $0x82] sm:$0xff]  ;;  %v4198_v40 = vld [vmem:[%s5030_s30 + $0x8b] sm:$0xff]  ;;  %v1147_v41 = vld [vmem:[#allocation2 + $0x2f8] sm:$0xff] }
  0x78   : > { %1715 = vmatmul.mubr.f32.gmra.mxu1 %v4139_v42  ;;  %1937 = vmatprep.subr.mxu0 %v6556_v0  ;;  %v271_v42 = vld [vmem:[%s5030_s30 + $0x88] sm:$0xff] }
  0x79   : > { %1719 = vmatprep.mubr.f32.mxu1 %v4188_v43  ;;  %1938 = vmatpush1.msra.mxu0 %v1125_v44  ;;  %v4103_v43 = vld [vmem:[%s5030_s30 + $0x91] sm:$0xff] }
  0x7a   : > { %1415 = vmatmul.mubr.f32.gmra.mxu0 %v261_v45  ;;  %2242 = vmatprep.subr.mxu1 %v6556_v0  ;;  %v1179_v44 = vld [vmem:[#allocation2 + $0x3f8] sm:$0xff]  ;;  %v4150_v45 = vld [vmem:[%s5030_s30 + $0x8a] sm:$0xff] }
  0x7b   : > { %1419 = vmatprep.mubr.f32.mxu0 %v4093_v46  ;;  %2243 = vmatpush1.msra.mxu1 %v1157_v47  ;;  %v4199_v46 = vld [vmem:[%s5030_s30 + $0x93] sm:$0xff] }
  0x7c   : > { %1720 = vmatmul.mubr.f32.gmra.mxu1 %v4140_v48  ;;  %1939 = vmatprep.subr.mxu0 %v6556_v0  ;;  %v1146_v47 = vld [vmem:[#allocation2 + $0x2f0] sm:$0xff] }
  0x7d   : > { %1724 = vmatprep.mubr.f32.mxu1 %v4189_v49  ;;  %1940 = vmatpush1.msra.mxu0 %v1124_v50  ;;  %v272_v48 = vld [vmem:[%s5030_s30 + $0x90] sm:$0xff]  ;;  %v4104_v49 = vld [vmem:[%s5030_s30 + $0x99] sm:$0xff] }
  0x7e   : > { %1420 = vmatmul.mubr.f32.gmra.mxu0 %v262_v51  ;;  %2244 = vmatprep.subr.mxu1 %v6556_v0  ;;  %v1178_v50 = vld [vmem:[#allocation2 + $0x3f0] sm:$0xff] }
  0x7f   : > { %1424 = vmatprep.mubr.f32.mxu0 %v4094_v52  ;;  %2245 = vmatpush1.msra.mxu1 %v1156_v53  ;;  %v4151_v51 = vld [vmem:[%s5030_s30 + $0x92] sm:$0xff]  ;;  %v4200_v52 = vld [vmem:[%s5030_s30 + $0x9b] sm:$0xff]  ;;  %v1145_v53 = vld [vmem:[#allocation2 + $0x2e8] sm:$0xff] }
  0x80   : > { %1725 = vmatmul.mubr.f32.gmra.mxu1 %v4141_v54  ;;  %1941 = vmatprep.subr.mxu0 %v6556_v0  ;;  %v273_v54 = vld [vmem:[%s5030_s30 + $0x98] sm:$0xff] }
  0x81   : > { %1729 = vmatprep.mubr.f32.mxu1 %v4190_v55  ;;  %1942 = vmatpush1.msra.mxu0 %v1123_v56  ;;  %v4105_v55 = vld [vmem:[%s5030_s30 + $0xa1] sm:$0xff] }
  0x82   : > { %1425 = vmatmul.mubr.f32.gmra.mxu0 %v263_v57  ;;  %2246 = vmatprep.subr.mxu1 %v6556_v0  ;;  %v1177_v56 = vld [vmem:[#allocation2 + $0x3e8] sm:$0xff]  ;;  %v4152_v57 = vld [vmem:[%s5030_s30 + $0x9a] sm:$0xff] }
  0x83   : > { %1429 = vmatprep.mubr.f32.mxu0 %v4095_v58  ;;  %2247 = vmatpush1.msra.mxu1 %v1155_v59  ;;  %v4201_v58 = vld [vmem:[%s5030_s30 + $0xa3] sm:$0xff] }
  0x84   : > { %1730 = vmatmul.mubr.f32.gmra.mxu1 %v4142_v60  ;;  %1943 = vmatprep.subr.mxu0 %v6556_v0  ;;  %v1144_v59 = vld [vmem:[#allocation2 + $0x2e0] sm:$0xff] }
  0x85   : > { %1734 = vmatprep.mubr.f32.mxu1 %v4191_v61  ;;  %1944 = vmatpush1.msra.mxu0 %v1122_v62  ;;  %v274_v60 = vld [vmem:[%s5030_s30 + $0xa0] sm:$0xff]  ;;  %v4106_v61 = vld [vmem:[%s5030_s30 + $0xa9] sm:$0xff] }
  0x86   : > { %1430 = vmatmul.mubr.f32.gmra.mxu0 %v264_v63  ;;  %2248 = vmatprep.subr.mxu1 %v6556_v0  ;;  %v1176_v62 = vld [vmem:[#allocation2 + $0x3e0] sm:$0xff] }
  0x87   : > { %1434 = vmatprep.mubr.f32.mxu0 %v4096_v1  ;;  %2249 = vmatpush1.msra.mxu1 %v1154_v2  ;;  %v4153_v63 = vld [vmem:[%s5030_s30 + $0xa2] sm:$0xff]  ;;  %v4202_v1 = vld [vmem:[%s5030_s30 + $0xab] sm:$0xff]  ;;  %v1143_v2 = vld [vmem:[#allocation2 + $0x2d8] sm:$0xff] }
  0x88   : > { %1735 = vmatmul.mubr.f32.gmra.mxu1 %v4143_v3  ;;  %1945 = vmatprep.subr.mxu0 %v6556_v0  ;;  %v275_v3 = vld [vmem:[%s5030_s30 + $0xa8] sm:$0xff] }
  0x89   : > { %1739 = vmatprep.mubr.f32.mxu1 %v4192_v4  ;;  %1946 = vmatpush1.msra.mxu0 %v1121_v5  ;;  %v4107_v4 = vld [vmem:[%s5030_s30 + $0xb1] sm:$0xff] }
  0x8a   : > { %1435 = vmatmul.mubr.f32.gmra.mxu0 %v265_v6  ;;  %2250 = vmatprep.subr.mxu1 %v6556_v0  ;;  %v1175_v5 = vld [vmem:[#allocation2 + $0x3d8] sm:$0xff]  ;;  %v4154_v6 = vld [vmem:[%s5030_s30 + $0xaa] sm:$0xff] }
  0x8b   : > { %1439 = vmatprep.mubr.f32.mxu0 %v4097_v7  ;;  %2251 = vmatpush1.msra.mxu1 %v1153_v8  ;;  %v4203_v7 = vld [vmem:[%s5030_s30 + $0xb3] sm:$0xff] }
  0x8c   : > { %1740 = vmatmul.mubr.f32.gmra.mxu1 %v4144_v9  ;;  %1947 = vmatprep.subr.mxu0 %v6556_v0  ;;  %v1142_v8 = vld [vmem:[#allocation2 + $0x2d0] sm:$0xff] }
  0x8d   : > { %1744 = vmatprep.mubr.f32.mxu1 %v4193_v10  ;;  %1948 = vmatpush1.msra.mxu0 %v1120_v11  ;;  %v276_v9 = vld [vmem:[%s5030_s30 + $0xb0] sm:$0xff]  ;;  %v4108_v10 = vld [vmem:[%s5030_s30 + $0xb9] sm:$0xff] }
  0x8e   : > { %1440 = vmatmul.mubr.f32.gmra.mxu0 %v266_v12  ;;  %2252 = vmatprep.subr.mxu1 %v6556_v0  ;;  %v1174_v11 = vld [vmem:[#allocation2 + $0x3d0] sm:$0xff] }
  0x8f   : > { %1444 = vmatprep.mubr.f32.mxu0 %v4098_v13  ;;  %2253 = vmatpush1.msra.mxu1 %v1152_v14  ;;  %v4155_v12 = vld [vmem:[%s5030_s30 + $0xb2] sm:$0xff]  ;;  %v4204_v13 = vld [vmem:[%s5030_s30 + $0xbb] sm:$0xff]  ;;  %v1141_v14 = vld [vmem:[#allocation2 + $0x2c8] sm:$0xff] }
  0x90   : > { %1745 = vmatmul.mubr.f32.gmra.mxu1 %v4145_v15  ;;  %1949 = vmatprep.subr.mxu0 %v6556_v0  ;;  %v277_v15 = vld [vmem:[%s5030_s30 + $0xb8] sm:$0xff] }
  0x91   : > { %1749 = vmatprep.mubr.f32.mxu1 %v4194_v16  ;;  %1950 = vmatpush1.msra.mxu0 %v1119_v17  ;;  %v4109_v16 = vld [vmem:[%s5030_s30 + $0xc1] sm:$0xff] }
  0x92   : > { %1445 = vmatmul.mubr.f32.gmra.mxu0 %v267_v18  ;;  %2254 = vmatprep.subr.mxu1 %v6556_v0  ;;  %v1173_v17 = vld [vmem:[#allocation2 + $0x3c8] sm:$0xff]  ;;  %v4156_v18 = vld [vmem:[%s5030_s30 + $0xba] sm:$0xff] }
  0x93   : > { %1449 = vmatprep.mubr.f32.mxu0 %v4099_v19  ;;  %2255 = vmatpush1.msra.mxu1 %v1151_v20  ;;  %v4205_v19 = vld [vmem:[%s5030_s30 + $0xc3] sm:$0xff] }
  0x94   : > { %1750 = vmatmul.mubr.f32.gmra.mxu1 %v4146_v21  ;;  %1951 = vmatprep.subr.mxu0 %v6556_v0  ;;  %v1140_v20 = vld [vmem:[#allocation2 + $0x2c0] sm:$0xff] }
  0x95   : > { %1754 = vmatprep.mubr.f32.mxu1 %v4195_v22  ;;  %1952 = vmatpush1.msra.mxu0 %v1118_v23  ;;  %v278_v21 = vld [vmem:[%s5030_s30 + $0xc0] sm:$0xff]  ;;  %v4110_v22 = vld [vmem:[%s5030_s30 + $0xc9] sm:$0xff] }
  0x96   : > { %1450 = vmatmul.mubr.f32.gmra.mxu0 %v268_v24  ;;  %2256 = vmatprep.subr.mxu1 %v6556_v0  ;;  %v1172_v23 = vld [vmem:[#allocation2 + $0x3c0] sm:$0xff] }
  0x97   : > { %1454 = vmatprep.mubr.f32.mxu0 %v4100_v25  ;;  %2257 = vmatpush1.msra.mxu1 %v1150_v26  ;;  %v4157_v24 = vld [vmem:[%s5030_s30 + $0xc2] sm:$0xff]  ;;  %v4206_v25 = vld [vmem:[%s5030_s30 + $0xcb] sm:$0xff]  ;;  %v1139_v26 = vld [vmem:[#allocation2 + $0x2b8] sm:$0xff] }
  0x98   : > { %1755 = vmatmul.mubr.f32.gmra.mxu1 %v4147_v27  ;;  %1953 = vmatprep.subr.mxu0 %v6556_v0  ;;  %v279_v27 = vld [vmem:[%s5030_s30 + $0xc8] sm:$0xff] }
  0x99   : > { %1759 = vmatprep.mubr.f32.mxu1 %v4196_v28  ;;  %1954 = vmatpush1.msra.mxu0 %v1117_v29  ;;  %v4111_v28 = vld [vmem:[%s5030_s30 + $0xd1] sm:$0xff] }
  0x9a   : > { %1455 = vmatmul.mubr.f32.gmra.mxu0 %v269_v30  ;;  %2258 = vmatprep.subr.mxu1 %v6556_v0  ;;  %v1171_v29 = vld [vmem:[#allocation2 + $0x3b8] sm:$0xff]  ;;  %v4158_v30 = vld [vmem:[%s5030_s30 + $0xca] sm:$0xff] }
  0x9b   : > { %1459 = vmatprep.mubr.f32.mxu0 %v4101_v31  ;;  %2259 = vmatpush1.msra.mxu1 %v1149_v32  ;;  %v4207_v31 = vld [vmem:[%s5030_s30 + $0xd3] sm:$0xff] }
  0x9c   : > { %1760 = vmatmul.mubr.f32.gmra.mxu1 %v4148_v33  ;;  %1955 = vmatprep.subr.mxu0 %v6556_v0  ;;  %v1138_v32 = vld [vmem:[#allocation2 + $0x2b0] sm:$0xff] }
  0x9d   : > { %1764 = vmatprep.mubr.f32.mxu1 %v4197_v34  ;;  %1956 = vmatpush1.msra.mxu0 %v1116_v35  ;;  %v280_v33 = vld [vmem:[%s5030_s30 + $0xd0] sm:$0xff]  ;;  %v4112_v34 = vld [vmem:[%s5030_s30 + $0xd9] sm:$0xff] }
  0x9e   : > { %1460 = vmatmul.mubr.f32.gmra.mxu0 %v270_v36  ;;  %2260 = vmatprep.subr.mxu1 %v6556_v0  ;;  %v1170_v35 = vld [vmem:[#allocation2 + $0x3b0] sm:$0xff] }
  0x9f   : > { %1464 = vmatprep.mubr.f32.mxu0 %v4102_v37  ;;  %2261 = vmatpush1.msra.mxu1 %v1148_v38  ;;  %v4159_v36 = vld [vmem:[%s5030_s30 + $0xd2] sm:$0xff]  ;;  %v4208_v37 = vld [vmem:[%s5030_s30 + $0xdb] sm:$0xff]  ;;  %v1137_v38 = vld [vmem:[#allocation2 + $0x2a8] sm:$0xff] }
  0xa0   : > { %1765 = vmatmul.mubr.f32.gmra.mxu1 %v4149_v39  ;;  %1957 = vmatprep.subr.mxu0 %v6556_v0  ;;  %v281_v39 = vld [vmem:[%s5030_s30 + $0xd8] sm:$0xff] }
  0xa1   : > { %1769 = vmatprep.mubr.f32.mxu1 %v4198_v40  ;;  %1958 = vmatpush2.msra.mxu0 %v1147_v41  ;;  %v4113_v40 = vld [vmem:[%s5030_s30 + $0xe1] sm:$0xff] }
  0xa2   : > { %1465 = vmatmul.mubr.f32.gmra.mxu0 %v271_v42  ;;  %2262 = vmatprep.subr.mxu1 %v6556_v0  ;;  %v1169_v41 = vld [vmem:[#allocation2 + $0x3a8] sm:$0xff]  ;;  %v4160_v42 = vld [vmem:[%s5030_s30 + $0xda] sm:$0xff] }
  0xa3   : > { %1469 = vmatprep.mubr.f32.mxu0 %v4103_v43  ;;  %2263 = vmatpush2.msra.mxu1 %v1179_v44  ;;  %v4209_v43 = vld [vmem:[%s5030_s30 + $0xe3] sm:$0xff] }
  0xa4   : > { %1770 = vmatmul.mubr.f32.gmra.mxu1 %v4150_v45  ;;  %1959 = vmatprep.subr.mxu0 %v6556_v0  ;;  %v1136_v44 = vld [vmem:[#allocation2 + $0x2a0] sm:$0xff] }
  0xa5   : > { %1774 = vmatprep.mubr.f32.mxu1 %v4199_v46  ;;  %1960 = vmatpush2.msra.mxu0 %v1146_v47  ;;  %v282_v45 = vld [vmem:[%s5030_s30 + $0xe0] sm:$0xff]  ;;  %v4114_v46 = vld [vmem:[%s5030_s30 + $0xe9] sm:$0xff] }
  0xa6   : > { %1470 = vmatmul.mubr.f32.gmra.mxu0 %v272_v48  ;;  %2264 = vmatprep.subr.mxu1 %v6556_v0  ;;  %v1168_v47 = vld [vmem:[#allocation2 + $0x3a0] sm:$0xff] }
  0xa7   : > { %1474 = vmatprep.mubr.f32.mxu0 %v4104_v49  ;;  %2265 = vmatpush2.msra.mxu1 %v1178_v50  ;;  %v4161_v48 = vld [vmem:[%s5030_s30 + $0xe2] sm:$0xff]  ;;  %v4210_v49 = vld [vmem:[%s5030_s30 + $0xeb] sm:$0xff]  ;;  %v1135_v50 = vld [vmem:[#allocation2 + $0x298] sm:$0xff] }
  0xa8   : > { %1775 = vmatmul.mubr.f32.gmra.mxu1 %v4151_v51  ;;  %1961 = vmatprep.subr.mxu0 %v6556_v0  ;;  %v283_v51 = vld [vmem:[%s5030_s30 + $0xe8] sm:$0xff] }
  0xa9   : > { %1779 = vmatprep.mubr.f32.mxu1 %v4200_v52  ;;  %1962 = vmatpush2.msra.mxu0 %v1145_v53  ;;  %v4115_v52 = vld [vmem:[%s5030_s30 + $0xf1] sm:$0xff] }
  0xaa   : > { %1475 = vmatmul.mubr.f32.gmra.mxu0 %v273_v54  ;;  %2266 = vmatprep.subr.mxu1 %v6556_v0  ;;  %v1167_v53 = vld [vmem:[#allocation2 + $0x398] sm:$0xff]  ;;  %v4162_v54 = vld [vmem:[%s5030_s30 + $0xea] sm:$0xff] }
  0xab   : > { %1479 = vmatprep.mubr.f32.mxu0 %v4105_v55  ;;  %2267 = vmatpush2.msra.mxu1 %v1177_v56  ;;  %v4211_v55 = vld [vmem:[%s5030_s30 + $0xf3] sm:$0xff] }
  0xac   : > { %1780 = vmatmul.mubr.f32.gmra.mxu1 %v4152_v57  ;;  %1963 = vmatprep.subr.mxu0 %v6556_v0  ;;  %v1134_v56 = vld [vmem:[#allocation2 + $0x290] sm:$0xff] }
  0xad   : > { %1784 = vmatprep.mubr.f32.mxu1 %v4201_v58  ;;  %1964 = vmatpush2.msra.mxu0 %v1144_v59  ;;  %v284_v57 = vld [vmem:[%s5030_s30 + $0xf0] sm:$0xff]  ;;  %v4116_v58 = vld [vmem:[%s5030_s30 + $0xf9] sm:$0xff] }
  0xae   : > { %1480 = vmatmul.mubr.f32.gmra.mxu0 %v274_v60  ;;  %2268 = vmatprep.subr.mxu1 %v6556_v0  ;;  %v1166_v59 = vld [vmem:[#allocation2 + $0x390] sm:$0xff] }
  0xaf   : > { %1484 = vmatprep.mubr.f32.mxu0 %v4106_v61  ;;  %2269 = vmatpush2.msra.mxu1 %v1176_v62  ;;  %v4163_v60 = vld [vmem:[%s5030_s30 + $0xf2] sm:$0xff]  ;;  %v4212_v61 = vld [vmem:[%s5030_s30 + $0xfb] sm:$0xff]  ;;  %v1133_v62 = vld [vmem:[#allocation2 + $0x288] sm:$0xff] }
  0xb0   : > { %1785 = vmatmul.mubr.f32.gmra.mxu1 %v4153_v63  ;;  %1965 = vmatprep.subr.mxu0 %v6556_v0  ;;  %v285_v63 = vld [vmem:[%s5030_s30 + $0xf8] sm:$0xff] }
  0xb1   : > { %1789 = vmatprep.mubr.f32.mxu1 %v4202_v1  ;;  %1966 = vmatpush2.msra.mxu0 %v1143_v2  ;;  %v4117_v1 = vld [vmem:[%s5030_s30 + $0x101] sm:$0xff] }
  0xb2   : > { %1485 = vmatmul.mubr.f32.gmra.mxu0 %v275_v3  ;;  %2270 = vmatprep.subr.mxu1 %v6556_v0  ;;  %v1165_v2 = vld [vmem:[#allocation2 + $0x388] sm:$0xff]  ;;  %v4164_v3 = vld [vmem:[%s5030_s30 + $0xfa] sm:$0xff] }
  0xb3   : > { %1489 = vmatprep.mubr.f32.mxu0 %v4107_v4  ;;  %2271 = vmatpush2.msra.mxu1 %v1175_v5  ;;  %v4213_v4 = vld [vmem:[%s5030_s30 + $0x103] sm:$0xff] }
  0xb4   : > { %1790 = vmatmul.mubr.f32.gmra.mxu1 %v4154_v6  ;;  %1967 = vmatprep.subr.mxu0 %v6556_v0  ;;  %v1132_v5 = vld [vmem:[#allocation2 + $0x280] sm:$0xff] }
  0xb5   : > { %1794 = vmatprep.mubr.f32.mxu1 %v4203_v7  ;;  %1968 = vmatpush2.msra.mxu0 %v1142_v8  ;;  %v286_v6 = vld [vmem:[%s5030_s30 + $0x100] sm:$0xff]  ;;  %v4118_v7 = vld [vmem:[%s5030_s30 + $0x109] sm:$0xff] }
  0xb6   : > { %1490 = vmatmul.mubr.f32.gmra.mxu0 %v276_v9  ;;  %2272 = vmatprep.subr.mxu1 %v6556_v0  ;;  %v1164_v8 = vld [vmem:[#allocation2 + $0x380] sm:$0xff] }
  0xb7   : > { %1494 = vmatprep.mubr.f32.mxu0 %v4108_v10  ;;  %2273 = vmatpush2.msra.mxu1 %v1174_v11  ;;  %v4165_v9 = vld [vmem:[%s5030_s30 + $0x102] sm:$0xff]  ;;  %v4214_v10 = vld [vmem:[%s5030_s30 + $0x10b] sm:$0xff] }
  0xb8   : > { %1795 = vmatmul.mubr.f32.gmra.mxu1 %v4155_v12  ;;  %1969 = vmatprep.subr.mxu0 %v6556_v0  ;;  %v287_v11 = vld [vmem:[%s5030_s30 + $0x108] sm:$0xff]  ;;  %v4119_v12 = vld [vmem:[%s5030_s30 + $0x111] sm:$0xff] }
  0xb9   : > { %1799 = vmatprep.mubr.f32.mxu1 %v4204_v13  ;;  %1970 = vmatpush2.msra.mxu0 %v1141_v14  ;;  %v4166_v13 = vld [vmem:[%s5030_s30 + $0x10a] sm:$0xff]  ;;  %v4215_v14 = vld [vmem:[%s5030_s30 + $0x113] sm:$0xff] }
  0xba   : > { %1495 = vmatmul.mubr.f32.gmra.mxu0 %v277_v15  ;;  %2274 = vmatprep.subr.mxu1 %v6556_v0  ;;  %v288_v15 = vld [vmem:[%s5030_s30 + $0x110] sm:$0xff] }
  0xbb   : > { %1499 = vmatprep.mubr.f32.mxu0 %v4109_v16  ;;  %2275 = vmatpush2.msra.mxu1 %v1173_v17  ;;  %v4120_v16 = vld [vmem:[%s5030_s30 + $0x119] sm:$0xff] }
  0xbc   : > { %1800 = vmatmul.mubr.f32.gmra.mxu1 %v4156_v18  ;;  %1971 = vmatprep.subr.mxu0 %v6556_v0  ;;  %v4167_v17 = vld [vmem:[%s5030_s30 + $0x112] sm:$0xff]  ;;  %v4216_v18 = vld [vmem:[%s5030_s30 + $0x11b] sm:$0xff] }
  0xbd   : > { %1804 = vmatprep.mubr.f32.mxu1 %v4205_v19  ;;  %1972 = vmatpush2.msra.mxu0 %v1140_v20  ;;  %v289_v19 = vld [vmem:[%s5030_s30 + $0x118] sm:$0xff]  ;;  %v4121_v20 = vld [vmem:[%s5030_s30 + $0x121] sm:$0xff] }
  0xbe   : > { %1500 = vmatmul.mubr.f32.gmra.mxu0 %v278_v21  ;;  %2276 = vmatprep.subr.mxu1 %v6556_v0  ;;  %v4168_v21 = vld [vmem:[%s5030_s30 + $0x11a] sm:$0xff] }
  0xbf   : > { %1504 = vmatprep.mubr.f32.mxu0 %v4110_v22  ;;  %2277 = vmatpush2.msra.mxu1 %v1172_v23  ;;  %v4217_v22 = vld [vmem:[%s5030_s30 + $0x123] sm:$0xff] }
  0xc0   : > { %1805 = vmatmul.mubr.f32.gmra.mxu1 %v4157_v24  ;;  %1973 = vmatprep.subr.mxu0 %v6556_v0  ;;  %v290_v23 = vld [vmem:[%s5030_s30 + $0x120] sm:$0xff]  ;;  %v4122_v24 = vld [vmem:[%s5030_s30 + $0x129] sm:$0xff] }
  0xc1   : > { %1809 = vmatprep.mubr.f32.mxu1 %v4206_v25  ;;  %1974 = vmatpush2.msra.mxu0 %v1139_v26  ;;  %v4169_v25 = vld [vmem:[%s5030_s30 + $0x122] sm:$0xff]  ;;  %v4218_v26 = vld [vmem:[%s5030_s30 + $0x12b] sm:$0xff] }
  0xc2   : > { %1505 = vmatmul.mubr.f32.gmra.mxu0 %v279_v27  ;;  %2278 = vmatprep.subr.mxu1 %v6556_v0  ;;  %v291_v27 = vld [vmem:[%s5030_s30 + $0x128] sm:$0xff] }
  0xc3   : > { %1509 = vmatprep.mubr.f32.mxu0 %v4111_v28  ;;  %2279 = vmatpush2.msra.mxu1 %v1171_v29  ;;  %v4123_v28 = vld [vmem:[%s5030_s30 + $0x131] sm:$0xff] }
  0xc4   : > { %1810 = vmatmul.mubr.f32.gmra.mxu1 %v4158_v30  ;;  %1975 = vmatprep.subr.mxu0 %v6556_v0  ;;  %v4170_v29 = vld [vmem:[%s5030_s30 + $0x12a] sm:$0xff]  ;;  %v4219_v30 = vld [vmem:[%s5030_s30 + $0x133] sm:$0xff] }
  0xc5   : > { %1814 = vmatprep.mubr.f32.mxu1 %v4207_v31  ;;  %1976 = vmatpush2.msra.mxu0 %v1138_v32  ;;  %v292_v31 = vld [vmem:[%s5030_s30 + $0x130] sm:$0xff]  ;;  %v4124_v32 = vld [vmem:[%s5030_s30 + $0x139] sm:$0xff] }
  0xc6   : > { %1510 = vmatmul.mubr.f32.gmra.mxu0 %v280_v33  ;;  %2280 = vmatprep.subr.mxu1 %v6556_v0  ;;  %v4171_v33 = vld [vmem:[%s5030_s30 + $0x132] sm:$0xff] }
  0xc7   : > { %1514 = vmatprep.mubr.f32.mxu0 %v4112_v34  ;;  %2281 = vmatpush2.msra.mxu1 %v1170_v35  ;;  %v4220_v34 = vld [vmem:[%s5030_s30 + $0x13b] sm:$0xff] }
  0xc8   : > { %1815 = vmatmul.mubr.f32.gmra.mxu1 %v4159_v36  ;;  %1977 = vmatprep.subr.mxu0 %v6556_v0  ;;  %v293_v35 = vld [vmem:[%s5030_s30 + $0x138] sm:$0xff]  ;;  %v4125_v36 = vld [vmem:[%s5030_s30 + $0x141] sm:$0xff] }
  0xc9   : > { %1819 = vmatprep.mubr.f32.mxu1 %v4208_v37  ;;  %1978 = vmatpush2.msra.mxu0 %v1137_v38  ;;  %v4172_v37 = vld [vmem:[%s5030_s30 + $0x13a] sm:$0xff]  ;;  %v4221_v38 = vld [vmem:[%s5030_s30 + $0x143] sm:$0xff] }
  0xca   : > { %1515 = vmatmul.mubr.f32.gmra.mxu0 %v281_v39  ;;  %2282 = vmatprep.subr.mxu1 %v6556_v0  ;;  %v294_v39 = vld [vmem:[%s5030_s30 + $0x140] sm:$0xff] }
  0xcb   : > { %1519 = vmatprep.mubr.f32.mxu0 %v4113_v40  ;;  %2283 = vmatpush2.msra.mxu1 %v1169_v41  ;;  %v4126_v40 = vld [vmem:[%s5030_s30 + $0x149] sm:$0xff] }
  0xcc   : > { %1820 = vmatmul.mubr.f32.gmra.mxu1 %v4160_v42  ;;  %1979 = vmatprep.subr.mxu0 %v6556_v0  ;;  %v4173_v41 = vld [vmem:[%s5030_s30 + $0x142] sm:$0xff]  ;;  %v4222_v42 = vld [vmem:[%s5030_s30 + $0x14b] sm:$0xff] }
  0xcd   : > { %1824 = vmatprep.mubr.f32.mxu1 %v4209_v43  ;;  %1980 = vmatpush2.msra.mxu0 %v1136_v44  ;;  %v295_v43 = vld [vmem:[%s5030_s30 + $0x148] sm:$0xff]  ;;  %v4127_v44 = vld [vmem:[%s5030_s30 + $0x151] sm:$0xff] }
  0xce   : > { %1520 = vmatmul.mubr.f32.gmra.mxu0 %v282_v45  ;;  %2284 = vmatprep.subr.mxu1 %v6556_v0  ;;  %v4174_v45 = vld [vmem:[%s5030_s30 + $0x14a] sm:$0xff] }
  0xcf   : > { %1524 = vmatprep.mubr.f32.mxu0 %v4114_v46  ;;  %2285 = vmatpush2.msra.mxu1 %v1168_v47  ;;  %v4223_v46 = vld [vmem:[%s5030_s30 + $0x153] sm:$0xff] }
  0xd0   : > { %1825 = vmatmul.mubr.f32.gmra.mxu1 %v4161_v48  ;;  %1981 = vmatprep.subr.mxu0 %v6556_v0  ;;  %v296_v47 = vld [vmem:[%s5030_s30 + $0x150] sm:$0xff]  ;;  %v4128_v48 = vld [vmem:[%s5030_s30 + $0x159] sm:$0xff] }
  0xd1   : > { %1829 = vmatprep.mubr.f32.mxu1 %v4210_v49  ;;  %1982 = vmatpush2.msra.mxu0 %v1135_v50  ;;  %v4175_v49 = vld [vmem:[%s5030_s30 + $0x152] sm:$0xff]  ;;  %v4224_v50 = vld [vmem:[%s5030_s30 + $0x15b] sm:$0xff] }
  0xd2   : > { %1525 = vmatmul.mubr.f32.gmra.mxu0 %v283_v51  ;;  %2286 = vmatprep.subr.mxu1 %v6556_v0  ;;  %v297_v51 = vld [vmem:[%s5030_s30 + $0x158] sm:$0xff] }
  0xd3   : > { %1529 = vmatprep.mubr.f32.mxu0 %v4115_v52  ;;  %2287 = vmatpush2.msra.mxu1 %v1167_v53  ;;  %v4129_v52 = vld [vmem:[%s5030_s30 + $0x161] sm:$0xff] }
  0xd4   : > { %1830 = vmatmul.mubr.f32.gmra.mxu1 %v4162_v54  ;;  %1983 = vmatprep.subr.mxu0 %v6556_v0  ;;  %v4176_v53 = vld [vmem:[%s5030_s30 + $0x15a] sm:$0xff]  ;;  %v4225_v54 = vld [vmem:[%s5030_s30 + $0x163] sm:$0xff] }
  0xd5   : > { %1834 = vmatprep.mubr.f32.mxu1 %v4211_v55  ;;  %1984 = vmatpush2.msra.mxu0 %v1134_v56  ;;  %v298_v55 = vld [vmem:[%s5030_s30 + $0x160] sm:$0xff]  ;;  %v4130_v56 = vld [vmem:[%s5030_s30 + $0x169] sm:$0xff] }
  0xd6   : > { %1530 = vmatmul.mubr.f32.gmra.mxu0 %v284_v57  ;;  %2288 = vmatprep.subr.mxu1 %v6556_v0  ;;  %v4177_v57 = vld [vmem:[%s5030_s30 + $0x162] sm:$0xff] }
  0xd7   : > { %1534 = vmatprep.mubr.f32.mxu0 %v4116_v58  ;;  %2289 = vmatpush2.msra.mxu1 %v1166_v59  ;;  %v4226_v58 = vld [vmem:[%s5030_s30 + $0x16b] sm:$0xff] }
  0xd8   : > { %1835 = vmatmul.mubr.f32.gmra.mxu1 %v4163_v60  ;;  %1985 = vmatprep.subr.mxu0 %v6556_v0  ;;  %v299_v59 = vld [vmem:[%s5030_s30 + $0x168] sm:$0xff]  ;;  %v4131_v60 = vld [vmem:[%s5030_s30 + $0x171] sm:$0xff] }
  0xd9   : > { %1839 = vmatprep.mubr.f32.mxu1 %v4212_v61  ;;  %1986 = vmatpush2.msra.mxu0 %v1133_v62  ;;  %v4178_v61 = vld [vmem:[%s5030_s30 + $0x16a] sm:$0xff]  ;;  %v4227_v62 = vld [vmem:[%s5030_s30 + $0x173] sm:$0xff] }
  0xda   : > { %1535 = vmatmul.mubr.f32.gmra.mxu0 %v285_v63  ;;  %2290 = vmatprep.subr.mxu1 %v6556_v0  ;;  %v300_v63 = vld [vmem:[%s5030_s30 + $0x170] sm:$0xff] }
  0xdb   : > { %1539 = vmatprep.mubr.f32.mxu0 %v4117_v1  ;;  %2291 = vmatpush2.msra.mxu1 %v1165_v2  ;;  %v4132_v1 = vld [vmem:[%s5030_s30 + $0x179] sm:$0xff] }
  0xdc   : > { %1840 = vmatmul.mubr.f32.gmra.mxu1 %v4164_v3  ;;  %1987 = vmatprep.subr.mxu0 %v6556_v0  ;;  %v4179_v2 = vld [vmem:[%s5030_s30 + $0x172] sm:$0xff]  ;;  %v4228_v3 = vld [vmem:[%s5030_s30 + $0x17b] sm:$0xff] }
  0xdd   : > { %1844 = vmatprep.mubr.f32.mxu1 %v4213_v4  ;;  %1988 = vmatpush2.msra.mxu0 %v1132_v5  ;;  %v301_v4 = vld [vmem:[%s5030_s30 + $0x178] sm:$0xff] }
  0xde   : > { %1540 = vmatmul.mubr.f32.gmra.mxu0 %v286_v6  ;;  %2292 = vmatprep.subr.mxu1 %v6556_v0  ;;  %v4277_v5 = vld [vmem:[%s5030_s30 + $0x19] sm:$0xff] }
  0xdf   : > { %1544 = vmatprep.mubr.f32.mxu0 %v4118_v7  ;;  %2293 = vmatpush2.msra.mxu1 %v1164_v8  ;;  %v4180_v6 = vld [vmem:[%s5030_s30 + $0x17a] sm:$0xff] }
  0xe0   : > { %1845 = vmatmul.mubr.f32.gmra.mxu1 %v4165_v9  ;;  %2535 = vmatprep.subr.mxu0 %v6556_v0  ;;  %v4373_v7 = vld [vmem:[%s5030_s30 + $0x1b] sm:$0xff] }
  0xe1   : > { %1849 = vmatprep.mubr.f32.mxu1 %v4214_v10  ;;  %2840 = vmatprep.subr.mxu1 %v6556_v0  ;;  %v4229_v8 = vld [vmem:[%s5030_s30 + $0x18] sm:$0xff]  ;;  %v5302_v9 = vld [vmem:[%s6554_s2] ss:$0 sm:$0xff] }
  0xe2   : > { %1545 = vmatmul.mubr.f32.gmra.mxu0 %v287_v11  ;;  %v1195_v10 = vld [vmem:[#allocation2 + $0x478] sm:$0xff]  ;;  %v4278_v11 = vld [vmem:[%s5030_s30 + $0x21] sm:$0xff] }
  0xe3   : > { %1549 = vmatprep.mubr.f32.mxu0 %v4119_v12  ;;  %v4325_v12 = vld [vmem:[%s5030_s30 + $0x1a] sm:$0xff] }
  0xe4   : > { %1850 = vmatmul.mubr.f32.gmra.mxu1 %v4166_v13 }
  0xe5   : > { %1854 = vmatprep.mubr.f32.mxu1 %v4215_v14  ;;  %v1227_v14 = vld [vmem:[#allocation2 + $0x578] sm:$0xff] }
  0xe6   : > { %1550 = vmatmul.mubr.f32.gmra.mxu0 %v288_v15  ;;  %v4374_v15 = vld [vmem:[%s5030_s30 + $0x23] sm:$0xff] }
  0xe7   : > { %1554 = vmatprep.mubr.f32.mxu0 %v4120_v16 }
  0xe8   : > { %1855 = vmatmul.mubr.f32.gmra.mxu1 %v4167_v17  ;;  %v4230_v17 = vld [vmem:[%s5030_s30 + $0x20] sm:$0xff] }
  0xe9   : > { %1859 = vmatprep.mubr.f32.mxu1 %v4216_v18 }
  0xea   : > { %1555 = vmatmul.mubr.f32.gmra.mxu0 %v289_v19 }
  0xeb   : > { %1559 = vmatprep.mubr.f32.mxu0 %v4121_v20  ;;  %v4279_v20 = vld [vmem:[%s5030_s30 + $0x29] sm:$0xff] }
  0xec   : > { %1860 = vmatmul.mubr.f32.gmra.mxu1 %v4168_v21  ;;  %v1194_v21 = vld [vmem:[#allocation2 + $0x470] sm:$0xff] }
  0xed   : > { %1864 = vmatprep.mubr.f32.mxu1 %v4217_v22 }
  0xee   : > { %1560 = vmatmul.mubr.f32.gmra.mxu0 %v290_v23  ;;  %v4326_v23 = vld [vmem:[%s5030_s30 + $0x22] sm:$0xff] }
  0xef   : > { %1564 = vmatprep.mubr.f32.mxu0 %v4122_v24 }
  0xf0   : > { %1865 = vmatmul.mubr.f32.gmra.mxu1 %v4169_v25 }
  0xf1   : > { %1869 = vmatprep.mubr.f32.mxu1 %v4218_v26  ;;  %v4375_v26 = vld [vmem:[%s5030_s30 + $0x2b] sm:$0xff] }
  0xf2   : > { %1565 = vmatmul.mubr.f32.gmra.mxu0 %v291_v27  ;;  %v1226_v27 = vld [vmem:[#allocation2 + $0x570] sm:$0xff] }
  0xf3   : > { %1569 = vmatprep.mubr.f32.mxu0 %v4123_v28 }
  0xf4   : > { %1870 = vmatmul.mubr.f32.gmra.mxu1 %v4170_v29  ;;  %v4231_v29 = vld [vmem:[%s5030_s30 + $0x28] sm:$0xff] }
  0xf5   : > { %1874 = vmatprep.mubr.f32.mxu1 %v4219_v30 }
  0xf6   : > { %1570 = vmatmul.mubr.f32.gmra.mxu0 %v292_v31 }
  0xf7   : > { %1574 = vmatprep.mubr.f32.mxu0 %v4124_v32  ;;  %v4280_v32 = vld [vmem:[%s5030_s30 + $0x31] sm:$0xff] }
  0xf8   : > { %1875 = vmatmul.mubr.f32.gmra.mxu1 %v4171_v33  ;;  %v1193_v33 = vld [vmem:[#allocation2 + $0x468] sm:$0xff] }
  0xf9   : > { %1879 = vmatprep.mubr.f32.mxu1 %v4220_v34 }
  0xfa   : > { %1575 = vmatmul.mubr.f32.gmra.mxu0 %v293_v35  ;;  %v4327_v35 = vld [vmem:[%s5030_s30 + $0x2a] sm:$0xff] }
  0xfb   : > { %1579 = vmatprep.mubr.f32.mxu0 %v4125_v36 }
  0xfc   : > { %1880 = vmatmul.mubr.f32.gmra.mxu1 %v4172_v37 }
  0xfd   : > { %1884 = vmatprep.mubr.f32.mxu1 %v4221_v38  ;;  %v4376_v38 = vld [vmem:[%s5030_s30 + $0x33] sm:$0xff] }
  0xfe   : > { %1580 = vmatmul.mubr.f32.gmra.mxu0 %v294_v39  ;;  %v1225_v39 = vld [vmem:[#allocation2 + $0x568] sm:$0xff] }
  0xff   : > { %1584 = vmatprep.mubr.f32.mxu0 %v4126_v40 }
 0x100   : > { %1885 = vmatmul.mubr.f32.gmra.mxu1 %v4173_v41  ;;  %v4232_v41 = vld [vmem:[%s5030_s30 + $0x30] sm:$0xff] }
 0x101   : > { %1889 = vmatprep.mubr.f32.mxu1 %v4222_v42 }
 0x102   : > { %1585 = vmatmul.mubr.f32.gmra.mxu0 %v295_v43 }
 0x103   : > { %1589 = vmatprep.mubr.f32.mxu0 %v4127_v44  ;;  %v4281_v44 = vld [vmem:[%s5030_s30 + $0x39] sm:$0xff] }
 0x104   : > { %1890 = vmatmul.mubr.f32.gmra.mxu1 %v4174_v45  ;;  %v1192_v45 = vld [vmem:[#allocation2 + $0x460] sm:$0xff] }
 0x105   : > { %1894 = vmatprep.mubr.f32.mxu1 %v4223_v46 }
 0x106   : > { %1590 = vmatmul.mubr.f32.gmra.mxu0 %v296_v47  ;;  %v4328_v47 = vld [vmem:[%s5030_s30 + $0x32] sm:$0xff] }
 0x107   : > { %1594 = vmatprep.mubr.f32.mxu0 %v4128_v48 }
 0x108   : > { %1895 = vmatmul.mubr.f32.gmra.mxu1 %v4175_v49 }
 0x109   : > { %1899 = vmatprep.mubr.f32.mxu1 %v4224_v50  ;;  %v4377_v50 = vld [vmem:[%s5030_s30 + $0x3b] sm:$0xff] }
 0x10a   : > { %1595 = vmatmul.mubr.f32.gmra.mxu0 %v297_v51  ;;  %v1224_v51 = vld [vmem:[#allocation2 + $0x560] sm:$0xff] }
 0x10b   : > { %1599 = vmatprep.mubr.f32.mxu0 %v4129_v52 }
 0x10c   : > { %1900 = vmatmul.mubr.f32.gmra.mxu1 %v4176_v53  ;;  %v4233_v53 = vld [vmem:[%s5030_s30 + $0x38] sm:$0xff] }
 0x10d   : > { %1904 = vmatprep.mubr.f32.mxu1 %v4225_v54 }
 0x10e   : > { %1600 = vmatmul.mubr.f32.gmra.mxu0 %v298_v55 }
 0x10f   : > { %1604 = vmatprep.mubr.f32.mxu0 %v4130_v56  ;;  %v4282_v56 = vld [vmem:[%s5030_s30 + $0x41] sm:$0xff] }
 0x110   : > { %1905 = vmatmul.mubr.f32.gmra.mxu1 %v4177_v57  ;;  %v1191_v57 = vld [vmem:[#allocation2 + $0x458] sm:$0xff] }
 0x111   : > { %1909 = vmatprep.mubr.f32.mxu1 %v4226_v58 }
 0x112   : > { %1605 = vmatmul.mubr.f32.gmra.mxu0 %v299_v59  ;;  %v4329_v59 = vld [vmem:[%s5030_s30 + $0x3a] sm:$0xff] }
 0x113   : > { %1609 = vmatprep.mubr.f32.mxu0 %v4131_v60 }
 0x114   : > { %1910 = vmatmul.mubr.f32.gmra.mxu1 %v4178_v61 }
 0x115   : > { %1914 = vmatprep.mubr.f32.mxu1 %v4227_v62  ;;  %v4378_v62 = vld [vmem:[%s5030_s30 + $0x43] sm:$0xff] }
 0x116   : > { %1610 = vmatmul.mubr.f32.gmra.mxu0 %v300_v63  ;;  %v1223_v63 = vld [vmem:[#allocation2 + $0x558] sm:$0xff] }
 0x117   : > { %1614 = vmatprep.mubr.f32.mxu0 %v4132_v1 }
 0x118   : > { %1915 = vmatmul.mubr.f32.gmra.mxu1 %v4179_v2  ;;  %v4234_v2 = vld [vmem:[%s5030_s30 + $0x40] sm:$0xff] }
 0x119   : > { %1919 = vmatprep.mubr.f32.mxu1 %v4228_v3 }
 0x11a   : > { %1615 = vmatmul.mubr.f32.gmra.mxu0 %v301_v4 }
 0x11b   : > { %1989 = vmatprep.mubr.f32.mxu0 %v4277_v5  ;;  %v4283_v5 = vld [vmem:[%s5030_s30 + $0x49] sm:$0xff] }
 0x11c   : > { %1920 = vmatmul.mubr.f32.gmra.mxu1 %v4180_v6  ;;  %v1190_v6 = vld [vmem:[#allocation2 + $0x450] sm:$0xff] }
 0x11d   : > { %2294 = vmatprep.mubr.f32.mxu1 %v4373_v7 }
 0x11e   : > { %v1381_v13 = vpop.f32.mrf.mxu0  ;;  %1990 = vmatmul.mubr.f32.vlgmr.msra.gmra.mxu0 %v4229_v8  ;;  %v4330_v8 = vld [vmem:[%s5030_s30 + $0x42] sm:$0xff] }
 0x11f   : > { %v1382_v16 = vadd.f32 %v5302_v9, %v1381_v13  ;;  %2536 = vmatpush1.msra.mxu0 %v1195_v10  ;;  %1994 = vmatprep.mubr.f32.mxu0 %v4278_v11  ;;  %v1222_v13 = vld [vmem:[#allocation2 + $0x550] sm:$0xff] }
 0x120   : > { %v1686_v18 = vpop.f32.mrf.mxu1  ;;  %2295 = vmatmul.mubr.f32.vlgmr.msra.gmra.mxu1 %v4325_v12  ;;  %v1383_v19 = vpop.f32.mrf.mxu0  ;;  %2537 = vmatprep.subr.mxu0 %v6556_v0  ;;  %v4379_v12 = vld [vmem:[%s5030_s30 + $0x4b] sm:$0xff] }
 0x121   : > { %v5311_v22 = vadd.f32 %v1686_v18, %v1382_v16  ;;  %2841 = vmatpush1.msra.mxu1 %v1227_v14  ;;  %2299 = vmatprep.mubr.f32.mxu1 %v4374_v15  ;;  %v4235_v15 = vld [vmem:[%s5030_s30 + $0x48] sm:$0xff]  ;;  %v4284_v18 = vld [vmem:[%s5030_s30 + $0x51] sm:$0xff] }
 0x122   : > { %v1688_v24 = vpop.f32.mrf.mxu1  ;;  %v1386_v25 = vpop.f32.mrf.mxu0  ;;  %1995 = vmatmul.mubr.f32.gmra.mxu0 %v4230_v17  ;;  %2842 = vmatprep.subr.mxu1 %v6556_v0  ;;  %v1189_v19 = vld [vmem:[#allocation2 + $0x448] sm:$0xff] }
 0x123   : > { %v1387_v28 = vadd.f32 %v5302_v9, %v1386_v25  ;;  %1999 = vmatprep.mubr.f32.mxu0 %v4279_v20  ;;  %2538 = vmatpush1.msra.mxu0 %v1194_v21  ;;  %v4331_v21 = vld [vmem:[%s5030_s30 + $0x4a] sm:$0xff]  ;;  %v4380_v25 = vld [vmem:[%s5030_s30 + $0x53] sm:$0xff] }
 0x124   : > { %v1691_v30 = vpop.f32.mrf.mxu1  ;;  %2300 = vmatmul.mubr.f32.gmra.mxu1 %v4326_v23  ;;  %v1388_v31 = vpop.f32.mrf.mxu0  ;;  %2539 = vmatprep.subr.mxu0 %v6556_v0 }
 0x125   : > { %v5320_v34 = vadd.f32 %v1691_v30, %v1387_v28  ;;  %2304 = vmatprep.mubr.f32.mxu1 %v4375_v26  ;;  %2843 = vmatpush1.msra.mxu1 %v1226_v27  ;;  %v1221_v26 = vld [vmem:[#allocation2 + $0x548] sm:$0xff]  ;;  %v4236_v28 = vld [vmem:[%s5030_s30 + $0x50] sm:$0xff]  ;;  %v4285_v31 = vld [vmem:[%s5030_s30 + $0x59] sm:$0xff] }
 0x126   : > { %v1693_v36 = vpop.f32.mrf.mxu1  ;;  %v1391_v37 = vpop.f32.mrf.mxu0  ;;  %2000 = vmatmul.mubr.f32.gmra.mxu0 %v4231_v29  ;;  %2844 = vmatprep.subr.mxu1 %v6556_v0 }
 0x127   : > { %v1392_v40 = vadd.f32 %v5302_v9, %v1391_v37  ;;  %2004 = vmatprep.mubr.f32.mxu0 %v4280_v32  ;;  %2540 = vmatpush1.msra.mxu0 %v1193_v33  ;;  %v1188_v32 = vld [vmem:[#allocation2 + $0x440] sm:$0xff] }
 0x128   : > { %v1696_v42 = vpop.f32.mrf.mxu1  ;;  %2305 = vmatmul.mubr.f32.gmra.mxu1 %v4327_v35  ;;  %v1393_v43 = vpop.f32.mrf.mxu0  ;;  %2541 = vmatprep.subr.mxu0 %v6556_v0  ;;  %v4332_v35 = vld [vmem:[%s5030_s30 + $0x52] sm:$0xff] }
 0x129   : > { %v5329_v46 = vadd.f32 %v1696_v42, %v1392_v40  ;;  %2309 = vmatprep.mubr.f32.mxu1 %v4376_v38  ;;  %2845 = vmatpush1.msra.mxu1 %v1225_v39  ;;  %v4381_v38 = vld [vmem:[%s5030_s30 + $0x5b] sm:$0xff] }
 0x12a   : > { %v1698_v48 = vpop.f32.mrf.mxu1  ;;  %v1396_v49 = vpop.f32.mrf.mxu0  ;;  %2005 = vmatmul.mubr.f32.gmra.mxu0 %v4232_v41  ;;  %2846 = vmatprep.subr.mxu1 %v6556_v0  ;;  %v1220_v39 = vld [vmem:[#allocation2 + $0x540] sm:$0xff]  ;;  %v4237_v41 = vld [vmem:[%s5030_s30 + $0x58] sm:$0xff] }
 0x12b   : > { %v1397_v52 = vadd.f32 %v5302_v9, %v1396_v49  ;;  %2009 = vmatprep.mubr.f32.mxu0 %v4281_v44  ;;  %2542 = vmatpush1.msra.mxu0 %v1192_v45  ;;  %v4286_v44 = vld [vmem:[%s5030_s30 + $0x61] sm:$0xff]  ;;  %v1187_v45 = vld [vmem:[#allocation2 + $0x438] sm:$0xff] }
 0x12c   : > { %v1701_v54 = vpop.f32.mrf.mxu1  ;;  %2310 = vmatmul.mubr.f32.gmra.mxu1 %v4328_v47  ;;  %v1398_v55 = vpop.f32.mrf.mxu0  ;;  %2543 = vmatprep.subr.mxu0 %v6556_v0  ;;  %v4333_v48 = vld [vmem:[%s5030_s30 + $0x5a] sm:$0xff] }
 0x12d   : > { %v5338_v58 = vadd.f32 %v1701_v54, %v1397_v52  ;;  %2314 = vmatprep.mubr.f32.mxu1 %v4377_v50  ;;  %2847 = vmatpush1.msra.mxu1 %v1224_v51  ;;  %v4382_v51 = vld [vmem:[%s5030_s30 + $0x63] sm:$0xff]  ;;  %v1219_v52 = vld [vmem:[#allocation2 + $0x538] sm:$0xff] }
 0x12e   : > { %v1703_v60 = vpop.f32.mrf.mxu1  ;;  %v1401_v61 = vpop.f32.mrf.mxu0  ;;  %2010 = vmatmul.mubr.f32.gmra.mxu0 %v4233_v53  ;;  %2848 = vmatprep.subr.mxu1 %v6556_v0  ;;  %v4238_v54 = vld [vmem:[%s5030_s30 + $0x60] sm:$0xff] }
 0x12f   : > { %v1402_v1 = vadd.f32 %v5302_v9, %v1401_v61  ;;  %2014 = vmatprep.mubr.f32.mxu0 %v4282_v56  ;;  %2544 = vmatpush1.msra.mxu0 %v1191_v57  ;;  %v4287_v57 = vld [vmem:[%s5030_s30 + $0x69] sm:$0xff] }
 0x130   : > { %v1706_v3 = vpop.f32.mrf.mxu1  ;;  %2315 = vmatmul.mubr.f32.gmra.mxu1 %v4329_v59  ;;  %v1403_v4 = vpop.f32.mrf.mxu0  ;;  %2545 = vmatprep.subr.mxu0 %v6556_v0  ;;  %v1186_v59 = vld [vmem:[#allocation2 + $0x430] sm:$0xff]  ;;  %v4334_v61 = vld [vmem:[%s5030_s30 + $0x62] sm:$0xff] }
 0x131   : > { %v5347_v7 = vadd.f32 %v1706_v3, %v1402_v1  ;;  %2319 = vmatprep.mubr.f32.mxu1 %v4378_v62  ;;  %2849 = vmatpush1.msra.mxu1 %v1223_v63  ;;  %v4383_v1 = vld [vmem:[%s5030_s30 + $0x6b] sm:$0xff] }
 0x132   : > { %v1708_v10 = vpop.f32.mrf.mxu1  ;;  %v1406_v11 = vpop.f32.mrf.mxu0  ;;  %2015 = vmatmul.mubr.f32.gmra.mxu0 %v4234_v2  ;;  %2850 = vmatprep.subr.mxu1 %v6556_v0  ;;  %v1218_v2 = vld [vmem:[#allocation2 + $0x530] sm:$0xff]  ;;  %v4239_v4 = vld [vmem:[%s5030_s30 + $0x68] sm:$0xff] }
 0x133   : > { %v1407_v14 = vadd.f32 %v5302_v9, %v1406_v11  ;;  %2019 = vmatprep.mubr.f32.mxu0 %v4283_v5  ;;  %2546 = vmatpush1.msra.mxu0 %v1190_v6  ;;  %v1185_v10 = vld [vmem:[#allocation2 + $0x428] sm:$0xff] }
 0x134   : > { %v1711_v16 = vpop.f32.mrf.mxu1  ;;  %2320 = vmatmul.mubr.f32.gmra.mxu1 %v4330_v8  ;;  %v1408_v17 = vpop.f32.mrf.mxu0  ;;  %2547 = vmatprep.subr.mxu0 %v6556_v0  ;;  %v4288_v8 = vld [vmem:[%s5030_s30 + $0x71] sm:$0xff] }
 0x135   : > { %v5356_v20 = vadd.f32 %v1711_v16, %v1407_v14  ;;  %2324 = vmatprep.mubr.f32.mxu1 %v4379_v12  ;;  %2851 = vmatpush1.msra.mxu1 %v1222_v13  ;;  %v4335_v12 = vld [vmem:[%s5030_s30 + $0x6a] sm:$0xff] }
 0x136   : > { %v1713_v23 = vpop.f32.mrf.mxu1  ;;  %v1411_v24 = vpop.f32.mrf.mxu0  ;;  %2020 = vmatmul.mubr.f32.gmra.mxu0 %v4235_v15  ;;  %2852 = vmatprep.subr.mxu1 %v6556_v0  ;;  %v4384_v15 = vld [vmem:[%s5030_s30 + $0x73] sm:$0xff]  ;;  %v1217_v16 = vld [vmem:[#allocation2 + $0x528] sm:$0xff] }
 0x137   : > { %v1412_v27 = vadd.f32 %v5302_v9, %v1411_v24  ;;  %2024 = vmatprep.mubr.f32.mxu0 %v4284_v18  ;;  %2548 = vmatpush1.msra.mxu0 %v1189_v19  ;;  %v4240_v18 = vld [vmem:[%s5030_s30 + $0x70] sm:$0xff]  ;;  %v4289_v23 = vld [vmem:[%s5030_s30 + $0x79] sm:$0xff] }
 0x138   : > { %v1716_v29 = vpop.f32.mrf.mxu1  ;;  %2325 = vmatmul.mubr.f32.gmra.mxu1 %v4331_v21  ;;  %v1413_v30 = vpop.f32.mrf.mxu0  ;;  %2549 = vmatprep.subr.mxu0 %v6556_v0  ;;  %v1184_v24 = vld [vmem:[#allocation2 + $0x420] sm:$0xff] }
 0x139   : > { %v5365_v33 = vadd.f32 %v1716_v29, %v1412_v27  ;;  %2329 = vmatprep.mubr.f32.mxu1 %v4380_v25  ;;  %2853 = vmatpush1.msra.mxu1 %v1221_v26  ;;  %v4336_v26 = vld [vmem:[%s5030_s30 + $0x72] sm:$0xff]  ;;  %v4385_v29 = vld [vmem:[%s5030_s30 + $0x7b] sm:$0xff] }
 0x13a   : > { %v1718_v36 = vpop.f32.mrf.mxu1  ;;  %v1416_v37 = vpop.f32.mrf.mxu0  ;;  %2025 = vmatmul.mubr.f32.gmra.mxu0 %v4236_v28  ;;  %2854 = vmatprep.subr.mxu1 %v6556_v0  ;;  %v1216_v30 = vld [vmem:[#allocation2 + $0x520] sm:$0xff] }
 0x13b   : > { %v1417_v40 = vadd.f32 %v5302_v9, %v1416_v37  ;;  %2029 = vmatprep.mubr.f32.mxu0 %v4285_v31  ;;  %2550 = vmatpush1.msra.mxu0 %v1188_v32  ;;  %v4241_v32 = vld [vmem:[%s5030_s30 + $0x78] sm:$0xff]  ;;  %v4290_v37 = vld [vmem:[%s5030_s30 + $0x81] sm:$0xff] }
 0x13c   : > { %v1721_v42 = vpop.f32.mrf.mxu1  ;;  %2330 = vmatmul.mubr.f32.gmra.mxu1 %v4332_v35  ;;  %v1418_v43 = vpop.f32.mrf.mxu0  ;;  %2551 = vmatprep.subr.mxu0 %v6556_v0 }
 0x13d   : > { %v5374_v47 = vadd.f32 %v1721_v42, %v1417_v40  ;;  %2334 = vmatprep.mubr.f32.mxu1 %v4381_v38  ;;  %2855 = vmatpush1.msra.mxu1 %v1220_v39  ;;  %v1183_v38 = vld [vmem:[#allocation2 + $0x418] sm:$0xff]  ;;  %v4386_v43 = vld [vmem:[%s5030_s30 + $0x83] sm:$0xff] }
 0x13e   : > { %v1723_v49 = vpop.f32.mrf.mxu1  ;;  %v1421_v50 = vpop.f32.mrf.mxu0  ;;  %2030 = vmatmul.mubr.f32.gmra.mxu0 %v4237_v41  ;;  %2856 = vmatprep.subr.mxu1 %v6556_v0  ;;  %v4337_v40 = vld [vmem:[%s5030_s30 + $0x7a] sm:$0xff] }
 0x13f   : > { %v1422_v53 = vadd.f32 %v5302_v9, %v1421_v50  ;;  %2034 = vmatprep.mubr.f32.mxu0 %v4286_v44  ;;  %2552 = vmatpush1.msra.mxu0 %v1187_v45  ;;  %v1215_v44 = vld [vmem:[#allocation2 + $0x518] sm:$0xff] }
 0x140   : > { %v1726_v55 = vpop.f32.mrf.mxu1  ;;  %2335 = vmatmul.mubr.f32.gmra.mxu1 %v4333_v48  ;;  %v1423_v56 = vpop.f32.mrf.mxu0  ;;  %2553 = vmatprep.subr.mxu0 %v6556_v0  ;;  %v4242_v48 = vld [vmem:[%s5030_s30 + $0x80] sm:$0xff] }
 0x141   : > { %v5383_v60 = vadd.f32 %v1726_v55, %v1422_v53  ;;  %2339 = vmatprep.mubr.f32.mxu1 %v4382_v51  ;;  %2857 = vmatpush1.msra.mxu1 %v1219_v52  ;;  %v4291_v51 = vld [vmem:[%s5030_s30 + $0x89] sm:$0xff] }
 0x142   : > { %v1728_v62 = vpop.f32.mrf.mxu1  ;;  %v1426_v63 = vpop.f32.mrf.mxu0  ;;  %2035 = vmatmul.mubr.f32.gmra.mxu0 %v4238_v54  ;;  %2858 = vmatprep.subr.mxu1 %v6556_v0  ;;  %v1182_v52 = vld [vmem:[#allocation2 + $0x410] sm:$0xff]  ;;  %v4338_v54 = vld [vmem:[%s5030_s30 + $0x82] sm:$0xff] }
 0x143   : > { %v1427_v3 = vadd.f32 %v5302_v9, %v1426_v63  ;;  %2039 = vmatprep.mubr.f32.mxu0 %v4287_v57  ;;  %2554 = vmatpush1.msra.mxu0 %v1186_v59  ;;  %v4387_v57 = vld [vmem:[%s5030_s30 + $0x8b] sm:$0xff] }
 0x144   : > { %v1731_v5 = vpop.f32.mrf.mxu1  ;;  %2340 = vmatmul.mubr.f32.gmra.mxu1 %v4334_v61  ;;  %v1428_v6 = vpop.f32.mrf.mxu0  ;;  %2555 = vmatprep.subr.mxu0 %v6556_v0  ;;  %v1214_v59 = vld [vmem:[#allocation2 + $0x510] sm:$0xff]  ;;  %v4243_v62 = vld [vmem:[%s5030_s30 + $0x88] sm:$0xff] }
 0x145   : > { %v5392_v11 = vadd.f32 %v1731_v5, %v1427_v3  ;;  %2344 = vmatprep.mubr.f32.mxu1 %v4383_v1  ;;  %2859 = vmatpush1.msra.mxu1 %v1218_v2  ;;  %v4292_v2 = vld [vmem:[%s5030_s30 + $0x91] sm:$0xff]  ;;  %v1181_v3 = vld [vmem:[#allocation2 + $0x408] sm:$0xff] }
 0x146   : > { %v1733_v13 = vpop.f32.mrf.mxu1  ;;  %v1431_v14 = vpop.f32.mrf.mxu0  ;;  %2040 = vmatmul.mubr.f32.gmra.mxu0 %v4239_v4  ;;  %2860 = vmatprep.subr.mxu1 %v6556_v0  ;;  %v4339_v5 = vld [vmem:[%s5030_s30 + $0x8a] sm:$0xff] }
 0x147   : > { %v1432_v17 = vadd.f32 %v5302_v9, %v1431_v14  ;;  %2044 = vmatprep.mubr.f32.mxu0 %v4288_v8  ;;  %2556 = vmatpush1.msra.mxu0 %v1185_v10  ;;  %v4388_v10 = vld [vmem:[%s5030_s30 + $0x93] sm:$0xff] }
 0x148   : > { %v1736_v19 = vpop.f32.mrf.mxu1  ;;  %2345 = vmatmul.mubr.f32.gmra.mxu1 %v4335_v12  ;;  %v1433_v21 = vpop.f32.mrf.mxu0  ;;  %2557 = vmatprep.subr.mxu0 %v6556_v0  ;;  %v1213_v12 = vld [vmem:[#allocation2 + $0x508] sm:$0xff]  ;;  %v4244_v14 = vld [vmem:[%s5030_s30 + $0x90] sm:$0xff] }
 0x149   : > { %v5401_v25 = vadd.f32 %v1736_v19, %v1432_v17  ;;  %2349 = vmatprep.mubr.f32.mxu1 %v4384_v15  ;;  %2861 = vmatpush1.msra.mxu1 %v1217_v16  ;;  %v4293_v17 = vld [vmem:[%s5030_s30 + $0x99] sm:$0xff] }
 0x14a   : > { %v1738_v27 = vpop.f32.mrf.mxu1  ;;  %v1436_v28 = vpop.f32.mrf.mxu0  ;;  %2045 = vmatmul.mubr.f32.gmra.mxu0 %v4240_v18  ;;  %2862 = vmatprep.subr.mxu1 %v6556_v0  ;;  %v1180_v18 = vld [vmem:[#allocation2 + $0x400] sm:$0xff]  ;;  %v4340_v21 = vld [vmem:[%s5030_s30 + $0x92] sm:$0xff] }
 0x14b   : > { %v1437_v31 = vadd.f32 %v5302_v9, %v1436_v28  ;;  %2049 = vmatprep.mubr.f32.mxu0 %v4289_v23  ;;  %2558 = vmatpush1.msra.mxu0 %v1184_v24  ;;  %v1212_v27 = vld [vmem:[#allocation2 + $0x500] sm:$0xff] }
 0x14c   : > { %v1741_v35 = vpop.f32.mrf.mxu1  ;;  %2350 = vmatmul.mubr.f32.gmra.mxu1 %v4336_v26  ;;  %v1438_v36 = vpop.f32.mrf.mxu0  ;;  %2559 = vmatprep.subr.mxu0 %v6556_v0  ;;  %v4389_v26 = vld [vmem:[%s5030_s30 + $0x9b] sm:$0xff] }
 0x14d   : > { %v5410_v39 = vadd.f32 %v1741_v35, %v1437_v31  ;;  %2354 = vmatprep.mubr.f32.mxu1 %v4385_v29  ;;  %2863 = vmatpush1.msra.mxu1 %v1216_v30  ;;  %v4245_v29 = vld [vmem:[%s5030_s30 + $0x98] sm:$0xff] }
 0x14e   : > { %v1743_v41 = vpop.f32.mrf.mxu1  ;;  %v1441_v42 = vpop.f32.mrf.mxu0  ;;  %2050 = vmatmul.mubr.f32.gmra.mxu0 %v4241_v32  ;;  %2864 = vmatprep.subr.mxu1 %v6556_v0  ;;  %v4294_v32 = vld [vmem:[%s5030_s30 + $0xa1] sm:$0xff]  ;;  %v1211_v35 = vld [vmem:[#allocation2 + $0x4f8] sm:$0xff] }
 0x14f   : > { %v1442_v45 = vadd.f32 %v5302_v9, %v1441_v42  ;;  %2054 = vmatprep.mubr.f32.mxu0 %v4290_v37  ;;  %2560 = vmatpush1.msra.mxu0 %v1183_v38  ;;  %v4341_v37 = vld [vmem:[%s5030_s30 + $0x9a] sm:$0xff]  ;;  %v4390_v41 = vld [vmem:[%s5030_s30 + $0xa3] sm:$0xff] }
 0x150   : > { %v1746_v49 = vpop.f32.mrf.mxu1  ;;  %2355 = vmatmul.mubr.f32.gmra.mxu1 %v4337_v40  ;;  %v1443_v50 = vpop.f32.mrf.mxu0  ;;  %2561 = vmatprep.subr.mxu0 %v6556_v0  ;;  %v1243_v42 = vld [vmem:[#allocation2 + $0x5f8] sm:$0xff] }
 0x151   : > { %v5419_v53 = vadd.f32 %v1746_v49, %v1442_v45  ;;  %2359 = vmatprep.mubr.f32.mxu1 %v4386_v43  ;;  %2865 = vmatpush1.msra.mxu1 %v1215_v44  ;;  %v4246_v44 = vld [vmem:[%s5030_s30 + $0xa0] sm:$0xff]  ;;  %v4295_v49 = vld [vmem:[%s5030_s30 + $0xa9] sm:$0xff] }
 0x152   : > { %v1748_v55 = vpop.f32.mrf.mxu1  ;;  %v1446_v56 = vpop.f32.mrf.mxu0  ;;  %2055 = vmatmul.mubr.f32.gmra.mxu0 %v4242_v48  ;;  %2866 = vmatprep.subr.mxu1 %v6556_v0  ;;  %v1210_v50 = vld [vmem:[#allocation2 + $0x4f0] sm:$0xff] }
 0x153   : > { %v1447_v61 = vadd.f32 %v5302_v9, %v1446_v56  ;;  %2059 = vmatprep.mubr.f32.mxu0 %v4291_v51  ;;  %2562 = vmatpush1.msra.mxu0 %v1182_v52  ;;  %v4342_v52 = vld [vmem:[%s5030_s30 + $0xa2] sm:$0xff]  ;;  %v4391_v56 = vld [vmem:[%s5030_s30 + $0xab] sm:$0xff] }
 0x154   : > { %v1751_v63 = vpop.f32.mrf.mxu1  ;;  %2360 = vmatmul.mubr.f32.gmra.mxu1 %v4338_v54  ;;  %v1448_v1 = vpop.f32.mrf.mxu0  ;;  %2563 = vmatprep.subr.mxu0 %v6556_v0 }
 0x155   : > { %v5428_v4 = vadd.f32 %v1751_v63, %v1447_v61  ;;  %2364 = vmatprep.mubr.f32.mxu1 %v4387_v57  ;;  %2867 = vmatpush1.msra.mxu1 %v1214_v59  ;;  %v1242_v57 = vld [vmem:[#allocation2 + $0x5f0] sm:$0xff]  ;;  %v4247_v61 = vld [vmem:[%s5030_s30 + $0xa8] sm:$0xff] }
 0x156   : > { %v1753_v6 = vpop.f32.mrf.mxu1  ;;  %v1451_v8 = vpop.f32.mrf.mxu0  ;;  %2060 = vmatmul.mubr.f32.gmra.mxu0 %v4243_v62  ;;  %2868 = vmatprep.subr.mxu1 %v6556_v0  ;;  %v4296_v1 = vld [vmem:[%s5030_s30 + $0xb1] sm:$0xff] }
 0x157   : > { %v1452_v13 = vadd.f32 %v5302_v9, %v1451_v8  ;;  %2064 = vmatprep.mubr.f32.mxu0 %v4292_v2  ;;  %2564 = vmatpush1.msra.mxu0 %v1181_v3  ;;  %v1209_v2 = vld [vmem:[#allocation2 + $0x4e8] sm:$0xff] }
 0x158   : > { %v1756_v15 = vpop.f32.mrf.mxu1  ;;  %2365 = vmatmul.mubr.f32.gmra.mxu1 %v4339_v5  ;;  %v1453_v16 = vpop.f32.mrf.mxu0  ;;  %2565 = vmatprep.subr.mxu0 %v6556_v0  ;;  %v4343_v5 = vld [vmem:[%s5030_s30 + $0xaa] sm:$0xff] }
 0x159   : > { %v5437_v19 = vadd.f32 %v1756_v15, %v1452_v13  ;;  %2369 = vmatprep.mubr.f32.mxu1 %v4388_v10  ;;  %2869 = vmatpush1.msra.mxu1 %v1213_v12  ;;  %v4392_v10 = vld [vmem:[%s5030_s30 + $0xb3] sm:$0xff]  ;;  %v1241_v12 = vld [vmem:[#allocation2 + $0x5e8] sm:$0xff] }
 0x15a   : > { %v1758_v23 = vpop.f32.mrf.mxu1  ;;  %v1456_v24 = vpop.f32.mrf.mxu0  ;;  %2065 = vmatmul.mubr.f32.gmra.mxu0 %v4244_v14  ;;  %2870 = vmatprep.subr.mxu1 %v6556_v0  ;;  %v4248_v14 = vld [vmem:[%s5030_s30 + $0xb0] sm:$0xff] }
 0x15b   : > { %v1457_v28 = vadd.f32 %v5302_v9, %v1456_v24  ;;  %2069 = vmatprep.mubr.f32.mxu0 %v4293_v17  ;;  %2566 = vmatpush1.msra.mxu0 %v1180_v18  ;;  %v4297_v17 = vld [vmem:[%s5030_s30 + $0xb9] sm:$0xff] }
 0x15c   : > { %v1761_v30 = vpop.f32.mrf.mxu1  ;;  %2370 = vmatmul.mubr.f32.gmra.mxu1 %v4340_v21  ;;  %v1458_v31 = vpop.f32.mrf.mxu0  ;;  %2567 = vmatprep.subr.mxu0 %v6556_v0  ;;  %v1208_v18 = vld [vmem:[#allocation2 + $0x4e0] sm:$0xff]  ;;  %v4344_v23 = vld [vmem:[%s5030_s30 + $0xb2] sm:$0xff] }
 0x15d   : > { %v5446_v36 = vadd.f32 %v1761_v30, %v1457_v28  ;;  %2374 = vmatprep.mubr.f32.mxu1 %v4389_v26  ;;  %2871 = vmatpush1.msra.mxu1 %v1212_v27  ;;  %v4393_v27 = vld [vmem:[%s5030_s30 + $0xbb] sm:$0xff] }
 0x15e   : > { %v1763_v38 = vpop.f32.mrf.mxu1  ;;  %v1461_v40 = vpop.f32.mrf.mxu0  ;;  %2070 = vmatmul.mubr.f32.gmra.mxu0 %v4245_v29  ;;  %2872 = vmatprep.subr.mxu1 %v6556_v0  ;;  %v1240_v28 = vld [vmem:[#allocation2 + $0x5e0] sm:$0xff]  ;;  %v4249_v30 = vld [vmem:[%s5030_s30 + $0xb8] sm:$0xff] }
 0x15f   : > { %v1462_v43 = vadd.f32 %v5302_v9, %v1461_v40  ;;  %2074 = vmatprep.mubr.f32.mxu0 %v4294_v32  ;;  %2568 = vmatpush2.msra.mxu0 %v1211_v35  ;;  %v4298_v35 = vld [vmem:[%s5030_s30 + $0xc1] sm:$0xff] }
 0x160   : > { %v1766_v45 = vpop.f32.mrf.mxu1  ;;  %2375 = vmatmul.mubr.f32.gmra.mxu1 %v4341_v37  ;;  %v1463_v48 = vpop.f32.mrf.mxu0  ;;  %2569 = vmatprep.subr.mxu0 %v6556_v0  ;;  %v1207_v37 = vld [vmem:[#allocation2 + $0x4d8] sm:$0xff] }
 0x161   : > { %v5455_v51 = vadd.f32 %v1766_v45, %v1462_v43  ;;  %2379 = vmatprep.mubr.f32.mxu1 %v4390_v41  ;;  %2873 = vmatpush2.msra.mxu1 %v1243_v42  ;;  %v4345_v40 = vld [vmem:[%s5030_s30 + $0xba] sm:$0xff]  ;;  %v4394_v43 = vld [vmem:[%s5030_s30 + $0xc3] sm:$0xff] }
 0x162   : > { %v1768_v54 = vpop.f32.mrf.mxu1  ;;  %v1466_v55 = vpop.f32.mrf.mxu0  ;;  %2075 = vmatmul.mubr.f32.gmra.mxu0 %v4246_v44  ;;  %2874 = vmatprep.subr.mxu1 %v6556_v0  ;;  %v1239_v44 = vld [vmem:[#allocation2 + $0x5d8] sm:$0xff]  ;;  %v4250_v48 = vld [vmem:[%s5030_s30 + $0xc0] sm:$0xff] }
 0x163   : > { %v1467_v59 = vadd.f32 %v5302_v9, %v1466_v55  ;;  %2079 = vmatprep.mubr.f32.mxu0 %v4295_v49  ;;  %2570 = vmatpush2.msra.mxu0 %v1210_v50  ;;  %v1206_v54 = vld [vmem:[#allocation2 + $0x4d0] sm:$0xff] }
 0x164   : > { %v1771_v62 = vpop.f32.mrf.mxu1  ;;  %2380 = vmatmul.mubr.f32.gmra.mxu1 %v4342_v52  ;;  %v1468_v63 = vpop.f32.mrf.mxu0  ;;  %2571 = vmatprep.subr.mxu0 %v6556_v0  ;;  %v4299_v52 = vld [vmem:[%s5030_s30 + $0xc9] sm:$0xff] }
 0x165   : > { %v5464_v3 = vadd.f32 %v1771_v62, %v1467_v59  ;;  %2384 = vmatprep.mubr.f32.mxu1 %v4391_v56  ;;  %2875 = vmatpush2.msra.mxu1 %v1242_v57  ;;  %v4346_v56 = vld [vmem:[%s5030_s30 + $0xc2] sm:$0xff]  ;;  %v1238_v62 = vld [vmem:[#allocation2 + $0x5d0] sm:$0xff] }
 0x166   : > { %v1773_v6 = vpop.f32.mrf.mxu1  ;;  %v1471_v8 = vpop.f32.mrf.mxu0  ;;  %2080 = vmatmul.mubr.f32.gmra.mxu0 %v4247_v61  ;;  %2876 = vmatprep.subr.mxu1 %v6556_v0  ;;  %v4395_v61 = vld [vmem:[%s5030_s30 + $0xcb] sm:$0xff] }
 0x167   : > { %v1472_v13 = vadd.f32 %v5302_v9, %v1471_v8  ;;  %2084 = vmatprep.mubr.f32.mxu0 %v4296_v1  ;;  %2572 = vmatpush2.msra.mxu0 %v1209_v2  ;;  %v4251_v1 = vld [vmem:[%s5030_s30 + $0xc8] sm:$0xff]  ;;  %v4300_v6 = vld [vmem:[%s5030_s30 + $0xd1] sm:$0xff] }
 0x168   : > { %v1776_v15 = vpop.f32.mrf.mxu1  ;;  %2385 = vmatmul.mubr.f32.gmra.mxu1 %v4343_v5  ;;  %v1473_v16 = vpop.f32.mrf.mxu0  ;;  %2573 = vmatprep.subr.mxu0 %v6556_v0  ;;  %v1205_v8 = vld [vmem:[#allocation2 + $0x4c8] sm:$0xff] }
 0x169   : > { %v5473_v21 = vadd.f32 %v1776_v15, %v1472_v13  ;;  %2389 = vmatprep.mubr.f32.mxu1 %v4392_v10  ;;  %2877 = vmatpush2.msra.mxu1 %v1241_v12  ;;  %v4347_v12 = vld [vmem:[%s5030_s30 + $0xca] sm:$0xff]  ;;  %v4396_v15 = vld [vmem:[%s5030_s30 + $0xd3] sm:$0xff] }
 0x16a   : > { %v1778_v24 = vpop.f32.mrf.mxu1  ;;  %v1476_v26 = vpop.f32.mrf.mxu0  ;;  %2085 = vmatmul.mubr.f32.gmra.mxu0 %v4248_v14  ;;  %2878 = vmatprep.subr.mxu1 %v6556_v0  ;;  %v1237_v16 = vld [vmem:[#allocation2 + $0x5c8] sm:$0xff] }
 0x16b   : > { %v1477_v29 = vadd.f32 %v5302_v9, %v1476_v26  ;;  %2089 = vmatprep.mubr.f32.mxu0 %v4297_v17  ;;  %2574 = vmatpush2.msra.mxu0 %v1208_v18  ;;  %v4252_v18 = vld [vmem:[%s5030_s30 + $0xd0] sm:$0xff]  ;;  %v4301_v26 = vld [vmem:[%s5030_s30 + $0xd9] sm:$0xff] }
 0x16c   : > { %v1781_v31 = vpop.f32.mrf.mxu1  ;;  %2390 = vmatmul.mubr.f32.gmra.mxu1 %v4344_v23  ;;  %v1478_v32 = vpop.f32.mrf.mxu0  ;;  %2575 = vmatprep.subr.mxu0 %v6556_v0 }
 0x16d   : > { %v5482_v38 = vadd.f32 %v1781_v31, %v1477_v29  ;;  %2394 = vmatprep.mubr.f32.mxu1 %v4393_v27  ;;  %2879 = vmatpush2.msra.mxu1 %v1240_v28  ;;  %v1204_v27 = vld [vmem:[#allocation2 + $0x4c0] sm:$0xff]  ;;  %v4348_v29 = vld [vmem:[%s5030_s30 + $0xd2] sm:$0xff] }
 0x16e   : > { %v1783_v41 = vpop.f32.mrf.mxu1  ;;  %v1481_v42 = vpop.f32.mrf.mxu0  ;;  %2090 = vmatmul.mubr.f32.gmra.mxu0 %v4249_v30  ;;  %2880 = vmatprep.subr.mxu1 %v6556_v0  ;;  %v4397_v32 = vld [vmem:[%s5030_s30 + $0xdb] sm:$0xff] }
 0x16f   : > { %v1482_v45 = vadd.f32 %v5302_v9, %v1481_v42  ;;  %2094 = vmatprep.mubr.f32.mxu0 %v4298_v35  ;;  %2576 = vmatpush2.msra.mxu0 %v1207_v37  ;;  %v1236_v35 = vld [vmem:[#allocation2 + $0x5c0] sm:$0xff] }
 0x170   : > { %v1786_v49 = vpop.f32.mrf.mxu1  ;;  %2395 = vmatmul.mubr.f32.gmra.mxu1 %v4345_v40  ;;  %v1483_v50 = vpop.f32.mrf.mxu0  ;;  %2577 = vmatprep.subr.mxu0 %v6556_v0  ;;  %v4253_v40 = vld [vmem:[%s5030_s30 + $0xd8] sm:$0xff] }
 0x171   : > { %v5491_v55 = vadd.f32 %v1786_v49, %v1482_v45  ;;  %2399 = vmatprep.mubr.f32.mxu1 %v4394_v43  ;;  %2881 = vmatpush2.msra.mxu1 %v1239_v44  ;;  %v4302_v43 = vld [vmem:[%s5030_s30 + $0xe1] sm:$0xff]  ;;  %v1203_v44 = vld [vmem:[#allocation2 + $0x4b8] sm:$0xff] }
 0x172   : > { %v1788_v57 = vpop.f32.mrf.mxu1  ;;  %v1486_v59 = vpop.f32.mrf.mxu0  ;;  %2095 = vmatmul.mubr.f32.gmra.mxu0 %v4250_v48  ;;  %2882 = vmatprep.subr.mxu1 %v6556_v0  ;;  %v4349_v48 = vld [vmem:[%s5030_s30 + $0xda] sm:$0xff] }
 0x173   : > { %v1487_v63 = vadd.f32 %v5302_v9, %v1486_v59  ;;  %2099 = vmatprep.mubr.f32.mxu0 %v4299_v52  ;;  %2578 = vmatpush2.msra.mxu0 %v1206_v54  ;;  %v4398_v52 = vld [vmem:[%s5030_s30 + $0xe3] sm:$0xff]  ;;  %v1235_v54 = vld [vmem:[#allocation2 + $0x5b8] sm:$0xff] }
 0x174   : > { %v1791_v2 = vpop.f32.mrf.mxu1  ;;  %2400 = vmatmul.mubr.f32.gmra.mxu1 %v4346_v56  ;;  %v1488_v5 = vpop.f32.mrf.mxu0  ;;  %2579 = vmatprep.subr.mxu0 %v6556_v0  ;;  %v4254_v57 = vld [vmem:[%s5030_s30 + $0xe0] sm:$0xff] }
 0x175   : > { %v5500_v10 = vadd.f32 %v1791_v2, %v1487_v63  ;;  %2404 = vmatprep.mubr.f32.mxu1 %v4395_v61  ;;  %2883 = vmatpush2.msra.mxu1 %v1238_v62  ;;  %v4303_v62 = vld [vmem:[%s5030_s30 + $0xe9] sm:$0xff] }
 0x176   : > { %v1793_v13 = vpop.f32.mrf.mxu1  ;;  %v1491_v14 = vpop.f32.mrf.mxu0  ;;  %2100 = vmatmul.mubr.f32.gmra.mxu0 %v4251_v1  ;;  %2884 = vmatprep.subr.mxu1 %v6556_v0  ;;  %v1202_v63 = vld [vmem:[#allocation2 + $0x4b0] sm:$0xff]  ;;  %v4350_v2 = vld [vmem:[%s5030_s30 + $0xe2] sm:$0xff] }
 0x177   : > { %v1492_v17 = vadd.f32 %v5302_v9, %v1491_v14  ;;  %2104 = vmatprep.mubr.f32.mxu0 %v4300_v6  ;;  %2580 = vmatpush2.msra.mxu0 %v1205_v8  ;;  %v4399_v8 = vld [vmem:[%s5030_s30 + $0xeb] sm:$0xff] }
 0x178   : > { %v1796_v23 = vpop.f32.mrf.mxu1  ;;  %2405 = vmatmul.mubr.f32.gmra.mxu1 %v4347_v12  ;;  %v1493_v24 = vpop.f32.mrf.mxu0  ;;  %2581 = vmatprep.subr.mxu0 %v6556_v0  ;;  %v1234_v12 = vld [vmem:[#allocation2 + $0x5b0] sm:$0xff]  ;;  %v4255_v14 = vld [vmem:[%s5030_s30 + $0xe8] sm:$0xff] }
 0x179   : > { %v5509_v28 = vadd.f32 %v1796_v23, %v1492_v17  ;;  %2409 = vmatprep.mubr.f32.mxu1 %v4396_v15  ;;  %2885 = vmatpush2.msra.mxu1 %v1237_v16  ;;  %v4304_v17 = vld [vmem:[%s5030_s30 + $0xf1] sm:$0xff] }
 0x17a   : > { %v1798_v30 = vpop.f32.mrf.mxu1  ;;  %v1496_v31 = vpop.f32.mrf.mxu0  ;;  %2105 = vmatmul.mubr.f32.gmra.mxu0 %v4252_v18  ;;  %2886 = vmatprep.subr.mxu1 %v6556_v0  ;;  %v1201_v18 = vld [vmem:[#allocation2 + $0x4a8] sm:$0xff] }
 0x17b   : > { %v1497_v37 = vadd.f32 %v5302_v9, %v1496_v31  ;;  %2109 = vmatprep.mubr.f32.mxu0 %v4301_v26  ;;  %2582 = vmatpush2.msra.mxu0 %v1204_v27  ;;  %v4351_v24 = vld [vmem:[%s5030_s30 + $0xea] sm:$0xff]  ;;  %v4400_v27 = vld [vmem:[%s5030_s30 + $0xf3] sm:$0xff]  ;;  %v5544_v30 = vld [vmem:[%s6554_s2] ss:$0 sm:$0xff] }
 0x17c   : > { %v1801_v41 = vpop.f32.mrf.mxu1  ;;  %2410 = vmatmul.mubr.f32.gmra.mxu1 %v4348_v29  ;;  %v1498_v42 = vpop.f32.mrf.mxu0  ;;  %2583 = vmatprep.subr.mxu0 %v6556_v0  ;;  %v1233_v29 = vld [vmem:[#allocation2 + $0x5a8] sm:$0xff] }
 0x17d   : > { %v5518_v45 = vadd.f32 %v1801_v41, %v1497_v37  ;;  %2414 = vmatprep.mubr.f32.mxu1 %v4397_v32  ;;  %2887 = vmatpush2.msra.mxu1 %v1236_v35  ;;  %v4256_v32 = vld [vmem:[%s5030_s30 + $0xf0] sm:$0xff]  ;;  %v1200_v41 = vld [vmem:[#allocation2 + $0x4a0] sm:$0xff] }
 0x17e   : > { %v1803_v49 = vpop.f32.mrf.mxu1  ;;  %v1501_v50 = vpop.f32.mrf.mxu0  ;;  %2110 = vmatmul.mubr.f32.gmra.mxu0 %v4253_v40  ;;  %2888 = vmatprep.subr.mxu1 %v6556_v0  ;;  %v4305_v40 = vld [vmem:[%s5030_s30 + $0xf9] sm:$0xff] }
 0x17f   : > { %v1502_v56 = vadd.f32 %v5302_v9, %v1501_v50  ;;  %2114 = vmatprep.mubr.f32.mxu0 %v4302_v43  ;;  %2584 = vmatpush2.msra.mxu0 %v1203_v44  ;;  %v4352_v43 = vld [vmem:[%s5030_s30 + $0xf2] sm:$0xff]  ;;  %v4401_v49 = vld [vmem:[%s5030_s30 + $0xfb] sm:$0xff] }
 0x180   : > { %v1806_v59 = vpop.f32.mrf.mxu1  ;;  %2415 = vmatmul.mubr.f32.gmra.mxu1 %v4349_v48  ;;  %v1503_v61 = vpop.f32.mrf.mxu0  ;;  %2585 = vmatprep.subr.mxu0 %v6556_v0  ;;  %v1232_v50 = vld [vmem:[#allocation2 + $0x5a0] sm:$0xff] }
 0x181   : > { %v5527_v1 = vadd.f32 %v1806_v59, %v1502_v56  ;;  %2419 = vmatprep.mubr.f32.mxu1 %v4398_v52  ;;  %2889 = vmatpush2.msra.mxu1 %v1235_v54  ;;  %v4257_v54 = vld [vmem:[%s5030_s30 + $0xf8] sm:$0xff]  ;;  %v4306_v59 = vld [vmem:[%s5030_s30 + $0x101] sm:$0xff] }
 0x182   : > { %v1808_v5 = vpop.f32.mrf.mxu1  ;;  %v1506_v6 = vpop.f32.mrf.mxu0  ;;  %2115 = vmatmul.mubr.f32.gmra.mxu0 %v4254_v57  ;;  %2890 = vmatprep.subr.mxu1 %v6556_v0  ;;  %v1199_v61 = vld [vmem:[#allocation2 + $0x498] sm:$0xff] }
 0x183   : > { %v1507_v13 = vadd.f32 %v5302_v9, %v1506_v6  ;;  %2119 = vmatprep.mubr.f32.mxu0 %v4303_v62  ;;  %2586 = vmatpush2.msra.mxu0 %v1202_v63  ;;  %v4353_v63 = vld [vmem:[%s5030_s30 + $0xfa] sm:$0xff]  ;;  %v4402_v6 = vld [vmem:[%s5030_s30 + $0x103] sm:$0xff] }
 0x184   : > { %v1811_v15 = vpop.f32.mrf.mxu1  ;;  %2420 = vmatmul.mubr.f32.gmra.mxu1 %v4350_v2  ;;  %v1508_v16 = vpop.f32.mrf.mxu0  ;;  %2587 = vmatprep.subr.mxu0 %v6556_v0 }
 0x185   : > { %v5536_v23 = vadd.f32 %v1811_v15, %v1507_v13  ;;  %2424 = vmatprep.mubr.f32.mxu1 %v4399_v8  ;;  %2891 = vmatpush2.msra.mxu1 %v1234_v12  ;;  %v1231_v8 = vld [vmem:[#allocation2 + $0x598] sm:$0xff]  ;;  %v4258_v13 = vld [vmem:[%s5030_s30 + $0x100] sm:$0xff]  ;;  %v4307_v16 = vld [vmem:[%s5030_s30 + $0x109] sm:$0xff] }
 0x186   : > { %v1813_v26 = vpop.f32.mrf.mxu1  ;;  %v1511_v9 = vpop.f32.mrf.mxu0  ;;  %2120 = vmatmul.mubr.f32.gmra.mxu0 %v4255_v14  ;;  %2892 = vmatprep.subr.mxu1 %v6556_v0 }
 0x187   : > { %v1512_v31 = vadd.f32 %v5544_v30, %v1511_v9  ;;  %2124 = vmatprep.mubr.f32.mxu0 %v4304_v17  ;;  %2588 = vmatpush2.msra.mxu0 %v1201_v18  ;;  %v1198_v17 = vld [vmem:[#allocation2 + $0x490] sm:$0xff] }
 0x188   : > { %v1816_v35 = vpop.f32.mrf.mxu1  ;;  %2425 = vmatmul.mubr.f32.gmra.mxu1 %v4351_v24  ;;  %v1513_v37 = vpop.f32.mrf.mxu0  ;;  %2589 = vmatprep.subr.mxu0 %v6556_v0  ;;  %v4354_v24 = vld [vmem:[%s5030_s30 + $0x102] sm:$0xff] }
 0x189   : > { %v5550_v42 = vadd.f32 %v1816_v35, %v1512_v31  ;;  %2429 = vmatprep.mubr.f32.mxu1 %v4400_v27  ;;  %2893 = vmatpush2.msra.mxu1 %v1233_v29  ;;  %v4403_v27 = vld [vmem:[%s5030_s30 + $0x10b] sm:$0xff] }
 0x18a   : > { %v1818_v44 = vpop.f32.mrf.mxu1  ;;  %v1516_v48 = vpop.f32.mrf.mxu0  ;;  %2125 = vmatmul.mubr.f32.gmra.mxu0 %v4256_v32  ;;  %2894 = vmatprep.subr.mxu1 %v6556_v0  ;;  %v1230_v29 = vld [vmem:[#allocation2 + $0x590] sm:$0xff]  ;;  %v4259_v32 = vld [vmem:[%s5030_s30 + $0x108] sm:$0xff] }
 0x18b   : > { %v1517_v52 = vadd.f32 %v5544_v30, %v1516_v48  ;;  %2129 = vmatprep.mubr.f32.mxu0 %v4305_v40  ;;  %2590 = vmatpush2.msra.mxu0 %v1200_v41  ;;  %v4308_v40 = vld [vmem:[%s5030_s30 + $0x111] sm:$0xff]  ;;  %v1197_v41 = vld [vmem:[#allocation2 + $0x488] sm:$0xff] }
 0x18c   : > { %v1821_v56 = vpop.f32.mrf.mxu1  ;;  %2430 = vmatmul.mubr.f32.gmra.mxu1 %v4352_v43  ;;  %v1518_v57 = vpop.f32.mrf.mxu0  ;;  %2591 = vmatprep.subr.mxu0 %v6556_v0  ;;  %v4355_v44 = vld [vmem:[%s5030_s30 + $0x10a] sm:$0xff] }
 0x18d   : > { %v5559_v62 = vadd.f32 %v1821_v56, %v1517_v52  ;;  %2434 = vmatprep.mubr.f32.mxu1 %v4401_v49  ;;  %2895 = vmatpush2.msra.mxu1 %v1232_v50  ;;  %v4404_v50 = vld [vmem:[%s5030_s30 + $0x113] sm:$0xff]  ;;  %v1229_v52 = vld [vmem:[#allocation2 + $0x588] sm:$0xff] }
 0x18e   : > { %v1823_v2 = vpop.f32.mrf.mxu1  ;;  %v1521_v5 = vpop.f32.mrf.mxu0  ;;  %2130 = vmatmul.mubr.f32.gmra.mxu0 %v4257_v54  ;;  %2896 = vmatprep.subr.mxu1 %v6556_v0  ;;  %v4260_v56 = vld [vmem:[%s5030_s30 + $0x110] sm:$0xff] }
 0x18f   : > { %v1522_v12 = vadd.f32 %v5544_v30, %v1521_v5  ;;  %2134 = vmatprep.mubr.f32.mxu0 %v4306_v59  ;;  %2592 = vmatpush2.msra.mxu0 %v1199_v61  ;;  %v4309_v61 = vld [vmem:[%s5030_s30 + $0x119] sm:$0xff] }
 0x190   : > { %v1826_v14 = vpop.f32.mrf.mxu1  ;;  %2435 = vmatmul.mubr.f32.gmra.mxu1 %v4353_v63  ;;  %v1523_v15 = vpop.f32.mrf.mxu0  ;;  %2593 = vmatprep.subr.mxu0 %v6556_v0  ;;  %v1196_v63 = vld [vmem:[#allocation2 + $0x480] sm:$0xff]  ;;  %v4356_v5 = vld [vmem:[%s5030_s30 + $0x112] sm:$0xff] }
 0x191   : > { %v5568_v18 = vadd.f32 %v1826_v14, %v1522_v12  ;;  %2439 = vmatprep.mubr.f32.mxu1 %v4402_v6  ;;  %2897 = vmatpush2.msra.mxu1 %v1231_v8  ;;  %v4405_v12 = vld [vmem:[%s5030_s30 + $0x11b] sm:$0xff] }
 0x192   : > { %v1828_v26 = vpop.f32.mrf.mxu1  ;;  %v1526_v9 = vpop.f32.mrf.mxu0  ;;  %2135 = vmatmul.mubr.f32.gmra.mxu0 %v4258_v13  ;;  %2898 = vmatprep.subr.mxu1 %v6556_v0  ;;  %v1228_v13 = vld [vmem:[#allocation2 + $0x580] sm:$0xff]  ;;  %v4261_v15 = vld [vmem:[%s5030_s30 + $0x118] sm:$0xff] }
 0x193   : > { %v1527_v31 = vadd.f32 %v5544_v30, %v1526_v9  ;;  %2139 = vmatprep.mubr.f32.mxu0 %v4307_v16  ;;  %2594 = vmatpush2.msra.mxu0 %v1198_v17  ;;  %v4357_v9 = vld [vmem:[%s5030_s30 + $0x11a] sm:$0xff] }
 0x194   : > { %v1831_v35 = vpop.f32.mrf.mxu1  ;;  %2440 = vmatmul.mubr.f32.gmra.mxu1 %v4354_v24  ;;  %v1528_v37 = vpop.f32.mrf.mxu0  ;;  %2595 = vmatprep.subr.mxu0 %v6556_v0  ;;  %v4310_v24 = vld [vmem:[%s5030_s30 + $0x121] sm:$0xff] }
 0x195   : > { %v5577_v43 = vadd.f32 %v1831_v35, %v1527_v31  ;;  %2444 = vmatprep.mubr.f32.mxu1 %v4403_v27  ;;  %2899 = vmatpush2.msra.mxu1 %v1230_v29  ;;  %v4406_v31 = vld [vmem:[%s5030_s30 + $0x123] sm:$0xff] }
 0x196   : > { %v1833_v48 = vpop.f32.mrf.mxu1  ;;  %v1531_v49 = vpop.f32.mrf.mxu0  ;;  %2140 = vmatmul.mubr.f32.gmra.mxu0 %v4259_v32  ;;  %2900 = vmatprep.subr.mxu1 %v6556_v0  ;;  %v4262_v35 = vld [vmem:[%s5030_s30 + $0x120] sm:$0xff] }
 0x197   : > { %v1532_v54 = vadd.f32 %v5544_v30, %v1531_v49  ;;  %2144 = vmatprep.mubr.f32.mxu0 %v4308_v40  ;;  %2596 = vmatpush2.msra.mxu0 %v1197_v41  ;;  %v4311_v41 = vld [vmem:[%s5030_s30 + $0x129] sm:$0xff] }
 0x198   : > { %v1836_v57 = vpop.f32.mrf.mxu1  ;;  %2445 = vmatmul.mubr.f32.gmra.mxu1 %v4355_v44  ;;  %v1533_v59 = vpop.f32.mrf.mxu0  ;;  %2597 = vmatprep.subr.mxu0 %v6556_v0  ;;  %v4358_v48 = vld [vmem:[%s5030_s30 + $0x122] sm:$0xff] }
 0x199   : > { %v5586_v2 = vadd.f32 %v1836_v57, %v1532_v54  ;;  %2449 = vmatprep.mubr.f32.mxu1 %v4404_v50  ;;  %2901 = vmatpush2.msra.mxu1 %v1229_v52  ;;  %v4407_v52 = vld [vmem:[%s5030_s30 + $0x12b] sm:$0xff] }
 0x19a   : > { %v1838_v6 = vpop.f32.mrf.mxu1  ;;  %v1536_v8 = vpop.f32.mrf.mxu0  ;;  %2145 = vmatmul.mubr.f32.gmra.mxu0 %v4260_v56  ;;  %2902 = vmatprep.subr.mxu1 %v6556_v0  ;;  %v4263_v56 = vld [vmem:[%s5030_s30 + $0x128] sm:$0xff] }
 0x19b   : > { %v1537_v14 = vadd.f32 %v5544_v30, %v1536_v8  ;;  %2149 = vmatprep.mubr.f32.mxu0 %v4309_v61  ;;  %2598 = vmatpush2.msra.mxu0 %v1196_v63  ;;  %v4312_v61 = vld [vmem:[%s5030_s30 + $0x131] sm:$0xff] }
 0x19c   : > { %v1841_v16 = vpop.f32.mrf.mxu1  ;;  %2450 = vmatmul.mubr.f32.gmra.mxu1 %v4356_v5  ;;  %v1538_v17 = vpop.f32.mrf.mxu0  ;;  %3145 = vmatprep.subr.mxu0 %v6556_v0  ;;  %v4359_v5 = vld [vmem:[%s5030_s30 + $0x12a] sm:$0xff] }
 0x19d   : > { %v5595_v26 = vadd.f32 %v1841_v16, %v1537_v14  ;;  %2454 = vmatprep.mubr.f32.mxu1 %v4405_v12  ;;  %2903 = vmatpush2.msra.mxu1 %v1228_v13  ;;  %v4408_v12 = vld [vmem:[%s5030_s30 + $0x133] sm:$0xff] }
 0x19e   : > { %v1843_v27 = vpop.f32.mrf.mxu1  ;;  %v1541_v29 = vpop.f32.mrf.mxu0  ;;  %2150 = vmatmul.mubr.f32.gmra.mxu0 %v4261_v15  ;;  %3450 = vmatprep.subr.mxu1 %v6556_v0  ;;  %v4264_v14 = vld [vmem:[%s5030_s30 + $0x130] sm:$0xff]  ;;  %v4313_v17 = vld [vmem:[%s5030_s30 + $0x139] sm:$0xff] }
 0x19f   : > { %v1542_v32 = vadd.f32 %v5544_v30, %v1541_v29  ;;  %2154 = vmatprep.mubr.f32.mxu0 %v4310_v24  ;;  %v4566_v0 = vld [vmem:[%s5030_s30 + $0x3b] sm:$0xff] }
 0x1a0   : > { %v1846_v37 = vpop.f32.mrf.mxu1  ;;  %2455 = vmatmul.mubr.f32.gmra.mxu1 %v4357_v9  ;;  %v1543_v40 = vpop.f32.mrf.mxu0  ;;  %v4360_v9 = vld [vmem:[%s5030_s30 + $0x132] sm:$0xff] }
 0x1a1   : > { %v5603_v44 = vadd.f32 %v1846_v37, %v1542_v32  ;;  %2459 = vmatprep.mubr.f32.mxu1 %v4406_v31  ;;  %v4409_v31 = vld [vmem:[%s5030_s30 + $0x13b] sm:$0xff] }
 0x1a2   : > { %v1848_v49 = vpop.f32.mrf.mxu1  ;;  %v1546_v50 = vpop.f32.mrf.mxu0  ;;  %2155 = vmatmul.mubr.f32.gmra.mxu0 %v4262_v35  ;;  %v4265_v35 = vld [vmem:[%s5030_s30 + $0x138] sm:$0xff] }
 0x1a3   : > { %v1547_v54 = vadd.f32 %v5544_v30, %v1546_v50  ;;  %2159 = vmatprep.mubr.f32.mxu0 %v4311_v41  ;;  %v4314_v41 = vld [vmem:[%s5030_s30 + $0x141] sm:$0xff] }
 0x1a4   : > { %v1851_v57 = vpop.f32.mrf.mxu1  ;;  %2460 = vmatmul.mubr.f32.gmra.mxu1 %v4358_v48  ;;  %v1548_v59 = vpop.f32.mrf.mxu0  ;;  %v4361_v49 = vld [vmem:[%s5030_s30 + $0x13a] sm:$0xff] }
 0x1a5   : > { %v5610_v63 = vadd.f32 %v1851_v57, %v1547_v54  ;;  %2464 = vmatprep.mubr.f32.mxu1 %v4407_v52  ;;  %v4410_v54 = vld [vmem:[%s5030_s30 + $0x143] sm:$0xff] }
 0x1a6   : > { %v1853_v6 = vpop.f32.mrf.mxu1  ;;  %v1551_v8 = vpop.f32.mrf.mxu0  ;;  %2160 = vmatmul.mubr.f32.gmra.mxu0 %v4263_v56  ;;  %v4266_v57 = vld [vmem:[%s5030_s30 + $0x140] sm:$0xff] }
 0x1a7   : > { %v1552_v13 = vadd.f32 %v5544_v30, %v1551_v8  ;;  %2164 = vmatprep.mubr.f32.mxu0 %v4312_v61  ;;  %v4362_v8 = vld [vmem:[%s5030_s30 + $0x142] sm:$0xff] }
 0x1a8   : > { %v1856_v15 = vpop.f32.mrf.mxu1  ;;  %2465 = vmatmul.mubr.f32.gmra.mxu1 %v4359_v5  ;;  %v1553_v16 = vpop.f32.mrf.mxu0  ;;  %v4315_v5 = vld [vmem:[%s5030_s30 + $0x149] sm:$0xff] }
 0x1a9   : > { %v5617_v24 = vadd.f32 %v1856_v15, %v1552_v13  ;;  %2469 = vmatprep.mubr.f32.mxu1 %v4408_v12  ;;  %v4267_v16 = vld [vmem:[%s5030_s30 + $0x148] sm:$0xff] }
 0x1aa   : > { %v1858_v27 = vpop.f32.mrf.mxu1  ;;  %v1556_v29 = vpop.f32.mrf.mxu0  ;;  %2165 = vmatmul.mubr.f32.gmra.mxu0 %v4264_v14  ;;  %v4411_v14 = vld [vmem:[%s5030_s30 + $0x14b] sm:$0xff] }
 0x1ab   : > { %v1557_v32 = vadd.f32 %v5544_v30, %v1556_v29  ;;  %2169 = vmatprep.mubr.f32.mxu0 %v4313_v17  ;;  %v4316_v27 = vld [vmem:[%s5030_s30 + $0x151] sm:$0xff] }
 0x1ac   : > { %v1861_v37 = vpop.f32.mrf.mxu1  ;;  %2470 = vmatmul.mubr.f32.gmra.mxu1 %v4360_v9  ;;  %v1558_v40 = vpop.f32.mrf.mxu0 }
 0x1ad   : > { %v5624_v48 = vadd.f32 %v1861_v37, %v1557_v32  ;;  %2474 = vmatprep.mubr.f32.mxu1 %v4409_v31  ;;  %v4363_v31 = vld [vmem:[%s5030_s30 + $0x14a] sm:$0xff]  ;;  %v4412_v37 = vld [vmem:[%s5030_s30 + $0x153] sm:$0xff] }
 0x1ae   : > { %v1863_v50 = vpop.f32.mrf.mxu1  ;;  %v1561_v52 = vpop.f32.mrf.mxu0  ;;  %2170 = vmatmul.mubr.f32.gmra.mxu0 %v4265_v35 }
 0x1af   : > { %v1562_v56 = vadd.f32 %v5544_v30, %v1561_v52  ;;  %2174 = vmatprep.mubr.f32.mxu0 %v4314_v41  ;;  %v4268_v41 = vld [vmem:[%s5030_s30 + $0x150] sm:$0xff]  ;;  %v4317_v52 = vld [vmem:[%s5030_s30 + $0x159] sm:$0xff] }
 0x1b0   : > { %v1866_v59 = vpop.f32.mrf.mxu1  ;;  %2475 = vmatmul.mubr.f32.gmra.mxu1 %v4361_v49  ;;  %v1563_v61 = vpop.f32.mrf.mxu0 }
 0x1b1   : > { %v5631_v6 = vadd.f32 %v1866_v59, %v1562_v56  ;;  %2479 = vmatprep.mubr.f32.mxu1 %v4410_v54  ;;  %v4364_v56 = vld [vmem:[%s5030_s30 + $0x152] sm:$0xff]  ;;  %v4413_v61 = vld [vmem:[%s5030_s30 + $0x15b] sm:$0xff] }
 0x1b2   : > { %v1868_v12 = vpop.f32.mrf.mxu1  ;;  %v1566_v13 = vpop.f32.mrf.mxu0  ;;  %2175 = vmatmul.mubr.f32.gmra.mxu0 %v4266_v57 }
 0x1b3   : > { %v1567_v15 = vadd.f32 %v5544_v30, %v1566_v13  ;;  %2179 = vmatprep.mubr.f32.mxu0 %v4315_v5 }
 0x1b4   : > { %v1871_v17 = vpop.f32.mrf.mxu1  ;;  %2480 = vmatmul.mubr.f32.gmra.mxu1 %v4362_v8  ;;  %v1568_v9 = vpop.f32.mrf.mxu0  ;;  %v4269_v8 = vld [vmem:[%s5030_s30 + $0x158] sm:$0xff] }
 0x1b5   : > { %v5638_v29 = vadd.f32 %v1871_v17, %v1567_v15  ;;  %2484 = vmatprep.mubr.f32.mxu1 %v4411_v14  ;;  %v4318_v14 = vld [vmem:[%s5030_s30 + $0x161] sm:$0xff] }
 0x1b6   : > { %v1873_v32 = vpop.f32.mrf.mxu1  ;;  %v1571_v35 = vpop.f32.mrf.mxu0  ;;  %2180 = vmatmul.mubr.f32.gmra.mxu0 %v4267_v16  ;;  %v4365_v16 = vld [vmem:[%s5030_s30 + $0x15a] sm:$0xff] }
 0x1b7   : > { %v1572_v40 = vadd.f32 %v5544_v30, %v1571_v35  ;;  %2184 = vmatprep.mubr.f32.mxu0 %v4316_v27  ;;  %v4414_v27 = vld [vmem:[%s5030_s30 + $0x163] sm:$0xff] }
 0x1b8   : > { %v1876_v49 = vpop.f32.mrf.mxu1  ;;  %2485 = vmatmul.mubr.f32.gmra.mxu1 %v4363_v31  ;;  %v1573_v50 = vpop.f32.mrf.mxu0  ;;  %v4270_v32 = vld [vmem:[%s5030_s30 + $0x160] sm:$0xff] }
 0x1b9   : > { %v5645_v54 = vadd.f32 %v1876_v49, %v1572_v40  ;;  %2489 = vmatprep.mubr.f32.mxu1 %v4412_v37  ;;  %v4319_v40 = vld [vmem:[%s5030_s30 + $0x169] sm:$0xff] }
 0x1ba   : > { %v1878_v57 = vpop.f32.mrf.mxu1  ;;  %v1576_v59 = vpop.f32.mrf.mxu0  ;;  %2185 = vmatmul.mubr.f32.gmra.mxu0 %v4268_v41  ;;  %v4366_v49 = vld [vmem:[%s5030_s30 + $0x162] sm:$0xff] }
 0x1bb   : > { %v1577_v5 = vadd.f32 %v5544_v30, %v1576_v59  ;;  %2189 = vmatprep.mubr.f32.mxu0 %v4317_v52  ;;  %v4271_v59 = vld [vmem:[%s5030_s30 + $0x168] sm:$0xff] }
 0x1bc   : > { %v1881_v12 = vpop.f32.mrf.mxu1  ;;  %2490 = vmatmul.mubr.f32.gmra.mxu1 %v4364_v56  ;;  %v1578_v13 = vpop.f32.mrf.mxu0  ;;  %v4415_v56 = vld [vmem:[%s5030_s30 + $0x16b] sm:$0xff] }
 0x1bd   : > { %v5652_v15 = vadd.f32 %v1881_v12, %v1577_v5  ;;  %2494 = vmatprep.mubr.f32.mxu1 %v4413_v61  ;;  %v4367_v13 = vld [vmem:[%s5030_s30 + $0x16a] sm:$0xff] }
 0x1be   : > { %v1883_v17 = vpop.f32.mrf.mxu1  ;;  %v1581_v9 = vpop.f32.mrf.mxu0  ;;  %2190 = vmatmul.mubr.f32.gmra.mxu0 %v4269_v8  ;;  %v4320_v8 = vld [vmem:[%s5030_s30 + $0x171] sm:$0xff] }
 0x1bf   : > { %v1582_v31 = vadd.f32 %v5544_v30, %v1581_v9  ;;  %2194 = vmatprep.mubr.f32.mxu0 %v4318_v14  ;;  %v4416_v17 = vld [vmem:[%s5030_s30 + $0x173] sm:$0xff] }
 0x1c0   : > { %v1886_v35 = vpop.f32.mrf.mxu1  ;;  %2495 = vmatmul.mubr.f32.gmra.mxu1 %v4365_v16  ;;  %v1583_v37 = vpop.f32.mrf.mxu0 }
 0x1c1   : > { %v5659_v41 = vadd.f32 %v1886_v35, %v1582_v31  ;;  %2499 = vmatprep.mubr.f32.mxu1 %v4414_v27  ;;  %v4272_v27 = vld [vmem:[%s5030_s30 + $0x170] sm:$0xff]  ;;  %v4321_v35 = vld [vmem:[%s5030_s30 + $0x179] sm:$0xff] }
 0x1c2   : > { %v1888_v50 = vpop.f32.mrf.mxu1  ;;  %v1586_v52 = vpop.f32.mrf.mxu0  ;;  %2195 = vmatmul.mubr.f32.gmra.mxu0 %v4270_v32 }
 0x1c3   : > { %v1587_v57 = vadd.f32 %v5544_v30, %v1586_v52  ;;  %2199 = vmatprep.mubr.f32.mxu0 %v4319_v40  ;;  %v4368_v40 = vld [vmem:[%s5030_s30 + $0x172] sm:$0xff]  ;;  %v4417_v52 = vld [vmem:[%s5030_s30 + $0x17b] sm:$0xff] }
 0x1c4   : > { %v1891_v61 = vpop.f32.mrf.mxu1  ;;  %2500 = vmatmul.mubr.f32.gmra.mxu1 %v4366_v49  ;;  %v1588_v5 = vpop.f32.mrf.mxu0 }
 0x1c5   : > { %v5666_v12 = vadd.f32 %v1891_v61, %v1587_v57  ;;  %2504 = vmatprep.mubr.f32.mxu1 %v4415_v56  ;;  %v4273_v57 = vld [vmem:[%s5030_s30 + $0x178] sm:$0xff]  ;;  %v4322_v5 = vld [vmem:[%s5030_s30 + $0x181] sm:$0xff] }
 0x1c6   : > { %v1893_v14 = vpop.f32.mrf.mxu1  ;;  %v1591_v16 = vpop.f32.mrf.mxu0  ;;  %2200 = vmatmul.mubr.f32.gmra.mxu0 %v4271_v59 }
 0x1c7   : > { %v1592_v9 = vadd.f32 %v5544_v30, %v1591_v16  ;;  %2204 = vmatprep.mubr.f32.mxu0 %v4320_v8 }
 0x1c8   : > { %v1896_v31 = vpop.f32.mrf.mxu1  ;;  %2505 = vmatmul.mubr.f32.gmra.mxu1 %v4367_v13  ;;  %v1593_v32 = vpop.f32.mrf.mxu0  ;;  %v4369_v13 = vld [vmem:[%s5030_s30 + $0x17a] sm:$0xff] }
 0x1c9   : > { %v5673_v37 = vadd.f32 %v1896_v31, %v1592_v9  ;;  %2509 = vmatprep.mubr.f32.mxu1 %v4416_v17  ;;  %v4418_v17 = vld [vmem:[%s5030_s30 + $0x183] sm:$0xff] }
 0x1ca   : > { %v1898_v49 = vpop.f32.mrf.mxu1  ;;  %v1596_v50 = vpop.f32.mrf.mxu0  ;;  %2205 = vmatmul.mubr.f32.gmra.mxu0 %v4272_v27  ;;  %v4274_v27 = vld [vmem:[%s5030_s30 + $0x180] sm:$0xff] }
 0x1cb   : > { %v1597_v56 = vadd.f32 %v5544_v30, %v1596_v50  ;;  %2209 = vmatprep.mubr.f32.mxu0 %v4321_v35  ;;  %v4323_v35 = vld [vmem:[%s5030_s30 + $0x189] sm:$0xff] }
 0x1cc   : > { %v1901_v59 = vpop.f32.mrf.mxu1  ;;  %2510 = vmatmul.mubr.f32.gmra.mxu1 %v4368_v40  ;;  %v1598_v61 = vpop.f32.mrf.mxu0  ;;  %v4370_v49 = vld [vmem:[%s5030_s30 + $0x182] sm:$0xff] }
 0x1cd   : > { %v5680_v8 = vadd.f32 %v1901_v59, %v1597_v56  ;;  %2514 = vmatprep.mubr.f32.mxu1 %v4417_v52  ;;  %v4419_v56 = vld [vmem:[%s5030_s30 + $0x18b] sm:$0xff] }
 0x1ce   : > { %v1903_v14 = vpop.f32.mrf.mxu1  ;;  %v1601_v16 = vpop.f32.mrf.mxu0  ;;  %2210 = vmatmul.mubr.f32.gmra.mxu0 %v4273_v57  ;;  %v4275_v59 = vld [vmem:[%s5030_s30 + $0x188] sm:$0xff] }
 0x1cf   : > { %v1602_v9 = vadd.f32 %v5544_v30, %v1601_v16  ;;  %2214 = vmatprep.mubr.f32.mxu0 %v4322_v5  ;;  %v4371_v16 = vld [vmem:[%s5030_s30 + $0x18a] sm:$0xff] }
 0x1d0   : > { %v1906_v31 = vpop.f32.mrf.mxu1  ;;  %2515 = vmatmul.mubr.f32.gmra.mxu1 %v4369_v13  ;;  %v1603_v32 = vpop.f32.mrf.mxu0  ;;  %v4324_v13 = vld [vmem:[%s5030_s30 + $0x191] sm:$0xff] }
 0x1d1   : > { %v5687_v40 = vadd.f32 %v1906_v31, %v1602_v9  ;;  %2519 = vmatprep.mubr.f32.mxu1 %v4418_v17  ;;  %v4276_v32 = vld [vmem:[%s5030_s30 + $0x190] sm:$0xff] }
 0x1d2   : > { %v1908_v50 = vpop.f32.mrf.mxu1  ;;  %v1606_v52 = vpop.f32.mrf.mxu0  ;;  %2215 = vmatmul.mubr.f32.gmra.mxu0 %v4274_v27  ;;  %v4420_v27 = vld [vmem:[%s5030_s30 + $0x193] sm:$0xff] }
 0x1d3   : > { %v1607_v57 = vadd.f32 %v5544_v30, %v1606_v52  ;;  %2219 = vmatprep.mubr.f32.mxu0 %v4323_v35  ;;  %v4469_v50 = vld [vmem:[%s5030_s30 + $0x31] sm:$0xff] }
 0x1d4   : > { %v1911_v61 = vpop.f32.mrf.mxu1  ;;  %2520 = vmatmul.mubr.f32.gmra.mxu1 %v4370_v49  ;;  %v1608_v5 = vpop.f32.mrf.mxu0 }
 0x1d5   : > { %v5694_v14 = vadd.f32 %v1911_v61, %v1607_v57  ;;  %2524 = vmatprep.mubr.f32.mxu1 %v4419_v56  ;;  %v4372_v56 = vld [vmem:[%s5030_s30 + $0x192] sm:$0xff] }
 0x1d6   : > { %v1913_v17 = vpop.f32.mrf.mxu1  ;;  %v1611_v9 = vpop.f32.mrf.mxu0  ;;  %2220 = vmatmul.mubr.f32.gmra.mxu0 %v4275_v59  ;;  %v4565_v59 = vld [vmem:[%s5030_s30 + $0x33] sm:$0xff] }
 0x1d7   : > { %v1612_v31 = vadd.f32 %v5544_v30, %v1611_v9  ;;  %2224 = vmatprep.mubr.f32.mxu0 %v4324_v13  ;;  %v4421_v13 = vld [vmem:[%s5030_s30 + $0x30] sm:$0xff]  ;;  %v1259_v9 = vld [vmem:[#allocation2 + $0x678] sm:$0xff] }
 0x1d8   : > { %v1916_v35 = vpop.f32.mrf.mxu1  ;;  %2525 = vmatmul.mubr.f32.gmra.mxu1 %v4371_v16  ;;  %v1613_v49 = vpop.f32.mrf.mxu0 }
 0x1d9   : > { %v5701_v52 = vadd.f32 %v1916_v35, %v1612_v31  ;;  %2529 = vmatprep.mubr.f32.mxu1 %v4420_v27  ;;  %v4470_v49 = vld [vmem:[%s5030_s30 + $0x39] sm:$0xff] }
 0x1da   : > { %v1918_v57 = vpop.f32.mrf.mxu1  ;;  %v1616_v61 = vpop.f32.mrf.mxu0  ;;  %2225 = vmatmul.mubr.f32.gmra.mxu0 %v4276_v32  ;;  %v4517_v27 = vld [vmem:[%s5030_s30 + $0x32] sm:$0xff] }
 0x1db   : > { %v1617_v5 = vadd.f32 %v5544_v30, %v1616_v61  ;;  %2599 = vmatprep.mubr.f32.mxu0 %v4469_v50  ;;  %v1291_v32 = vld [vmem:[#allocation2 + $0x778] sm:$0xff] }
 0x1dc   : > { %v1921_v17 = vpop.f32.mrf.mxu1  ;;  %2530 = vmatmul.mubr.f32.gmra.mxu1 %v4372_v56  ;;  %v1618_v16 = vpop.f32.mrf.mxu0  ;;  %v4422_v50 = vld [vmem:[%s5030_s30 + $0x38] sm:$0xff] }
 0x1dd   : > { %v5708_v31 = vadd.f32 %v1921_v17, %v1617_v5  ;;  %2904 = vmatprep.mubr.f32.mxu1 %v4565_v59  ;;  %v6560_v5 = vmov 0.0   ;;  %v4471_v59 = vld [vmem:[%s5030_s30 + $0x41] sm:$0xff]  ;;  %v1258_v17 = vld [vmem:[#allocation2 + $0x670] sm:$0xff] }
 0x1de   : > { %v1923_v35 = vpop.f32.mrf.mxu1  ;;  %v1991_v57 = vpop.f32.mrf.mxu0  ;;  %2600 = vmatmul.mubr.f32.vlgmr.msra.gmra.mxu0 %v4421_v13  ;;  %v4518_v13 = vld [vmem:[%s5030_s30 + $0x3a] sm:$0xff] }
 0x1df   : > { %v1992_v30 = vadd.f32 %v1991_v57, %v5311_v22  ;;  %3146 = vmatpush1.msra.mxu0 %v1259_v9  ;;  %2604 = vmatprep.mubr.f32.mxu0 %v4470_v49  ;;  %v4567_v9 = vld [vmem:[%s5030_s30 + $0x43] sm:$0xff]  ;;  %v1290_v49 = vld [vmem:[#allocation2 + $0x770] sm:$0xff] }
 0x1e0   : > { %v2296_v56 = vpop.f32.mrf.mxu1  ;;  %2905 = vmatmul.mubr.f32.vlgmr.msra.gmra.mxu1 %v4517_v27  ;;  %v1993_v61 = vpop.f32.mrf.mxu0  ;;  %3147 = vmatprep.subr.mxu0 %v6560_v5  ;;  %v4423_v57 = vld [vmem:[%s5030_s30 + $0x40] sm:$0xff] }
 0x1e1   : > { %v5716_v16 = vadd.f32 %v2296_v56, %v1992_v30  ;;  %3451 = vmatpush1.msra.mxu1 %v1291_v32  ;;  %2909 = vmatprep.mubr.f32.mxu1 %v4566_v0  ;;  %v4472_v0 = vld [vmem:[%s5030_s30 + $0x49] sm:$0xff] }
 0x1e2   : > { %v2298_v35 = vpop.f32.mrf.mxu1  ;;  %v1996_v22 = vpop.f32.mrf.mxu0  ;;  %2605 = vmatmul.mubr.f32.gmra.mxu0 %v4422_v50  ;;  %3452 = vmatprep.subr.mxu1 %v6560_v5  ;;  %v1257_v56 = vld [vmem:[#allocation2 + $0x668] sm:$0xff] }
 0x1e3   : > { %v1997_v27 = vadd.f32 %v1996_v22, %v5320_v34  ;;  %2609 = vmatprep.mubr.f32.mxu0 %v4471_v59  ;;  %3148 = vmatpush1.msra.mxu0 %v1258_v17  ;;  %v4519_v61 = vld [vmem:[%s5030_s30 + $0x42] sm:$0xff]  ;;  %v4568_v59 = vld [vmem:[%s5030_s30 + $0x4b] sm:$0xff] }
 0x1e4   : > { %v2301_v30 = vpop.f32.mrf.mxu1  ;;  %2910 = vmatmul.mubr.f32.gmra.mxu1 %v4518_v13  ;;  %v1998_v32 = vpop.f32.mrf.mxu0  ;;  %3149 = vmatprep.subr.mxu0 %v6560_v5  ;;  %v1289_v17 = vld [vmem:[#allocation2 + $0x768] sm:$0xff] }
 0x1e5   : > { %v5725_v50 = vadd.f32 %v2301_v30, %v1997_v27  ;;  %2914 = vmatprep.mubr.f32.mxu1 %v4567_v9  ;;  %3453 = vmatpush1.msra.mxu1 %v1290_v49  ;;  %v4424_v22 = vld [vmem:[%s5030_s30 + $0x48] sm:$0xff]  ;;  %v4473_v30 = vld [vmem:[%s5030_s30 + $0x51] sm:$0xff]  ;;  %v1256_v49 = vld [vmem:[#allocation2 + $0x660] sm:$0xff] }
 0x1e6   : > { %v2303_v35 = vpop.f32.mrf.mxu1  ;;  %v2001_v34 = vpop.f32.mrf.mxu0  ;;  %2610 = vmatmul.mubr.f32.gmra.mxu0 %v4423_v57  ;;  %3454 = vmatprep.subr.mxu1 %v6560_v5  ;;  %v4520_v32 = vld [vmem:[%s5030_s30 + $0x4a] sm:$0xff] }
 0x1e7   : > { %v2002_v13 = vadd.f32 %v2001_v34, %v5329_v46  ;;  %2614 = vmatprep.mubr.f32.mxu0 %v4472_v0  ;;  %3150 = vmatpush1.msra.mxu0 %v1257_v56  ;;  %v4569_v0 = vld [vmem:[%s5030_s30 + $0x53] sm:$0xff]  ;;  %v1288_v56 = vld [vmem:[#allocation2 + $0x760] sm:$0xff] }
 0x1e8   : > { %v2306_v27 = vpop.f32.mrf.mxu1  ;;  %2915 = vmatmul.mubr.f32.gmra.mxu1 %v4519_v61  ;;  %v2003_v9 = vpop.f32.mrf.mxu0  ;;  %3151 = vmatprep.subr.mxu0 %v6560_v5  ;;  %v4425_v34 = vld [vmem:[%s5030_s30 + $0x50] sm:$0xff] }
 0x1e9   : > { %v5734_v57 = vadd.f32 %v2306_v27, %v2002_v13  ;;  %2919 = vmatprep.mubr.f32.mxu1 %v4568_v59  ;;  %3455 = vmatpush1.msra.mxu1 %v1289_v17  ;;  %v4474_v27 = vld [vmem:[%s5030_s30 + $0x59] sm:$0xff] }
 0x1ea   : > { %v2308_v35 = vpop.f32.mrf.mxu1  ;;  %v2006_v46 = vpop.f32.mrf.mxu0  ;;  %2615 = vmatmul.mubr.f32.gmra.mxu0 %v4424_v22  ;;  %3456 = vmatprep.subr.mxu1 %v6560_v5  ;;  %v1255_v17 = vld [vmem:[#allocation2 + $0x658] sm:$0xff] }
 0x1eb   : > { %v2007_v61 = vadd.f32 %v2006_v46, %v5338_v58  ;;  %2619 = vmatprep.mubr.f32.mxu0 %v4473_v30  ;;  %3152 = vmatpush1.msra.mxu0 %v1256_v49  ;;  %v4521_v9 = vld [vmem:[%s5030_s30 + $0x52] sm:$0xff]  ;;  %v4570_v30 = vld [vmem:[%s5030_s30 + $0x5b] sm:$0xff] }
 0x1ec   : > { %v2311_v13 = vpop.f32.mrf.mxu1  ;;  %2920 = vmatmul.mubr.f32.gmra.mxu1 %v4520_v32  ;;  %v2008_v59 = vpop.f32.mrf.mxu0  ;;  %3153 = vmatprep.subr.mxu0 %v6560_v5  ;;  %v1287_v49 = vld [vmem:[#allocation2 + $0x758] sm:$0xff] }
 0x1ed   : > { %v5743_v22 = vadd.f32 %v2311_v13, %v2007_v61  ;;  %2924 = vmatprep.mubr.f32.mxu1 %v4569_v0  ;;  %3457 = vmatpush1.msra.mxu1 %v1288_v56  ;;  %v4426_v46 = vld [vmem:[%s5030_s30 + $0x58] sm:$0xff]  ;;  %v4475_v13 = vld [vmem:[%s5030_s30 + $0x61] sm:$0xff]  ;;  %v1254_v56 = vld [vmem:[#allocation2 + $0x650] sm:$0xff] }
 0x1ee   : > { %v2313_v35 = vpop.f32.mrf.mxu1  ;;  %v2011_v58 = vpop.f32.mrf.mxu0  ;;  %2620 = vmatmul.mubr.f32.gmra.mxu0 %v4425_v34  ;;  %3458 = vmatprep.subr.mxu1 %v6560_v5  ;;  %v4522_v59 = vld [vmem:[%s5030_s30 + $0x5a] sm:$0xff] }
 0x1ef   : > { %v2012_v32 = vadd.f32 %v2011_v58, %v5347_v7  ;;  %2624 = vmatprep.mubr.f32.mxu0 %v4474_v27  ;;  %3154 = vmatpush1.msra.mxu0 %v1255_v17  ;;  %v4571_v27 = vld [vmem:[%s5030_s30 + $0x63] sm:$0xff]  ;;  %v1286_v17 = vld [vmem:[#allocation2 + $0x750] sm:$0xff] }
 0x1f0   : > { %v2316_v61 = vpop.f32.mrf.mxu1  ;;  %2925 = vmatmul.mubr.f32.gmra.mxu1 %v4521_v9  ;;  %v2013_v0 = vpop.f32.mrf.mxu0  ;;  %3155 = vmatprep.subr.mxu0 %v6560_v5  ;;  %v4427_v58 = vld [vmem:[%s5030_s30 + $0x60] sm:$0xff] }
 0x1f1   : > { %v5752_v34 = vadd.f32 %v2316_v61, %v2012_v32  ;;  %2929 = vmatprep.mubr.f32.mxu1 %v4570_v30  ;;  %3459 = vmatpush1.msra.mxu1 %v1287_v49  ;;  %v4476_v61 = vld [vmem:[%s5030_s30 + $0x69] sm:$0xff] }
 0x1f2   : > { %v2318_v35 = vpop.f32.mrf.mxu1  ;;  %v2016_v7 = vpop.f32.mrf.mxu0  ;;  %2625 = vmatmul.mubr.f32.gmra.mxu0 %v4426_v46  ;;  %3460 = vmatprep.subr.mxu1 %v6560_v5  ;;  %v1253_v49 = vld [vmem:[#allocation2 + $0x648] sm:$0xff] }
 0x1f3   : > { %v2017_v9 = vadd.f32 %v2016_v7, %v5356_v20  ;;  %2629 = vmatprep.mubr.f32.mxu0 %v4475_v13  ;;  %3156 = vmatpush1.msra.mxu0 %v1254_v56  ;;  %v4523_v0 = vld [vmem:[%s5030_s30 + $0x62] sm:$0xff]  ;;  %v4572_v13 = vld [vmem:[%s5030_s30 + $0x6b] sm:$0xff] }
 0x1f4   : > { %v2321_v32 = vpop.f32.mrf.mxu1  ;;  %2930 = vmatmul.mubr.f32.gmra.mxu1 %v4522_v59  ;;  %v2018_v30 = vpop.f32.mrf.mxu0  ;;  %3157 = vmatprep.subr.mxu0 %v6560_v5  ;;  %v1285_v56 = vld [vmem:[#allocation2 + $0x748] sm:$0xff] }
 0x1f5   : > { %v5761_v46 = vadd.f32 %v2321_v32, %v2017_v9  ;;  %2934 = vmatprep.mubr.f32.mxu1 %v4571_v27  ;;  %3461 = vmatpush1.msra.mxu1 %v1286_v17  ;;  %v4428_v7 = vld [vmem:[%s5030_s30 + $0x68] sm:$0xff]  ;;  %v4477_v32 = vld [vmem:[%s5030_s30 + $0x71] sm:$0xff]  ;;  %v1252_v17 = vld [vmem:[#allocation2 + $0x640] sm:$0xff] }
 0x1f6   : > { %v2323_v35 = vpop.f32.mrf.mxu1  ;;  %v2021_v20 = vpop.f32.mrf.mxu0  ;;  %2630 = vmatmul.mubr.f32.gmra.mxu0 %v4427_v58  ;;  %3462 = vmatprep.subr.mxu1 %v6560_v5  ;;  %v4524_v30 = vld [vmem:[%s5030_s30 + $0x6a] sm:$0xff] }
 0x1f7   : > { %v2022_v59 = vadd.f32 %v2021_v20, %v5365_v33  ;;  %2634 = vmatprep.mubr.f32.mxu0 %v4476_v61  ;;  %3158 = vmatpush1.msra.mxu0 %v1253_v49  ;;  %v4573_v61 = vld [vmem:[%s5030_s30 + $0x73] sm:$0xff]  ;;  %v1284_v49 = vld [vmem:[#allocation2 + $0x740] sm:$0xff] }
 0x1f8   : > { %v2326_v9 = vpop.f32.mrf.mxu1  ;;  %2935 = vmatmul.mubr.f32.gmra.mxu1 %v4523_v0  ;;  %v2023_v27 = vpop.f32.mrf.mxu0  ;;  %3159 = vmatprep.subr.mxu0 %v6560_v5  ;;  %v4429_v20 = vld [vmem:[%s5030_s30 + $0x70] sm:$0xff] }
 0x1f9   : > { %v5770_v58 = vadd.f32 %v2326_v9, %v2022_v59  ;;  %2939 = vmatprep.mubr.f32.mxu1 %v4572_v13  ;;  %3463 = vmatpush1.msra.mxu1 %v1285_v56  ;;  %v4478_v9 = vld [vmem:[%s5030_s30 + $0x79] sm:$0xff] }
 0x1fa   : > { %v2328_v35 = vpop.f32.mrf.mxu1  ;;  %v2026_v33 = vpop.f32.mrf.mxu0  ;;  %2635 = vmatmul.mubr.f32.gmra.mxu0 %v4428_v7  ;;  %3464 = vmatprep.subr.mxu1 %v6560_v5  ;;  %v1251_v56 = vld [vmem:[#allocation2 + $0x638] sm:$0xff] }
 0x1fb   : > { %v2027_v0 = vadd.f32 %v2026_v33, %v5374_v47  ;;  %2639 = vmatprep.mubr.f32.mxu0 %v4477_v32  ;;  %3160 = vmatpush1.msra.mxu0 %v1252_v17  ;;  %v4525_v27 = vld [vmem:[%s5030_s30 + $0x72] sm:$0xff]  ;;  %v4574_v32 = vld [vmem:[%s5030_s30 + $0x7b] sm:$0xff] }
 0x1fc   : > { %v2331_v59 = vpop.f32.mrf.mxu1  ;;  %2940 = vmatmul.mubr.f32.gmra.mxu1 %v4524_v30  ;;  %v2028_v13 = vpop.f32.mrf.mxu0  ;;  %3161 = vmatprep.subr.mxu0 %v6560_v5  ;;  %v1283_v17 = vld [vmem:[#allocation2 + $0x738] sm:$0xff] }
 0x1fd   : > { %v5779_v7 = vadd.f32 %v2331_v59, %v2027_v0  ;;  %2944 = vmatprep.mubr.f32.mxu1 %v4573_v61  ;;  %3465 = vmatpush1.msra.mxu1 %v1284_v49  ;;  %v4430_v33 = vld [vmem:[%s5030_s30 + $0x78] sm:$0xff]  ;;  %v4479_v59 = vld [vmem:[%s5030_s30 + $0x81] sm:$0xff]  ;;  %v1250_v49 = vld [vmem:[#allocation2 + $0x630] sm:$0xff] }
 0x1fe   : > { %v2333_v35 = vpop.f32.mrf.mxu1  ;;  %v2031_v47 = vpop.f32.mrf.mxu0  ;;  %2640 = vmatmul.mubr.f32.gmra.mxu0 %v4429_v20  ;;  %3466 = vmatprep.subr.mxu1 %v6560_v5  ;;  %v4526_v13 = vld [vmem:[%s5030_s30 + $0x7a] sm:$0xff] }
 0x1ff   : > { %v2032_v30 = vadd.f32 %v2031_v47, %v5383_v60  ;;  %2644 = vmatprep.mubr.f32.mxu0 %v4478_v9  ;;  %3162 = vmatpush1.msra.mxu0 %v1251_v56  ;;  %v4575_v9 = vld [vmem:[%s5030_s30 + $0x83] sm:$0xff]  ;;  %v1282_v56 = vld [vmem:[#allocation2 + $0x730] sm:$0xff] }
 0x200   : > { %v2336_v0 = vpop.f32.mrf.mxu1  ;;  %2945 = vmatmul.mubr.f32.gmra.mxu1 %v4525_v27  ;;  %v2033_v61 = vpop.f32.mrf.mxu0  ;;  %3163 = vmatprep.subr.mxu0 %v6560_v5  ;;  %v4431_v47 = vld [vmem:[%s5030_s30 + $0x80] sm:$0xff] }
 0x201   : > { %v5788_v20 = vadd.f32 %v2336_v0, %v2032_v30  ;;  %2949 = vmatprep.mubr.f32.mxu1 %v4574_v32  ;;  %3467 = vmatpush1.msra.mxu1 %v1283_v17  ;;  %v4480_v0 = vld [vmem:[%s5030_s30 + $0x89] sm:$0xff] }
 0x202   : > { %v2338_v35 = vpop.f32.mrf.mxu1  ;;  %v2036_v60 = vpop.f32.mrf.mxu0  ;;  %2645 = vmatmul.mubr.f32.gmra.mxu0 %v4430_v33  ;;  %3468 = vmatprep.subr.mxu1 %v6560_v5  ;;  %v1249_v17 = vld [vmem:[#allocation2 + $0x628] sm:$0xff] }
 0x203   : > { %v2037_v27 = vadd.f32 %v2036_v60, %v5392_v11  ;;  %2649 = vmatprep.mubr.f32.mxu0 %v4479_v59  ;;  %3164 = vmatpush1.msra.mxu0 %v1250_v49  ;;  %v4527_v61 = vld [vmem:[%s5030_s30 + $0x82] sm:$0xff]  ;;  %v4576_v59 = vld [vmem:[%s5030_s30 + $0x8b] sm:$0xff] }
 0x204   : > { %v2341_v30 = vpop.f32.mrf.mxu1  ;;  %2950 = vmatmul.mubr.f32.gmra.mxu1 %v4526_v13  ;;  %v2038_v32 = vpop.f32.mrf.mxu0  ;;  %3165 = vmatprep.subr.mxu0 %v6560_v5  ;;  %v1281_v49 = vld [vmem:[#allocation2 + $0x728] sm:$0xff] }
 0x205   : > { %v5797_v33 = vadd.f32 %v2341_v30, %v2037_v27  ;;  %2954 = vmatprep.mubr.f32.mxu1 %v4575_v9  ;;  %3469 = vmatpush1.msra.mxu1 %v1282_v56  ;;  %v4432_v60 = vld [vmem:[%s5030_s30 + $0x88] sm:$0xff]  ;;  %v4481_v30 = vld [vmem:[%s5030_s30 + $0x91] sm:$0xff]  ;;  %v1248_v56 = vld [vmem:[#allocation2 + $0x620] sm:$0xff] }
 0x206   : > { %v2343_v35 = vpop.f32.mrf.mxu1  ;;  %v2041_v11 = vpop.f32.mrf.mxu0  ;;  %2650 = vmatmul.mubr.f32.gmra.mxu0 %v4431_v47  ;;  %3470 = vmatprep.subr.mxu1 %v6560_v5  ;;  %v4528_v32 = vld [vmem:[%s5030_s30 + $0x8a] sm:$0xff] }
 0x207   : > { %v2042_v13 = vadd.f32 %v2041_v11, %v5401_v25  ;;  %2654 = vmatprep.mubr.f32.mxu0 %v4480_v0  ;;  %3166 = vmatpush1.msra.mxu0 %v1249_v17  ;;  %v4577_v0 = vld [vmem:[%s5030_s30 + $0x93] sm:$0xff]  ;;  %v1280_v17 = vld [vmem:[#allocation2 + $0x720] sm:$0xff] }
 0x208   : > { %v2346_v27 = vpop.f32.mrf.mxu1  ;;  %2955 = vmatmul.mubr.f32.gmra.mxu1 %v4527_v61  ;;  %v2043_v9 = vpop.f32.mrf.mxu0  ;;  %3167 = vmatprep.subr.mxu0 %v6560_v5  ;;  %v4433_v11 = vld [vmem:[%s5030_s30 + $0x90] sm:$0xff] }
 0x209   : > { %v5806_v47 = vadd.f32 %v2346_v27, %v2042_v13  ;;  %2959 = vmatprep.mubr.f32.mxu1 %v4576_v59  ;;  %3471 = vmatpush1.msra.mxu1 %v1281_v49  ;;  %v4482_v27 = vld [vmem:[%s5030_s30 + $0x99] sm:$0xff] }
 0x20a   : > { %v2348_v35 = vpop.f32.mrf.mxu1  ;;  %v2046_v25 = vpop.f32.mrf.mxu0  ;;  %2655 = vmatmul.mubr.f32.gmra.mxu0 %v4432_v60  ;;  %3472 = vmatprep.subr.mxu1 %v6560_v5  ;;  %v1247_v49 = vld [vmem:[#allocation2 + $0x618] sm:$0xff] }
 0x20b   : > { %v2047_v61 = vadd.f32 %v2046_v25, %v5410_v39  ;;  %2659 = vmatprep.mubr.f32.mxu0 %v4481_v30  ;;  %3168 = vmatpush1.msra.mxu0 %v1248_v56  ;;  %v4529_v9 = vld [vmem:[%s5030_s30 + $0x92] sm:$0xff]  ;;  %v4578_v30 = vld [vmem:[%s5030_s30 + $0x9b] sm:$0xff] }
 0x20c   : > { %v2351_v13 = vpop.f32.mrf.mxu1  ;;  %2960 = vmatmul.mubr.f32.gmra.mxu1 %v4528_v32  ;;  %v2048_v59 = vpop.f32.mrf.mxu0  ;;  %3169 = vmatprep.subr.mxu0 %v6560_v5  ;;  %v1279_v56 = vld [vmem:[#allocation2 + $0x718] sm:$0xff] }
 0x20d   : > { %v5815_v60 = vadd.f32 %v2351_v13, %v2047_v61  ;;  %2964 = vmatprep.mubr.f32.mxu1 %v4577_v0  ;;  %3473 = vmatpush1.msra.mxu1 %v1280_v17  ;;  %v4434_v25 = vld [vmem:[%s5030_s30 + $0x98] sm:$0xff]  ;;  %v4483_v13 = vld [vmem:[%s5030_s30 + $0xa1] sm:$0xff]  ;;  %v1246_v17 = vld [vmem:[#allocation2 + $0x610] sm:$0xff] }
 0x20e   : > { %v2353_v35 = vpop.f32.mrf.mxu1  ;;  %v2051_v39 = vpop.f32.mrf.mxu0  ;;  %2660 = vmatmul.mubr.f32.gmra.mxu0 %v4433_v11  ;;  %3474 = vmatprep.subr.mxu1 %v6560_v5  ;;  %v4530_v59 = vld [vmem:[%s5030_s30 + $0x9a] sm:$0xff] }
 0x20f   : > { %v2052_v32 = vadd.f32 %v2051_v39, %v5419_v53  ;;  %2664 = vmatprep.mubr.f32.mxu0 %v4482_v27  ;;  %3170 = vmatpush1.msra.mxu0 %v1247_v49  ;;  %v4579_v27 = vld [vmem:[%s5030_s30 + $0xa3] sm:$0xff]  ;;  %v1278_v49 = vld [vmem:[#allocation2 + $0x710] sm:$0xff] }
 0x210   : > { %v2356_v61 = vpop.f32.mrf.mxu1  ;;  %2965 = vmatmul.mubr.f32.gmra.mxu1 %v4529_v9  ;;  %v2053_v0 = vpop.f32.mrf.mxu0  ;;  %3171 = vmatprep.subr.mxu0 %v6560_v5  ;;  %v4435_v39 = vld [vmem:[%s5030_s30 + $0xa0] sm:$0xff] }
 0x211   : > { %v5824_v11 = vadd.f32 %v2356_v61, %v2052_v32  ;;  %2969 = vmatprep.mubr.f32.mxu1 %v4578_v30  ;;  %3475 = vmatpush1.msra.mxu1 %v1279_v56  ;;  %v4484_v61 = vld [vmem:[%s5030_s30 + $0xa9] sm:$0xff] }
 0x212   : > { %v2358_v35 = vpop.f32.mrf.mxu1  ;;  %v2056_v53 = vpop.f32.mrf.mxu0  ;;  %2665 = vmatmul.mubr.f32.gmra.mxu0 %v4434_v25  ;;  %3476 = vmatprep.subr.mxu1 %v6560_v5  ;;  %v1245_v56 = vld [vmem:[#allocation2 + $0x608] sm:$0xff] }
 0x213   : > { %v2057_v9 = vadd.f32 %v2056_v53, %v5428_v4  ;;  %2669 = vmatprep.mubr.f32.mxu0 %v4483_v13  ;;  %3172 = vmatpush1.msra.mxu0 %v1246_v17  ;;  %v4531_v0 = vld [vmem:[%s5030_s30 + $0xa2] sm:$0xff]  ;;  %v4580_v13 = vld [vmem:[%s5030_s30 + $0xab] sm:$0xff] }
 0x214   : > { %v2361_v32 = vpop.f32.mrf.mxu1  ;;  %2970 = vmatmul.mubr.f32.gmra.mxu1 %v4530_v59  ;;  %v2058_v30 = vpop.f32.mrf.mxu0  ;;  %3173 = vmatprep.subr.mxu0 %v6560_v5  ;;  %v1277_v17 = vld [vmem:[#allocation2 + $0x708] sm:$0xff] }
 0x215   : > { %v5833_v25 = vadd.f32 %v2361_v32, %v2057_v9  ;;  %2974 = vmatprep.mubr.f32.mxu1 %v4579_v27  ;;  %3477 = vmatpush1.msra.mxu1 %v1278_v49  ;;  %v4436_v53 = vld [vmem:[%s5030_s30 + $0xa8] sm:$0xff]  ;;  %v4485_v32 = vld [vmem:[%s5030_s30 + $0xb1] sm:$0xff]  ;;  %v1244_v49 = vld [vmem:[#allocation2 + $0x600] sm:$0xff] }
 0x216   : > { %v2363_v35 = vpop.f32.mrf.mxu1  ;;  %v2061_v4 = vpop.f32.mrf.mxu0  ;;  %2670 = vmatmul.mubr.f32.gmra.mxu0 %v4435_v39  ;;  %3478 = vmatprep.subr.mxu1 %v6560_v5  ;;  %v4532_v30 = vld [vmem:[%s5030_s30 + $0xaa] sm:$0xff] }
 0x217   : > { %v2062_v59 = vadd.f32 %v2061_v4, %v5437_v19  ;;  %2674 = vmatprep.mubr.f32.mxu0 %v4484_v61  ;;  %3174 = vmatpush1.msra.mxu0 %v1245_v56  ;;  %v4581_v61 = vld [vmem:[%s5030_s30 + $0xb3] sm:$0xff]  ;;  %v1276_v56 = vld [vmem:[#allocation2 + $0x700] sm:$0xff] }
 0x218   : > { %v2366_v9 = vpop.f32.mrf.mxu1  ;;  %2975 = vmatmul.mubr.f32.gmra.mxu1 %v4531_v0  ;;  %v2063_v27 = vpop.f32.mrf.mxu0  ;;  %3175 = vmatprep.subr.mxu0 %v6560_v5  ;;  %v4437_v4 = vld [vmem:[%s5030_s30 + $0xb0] sm:$0xff] }
 0x219   : > { %v5842_v39 = vadd.f32 %v2366_v9, %v2062_v59  ;;  %2979 = vmatprep.mubr.f32.mxu1 %v4580_v13  ;;  %3479 = vmatpush1.msra.mxu1 %v1277_v17  ;;  %v4486_v9 = vld [vmem:[%s5030_s30 + $0xb9] sm:$0xff] }
 0x21a   : > { %v2368_v35 = vpop.f32.mrf.mxu1  ;;  %v2066_v19 = vpop.f32.mrf.mxu0  ;;  %2675 = vmatmul.mubr.f32.gmra.mxu0 %v4436_v53  ;;  %3480 = vmatprep.subr.mxu1 %v6560_v5  ;;  %v1275_v17 = vld [vmem:[#allocation2 + $0x6f8] sm:$0xff] }
 0x21b   : > { %v2067_v0 = vadd.f32 %v2066_v19, %v5446_v36  ;;  %2679 = vmatprep.mubr.f32.mxu0 %v4485_v32  ;;  %3176 = vmatpush1.msra.mxu0 %v1244_v49  ;;  %v4533_v27 = vld [vmem:[%s5030_s30 + $0xb2] sm:$0xff]  ;;  %v4582_v32 = vld [vmem:[%s5030_s30 + $0xbb] sm:$0xff] }
 0x21c   : > { %v2371_v59 = vpop.f32.mrf.mxu1  ;;  %2980 = vmatmul.mubr.f32.gmra.mxu1 %v4532_v30  ;;  %v2068_v13 = vpop.f32.mrf.mxu0  ;;  %3177 = vmatprep.subr.mxu0 %v6560_v5  ;;  %v1307_v49 = vld [vmem:[#allocation2 + $0x7f8] sm:$0xff] }
 0x21d   : > { %v5851_v53 = vadd.f32 %v2371_v59, %v2067_v0  ;;  %2984 = vmatprep.mubr.f32.mxu1 %v4581_v61  ;;  %3481 = vmatpush1.msra.mxu1 %v1276_v56  ;;  %v4438_v19 = vld [vmem:[%s5030_s30 + $0xb8] sm:$0xff]  ;;  %v4487_v59 = vld [vmem:[%s5030_s30 + $0xc1] sm:$0xff]  ;;  %v1274_v56 = vld [vmem:[#allocation2 + $0x6f0] sm:$0xff] }
 0x21e   : > { %v2373_v35 = vpop.f32.mrf.mxu1  ;;  %v2071_v36 = vpop.f32.mrf.mxu0  ;;  %2680 = vmatmul.mubr.f32.gmra.mxu0 %v4437_v4  ;;  %3482 = vmatprep.subr.mxu1 %v6560_v5  ;;  %v4534_v13 = vld [vmem:[%s5030_s30 + $0xba] sm:$0xff] }
 0x21f   : > { %v2072_v30 = vadd.f32 %v2071_v36, %v5455_v51  ;;  %2684 = vmatprep.mubr.f32.mxu0 %v4486_v9  ;;  %3178 = vmatpush2.msra.mxu0 %v1275_v17  ;;  %v4583_v9 = vld [vmem:[%s5030_s30 + $0xc3] sm:$0xff]  ;;  %v1306_v17 = vld [vmem:[#allocation2 + $0x7f0] sm:$0xff] }
 0x220   : > { %v2376_v0 = vpop.f32.mrf.mxu1  ;;  %2985 = vmatmul.mubr.f32.gmra.mxu1 %v4533_v27  ;;  %v2073_v61 = vpop.f32.mrf.mxu0  ;;  %3179 = vmatprep.subr.mxu0 %v6560_v5  ;;  %v4439_v36 = vld [vmem:[%s5030_s30 + $0xc0] sm:$0xff] }
 0x221   : > { %v5860_v4 = vadd.f32 %v2376_v0, %v2072_v30  ;;  %2989 = vmatprep.mubr.f32.mxu1 %v4582_v32  ;;  %3483 = vmatpush2.msra.mxu1 %v1307_v49  ;;  %v4488_v0 = vld [vmem:[%s5030_s30 + $0xc9] sm:$0xff] }
 0x222   : > { %v2378_v35 = vpop.f32.mrf.mxu1  ;;  %v2076_v51 = vpop.f32.mrf.mxu0  ;;  %2685 = vmatmul.mubr.f32.gmra.mxu0 %v4438_v19  ;;  %3484 = vmatprep.subr.mxu1 %v6560_v5  ;;  %v1273_v49 = vld [vmem:[#allocation2 + $0x6e8] sm:$0xff] }
 0x223   : > { %v2077_v27 = vadd.f32 %v2076_v51, %v5464_v3  ;;  %2689 = vmatprep.mubr.f32.mxu0 %v4487_v59  ;;  %3180 = vmatpush2.msra.mxu0 %v1274_v56  ;;  %v4535_v61 = vld [vmem:[%s5030_s30 + $0xc2] sm:$0xff]  ;;  %v4584_v59 = vld [vmem:[%s5030_s30 + $0xcb] sm:$0xff] }
 0x224   : > { %v2381_v30 = vpop.f32.mrf.mxu1  ;;  %2990 = vmatmul.mubr.f32.gmra.mxu1 %v4534_v13  ;;  %v2078_v32 = vpop.f32.mrf.mxu0  ;;  %3181 = vmatprep.subr.mxu0 %v6560_v5  ;;  %v1305_v56 = vld [vmem:[#allocation2 + $0x7e8] sm:$0xff] }
 0x225   : > { %v5869_v19 = vadd.f32 %v2381_v30, %v2077_v27  ;;  %2994 = vmatprep.mubr.f32.mxu1 %v4583_v9  ;;  %3485 = vmatpush2.msra.mxu1 %v1306_v17  ;;  %v4440_v51 = vld [vmem:[%s5030_s30 + $0xc8] sm:$0xff]  ;;  %v4489_v30 = vld [vmem:[%s5030_s30 + $0xd1] sm:$0xff]  ;;  %v1272_v17 = vld [vmem:[#allocation2 + $0x6e0] sm:$0xff] }
 0x226   : > { %v2383_v35 = vpop.f32.mrf.mxu1  ;;  %v2081_v3 = vpop.f32.mrf.mxu0  ;;  %2690 = vmatmul.mubr.f32.gmra.mxu0 %v4439_v36  ;;  %3486 = vmatprep.subr.mxu1 %v6560_v5  ;;  %v4536_v32 = vld [vmem:[%s5030_s30 + $0xca] sm:$0xff] }
 0x227   : > { %v2082_v13 = vadd.f32 %v2081_v3, %v5473_v21  ;;  %2694 = vmatprep.mubr.f32.mxu0 %v4488_v0  ;;  %3182 = vmatpush2.msra.mxu0 %v1273_v49  ;;  %v4585_v0 = vld [vmem:[%s5030_s30 + $0xd3] sm:$0xff]  ;;  %v1304_v49 = vld [vmem:[#allocation2 + $0x7e0] sm:$0xff] }
 0x228   : > { %v2386_v27 = vpop.f32.mrf.mxu1  ;;  %2995 = vmatmul.mubr.f32.gmra.mxu1 %v4535_v61  ;;  %v2083_v9 = vpop.f32.mrf.mxu0  ;;  %3183 = vmatprep.subr.mxu0 %v6560_v5  ;;  %v4441_v3 = vld [vmem:[%s5030_s30 + $0xd0] sm:$0xff] }
 0x229   : > { %v5878_v36 = vadd.f32 %v2386_v27, %v2082_v13  ;;  %2999 = vmatprep.mubr.f32.mxu1 %v4584_v59  ;;  %3487 = vmatpush2.msra.mxu1 %v1305_v56  ;;  %v4490_v27 = vld [vmem:[%s5030_s30 + $0xd9] sm:$0xff] }
 0x22a   : > { %v2388_v35 = vpop.f32.mrf.mxu1  ;;  %v2086_v21 = vpop.f32.mrf.mxu0  ;;  %2695 = vmatmul.mubr.f32.gmra.mxu0 %v4440_v51  ;;  %3488 = vmatprep.subr.mxu1 %v6560_v5  ;;  %v1271_v56 = vld [vmem:[#allocation2 + $0x6d8] sm:$0xff] }
 0x22b   : > { %v2087_v61 = vadd.f32 %v2086_v21, %v5482_v38  ;;  %2699 = vmatprep.mubr.f32.mxu0 %v4489_v30  ;;  %3184 = vmatpush2.msra.mxu0 %v1272_v17  ;;  %v4537_v9 = vld [vmem:[%s5030_s30 + $0xd2] sm:$0xff]  ;;  %v4586_v30 = vld [vmem:[%s5030_s30 + $0xdb] sm:$0xff] }
 0x22c   : > { %v2391_v13 = vpop.f32.mrf.mxu1  ;;  %3000 = vmatmul.mubr.f32.gmra.mxu1 %v4536_v32  ;;  %v2088_v59 = vpop.f32.mrf.mxu0  ;;  %3185 = vmatprep.subr.mxu0 %v6560_v5  ;;  %v1303_v17 = vld [vmem:[#allocation2 + $0x7d8] sm:$0xff] }
 0x22d   : > { %v5887_v51 = vadd.f32 %v2391_v13, %v2087_v61  ;;  %3004 = vmatprep.mubr.f32.mxu1 %v4585_v0  ;;  %3489 = vmatpush2.msra.mxu1 %v1304_v49  ;;  %v4442_v21 = vld [vmem:[%s5030_s30 + $0xd8] sm:$0xff]  ;;  %v4491_v13 = vld [vmem:[%s5030_s30 + $0xe1] sm:$0xff]  ;;  %v1270_v49 = vld [vmem:[#allocation2 + $0x6d0] sm:$0xff] }
 0x22e   : > { %v2393_v35 = vpop.f32.mrf.mxu1  ;;  %v2091_v38 = vpop.f32.mrf.mxu0  ;;  %2700 = vmatmul.mubr.f32.gmra.mxu0 %v4441_v3  ;;  %3490 = vmatprep.subr.mxu1 %v6560_v5  ;;  %v4538_v59 = vld [vmem:[%s5030_s30 + $0xda] sm:$0xff] }
 0x22f   : > { %v2092_v32 = vadd.f32 %v2091_v38, %v5491_v55  ;;  %2704 = vmatprep.mubr.f32.mxu0 %v4490_v27  ;;  %3186 = vmatpush2.msra.mxu0 %v1271_v56  ;;  %v4587_v27 = vld [vmem:[%s5030_s30 + $0xe3] sm:$0xff]  ;;  %v1302_v56 = vld [vmem:[#allocation2 + $0x7d0] sm:$0xff] }
 0x230   : > { %v2396_v61 = vpop.f32.mrf.mxu1  ;;  %3005 = vmatmul.mubr.f32.gmra.mxu1 %v4537_v9  ;;  %v2093_v0 = vpop.f32.mrf.mxu0  ;;  %3187 = vmatprep.subr.mxu0 %v6560_v5  ;;  %v4443_v38 = vld [vmem:[%s5030_s30 + $0xe0] sm:$0xff] }
 0x231   : > { %v5896_v3 = vadd.f32 %v2396_v61, %v2092_v32  ;;  %3009 = vmatprep.mubr.f32.mxu1 %v4586_v30  ;;  %3491 = vmatpush2.msra.mxu1 %v1303_v17  ;;  %v4492_v61 = vld [vmem:[%s5030_s30 + $0xe9] sm:$0xff] }
 0x232   : > { %v2398_v35 = vpop.f32.mrf.mxu1  ;;  %v2096_v55 = vpop.f32.mrf.mxu0  ;;  %2705 = vmatmul.mubr.f32.gmra.mxu0 %v4442_v21  ;;  %3492 = vmatprep.subr.mxu1 %v6560_v5  ;;  %v1269_v17 = vld [vmem:[#allocation2 + $0x6c8] sm:$0xff] }
 0x233   : > { %v2097_v9 = vadd.f32 %v2096_v55, %v5500_v10  ;;  %2709 = vmatprep.mubr.f32.mxu0 %v4491_v13  ;;  %3188 = vmatpush2.msra.mxu0 %v1270_v49  ;;  %v4539_v0 = vld [vmem:[%s5030_s30 + $0xe2] sm:$0xff]  ;;  %v4588_v13 = vld [vmem:[%s5030_s30 + $0xeb] sm:$0xff] }
 0x234   : > { %v2401_v32 = vpop.f32.mrf.mxu1  ;;  %3010 = vmatmul.mubr.f32.gmra.mxu1 %v4538_v59  ;;  %v2098_v30 = vpop.f32.mrf.mxu0  ;;  %3189 = vmatprep.subr.mxu0 %v6560_v5  ;;  %v1301_v49 = vld [vmem:[#allocation2 + $0x7c8] sm:$0xff] }
 0x235   : > { %v5905_v21 = vadd.f32 %v2401_v32, %v2097_v9  ;;  %3014 = vmatprep.mubr.f32.mxu1 %v4587_v27  ;;  %3493 = vmatpush2.msra.mxu1 %v1302_v56  ;;  %v4444_v55 = vld [vmem:[%s5030_s30 + $0xe8] sm:$0xff]  ;;  %v4493_v32 = vld [vmem:[%s5030_s30 + $0xf1] sm:$0xff]  ;;  %v1268_v56 = vld [vmem:[#allocation2 + $0x6c0] sm:$0xff] }
 0x236   : > { %v2403_v35 = vpop.f32.mrf.mxu1  ;;  %v2101_v10 = vpop.f32.mrf.mxu0  ;;  %2710 = vmatmul.mubr.f32.gmra.mxu0 %v4443_v38  ;;  %3494 = vmatprep.subr.mxu1 %v6560_v5  ;;  %v4540_v30 = vld [vmem:[%s5030_s30 + $0xea] sm:$0xff] }
 0x237   : > { %v2102_v59 = vadd.f32 %v2101_v10, %v5509_v28  ;;  %2714 = vmatprep.mubr.f32.mxu0 %v4492_v61  ;;  %3190 = vmatpush2.msra.mxu0 %v1269_v17  ;;  %v4589_v61 = vld [vmem:[%s5030_s30 + $0xf3] sm:$0xff]  ;;  %v1300_v17 = vld [vmem:[#allocation2 + $0x7c0] sm:$0xff] }
 0x238   : > { %v2406_v9 = vpop.f32.mrf.mxu1  ;;  %3015 = vmatmul.mubr.f32.gmra.mxu1 %v4539_v0  ;;  %v2103_v27 = vpop.f32.mrf.mxu0  ;;  %3191 = vmatprep.subr.mxu0 %v6560_v5  ;;  %v4445_v10 = vld [vmem:[%s5030_s30 + $0xf0] sm:$0xff] }
 0x239   : > { %v5914_v38 = vadd.f32 %v2406_v9, %v2102_v59  ;;  %3019 = vmatprep.mubr.f32.mxu1 %v4588_v13  ;;  %3495 = vmatpush2.msra.mxu1 %v1301_v49  ;;  %v4494_v9 = vld [vmem:[%s5030_s30 + $0xf9] sm:$0xff] }
 0x23a   : > { %v2408_v35 = vpop.f32.mrf.mxu1  ;;  %v2106_v28 = vpop.f32.mrf.mxu0  ;;  %2715 = vmatmul.mubr.f32.gmra.mxu0 %v4444_v55  ;;  %3496 = vmatprep.subr.mxu1 %v6560_v5  ;;  %v1267_v49 = vld [vmem:[#allocation2 + $0x6b8] sm:$0xff] }
 0x23b   : > { %v2107_v0 = vadd.f32 %v2106_v28, %v5518_v45  ;;  %2719 = vmatprep.mubr.f32.mxu0 %v4493_v32  ;;  %3192 = vmatpush2.msra.mxu0 %v1268_v56  ;;  %v4541_v27 = vld [vmem:[%s5030_s30 + $0xf2] sm:$0xff]  ;;  %v4590_v32 = vld [vmem:[%s5030_s30 + $0xfb] sm:$0xff] }
 0x23c   : > { %v2411_v59 = vpop.f32.mrf.mxu1  ;;  %3020 = vmatmul.mubr.f32.gmra.mxu1 %v4540_v30  ;;  %v2108_v13 = vpop.f32.mrf.mxu0  ;;  %3193 = vmatprep.subr.mxu0 %v6560_v5  ;;  %v1299_v56 = vld [vmem:[#allocation2 + $0x7b8] sm:$0xff] }
 0x23d   : > { %v5923_v55 = vadd.f32 %v2411_v59, %v2107_v0  ;;  %3024 = vmatprep.mubr.f32.mxu1 %v4589_v61  ;;  %3497 = vmatpush2.msra.mxu1 %v1300_v17  ;;  %v4446_v28 = vld [vmem:[%s5030_s30 + $0xf8] sm:$0xff]  ;;  %v4495_v59 = vld [vmem:[%s5030_s30 + $0x101] sm:$0xff]  ;;  %v1266_v17 = vld [vmem:[#allocation2 + $0x6b0] sm:$0xff] }
 0x23e   : > { %v2413_v35 = vpop.f32.mrf.mxu1  ;;  %v2111_v45 = vpop.f32.mrf.mxu0  ;;  %2720 = vmatmul.mubr.f32.gmra.mxu0 %v4445_v10  ;;  %3498 = vmatprep.subr.mxu1 %v6560_v5  ;;  %v4542_v13 = vld [vmem:[%s5030_s30 + $0xfa] sm:$0xff] }
 0x23f   : > { %v2112_v30 = vadd.f32 %v2111_v45, %v5527_v1  ;;  %2724 = vmatprep.mubr.f32.mxu0 %v4494_v9  ;;  %3194 = vmatpush2.msra.mxu0 %v1267_v49  ;;  %v4591_v9 = vld [vmem:[%s5030_s30 + $0x103] sm:$0xff]  ;;  %v1298_v49 = vld [vmem:[#allocation2 + $0x7b0] sm:$0xff] }
 0x240   : > { %v2416_v0 = vpop.f32.mrf.mxu1  ;;  %3025 = vmatmul.mubr.f32.gmra.mxu1 %v4541_v27  ;;  %v2113_v61 = vpop.f32.mrf.mxu0  ;;  %3195 = vmatprep.subr.mxu0 %v6560_v5  ;;  %v4447_v45 = vld [vmem:[%s5030_s30 + $0x100] sm:$0xff] }
 0x241   : > { %v5932_v10 = vadd.f32 %v2416_v0, %v2112_v30  ;;  %3029 = vmatprep.mubr.f32.mxu1 %v4590_v32  ;;  %3499 = vmatpush2.msra.mxu1 %v1299_v56  ;;  %v4496_v0 = vld [vmem:[%s5030_s30 + $0x109] sm:$0xff] }
 0x242   : > { %v2418_v35 = vpop.f32.mrf.mxu1  ;;  %v2116_v1 = vpop.f32.mrf.mxu0  ;;  %2725 = vmatmul.mubr.f32.gmra.mxu0 %v4446_v28  ;;  %3500 = vmatprep.subr.mxu1 %v6560_v5  ;;  %v1265_v56 = vld [vmem:[#allocation2 + $0x6a8] sm:$0xff] }
 0x243   : > { %v2117_v27 = vadd.f32 %v2116_v1, %v5536_v23  ;;  %2729 = vmatprep.mubr.f32.mxu0 %v4495_v59  ;;  %3196 = vmatpush2.msra.mxu0 %v1266_v17  ;;  %v4543_v61 = vld [vmem:[%s5030_s30 + $0x102] sm:$0xff]  ;;  %v4592_v59 = vld [vmem:[%s5030_s30 + $0x10b] sm:$0xff] }
 0x244   : > { %v2421_v30 = vpop.f32.mrf.mxu1  ;;  %3030 = vmatmul.mubr.f32.gmra.mxu1 %v4542_v13  ;;  %v2118_v32 = vpop.f32.mrf.mxu0  ;;  %3197 = vmatprep.subr.mxu0 %v6560_v5  ;;  %v1297_v17 = vld [vmem:[#allocation2 + $0x7a8] sm:$0xff] }
 0x245   : > { %v5941_v28 = vadd.f32 %v2421_v30, %v2117_v27  ;;  %3034 = vmatprep.mubr.f32.mxu1 %v4591_v9  ;;  %3501 = vmatpush2.msra.mxu1 %v1298_v49  ;;  %v4448_v1 = vld [vmem:[%s5030_s30 + $0x108] sm:$0xff]  ;;  %v4497_v30 = vld [vmem:[%s5030_s30 + $0x111] sm:$0xff]  ;;  %v1264_v49 = vld [vmem:[#allocation2 + $0x6a0] sm:$0xff] }
 0x246   : > { %v2423_v35 = vpop.f32.mrf.mxu1  ;;  %v2121_v23 = vpop.f32.mrf.mxu0  ;;  %2730 = vmatmul.mubr.f32.gmra.mxu0 %v4447_v45  ;;  %3502 = vmatprep.subr.mxu1 %v6560_v5  ;;  %v4544_v32 = vld [vmem:[%s5030_s30 + $0x10a] sm:$0xff] }
 0x247   : > { %v2122_v13 = vadd.f32 %v2121_v23, %v5550_v42  ;;  %2734 = vmatprep.mubr.f32.mxu0 %v4496_v0  ;;  %3198 = vmatpush2.msra.mxu0 %v1265_v56  ;;  %v4593_v0 = vld [vmem:[%s5030_s30 + $0x113] sm:$0xff]  ;;  %v1296_v56 = vld [vmem:[#allocation2 + $0x7a0] sm:$0xff] }
 0x248   : > { %v2426_v27 = vpop.f32.mrf.mxu1  ;;  %3035 = vmatmul.mubr.f32.gmra.mxu1 %v4543_v61  ;;  %v2123_v9 = vpop.f32.mrf.mxu0  ;;  %3199 = vmatprep.subr.mxu0 %v6560_v5  ;;  %v4449_v23 = vld [vmem:[%s5030_s30 + $0x110] sm:$0xff] }
 0x249   : > { %v5950_v45 = vadd.f32 %v2426_v27, %v2122_v13  ;;  %3039 = vmatprep.mubr.f32.mxu1 %v4592_v59  ;;  %3503 = vmatpush2.msra.mxu1 %v1297_v17  ;;  %v4498_v27 = vld [vmem:[%s5030_s30 + $0x119] sm:$0xff] }
 0x24a   : > { %v2428_v35 = vpop.f32.mrf.mxu1  ;;  %v2126_v42 = vpop.f32.mrf.mxu0  ;;  %2735 = vmatmul.mubr.f32.gmra.mxu0 %v4448_v1  ;;  %3504 = vmatprep.subr.mxu1 %v6560_v5  ;;  %v1263_v17 = vld [vmem:[#allocation2 + $0x698] sm:$0xff] }
 0x24b   : > { %v2127_v61 = vadd.f32 %v2126_v42, %v5559_v62  ;;  %2739 = vmatprep.mubr.f32.mxu0 %v4497_v30  ;;  %3200 = vmatpush2.msra.mxu0 %v1264_v49  ;;  %v4545_v9 = vld [vmem:[%s5030_s30 + $0x112] sm:$0xff]  ;;  %v4594_v30 = vld [vmem:[%s5030_s30 + $0x11b] sm:$0xff] }
 0x24c   : > { %v2431_v13 = vpop.f32.mrf.mxu1  ;;  %3040 = vmatmul.mubr.f32.gmra.mxu1 %v4544_v32  ;;  %v2128_v59 = vpop.f32.mrf.mxu0  ;;  %3201 = vmatprep.subr.mxu0 %v6560_v5  ;;  %v1295_v49 = vld [vmem:[#allocation2 + $0x798] sm:$0xff] }
 0x24d   : > { %v5959_v1 = vadd.f32 %v2431_v13, %v2127_v61  ;;  %3044 = vmatprep.mubr.f32.mxu1 %v4593_v0  ;;  %3505 = vmatpush2.msra.mxu1 %v1296_v56  ;;  %v4450_v42 = vld [vmem:[%s5030_s30 + $0x118] sm:$0xff]  ;;  %v4499_v13 = vld [vmem:[%s5030_s30 + $0x121] sm:$0xff]  ;;  %v1262_v56 = vld [vmem:[#allocation2 + $0x690] sm:$0xff] }
 0x24e   : > { %v2433_v35 = vpop.f32.mrf.mxu1  ;;  %v2131_v62 = vpop.f32.mrf.mxu0  ;;  %2740 = vmatmul.mubr.f32.gmra.mxu0 %v4449_v23  ;;  %3506 = vmatprep.subr.mxu1 %v6560_v5  ;;  %v4546_v59 = vld [vmem:[%s5030_s30 + $0x11a] sm:$0xff] }
 0x24f   : > { %v2132_v32 = vadd.f32 %v2131_v62, %v5568_v18  ;;  %2744 = vmatprep.mubr.f32.mxu0 %v4498_v27  ;;  %3202 = vmatpush2.msra.mxu0 %v1263_v17  ;;  %v4595_v27 = vld [vmem:[%s5030_s30 + $0x123] sm:$0xff]  ;;  %v1294_v17 = vld [vmem:[#allocation2 + $0x790] sm:$0xff] }
 0x250   : > { %v2436_v61 = vpop.f32.mrf.mxu1  ;;  %3045 = vmatmul.mubr.f32.gmra.mxu1 %v4545_v9  ;;  %v2133_v0 = vpop.f32.mrf.mxu0  ;;  %3203 = vmatprep.subr.mxu0 %v6560_v5  ;;  %v4451_v62 = vld [vmem:[%s5030_s30 + $0x120] sm:$0xff] }
 0x251   : > { %v5968_v23 = vadd.f32 %v2436_v61, %v2132_v32  ;;  %3049 = vmatprep.mubr.f32.mxu1 %v4594_v30  ;;  %3507 = vmatpush2.msra.mxu1 %v1295_v49  ;;  %v4500_v61 = vld [vmem:[%s5030_s30 + $0x129] sm:$0xff] }
 0x252   : > { %v2438_v35 = vpop.f32.mrf.mxu1  ;;  %v2136_v18 = vpop.f32.mrf.mxu0  ;;  %2745 = vmatmul.mubr.f32.gmra.mxu0 %v4450_v42  ;;  %3508 = vmatprep.subr.mxu1 %v6560_v5  ;;  %v1261_v49 = vld [vmem:[#allocation2 + $0x688] sm:$0xff] }
 0x253   : > { %v2137_v9 = vadd.f32 %v2136_v18, %v5577_v43  ;;  %2749 = vmatprep.mubr.f32.mxu0 %v4499_v13  ;;  %3204 = vmatpush2.msra.mxu0 %v1262_v56  ;;  %v4547_v0 = vld [vmem:[%s5030_s30 + $0x122] sm:$0xff]  ;;  %v4596_v13 = vld [vmem:[%s5030_s30 + $0x12b] sm:$0xff] }
 0x254   : > { %v2441_v32 = vpop.f32.mrf.mxu1  ;;  %3050 = vmatmul.mubr.f32.gmra.mxu1 %v4546_v59  ;;  %v2138_v30 = vpop.f32.mrf.mxu0  ;;  %3205 = vmatprep.subr.mxu0 %v6560_v5  ;;  %v1293_v56 = vld [vmem:[#allocation2 + $0x788] sm:$0xff] }
 0x255   : > { %v5977_v42 = vadd.f32 %v2441_v32, %v2137_v9  ;;  %3054 = vmatprep.mubr.f32.mxu1 %v4595_v27  ;;  %3509 = vmatpush2.msra.mxu1 %v1294_v17  ;;  %v4452_v18 = vld [vmem:[%s5030_s30 + $0x128] sm:$0xff]  ;;  %v4501_v32 = vld [vmem:[%s5030_s30 + $0x131] sm:$0xff]  ;;  %v1260_v17 = vld [vmem:[#allocation2 + $0x680] sm:$0xff] }
 0x256   : > { %v2443_v35 = vpop.f32.mrf.mxu1  ;;  %v2141_v43 = vpop.f32.mrf.mxu0  ;;  %2750 = vmatmul.mubr.f32.gmra.mxu0 %v4451_v62  ;;  %3510 = vmatprep.subr.mxu1 %v6560_v5  ;;  %v4548_v30 = vld [vmem:[%s5030_s30 + $0x12a] sm:$0xff] }
 0x257   : > { %v2142_v59 = vadd.f32 %v2141_v43, %v5586_v2  ;;  %2754 = vmatprep.mubr.f32.mxu0 %v4500_v61  ;;  %3206 = vmatpush2.msra.mxu0 %v1261_v49  ;;  %v4597_v61 = vld [vmem:[%s5030_s30 + $0x133] sm:$0xff]  ;;  %v1292_v49 = vld [vmem:[#allocation2 + $0x780] sm:$0xff] }
 0x258   : > { %v2446_v9 = vpop.f32.mrf.mxu1  ;;  %3055 = vmatmul.mubr.f32.gmra.mxu1 %v4547_v0  ;;  %v2143_v27 = vpop.f32.mrf.mxu0  ;;  %3207 = vmatprep.subr.mxu0 %v6560_v5  ;;  %v4453_v43 = vld [vmem:[%s5030_s30 + $0x130] sm:$0xff] }
 0x259   : > { %v5986_v62 = vadd.f32 %v2446_v9, %v2142_v59  ;;  %3059 = vmatprep.mubr.f32.mxu1 %v4596_v13  ;;  %3511 = vmatpush2.msra.mxu1 %v1293_v56  ;;  %v4502_v56 = vld [vmem:[%s5030_s30 + $0x139] sm:$0xff] }
 0x25a   : > { %v2448_v35 = vpop.f32.mrf.mxu1  ;;  %v2146_v2 = vpop.f32.mrf.mxu0  ;;  %2755 = vmatmul.mubr.f32.gmra.mxu0 %v4452_v18  ;;  %3512 = vmatprep.subr.mxu1 %v6560_v5  ;;  %v4549_v18 = vld [vmem:[%s5030_s30 + $0x132] sm:$0xff] }
 0x25b   : > { %v2147_v0 = vadd.f32 %v2146_v2, %v5595_v26  ;;  %2759 = vmatprep.mubr.f32.mxu0 %v4501_v32  ;;  %3208 = vmatpush2.msra.mxu0 %v1260_v17  ;;  %v4598_v26 = vld [vmem:[%s5030_s30 + $0x13b] sm:$0xff] }
 0x25c   : > { %v2451_v59 = vpop.f32.mrf.mxu1  ;;  %3060 = vmatmul.mubr.f32.gmra.mxu1 %v4548_v30  ;;  %v2148_v13 = vpop.f32.mrf.mxu0  ;;  %v4454_v17 = vld [vmem:[%s5030_s30 + $0x138] sm:$0xff]  ;;  %v4503_v2 = vld [vmem:[%s5030_s30 + $0x141] sm:$0xff] }
 0x25d   : > { %v5994_v9 = vadd.f32 %v2451_v59, %v2147_v0  ;;  %3064 = vmatprep.mubr.f32.mxu1 %v4597_v61  ;;  %3513 = vmatpush2.msra.mxu1 %v1292_v49  ;;  %v4550_v61 = vld [vmem:[%s5030_s30 + $0x13a] sm:$0xff] }
 0x25e   : > { %v2453_v5 = vpop.f32.mrf.mxu1  ;;  %v2151_v27 = vpop.f32.mrf.mxu0  ;;  %2760 = vmatmul.mubr.f32.gmra.mxu0 %v4453_v43  ;;  %v4599_v43 = vld [vmem:[%s5030_s30 + $0x143] sm:$0xff] }
 0x25f   : > { %v2152_v32 = vadd.f32 %v2151_v27, %v5603_v44  ;;  %2764 = vmatprep.mubr.f32.mxu0 %v4502_v56  ;;  %v4455_v13 = vld [vmem:[%s5030_s30 + $0x140] sm:$0xff]  ;;  %v4504_v5 = vld [vmem:[%s5030_s30 + $0x149] sm:$0xff] }
 0x260   : > { %v2456_v30 = vpop.f32.mrf.mxu1  ;;  %3065 = vmatmul.mubr.f32.gmra.mxu1 %v4549_v18  ;;  %v2153_v35 = vpop.f32.mrf.mxu0 }
 0x261   : > { %v6001_v0 = vadd.f32 %v2456_v30, %v2152_v32  ;;  %3069 = vmatprep.mubr.f32.mxu1 %v4598_v26  ;;  %v4551_v26 = vld [vmem:[%s5030_s30 + $0x142] sm:$0xff] }
 0x262   : > { %v2458_v49 = vpop.f32.mrf.mxu1  ;;  %v2156_v59 = vpop.f32.mrf.mxu0  ;;  %2765 = vmatmul.mubr.f32.gmra.mxu0 %v4454_v17  ;;  %v4600_v17 = vld [vmem:[%s5030_s30 + $0x14b] sm:$0xff] }
 0x263   : > { %v2157_v44 = vadd.f32 %v2156_v59, %v5610_v63  ;;  %2769 = vmatprep.mubr.f32.mxu0 %v4503_v2  ;;  %v4456_v35 = vld [vmem:[%s5030_s30 + $0x148] sm:$0xff]  ;;  %v4505_v49 = vld [vmem:[%s5030_s30 + $0x151] sm:$0xff] }
 0x264   : > { %v2461_v56 = vpop.f32.mrf.mxu1  ;;  %3070 = vmatmul.mubr.f32.gmra.mxu1 %v4550_v61  ;;  %v2158_v18 = vpop.f32.mrf.mxu0 }
 0x265   : > { %v6008_v27 = vadd.f32 %v2461_v56, %v2157_v44  ;;  %3074 = vmatprep.mubr.f32.mxu1 %v4599_v43  ;;  %v4552_v43 = vld [vmem:[%s5030_s30 + $0x14a] sm:$0xff] }
 0x266   : > { %v2463_v32 = vpop.f32.mrf.mxu1  ;;  %v2161_v30 = vpop.f32.mrf.mxu0  ;;  %2770 = vmatmul.mubr.f32.gmra.mxu0 %v4455_v13  ;;  %v4601_v13 = vld [vmem:[%s5030_s30 + $0x153] sm:$0xff] }
 0x267   : > { %v2162_v63 = vadd.f32 %v2161_v30, %v5617_v24  ;;  %2774 = vmatprep.mubr.f32.mxu0 %v4504_v5  ;;  %v4457_v18 = vld [vmem:[%s5030_s30 + $0x150] sm:$0xff]  ;;  %v4506_v32 = vld [vmem:[%s5030_s30 + $0x159] sm:$0xff] }
 0x268   : > { %v2466_v2 = vpop.f32.mrf.mxu1  ;;  %3075 = vmatmul.mubr.f32.gmra.mxu1 %v4551_v26  ;;  %v2163_v61 = vpop.f32.mrf.mxu0 }
 0x269   : > { %v6015_v59 = vadd.f32 %v2466_v2, %v2162_v63  ;;  %3079 = vmatprep.mubr.f32.mxu1 %v4600_v17  ;;  %v4553_v17 = vld [vmem:[%s5030_s30 + $0x152] sm:$0xff] }
 0x26a   : > { %v2468_v44 = vpop.f32.mrf.mxu1  ;;  %v2166_v56 = vpop.f32.mrf.mxu0  ;;  %2775 = vmatmul.mubr.f32.gmra.mxu0 %v4456_v35  ;;  %v4602_v35 = vld [vmem:[%s5030_s30 + $0x15b] sm:$0xff] }
 0x26b   : > { %v2167_v24 = vadd.f32 %v2166_v56, %v5624_v48  ;;  %2779 = vmatprep.mubr.f32.mxu0 %v4505_v49  ;;  %v4458_v61 = vld [vmem:[%s5030_s30 + $0x158] sm:$0xff]  ;;  %v4507_v44 = vld [vmem:[%s5030_s30 + $0x161] sm:$0xff] }
 0x26c   : > { %v2471_v5 = vpop.f32.mrf.mxu1  ;;  %3080 = vmatmul.mubr.f32.gmra.mxu1 %v4552_v43  ;;  %v2168_v26 = vpop.f32.mrf.mxu0 }
 0x26d   : > { %v6022_v30 = vadd.f32 %v2471_v5, %v2167_v24  ;;  %3084 = vmatprep.mubr.f32.mxu1 %v4601_v13  ;;  %v4554_v13 = vld [vmem:[%s5030_s30 + $0x15a] sm:$0xff] }
 0x26e   : > { %v2473_v63 = vpop.f32.mrf.mxu1  ;;  %v2171_v2 = vpop.f32.mrf.mxu0  ;;  %2780 = vmatmul.mubr.f32.gmra.mxu0 %v4457_v18  ;;  %v4603_v18 = vld [vmem:[%s5030_s30 + $0x163] sm:$0xff] }
 0x26f   : > { %v2172_v48 = vadd.f32 %v2171_v2, %v5631_v6  ;;  %2784 = vmatprep.mubr.f32.mxu0 %v4506_v32  ;;  %v4459_v26 = vld [vmem:[%s5030_s30 + $0x160] sm:$0xff]  ;;  %v4508_v63 = vld [vmem:[%s5030_s30 + $0x169] sm:$0xff] }
 0x270   : > { %v2476_v49 = vpop.f32.mrf.mxu1  ;;  %3085 = vmatmul.mubr.f32.gmra.mxu1 %v4553_v17  ;;  %v2173_v43 = vpop.f32.mrf.mxu0 }
 0x271   : > { %v6029_v56 = vadd.f32 %v2476_v49, %v2172_v48  ;;  %3089 = vmatprep.mubr.f32.mxu1 %v4602_v35  ;;  %v4555_v35 = vld [vmem:[%s5030_s30 + $0x162] sm:$0xff] }
 0x272   : > { %v2478_v24 = vpop.f32.mrf.mxu1  ;;  %v2176_v5 = vpop.f32.mrf.mxu0  ;;  %2785 = vmatmul.mubr.f32.gmra.mxu0 %v4458_v61  ;;  %v4604_v61 = vld [vmem:[%s5030_s30 + $0x16b] sm:$0xff] }
 0x273   : > { %v2177_v6 = vadd.f32 %v2176_v5, %v5638_v29  ;;  %2789 = vmatprep.mubr.f32.mxu0 %v4507_v44  ;;  %v4460_v43 = vld [vmem:[%s5030_s30 + $0x168] sm:$0xff]  ;;  %v4509_v24 = vld [vmem:[%s5030_s30 + $0x171] sm:$0xff] }
 0x274   : > { %v2481_v32 = vpop.f32.mrf.mxu1  ;;  %3090 = vmatmul.mubr.f32.gmra.mxu1 %v4554_v13  ;;  %v2178_v17 = vpop.f32.mrf.mxu0 }
 0x275   : > { %v6036_v2 = vadd.f32 %v2481_v32, %v2177_v6  ;;  %3094 = vmatprep.mubr.f32.mxu1 %v4603_v18  ;;  %v4556_v18 = vld [vmem:[%s5030_s30 + $0x16a] sm:$0xff] }
 0x276   : > { %v2483_v48 = vpop.f32.mrf.mxu1  ;;  %v2181_v49 = vpop.f32.mrf.mxu0  ;;  %2790 = vmatmul.mubr.f32.gmra.mxu0 %v4459_v26  ;;  %v4605_v26 = vld [vmem:[%s5030_s30 + $0x173] sm:$0xff] }
 0x277   : > { %v2182_v29 = vadd.f32 %v2181_v49, %v5645_v54  ;;  %2794 = vmatprep.mubr.f32.mxu0 %v4508_v63  ;;  %v4461_v17 = vld [vmem:[%s5030_s30 + $0x170] sm:$0xff]  ;;  %v4510_v48 = vld [vmem:[%s5030_s30 + $0x179] sm:$0xff] }
 0x278   : > { %v2486_v44 = vpop.f32.mrf.mxu1  ;;  %3095 = vmatmul.mubr.f32.gmra.mxu1 %v4555_v35  ;;  %v2183_v13 = vpop.f32.mrf.mxu0 }
 0x279   : > { %v6043_v5 = vadd.f32 %v2486_v44, %v2182_v29  ;;  %3099 = vmatprep.mubr.f32.mxu1 %v4604_v61  ;;  %v4557_v61 = vld [vmem:[%s5030_s30 + $0x172] sm:$0xff] }
 0x27a   : > { %v2488_v6 = vpop.f32.mrf.mxu1  ;;  %v2186_v32 = vpop.f32.mrf.mxu0  ;;  %2795 = vmatmul.mubr.f32.gmra.mxu0 %v4460_v43  ;;  %v4606_v43 = vld [vmem:[%s5030_s30 + $0x17b] sm:$0xff] }
 0x27b   : > { %v2187_v54 = vadd.f32 %v2186_v32, %v5652_v15  ;;  %2799 = vmatprep.mubr.f32.mxu0 %v4509_v24  ;;  %v4462_v13 = vld [vmem:[%s5030_s30 + $0x178] sm:$0xff]  ;;  %v4511_v6 = vld [vmem:[%s5030_s30 + $0x181] sm:$0xff] }
 0x27c   : > { %v2491_v63 = vpop.f32.mrf.mxu1  ;;  %3100 = vmatmul.mubr.f32.gmra.mxu1 %v4556_v18  ;;  %v2188_v35 = vpop.f32.mrf.mxu0 }
 0x27d   : > { %v6050_v49 = vadd.f32 %v2491_v63, %v2187_v54  ;;  %3104 = vmatprep.mubr.f32.mxu1 %v4605_v26  ;;  %v4558_v26 = vld [vmem:[%s5030_s30 + $0x17a] sm:$0xff] }
 0x27e   : > { %v2493_v29 = vpop.f32.mrf.mxu1  ;;  %v2191_v44 = vpop.f32.mrf.mxu0  ;;  %2800 = vmatmul.mubr.f32.gmra.mxu0 %v4461_v17  ;;  %v4607_v17 = vld [vmem:[%s5030_s30 + $0x183] sm:$0xff] }
 0x27f   : > { %v2192_v15 = vadd.f32 %v2191_v44, %v5659_v41  ;;  %2804 = vmatprep.mubr.f32.mxu0 %v4510_v48  ;;  %v4463_v35 = vld [vmem:[%s5030_s30 + $0x180] sm:$0xff]  ;;  %v4512_v29 = vld [vmem:[%s5030_s30 + $0x189] sm:$0xff] }
 0x280   : > { %v2496_v24 = vpop.f32.mrf.mxu1  ;;  %3105 = vmatmul.mubr.f32.gmra.mxu1 %v4557_v61  ;;  %v2193_v18 = vpop.f32.mrf.mxu0 }
 0x281   : > { %v6057_v32 = vadd.f32 %v2496_v24, %v2192_v15  ;;  %3109 = vmatprep.mubr.f32.mxu1 %v4606_v43  ;;  %v4559_v43 = vld [vmem:[%s5030_s30 + $0x182] sm:$0xff] }
 0x282   : > { %v2498_v54 = vpop.f32.mrf.mxu1  ;;  %v2196_v63 = vpop.f32.mrf.mxu0  ;;  %2805 = vmatmul.mubr.f32.gmra.mxu0 %v4462_v13  ;;  %v4608_v13 = vld [vmem:[%s5030_s30 + $0x18b] sm:$0xff] }
 0x283   : > { %v2197_v41 = vadd.f32 %v2196_v63, %v5666_v12  ;;  %2809 = vmatprep.mubr.f32.mxu0 %v4511_v6  ;;  %v4464_v18 = vld [vmem:[%s5030_s30 + $0x188] sm:$0xff]  ;;  %v4513_v54 = vld [vmem:[%s5030_s30 + $0x191] sm:$0xff] }
 0x284   : > { %v2501_v48 = vpop.f32.mrf.mxu1  ;;  %3110 = vmatmul.mubr.f32.gmra.mxu1 %v4558_v26  ;;  %v2198_v61 = vpop.f32.mrf.mxu0 }
 0x285   : > { %v6064_v44 = vadd.f32 %v2501_v48, %v2197_v41  ;;  %3114 = vmatprep.mubr.f32.mxu1 %v4607_v17  ;;  %v4560_v17 = vld [vmem:[%s5030_s30 + $0x18a] sm:$0xff] }
 0x286   : > { %v2503_v15 = vpop.f32.mrf.mxu1  ;;  %v2201_v24 = vpop.f32.mrf.mxu0  ;;  %2810 = vmatmul.mubr.f32.gmra.mxu0 %v4463_v35  ;;  %v4609_v35 = vld [vmem:[%s5030_s30 + $0x193] sm:$0xff] }
 0x287   : > { %v2202_v12 = vadd.f32 %v2201_v24, %v5673_v37  ;;  %2814 = vmatprep.mubr.f32.mxu0 %v4512_v29  ;;  %v4465_v61 = vld [vmem:[%s5030_s30 + $0x190] sm:$0xff]  ;;  %v4514_v15 = vld [vmem:[%s5030_s30 + $0x199] sm:$0xff] }
 0x288   : > { %v2506_v6 = vpop.f32.mrf.mxu1  ;;  %3115 = vmatmul.mubr.f32.gmra.mxu1 %v4559_v43  ;;  %v2203_v26 = vpop.f32.mrf.mxu0 }
 0x289   : > { %v6071_v63 = vadd.f32 %v2506_v6, %v2202_v12  ;;  %3119 = vmatprep.mubr.f32.mxu1 %v4608_v13  ;;  %v4561_v13 = vld [vmem:[%s5030_s30 + $0x192] sm:$0xff] }
 0x28a   : > { %v2508_v41 = vpop.f32.mrf.mxu1  ;;  %v2206_v48 = vpop.f32.mrf.mxu0  ;;  %2815 = vmatmul.mubr.f32.gmra.mxu0 %v4464_v18  ;;  %v4610_v18 = vld [vmem:[%s5030_s30 + $0x19b] sm:$0xff] }
 0x28b   : > { %v2207_v37 = vadd.f32 %v2206_v48, %v5680_v8  ;;  %2819 = vmatprep.mubr.f32.mxu0 %v4513_v54  ;;  %v4466_v26 = vld [vmem:[%s5030_s30 + $0x198] sm:$0xff]  ;;  %v4515_v41 = vld [vmem:[%s5030_s30 + $0x1a1] sm:$0xff] }
 0x28c   : > { %v2511_v29 = vpop.f32.mrf.mxu1  ;;  %3120 = vmatmul.mubr.f32.gmra.mxu1 %v4560_v17  ;;  %v2208_v43 = vpop.f32.mrf.mxu0 }
 0x28d   : > { %v6078_v24 = vadd.f32 %v2511_v29, %v2207_v37  ;;  %3124 = vmatprep.mubr.f32.mxu1 %v4609_v35  ;;  %v4562_v35 = vld [vmem:[%s5030_s30 + $0x19a] sm:$0xff] }
 0x28e   : > { %v2513_v12 = vpop.f32.mrf.mxu1  ;;  %v2211_v6 = vpop.f32.mrf.mxu0  ;;  %2820 = vmatmul.mubr.f32.gmra.mxu0 %v4465_v61  ;;  %v4611_v61 = vld [vmem:[%s5030_s30 + $0x1a3] sm:$0xff] }
 0x28f   : > { %v2212_v8 = vadd.f32 %v2211_v6, %v5687_v40  ;;  %2824 = vmatprep.mubr.f32.mxu0 %v4514_v15  ;;  %v4467_v43 = vld [vmem:[%s5030_s30 + $0x1a0] sm:$0xff]  ;;  %v4516_v12 = vld [vmem:[%s5030_s30 + $0x1a9] sm:$0xff] }
 0x290   : > { %v2516_v54 = vpop.f32.mrf.mxu1  ;;  %3125 = vmatmul.mubr.f32.gmra.mxu1 %v4561_v13  ;;  %v2213_v17 = vpop.f32.mrf.mxu0 }
 0x291   : > { %v6085_v48 = vadd.f32 %v2516_v54, %v2212_v8  ;;  %3129 = vmatprep.mubr.f32.mxu1 %v4610_v18  ;;  %v4563_v18 = vld [vmem:[%s5030_s30 + $0x1a2] sm:$0xff] }
 0x292   : > { %v2518_v37 = vpop.f32.mrf.mxu1  ;;  %v2216_v29 = vpop.f32.mrf.mxu0  ;;  %2825 = vmatmul.mubr.f32.gmra.mxu0 %v4466_v26  ;;  %v4612_v26 = vld [vmem:[%s5030_s30 + $0x1ab] sm:$0xff] }
 0x293   : > { %v2217_v40 = vadd.f32 %v2216_v29, %v5694_v14  ;;  %2829 = vmatprep.mubr.f32.mxu0 %v4515_v41  ;;  %v4468_v17 = vld [vmem:[%s5030_s30 + $0x1a8] sm:$0xff] }
 0x294   : > { %v2521_v15 = vpop.f32.mrf.mxu1  ;;  %3130 = vmatmul.mubr.f32.gmra.mxu1 %v4562_v35  ;;  %v2218_v13 = vpop.f32.mrf.mxu0  ;;  %v4661_v37 = vld [vmem:[%s5030_s30 + $0x49] sm:$0xff] }
 0x295   : > { %v6092_v6 = vadd.f32 %v2521_v15, %v2217_v40  ;;  %3134 = vmatprep.mubr.f32.mxu1 %v4611_v61  ;;  %v4564_v61 = vld [vmem:[%s5030_s30 + $0x1aa] sm:$0xff] }
 0x296   : > { %v2523_v8 = vpop.f32.mrf.mxu1  ;;  %v2221_v54 = vpop.f32.mrf.mxu0  ;;  %2830 = vmatmul.mubr.f32.gmra.mxu0 %v4467_v43  ;;  %v4757_v43 = vld [vmem:[%s5030_s30 + $0x4b] sm:$0xff] }
 0x297   : > { %v2222_v14 = vadd.f32 %v2221_v54, %v5701_v52  ;;  %2834 = vmatprep.mubr.f32.mxu0 %v4516_v12  ;;  %v4613_v13 = vld [vmem:[%s5030_s30 + $0x48] sm:$0xff]  ;;  %v4662_v8 = vld [vmem:[%s5030_s30 + $0x51] sm:$0xff] }
 0x298   : > { %v2526_v41 = vpop.f32.mrf.mxu1  ;;  %3135 = vmatmul.mubr.f32.gmra.mxu1 %v4563_v18  ;;  %v2223_v35 = vpop.f32.mrf.mxu0 }
 0x299   : > { %v6099_v29 = vadd.f32 %v2526_v41, %v2222_v14  ;;  %3139 = vmatprep.mubr.f32.mxu1 %v4612_v26  ;;  %v4709_v26 = vld [vmem:[%s5030_s30 + $0x4a] sm:$0xff] }
 0x29a   : > { %v2528_v40 = vpop.f32.mrf.mxu1  ;;  %v2226_v15 = vpop.f32.mrf.mxu0  ;;  %2835 = vmatmul.mubr.f32.gmra.mxu0 %v4468_v17  ;;  %v4758_v17 = vld [vmem:[%s5030_s30 + $0x53] sm:$0xff] }
 0x29b   : > { %v2227_v52 = vadd.f32 %v2226_v15, %v5708_v31  ;;  %3209 = vmatprep.mubr.f32.mxu0 %v4661_v37  ;;  %v4614_v35 = vld [vmem:[%s5030_s30 + $0x50] sm:$0xff]  ;;  %v4663_v40 = vld [vmem:[%s5030_s30 + $0x59] sm:$0xff] }
 0x29c   : > { %v2531_v12 = vpop.f32.mrf.mxu1  ;;  %3140 = vmatmul.mubr.f32.gmra.mxu1 %v4564_v61  ;;  %v2228_v18 = vpop.f32.mrf.mxu0 }
 0x29d   : > { %v6106_v54 = vadd.f32 %v2531_v12, %v2227_v52  ;;  %3514 = vmatprep.mubr.f32.mxu1 %v4757_v43  ;;  %v4710_v43 = vld [vmem:[%s5030_s30 + $0x52] sm:$0xff] }
 0x29e   : > { %v2533_v14 = vpop.f32.mrf.mxu1  ;;  %v2601_v41 = vpop.f32.mrf.mxu0  ;;  %3210 = vmatmul.mubr.f32.vlgmr.msra.gmra.mxu0 %v4613_v13  ;;  %v4759_v13 = vld [vmem:[%s5030_s30 + $0x5b] sm:$0xff] }
 0x29f   : > { %v2602_v31 = vadd.f32 %v2601_v41, %v5716_v16  ;;  %3214 = vmatprep.mubr.f32.mxu0 %v4662_v8  ;;  %v4615_v18 = vld [vmem:[%s5030_s30 + $0x58] sm:$0xff]  ;;  %v4664_v14 = vld [vmem:[%s5030_s30 + $0x61] sm:$0xff] }
 0x2a0   : > { %v2906_v37 = vpop.f32.mrf.mxu1  ;;  %3515 = vmatmul.mubr.f32.vlgmr.msra.gmra.mxu1 %v4709_v26  ;;  %v2603_v61 = vpop.f32.mrf.mxu0 }
 0x2a1   : > { %v6113_v15 = vadd.f32 %v2906_v37, %v2602_v31  ;;  %3519 = vmatprep.mubr.f32.mxu1 %v4758_v17  ;;  %v4711_v17 = vld [vmem:[%s5030_s30 + $0x5a] sm:$0xff] }
 0x2a2   : > { %v2908_v52 = vpop.f32.mrf.mxu1  ;;  %v2606_v12 = vpop.f32.mrf.mxu0  ;;  %3215 = vmatmul.mubr.f32.gmra.mxu0 %v4614_v35  ;;  %v4760_v35 = vld [vmem:[%s5030_s30 + $0x63] sm:$0xff] }
 0x2a3   : > { %v2607_v16 = vadd.f32 %v2606_v12, %v5725_v50  ;;  %3219 = vmatprep.mubr.f32.mxu0 %v4663_v40  ;;  %v4616_v61 = vld [vmem:[%s5030_s30 + $0x60] sm:$0xff]  ;;  %v4665_v52 = vld [vmem:[%s5030_s30 + $0x69] sm:$0xff] }
 0x2a4   : > { %v2911_v8 = vpop.f32.mrf.mxu1  ;;  %3520 = vmatmul.mubr.f32.gmra.mxu1 %v4710_v43  ;;  %v2608_v26 = vpop.f32.mrf.mxu0 }
 0x2a5   : > { %v6120_v41 = vadd.f32 %v2911_v8, %v2607_v16  ;;  %3524 = vmatprep.mubr.f32.mxu1 %v4759_v13  ;;  %v4712_v13 = vld [vmem:[%s5030_s30 + $0x62] sm:$0xff] }
 0x2a6   : > { %v2913_v31 = vpop.f32.mrf.mxu1  ;;  %v2611_v37 = vpop.f32.mrf.mxu0  ;;  %3220 = vmatmul.mubr.f32.gmra.mxu0 %v4615_v18  ;;  %v4761_v18 = vld [vmem:[%s5030_s30 + $0x6b] sm:$0xff] }
 0x2a7   : > { %v2612_v50 = vadd.f32 %v2611_v37, %v5734_v57  ;;  %3224 = vmatprep.mubr.f32.mxu0 %v4664_v14  ;;  %v4617_v26 = vld [vmem:[%s5030_s30 + $0x68] sm:$0xff]  ;;  %v4666_v31 = vld [vmem:[%s5030_s30 + $0x71] sm:$0xff] }
 0x2a8   : > { %v2916_v40 = vpop.f32.mrf.mxu1  ;;  %3525 = vmatmul.mubr.f32.gmra.mxu1 %v4711_v17  ;;  %v2613_v43 = vpop.f32.mrf.mxu0 }
 0x2a9   : > { %v6127_v12 = vadd.f32 %v2916_v40, %v2612_v50  ;;  %3529 = vmatprep.mubr.f32.mxu1 %v4760_v35  ;;  %v4713_v35 = vld [vmem:[%s5030_s30 + $0x6a] sm:$0xff] }
 0x2aa   : > { %v2918_v16 = vpop.f32.mrf.mxu1  ;;  %v2616_v8 = vpop.f32.mrf.mxu0  ;;  %3225 = vmatmul.mubr.f32.gmra.mxu0 %v4616_v61  ;;  %v4762_v61 = vld [vmem:[%s5030_s30 + $0x73] sm:$0xff] }
 0x2ab   : > { %v2617_v57 = vadd.f32 %v2616_v8, %v5743_v22  ;;  %3229 = vmatprep.mubr.f32.mxu0 %v4665_v52  ;;  %v4618_v43 = vld [vmem:[%s5030_s30 + $0x70] sm:$0xff]  ;;  %v4667_v16 = vld [vmem:[%s5030_s30 + $0x79] sm:$0xff] }
 0x2ac   : > { %v2921_v14 = vpop.f32.mrf.mxu1  ;;  %3530 = vmatmul.mubr.f32.gmra.mxu1 %v4712_v13  ;;  %v2618_v17 = vpop.f32.mrf.mxu0 }
 0x2ad   : > { %v6134_v37 = vadd.f32 %v2921_v14, %v2617_v57  ;;  %3534 = vmatprep.mubr.f32.mxu1 %v4761_v18  ;;  %v4714_v18 = vld [vmem:[%s5030_s30 + $0x72] sm:$0xff] }
 0x2ae   : > { %v2923_v50 = vpop.f32.mrf.mxu1  ;;  %v2621_v40 = vpop.f32.mrf.mxu0  ;;  %3230 = vmatmul.mubr.f32.gmra.mxu0 %v4617_v26  ;;  %v4763_v26 = vld [vmem:[%s5030_s30 + $0x7b] sm:$0xff] }
 0x2af   : > { %v2622_v22 = vadd.f32 %v2621_v40, %v5752_v34  ;;  %3234 = vmatprep.mubr.f32.mxu0 %v4666_v31  ;;  %v4619_v17 = vld [vmem:[%s5030_s30 + $0x78] sm:$0xff]  ;;  %v4668_v50 = vld [vmem:[%s5030_s30 + $0x81] sm:$0xff] }
 0x2b0   : > { %v2926_v52 = vpop.f32.mrf.mxu1  ;;  %3535 = vmatmul.mubr.f32.gmra.mxu1 %v4713_v35  ;;  %v2623_v13 = vpop.f32.mrf.mxu0 }
 0x2b1   : > { %v6141_v8 = vadd.f32 %v2926_v52, %v2622_v22  ;;  %3539 = vmatprep.mubr.f32.mxu1 %v4762_v61  ;;  %v4715_v61 = vld [vmem:[%s5030_s30 + $0x7a] sm:$0xff] }
 0x2b2   : > { %v2928_v57 = vpop.f32.mrf.mxu1  ;;  %v2626_v14 = vpop.f32.mrf.mxu0  ;;  %3235 = vmatmul.mubr.f32.gmra.mxu0 %v4618_v43  ;;  %v4764_v43 = vld [vmem:[%s5030_s30 + $0x83] sm:$0xff] }
 0x2b3   : > { %v2627_v34 = vadd.f32 %v2626_v14, %v5761_v46  ;;  %3239 = vmatprep.mubr.f32.mxu0 %v4667_v16  ;;  %v4620_v13 = vld [vmem:[%s5030_s30 + $0x80] sm:$0xff]  ;;  %v4669_v57 = vld [vmem:[%s5030_s30 + $0x89] sm:$0xff] }
 0x2b4   : > { %v2931_v31 = vpop.f32.mrf.mxu1  ;;  %3540 = vmatmul.mubr.f32.gmra.mxu1 %v4714_v18  ;;  %v2628_v35 = vpop.f32.mrf.mxu0 }
 0x2b5   : > { %v6148_v40 = vadd.f32 %v2931_v31, %v2627_v34  ;;  %3544 = vmatprep.mubr.f32.mxu1 %v4763_v26  ;;  %v4716_v26 = vld [vmem:[%s5030_s30 + $0x82] sm:$0xff] }
 0x2b6   : > { %v2933_v22 = vpop.f32.mrf.mxu1  ;;  %v2631_v52 = vpop.f32.mrf.mxu0  ;;  %3240 = vmatmul.mubr.f32.gmra.mxu0 %v4619_v17  ;;  %v4765_v17 = vld [vmem:[%s5030_s30 + $0x8b] sm:$0xff] }
 0x2b7   : > { %v2632_v46 = vadd.f32 %v2631_v52, %v5770_v58  ;;  %3244 = vmatprep.mubr.f32.mxu0 %v4668_v50  ;;  %v4621_v35 = vld [vmem:[%s5030_s30 + $0x88] sm:$0xff]  ;;  %v4670_v22 = vld [vmem:[%s5030_s30 + $0x91] sm:$0xff] }
 0x2b8   : > { %v2936_v16 = vpop.f32.mrf.mxu1  ;;  %3545 = vmatmul.mubr.f32.gmra.mxu1 %v4715_v61  ;;  %v2633_v18 = vpop.f32.mrf.mxu0 }
 0x2b9   : > { %v6155_v14 = vadd.f32 %v2936_v16, %v2632_v46  ;;  %3549 = vmatprep.mubr.f32.mxu1 %v4764_v43  ;;  %v4717_v43 = vld [vmem:[%s5030_s30 + $0x8a] sm:$0xff] }
 0x2ba   : > { %v2938_v34 = vpop.f32.mrf.mxu1  ;;  %v2636_v31 = vpop.f32.mrf.mxu0  ;;  %3245 = vmatmul.mubr.f32.gmra.mxu0 %v4620_v13  ;;  %v4766_v13 = vld [vmem:[%s5030_s30 + $0x93] sm:$0xff] }
 0x2bb   : > { %v2637_v58 = vadd.f32 %v2636_v31, %v5779_v7  ;;  %3249 = vmatprep.mubr.f32.mxu0 %v4669_v57  ;;  %v4622_v18 = vld [vmem:[%s5030_s30 + $0x90] sm:$0xff]  ;;  %v4671_v34 = vld [vmem:[%s5030_s30 + $0x99] sm:$0xff] }
 0x2bc   : > { %v2941_v50 = vpop.f32.mrf.mxu1  ;;  %3550 = vmatmul.mubr.f32.gmra.mxu1 %v4716_v26  ;;  %v2638_v61 = vpop.f32.mrf.mxu0 }
 0x2bd   : > { %v6162_v52 = vadd.f32 %v2941_v50, %v2637_v58  ;;  %3554 = vmatprep.mubr.f32.mxu1 %v4765_v17  ;;  %v4718_v17 = vld [vmem:[%s5030_s30 + $0x92] sm:$0xff] }
 0x2be   : > { %v2943_v46 = vpop.f32.mrf.mxu1  ;;  %v2641_v16 = vpop.f32.mrf.mxu0  ;;  %3250 = vmatmul.mubr.f32.gmra.mxu0 %v4621_v35  ;;  %v4767_v35 = vld [vmem:[%s5030_s30 + $0x9b] sm:$0xff] }
 0x2bf   : > { %v2642_v7 = vadd.f32 %v2641_v16, %v5788_v20  ;;  %3254 = vmatprep.mubr.f32.mxu0 %v4670_v22  ;;  %v4623_v61 = vld [vmem:[%s5030_s30 + $0x98] sm:$0xff]  ;;  %v4672_v46 = vld [vmem:[%s5030_s30 + $0xa1] sm:$0xff] }
 0x2c0   : > { %v2946_v57 = vpop.f32.mrf.mxu1  ;;  %3555 = vmatmul.mubr.f32.gmra.mxu1 %v4717_v43  ;;  %v2643_v26 = vpop.f32.mrf.mxu0 }
 0x2c1   : > { %v6169_v31 = vadd.f32 %v2946_v57, %v2642_v7  ;;  %3559 = vmatprep.mubr.f32.mxu1 %v4766_v13  ;;  %v4719_v13 = vld [vmem:[%s5030_s30 + $0x9a] sm:$0xff] }
 0x2c2   : > { %v2948_v58 = vpop.f32.mrf.mxu1  ;;  %v2646_v50 = vpop.f32.mrf.mxu0  ;;  %3255 = vmatmul.mubr.f32.gmra.mxu0 %v4622_v18  ;;  %v4768_v18 = vld [vmem:[%s5030_s30 + $0xa3] sm:$0xff] }
 0x2c3   : > { %v2647_v20 = vadd.f32 %v2646_v50, %v5797_v33  ;;  %3259 = vmatprep.mubr.f32.mxu0 %v4671_v34  ;;  %v4624_v26 = vld [vmem:[%s5030_s30 + $0xa0] sm:$0xff]  ;;  %v4673_v58 = vld [vmem:[%s5030_s30 + $0xa9] sm:$0xff] }
 0x2c4   : > { %v2951_v22 = vpop.f32.mrf.mxu1  ;;  %3560 = vmatmul.mubr.f32.gmra.mxu1 %v4718_v17  ;;  %v2648_v43 = vpop.f32.mrf.mxu0 }
 0x2c5   : > { %v6176_v16 = vadd.f32 %v2951_v22, %v2647_v20  ;;  %3564 = vmatprep.mubr.f32.mxu1 %v4767_v35  ;;  %v4720_v35 = vld [vmem:[%s5030_s30 + $0xa2] sm:$0xff] }
 0x2c6   : > { %v2953_v7 = vpop.f32.mrf.mxu1  ;;  %v2651_v57 = vpop.f32.mrf.mxu0  ;;  %3260 = vmatmul.mubr.f32.gmra.mxu0 %v4623_v61  ;;  %v4769_v61 = vld [vmem:[%s5030_s30 + $0xab] sm:$0xff] }
 0x2c7   : > { %v2652_v33 = vadd.f32 %v2651_v57, %v5806_v47  ;;  %3264 = vmatprep.mubr.f32.mxu0 %v4672_v46  ;;  %v4625_v43 = vld [vmem:[%s5030_s30 + $0xa8] sm:$0xff]  ;;  %v4674_v7 = vld [vmem:[%s5030_s30 + $0xb1] sm:$0xff] }
 0x2c8   : > { %v2956_v34 = vpop.f32.mrf.mxu1  ;;  %3565 = vmatmul.mubr.f32.gmra.mxu1 %v4719_v13  ;;  %v2653_v17 = vpop.f32.mrf.mxu0 }
 0x2c9   : > { %v6183_v50 = vadd.f32 %v2956_v34, %v2652_v33  ;;  %3569 = vmatprep.mubr.f32.mxu1 %v4768_v18  ;;  %v4721_v18 = vld [vmem:[%s5030_s30 + $0xaa] sm:$0xff] }
 0x2ca   : > { %v2958_v20 = vpop.f32.mrf.mxu1  ;;  %v2656_v22 = vpop.f32.mrf.mxu0  ;;  %3265 = vmatmul.mubr.f32.gmra.mxu0 %v4624_v26  ;;  %v4770_v26 = vld [vmem:[%s5030_s30 + $0xb3] sm:$0xff] }
 0x2cb   : > { %v2657_v47 = vadd.f32 %v2656_v22, %v5815_v60  ;;  %3269 = vmatprep.mubr.f32.mxu0 %v4673_v58  ;;  %v4626_v17 = vld [vmem:[%s5030_s30 + $0xb0] sm:$0xff]  ;;  %v4675_v20 = vld [vmem:[%s5030_s30 + $0xb9] sm:$0xff] }
 0x2cc   : > { %v2961_v46 = vpop.f32.mrf.mxu1  ;;  %3570 = vmatmul.mubr.f32.gmra.mxu1 %v4720_v35  ;;  %v2658_v13 = vpop.f32.mrf.mxu0 }
 0x2cd   : > { %v6190_v57 = vadd.f32 %v2961_v46, %v2657_v47  ;;  %3574 = vmatprep.mubr.f32.mxu1 %v4769_v61  ;;  %v4722_v61 = vld [vmem:[%s5030_s30 + $0xb2] sm:$0xff] }
 0x2ce   : > { %v2963_v33 = vpop.f32.mrf.mxu1  ;;  %v2661_v34 = vpop.f32.mrf.mxu0  ;;  %3270 = vmatmul.mubr.f32.gmra.mxu0 %v4625_v43  ;;  %v4771_v43 = vld [vmem:[%s5030_s30 + $0xbb] sm:$0xff] }
 0x2cf   : > { %v2662_v60 = vadd.f32 %v2661_v34, %v5824_v11  ;;  %3274 = vmatprep.mubr.f32.mxu0 %v4674_v7  ;;  %v4627_v13 = vld [vmem:[%s5030_s30 + $0xb8] sm:$0xff]  ;;  %v4676_v33 = vld [vmem:[%s5030_s30 + $0xc1] sm:$0xff] }
 0x2d0   : > { %v2966_v58 = vpop.f32.mrf.mxu1  ;;  %3575 = vmatmul.mubr.f32.gmra.mxu1 %v4721_v18  ;;  %v2663_v35 = vpop.f32.mrf.mxu0 }
 0x2d1   : > { %v6197_v22 = vadd.f32 %v2966_v58, %v2662_v60  ;;  %3579 = vmatprep.mubr.f32.mxu1 %v4770_v26  ;;  %v4723_v26 = vld [vmem:[%s5030_s30 + $0xba] sm:$0xff] }
 0x2d2   : > { %v2968_v47 = vpop.f32.mrf.mxu1  ;;  %v2666_v46 = vpop.f32.mrf.mxu0  ;;  %3275 = vmatmul.mubr.f32.gmra.mxu0 %v4626_v17  ;;  %v4772_v17 = vld [vmem:[%s5030_s30 + $0xc3] sm:$0xff] }
 0x2d3   : > { %v2667_v11 = vadd.f32 %v2666_v46, %v5833_v25  ;;  %3279 = vmatprep.mubr.f32.mxu0 %v4675_v20  ;;  %v4628_v35 = vld [vmem:[%s5030_s30 + $0xc0] sm:$0xff]  ;;  %v4677_v47 = vld [vmem:[%s5030_s30 + $0xc9] sm:$0xff] }
 0x2d4   : > { %v2971_v7 = vpop.f32.mrf.mxu1  ;;  %3580 = vmatmul.mubr.f32.gmra.mxu1 %v4722_v61  ;;  %v2668_v18 = vpop.f32.mrf.mxu0 }
 0x2d5   : > { %v6204_v34 = vadd.f32 %v2971_v7, %v2667_v11  ;;  %3584 = vmatprep.mubr.f32.mxu1 %v4771_v43  ;;  %v4724_v43 = vld [vmem:[%s5030_s30 + $0xc2] sm:$0xff] }
 0x2d6   : > { %v2973_v60 = vpop.f32.mrf.mxu1  ;;  %v2671_v58 = vpop.f32.mrf.mxu0  ;;  %3280 = vmatmul.mubr.f32.gmra.mxu0 %v4627_v13  ;;  %v4773_v13 = vld [vmem:[%s5030_s30 + $0xcb] sm:$0xff] }
 0x2d7   : > { %v2672_v25 = vadd.f32 %v2671_v58, %v5842_v39  ;;  %3284 = vmatprep.mubr.f32.mxu0 %v4676_v33  ;;  %v4629_v18 = vld [vmem:[%s5030_s30 + $0xc8] sm:$0xff]  ;;  %v4678_v60 = vld [vmem:[%s5030_s30 + $0xd1] sm:$0xff] }
 0x2d8   : > { %v2976_v20 = vpop.f32.mrf.mxu1  ;;  %3585 = vmatmul.mubr.f32.gmra.mxu1 %v4723_v26  ;;  %v2673_v61 = vpop.f32.mrf.mxu0 }
 0x2d9   : > { %v6211_v46 = vadd.f32 %v2976_v20, %v2672_v25  ;;  %3589 = vmatprep.mubr.f32.mxu1 %v4772_v17  ;;  %v4725_v17 = vld [vmem:[%s5030_s30 + $0xca] sm:$0xff] }
 0x2da   : > { %v2978_v11 = vpop.f32.mrf.mxu1  ;;  %v2676_v7 = vpop.f32.mrf.mxu0  ;;  %3285 = vmatmul.mubr.f32.gmra.mxu0 %v4628_v35  ;;  %v4774_v35 = vld [vmem:[%s5030_s30 + $0xd3] sm:$0xff] }
 0x2db   : > { %v2677_v39 = vadd.f32 %v2676_v7, %v5851_v53  ;;  %3289 = vmatprep.mubr.f32.mxu0 %v4677_v47  ;;  %v4630_v61 = vld [vmem:[%s5030_s30 + $0xd0] sm:$0xff]  ;;  %v4679_v11 = vld [vmem:[%s5030_s30 + $0xd9] sm:$0xff] }
 0x2dc   : > { %v2981_v33 = vpop.f32.mrf.mxu1  ;;  %3590 = vmatmul.mubr.f32.gmra.mxu1 %v4724_v43  ;;  %v2678_v26 = vpop.f32.mrf.mxu0 }
 0x2dd   : > { %v6218_v58 = vadd.f32 %v2981_v33, %v2677_v39  ;;  %3594 = vmatprep.mubr.f32.mxu1 %v4773_v13  ;;  %v4726_v13 = vld [vmem:[%s5030_s30 + $0xd2] sm:$0xff] }
 0x2de   : > { %v2983_v25 = vpop.f32.mrf.mxu1  ;;  %v2681_v20 = vpop.f32.mrf.mxu0  ;;  %3290 = vmatmul.mubr.f32.gmra.mxu0 %v4629_v18  ;;  %v4775_v18 = vld [vmem:[%s5030_s30 + $0xdb] sm:$0xff] }
 0x2df   : > { %v2682_v53 = vadd.f32 %v2681_v20, %v5860_v4  ;;  %3294 = vmatprep.mubr.f32.mxu0 %v4678_v60  ;;  %v4631_v26 = vld [vmem:[%s5030_s30 + $0xd8] sm:$0xff]  ;;  %v4680_v25 = vld [vmem:[%s5030_s30 + $0xe1] sm:$0xff] }
 0x2e0   : > { %v2986_v47 = vpop.f32.mrf.mxu1  ;;  %3595 = vmatmul.mubr.f32.gmra.mxu1 %v4725_v17  ;;  %v2683_v43 = vpop.f32.mrf.mxu0 }
 0x2e1   : > { %v6225_v7 = vadd.f32 %v2986_v47, %v2682_v53  ;;  %3599 = vmatprep.mubr.f32.mxu1 %v4774_v35  ;;  %v4727_v35 = vld [vmem:[%s5030_s30 + $0xda] sm:$0xff] }
 0x2e2   : > { %v2988_v39 = vpop.f32.mrf.mxu1  ;;  %v2686_v33 = vpop.f32.mrf.mxu0  ;;  %3295 = vmatmul.mubr.f32.gmra.mxu0 %v4630_v61  ;;  %v4776_v61 = vld [vmem:[%s5030_s30 + $0xe3] sm:$0xff] }
 0x2e3   : > { %v2687_v4 = vadd.f32 %v2686_v33, %v5869_v19  ;;  %3299 = vmatprep.mubr.f32.mxu0 %v4679_v11  ;;  %v4632_v43 = vld [vmem:[%s5030_s30 + $0xe0] sm:$0xff]  ;;  %v4681_v39 = vld [vmem:[%s5030_s30 + $0xe9] sm:$0xff] }
 0x2e4   : > { %v2991_v60 = vpop.f32.mrf.mxu1  ;;  %3600 = vmatmul.mubr.f32.gmra.mxu1 %v4726_v13  ;;  %v2688_v17 = vpop.f32.mrf.mxu0 }
 0x2e5   : > { %v6232_v20 = vadd.f32 %v2991_v60, %v2687_v4  ;;  %3604 = vmatprep.mubr.f32.mxu1 %v4775_v18  ;;  %v4728_v18 = vld [vmem:[%s5030_s30 + $0xe2] sm:$0xff] }
 0x2e6   : > { %v2993_v53 = vpop.f32.mrf.mxu1  ;;  %v2691_v47 = vpop.f32.mrf.mxu0  ;;  %3300 = vmatmul.mubr.f32.gmra.mxu0 %v4631_v26  ;;  %v4777_v26 = vld [vmem:[%s5030_s30 + $0xeb] sm:$0xff] }
 0x2e7   : > { %v2692_v19 = vadd.f32 %v2691_v47, %v5878_v36  ;;  %3304 = vmatprep.mubr.f32.mxu0 %v4680_v25  ;;  %v4633_v17 = vld [vmem:[%s5030_s30 + $0xe8] sm:$0xff]  ;;  %v4682_v53 = vld [vmem:[%s5030_s30 + $0xf1] sm:$0xff] }
 0x2e8   : > { %v2996_v11 = vpop.f32.mrf.mxu1  ;;  %3605 = vmatmul.mubr.f32.gmra.mxu1 %v4727_v35  ;;  %v2693_v13 = vpop.f32.mrf.mxu0 }
 0x2e9   : > { %v6239_v33 = vadd.f32 %v2996_v11, %v2692_v19  ;;  %3609 = vmatprep.mubr.f32.mxu1 %v4776_v61  ;;  %v4729_v61 = vld [vmem:[%s5030_s30 + $0xea] sm:$0xff] }
 0x2ea   : > { %v2998_v4 = vpop.f32.mrf.mxu1  ;;  %v2696_v60 = vpop.f32.mrf.mxu0  ;;  %3305 = vmatmul.mubr.f32.gmra.mxu0 %v4632_v43  ;;  %v4778_v43 = vld [vmem:[%s5030_s30 + $0xf3] sm:$0xff] }
 0x2eb   : > { %v2697_v36 = vadd.f32 %v2696_v60, %v5887_v51  ;;  %3309 = vmatprep.mubr.f32.mxu0 %v4681_v39  ;;  %v4634_v13 = vld [vmem:[%s5030_s30 + $0xf0] sm:$0xff]  ;;  %v4683_v4 = vld [vmem:[%s5030_s30 + $0xf9] sm:$0xff] }
 0x2ec   : > { %v3001_v25 = vpop.f32.mrf.mxu1  ;;  %3610 = vmatmul.mubr.f32.gmra.mxu1 %v4728_v18  ;;  %v2698_v35 = vpop.f32.mrf.mxu0 }
 0x2ed   : > { %v6246_v47 = vadd.f32 %v3001_v25, %v2697_v36  ;;  %3614 = vmatprep.mubr.f32.mxu1 %v4777_v26  ;;  %v4730_v26 = vld [vmem:[%s5030_s30 + $0xf2] sm:$0xff] }
 0x2ee   : > { %v3003_v19 = vpop.f32.mrf.mxu1  ;;  %v2701_v11 = vpop.f32.mrf.mxu0  ;;  %3310 = vmatmul.mubr.f32.gmra.mxu0 %v4633_v17  ;;  %v4779_v17 = vld [vmem:[%s5030_s30 + $0xfb] sm:$0xff] }
 0x2ef   : > { %v2702_v51 = vadd.f32 %v2701_v11, %v5896_v3  ;;  %3314 = vmatprep.mubr.f32.mxu0 %v4682_v53  ;;  %v4635_v35 = vld [vmem:[%s5030_s30 + $0xf8] sm:$0xff]  ;;  %v4684_v19 = vld [vmem:[%s5030_s30 + $0x101] sm:$0xff] }
 0x2f0   : > { %v3006_v39 = vpop.f32.mrf.mxu1  ;;  %3615 = vmatmul.mubr.f32.gmra.mxu1 %v4729_v61  ;;  %v2703_v18 = vpop.f32.mrf.mxu0 }
 0x2f1   : > { %v6253_v60 = vadd.f32 %v3006_v39, %v2702_v51  ;;  %3619 = vmatprep.mubr.f32.mxu1 %v4778_v43  ;;  %v4731_v43 = vld [vmem:[%s5030_s30 + $0xfa] sm:$0xff] }
 0x2f2   : > { %v3008_v36 = vpop.f32.mrf.mxu1  ;;  %v2706_v25 = vpop.f32.mrf.mxu0  ;;  %3315 = vmatmul.mubr.f32.gmra.mxu0 %v4634_v13  ;;  %v4780_v13 = vld [vmem:[%s5030_s30 + $0x103] sm:$0xff] }
 0x2f3   : > { %v2707_v3 = vadd.f32 %v2706_v25, %v5905_v21  ;;  %3319 = vmatprep.mubr.f32.mxu0 %v4683_v4  ;;  %v4636_v18 = vld [vmem:[%s5030_s30 + $0x100] sm:$0xff]  ;;  %v4685_v36 = vld [vmem:[%s5030_s30 + $0x109] sm:$0xff] }
 0x2f4   : > { %v3011_v53 = vpop.f32.mrf.mxu1  ;;  %3620 = vmatmul.mubr.f32.gmra.mxu1 %v4730_v26  ;;  %v2708_v61 = vpop.f32.mrf.mxu0 }
 0x2f5   : > { %v6260_v11 = vadd.f32 %v3011_v53, %v2707_v3  ;;  %3624 = vmatprep.mubr.f32.mxu1 %v4779_v17  ;;  %v4732_v17 = vld [vmem:[%s5030_s30 + $0x102] sm:$0xff] }
 0x2f6   : > { %v3013_v51 = vpop.f32.mrf.mxu1  ;;  %v2711_v39 = vpop.f32.mrf.mxu0  ;;  %3320 = vmatmul.mubr.f32.gmra.mxu0 %v4635_v35  ;;  %v4781_v35 = vld [vmem:[%s5030_s30 + $0x10b] sm:$0xff] }
 0x2f7   : > { %v2712_v21 = vadd.f32 %v2711_v39, %v5914_v38  ;;  %3324 = vmatprep.mubr.f32.mxu0 %v4684_v19  ;;  %v4637_v61 = vld [vmem:[%s5030_s30 + $0x108] sm:$0xff]  ;;  %v4686_v51 = vld [vmem:[%s5030_s30 + $0x111] sm:$0xff] }
 0x2f8   : > { %v3016_v4 = vpop.f32.mrf.mxu1  ;;  %3625 = vmatmul.mubr.f32.gmra.mxu1 %v4731_v43  ;;  %v2713_v26 = vpop.f32.mrf.mxu0 }
 0x2f9   : > { %v6267_v25 = vadd.f32 %v3016_v4, %v2712_v21  ;;  %3629 = vmatprep.mubr.f32.mxu1 %v4780_v13  ;;  %v4733_v13 = vld [vmem:[%s5030_s30 + $0x10a] sm:$0xff] }
 0x2fa   : > { %v3018_v3 = vpop.f32.mrf.mxu1  ;;  %v2716_v53 = vpop.f32.mrf.mxu0  ;;  %3325 = vmatmul.mubr.f32.gmra.mxu0 %v4636_v18  ;;  %v4782_v18 = vld [vmem:[%s5030_s30 + $0x113] sm:$0xff] }
 0x2fb   : > { %v2717_v38 = vadd.f32 %v2716_v53, %v5923_v55  ;;  %3329 = vmatprep.mubr.f32.mxu0 %v4685_v36  ;;  %v4638_v26 = vld [vmem:[%s5030_s30 + $0x110] sm:$0xff]  ;;  %v4687_v3 = vld [vmem:[%s5030_s30 + $0x119] sm:$0xff] }
 0x2fc   : > { %v3021_v19 = vpop.f32.mrf.mxu1  ;;  %3630 = vmatmul.mubr.f32.gmra.mxu1 %v4732_v17  ;;  %v2718_v43 = vpop.f32.mrf.mxu0 }
 0x2fd   : > { %v6274_v39 = vadd.f32 %v3021_v19, %v2717_v38  ;;  %3634 = vmatprep.mubr.f32.mxu1 %v4781_v35  ;;  %v4734_v35 = vld [vmem:[%s5030_s30 + $0x112] sm:$0xff] }
 0x2fe   : > { %v3023_v21 = vpop.f32.mrf.mxu1  ;;  %v2721_v4 = vpop.f32.mrf.mxu0  ;;  %3330 = vmatmul.mubr.f32.gmra.mxu0 %v4637_v61  ;;  %v4783_v61 = vld [vmem:[%s5030_s30 + $0x11b] sm:$0xff] }
 0x2ff   : > { %v2722_v55 = vadd.f32 %v2721_v4, %v5932_v10  ;;  %3334 = vmatprep.mubr.f32.mxu0 %v4686_v51  ;;  %v4639_v43 = vld [vmem:[%s5030_s30 + $0x118] sm:$0xff]  ;;  %v4688_v21 = vld [vmem:[%s5030_s30 + $0x121] sm:$0xff] }
 0x300   : > { %v3026_v36 = vpop.f32.mrf.mxu1  ;;  %3635 = vmatmul.mubr.f32.gmra.mxu1 %v4733_v13  ;;  %v2723_v17 = vpop.f32.mrf.mxu0 }
 0x301   : > { %v6281_v53 = vadd.f32 %v3026_v36, %v2722_v55  ;;  %3639 = vmatprep.mubr.f32.mxu1 %v4782_v18  ;;  %v4735_v18 = vld [vmem:[%s5030_s30 + $0x11a] sm:$0xff] }
 0x302   : > { %v3028_v38 = vpop.f32.mrf.mxu1  ;;  %v2726_v19 = vpop.f32.mrf.mxu0  ;;  %3335 = vmatmul.mubr.f32.gmra.mxu0 %v4638_v26  ;;  %v4784_v26 = vld [vmem:[%s5030_s30 + $0x123] sm:$0xff] }
 0x303   : > { %v2727_v10 = vadd.f32 %v2726_v19, %v5941_v28  ;;  %3339 = vmatprep.mubr.f32.mxu0 %v4687_v3  ;;  %v4640_v17 = vld [vmem:[%s5030_s30 + $0x120] sm:$0xff]  ;;  %v4689_v38 = vld [vmem:[%s5030_s30 + $0x129] sm:$0xff] }
 0x304   : > { %v3031_v51 = vpop.f32.mrf.mxu1  ;;  %3640 = vmatmul.mubr.f32.gmra.mxu1 %v4734_v35  ;;  %v2728_v13 = vpop.f32.mrf.mxu0 }
 0x305   : > { %v6288_v4 = vadd.f32 %v3031_v51, %v2727_v10  ;;  %3644 = vmatprep.mubr.f32.mxu1 %v4783_v61  ;;  %v4736_v61 = vld [vmem:[%s5030_s30 + $0x122] sm:$0xff] }
 0x306   : > { %v3033_v55 = vpop.f32.mrf.mxu1  ;;  %v2731_v36 = vpop.f32.mrf.mxu0  ;;  %3340 = vmatmul.mubr.f32.gmra.mxu0 %v4639_v43  ;;  %v4785_v43 = vld [vmem:[%s5030_s30 + $0x12b] sm:$0xff] }
 0x307   : > { %v2732_v28 = vadd.f32 %v2731_v36, %v5950_v45  ;;  %3344 = vmatprep.mubr.f32.mxu0 %v4688_v21  ;;  %v4641_v13 = vld [vmem:[%s5030_s30 + $0x128] sm:$0xff]  ;;  %v4690_v55 = vld [vmem:[%s5030_s30 + $0x131] sm:$0xff] }
 0x308   : > { %v3036_v3 = vpop.f32.mrf.mxu1  ;;  %3645 = vmatmul.mubr.f32.gmra.mxu1 %v4735_v18  ;;  %v2733_v35 = vpop.f32.mrf.mxu0 }
 0x309   : > { %v6295_v19 = vadd.f32 %v3036_v3, %v2732_v28  ;;  %3649 = vmatprep.mubr.f32.mxu1 %v4784_v26  ;;  %v4737_v26 = vld [vmem:[%s5030_s30 + $0x12a] sm:$0xff] }
 0x30a   : > { %v3038_v10 = vpop.f32.mrf.mxu1  ;;  %v2736_v51 = vpop.f32.mrf.mxu0  ;;  %3345 = vmatmul.mubr.f32.gmra.mxu0 %v4640_v17  ;;  %v4786_v17 = vld [vmem:[%s5030_s30 + $0x133] sm:$0xff] }
 0x30b   : > { %v2737_v45 = vadd.f32 %v2736_v51, %v5959_v1  ;;  %3349 = vmatprep.mubr.f32.mxu0 %v4689_v38  ;;  %v4642_v35 = vld [vmem:[%s5030_s30 + $0x130] sm:$0xff]  ;;  %v4691_v10 = vld [vmem:[%s5030_s30 + $0x139] sm:$0xff] }
 0x30c   : > { %v3041_v21 = vpop.f32.mrf.mxu1  ;;  %3650 = vmatmul.mubr.f32.gmra.mxu1 %v4736_v61  ;;  %v2738_v18 = vpop.f32.mrf.mxu0 }
 0x30d   : > { %v6302_v36 = vadd.f32 %v3041_v21, %v2737_v45  ;;  %3654 = vmatprep.mubr.f32.mxu1 %v4785_v43  ;;  %v4738_v43 = vld [vmem:[%s5030_s30 + $0x132] sm:$0xff] }
 0x30e   : > { %v3043_v28 = vpop.f32.mrf.mxu1  ;;  %v2741_v3 = vpop.f32.mrf.mxu0  ;;  %3350 = vmatmul.mubr.f32.gmra.mxu0 %v4641_v13  ;;  %v4787_v13 = vld [vmem:[%s5030_s30 + $0x13b] sm:$0xff] }
 0x30f   : > { %v2742_v1 = vadd.f32 %v2741_v3, %v5968_v23  ;;  %3354 = vmatprep.mubr.f32.mxu0 %v4690_v55  ;;  %v4643_v18 = vld [vmem:[%s5030_s30 + $0x138] sm:$0xff]  ;;  %v4692_v28 = vld [vmem:[%s5030_s30 + $0x141] sm:$0xff] }
 0x310   : > { %v3046_v38 = vpop.f32.mrf.mxu1  ;;  %3655 = vmatmul.mubr.f32.gmra.mxu1 %v4737_v26  ;;  %v2743_v61 = vpop.f32.mrf.mxu0 }
 0x311   : > { %v6309_v51 = vadd.f32 %v3046_v38, %v2742_v1  ;;  %3659 = vmatprep.mubr.f32.mxu1 %v4786_v17  ;;  %v4739_v17 = vld [vmem:[%s5030_s30 + $0x13a] sm:$0xff] }
 0x312   : > { %v3048_v45 = vpop.f32.mrf.mxu1  ;;  %v2746_v21 = vpop.f32.mrf.mxu0  ;;  %3355 = vmatmul.mubr.f32.gmra.mxu0 %v4642_v35  ;;  %v4788_v35 = vld [vmem:[%s5030_s30 + $0x143] sm:$0xff] }
 0x313   : > { %v2747_v23 = vadd.f32 %v2746_v21, %v5977_v42  ;;  %3359 = vmatprep.mubr.f32.mxu0 %v4691_v10  ;;  %v4644_v61 = vld [vmem:[%s5030_s30 + $0x140] sm:$0xff]  ;;  %v4693_v45 = vld [vmem:[%s5030_s30 + $0x149] sm:$0xff] }
 0x314   : > { %v3051_v55 = vpop.f32.mrf.mxu1  ;;  %3660 = vmatmul.mubr.f32.gmra.mxu1 %v4738_v43  ;;  %v2748_v26 = vpop.f32.mrf.mxu0 }
 0x315   : > { %v6316_v3 = vadd.f32 %v3051_v55, %v2747_v23  ;;  %3664 = vmatprep.mubr.f32.mxu1 %v4787_v13  ;;  %v4740_v13 = vld [vmem:[%s5030_s30 + $0x142] sm:$0xff] }
 0x316   : > { %v3053_v1 = vpop.f32.mrf.mxu1  ;;  %v2751_v38 = vpop.f32.mrf.mxu0  ;;  %3360 = vmatmul.mubr.f32.gmra.mxu0 %v4643_v18  ;;  %v4789_v18 = vld [vmem:[%s5030_s30 + $0x14b] sm:$0xff] }
 0x317   : > { %v2752_v42 = vadd.f32 %v2751_v38, %v5986_v62  ;;  %3364 = vmatprep.mubr.f32.mxu0 %v4692_v28  ;;  %v4645_v26 = vld [vmem:[%s5030_s30 + $0x148] sm:$0xff]  ;;  %v4694_v1 = vld [vmem:[%s5030_s30 + $0x151] sm:$0xff] }
 0x318   : > { %v3056_v10 = vpop.f32.mrf.mxu1  ;;  %3665 = vmatmul.mubr.f32.gmra.mxu1 %v4739_v17  ;;  %v2753_v43 = vpop.f32.mrf.mxu0 }
 0x319   : > { %v6323_v21 = vadd.f32 %v3056_v10, %v2752_v42  ;;  %3669 = vmatprep.mubr.f32.mxu1 %v4788_v35  ;;  %v4741_v35 = vld [vmem:[%s5030_s30 + $0x14a] sm:$0xff] }
 0x31a   : > { %v3058_v23 = vpop.f32.mrf.mxu1  ;;  %v2756_v55 = vpop.f32.mrf.mxu0  ;;  %3365 = vmatmul.mubr.f32.gmra.mxu0 %v4644_v61  ;;  %v4790_v61 = vld [vmem:[%s5030_s30 + $0x153] sm:$0xff] }
 0x31b   : > { %v2757_v62 = vadd.f32 %v2756_v55, %v5994_v9  ;;  %3369 = vmatprep.mubr.f32.mxu0 %v4693_v45  ;;  %v4646_v43 = vld [vmem:[%s5030_s30 + $0x150] sm:$0xff]  ;;  %v4695_v23 = vld [vmem:[%s5030_s30 + $0x159] sm:$0xff] }
 0x31c   : > { %v3061_v28 = vpop.f32.mrf.mxu1  ;;  %3670 = vmatmul.mubr.f32.gmra.mxu1 %v4740_v13  ;;  %v2758_v17 = vpop.f32.mrf.mxu0 }
 0x31d   : > { %v6330_v38 = vadd.f32 %v3061_v28, %v2757_v62  ;;  %3674 = vmatprep.mubr.f32.mxu1 %v4789_v18  ;;  %v4742_v18 = vld [vmem:[%s5030_s30 + $0x152] sm:$0xff] }
 0x31e   : > { %v3063_v42 = vpop.f32.mrf.mxu1  ;;  %v2761_v10 = vpop.f32.mrf.mxu0  ;;  %3370 = vmatmul.mubr.f32.gmra.mxu0 %v4645_v26  ;;  %v4791_v26 = vld [vmem:[%s5030_s30 + $0x15b] sm:$0xff] }
 0x31f   : > { %v2762_v9 = vadd.f32 %v2761_v10, %v6001_v0  ;;  %3374 = vmatprep.mubr.f32.mxu0 %v4694_v1  ;;  %v4647_v17 = vld [vmem:[%s5030_s30 + $0x158] sm:$0xff]  ;;  %v4696_v42 = vld [vmem:[%s5030_s30 + $0x161] sm:$0xff] }
 0x320   : > { %v3066_v45 = vpop.f32.mrf.mxu1  ;;  %3675 = vmatmul.mubr.f32.gmra.mxu1 %v4741_v35  ;;  %v2763_v13 = vpop.f32.mrf.mxu0 }
 0x321   : > { %v6337_v55 = vadd.f32 %v3066_v45, %v2762_v9  ;;  %3679 = vmatprep.mubr.f32.mxu1 %v4790_v61  ;;  %v4743_v61 = vld [vmem:[%s5030_s30 + $0x15a] sm:$0xff] }
 0x322   : > { %v3068_v62 = vpop.f32.mrf.mxu1  ;;  %v2766_v28 = vpop.f32.mrf.mxu0  ;;  %3375 = vmatmul.mubr.f32.gmra.mxu0 %v4646_v43  ;;  %v4792_v43 = vld [vmem:[%s5030_s30 + $0x163] sm:$0xff] }
 0x323   : > { %v2767_v0 = vadd.f32 %v2766_v28, %v6008_v27  ;;  %3379 = vmatprep.mubr.f32.mxu0 %v4695_v23  ;;  %v4648_v13 = vld [vmem:[%s5030_s30 + $0x160] sm:$0xff]  ;;  %v4697_v62 = vld [vmem:[%s5030_s30 + $0x169] sm:$0xff] }
 0x324   : > { %v3071_v1 = vpop.f32.mrf.mxu1  ;;  %3680 = vmatmul.mubr.f32.gmra.mxu1 %v4742_v18  ;;  %v2768_v35 = vpop.f32.mrf.mxu0 }
 0x325   : > { %v6344_v10 = vadd.f32 %v3071_v1, %v2767_v0  ;;  %3684 = vmatprep.mubr.f32.mxu1 %v4791_v26  ;;  %v4744_v26 = vld [vmem:[%s5030_s30 + $0x162] sm:$0xff] }
 0x326   : > { %v3073_v9 = vpop.f32.mrf.mxu1  ;;  %v2771_v45 = vpop.f32.mrf.mxu0  ;;  %3380 = vmatmul.mubr.f32.gmra.mxu0 %v4647_v17  ;;  %v4793_v17 = vld [vmem:[%s5030_s30 + $0x16b] sm:$0xff] }
 0x327   : > { %v2772_v27 = vadd.f32 %v2771_v45, %v6015_v59  ;;  %3384 = vmatprep.mubr.f32.mxu0 %v4696_v42  ;;  %v4649_v35 = vld [vmem:[%s5030_s30 + $0x168] sm:$0xff]  ;;  %v4698_v9 = vld [vmem:[%s5030_s30 + $0x171] sm:$0xff] }
 0x328   : > { %v3076_v23 = vpop.f32.mrf.mxu1  ;;  %3685 = vmatmul.mubr.f32.gmra.mxu1 %v4743_v61  ;;  %v2773_v18 = vpop.f32.mrf.mxu0 }
 0x329   : > { %v6351_v28 = vadd.f32 %v3076_v23, %v2772_v27  ;;  %3689 = vmatprep.mubr.f32.mxu1 %v4792_v43  ;;  %v4745_v43 = vld [vmem:[%s5030_s30 + $0x16a] sm:$0xff] }
 0x32a   : > { %v3078_v0 = vpop.f32.mrf.mxu1  ;;  %v2776_v1 = vpop.f32.mrf.mxu0  ;;  %3385 = vmatmul.mubr.f32.gmra.mxu0 %v4648_v13  ;;  %v4794_v13 = vld [vmem:[%s5030_s30 + $0x173] sm:$0xff] }
 0x32b   : > { %v2777_v59 = vadd.f32 %v2776_v1, %v6022_v30  ;;  %3389 = vmatprep.mubr.f32.mxu0 %v4697_v62  ;;  %v4650_v18 = vld [vmem:[%s5030_s30 + $0x170] sm:$0xff]  ;;  %v4699_v0 = vld [vmem:[%s5030_s30 + $0x179] sm:$0xff] }
 0x32c   : > { %v3081_v42 = vpop.f32.mrf.mxu1  ;;  %3690 = vmatmul.mubr.f32.gmra.mxu1 %v4744_v26  ;;  %v2778_v61 = vpop.f32.mrf.mxu0 }
 0x32d   : > { %v6358_v45 = vadd.f32 %v3081_v42, %v2777_v59  ;;  %3694 = vmatprep.mubr.f32.mxu1 %v4793_v17  ;;  %v4746_v17 = vld [vmem:[%s5030_s30 + $0x172] sm:$0xff] }
 0x32e   : > { %v3083_v27 = vpop.f32.mrf.mxu1  ;;  %v2781_v23 = vpop.f32.mrf.mxu0  ;;  %3390 = vmatmul.mubr.f32.gmra.mxu0 %v4649_v35  ;;  %v4795_v35 = vld [vmem:[%s5030_s30 + $0x17b] sm:$0xff] }
 0x32f   : > { %v2782_v30 = vadd.f32 %v2781_v23, %v6029_v56  ;;  %3394 = vmatprep.mubr.f32.mxu0 %v4698_v9  ;;  %v4651_v61 = vld [vmem:[%s5030_s30 + $0x178] sm:$0xff]  ;;  %v4700_v27 = vld [vmem:[%s5030_s30 + $0x181] sm:$0xff] }
 0x330   : > { %v3086_v62 = vpop.f32.mrf.mxu1  ;;  %3695 = vmatmul.mubr.f32.gmra.mxu1 %v4745_v43  ;;  %v2783_v26 = vpop.f32.mrf.mxu0 }
 0x331   : > { %v6365_v1 = vadd.f32 %v3086_v62, %v2782_v30  ;;  %3699 = vmatprep.mubr.f32.mxu1 %v4794_v13  ;;  %v4747_v13 = vld [vmem:[%s5030_s30 + $0x17a] sm:$0xff] }
 0x332   : > { %v3088_v59 = vpop.f32.mrf.mxu1  ;;  %v2786_v42 = vpop.f32.mrf.mxu0  ;;  %3395 = vmatmul.mubr.f32.gmra.mxu0 %v4650_v18  ;;  %v4796_v18 = vld [vmem:[%s5030_s30 + $0x183] sm:$0xff] }
 0x333   : > { %v2787_v56 = vadd.f32 %v2786_v42, %v6036_v2  ;;  %3399 = vmatprep.mubr.f32.mxu0 %v4699_v0  ;;  %v4652_v26 = vld [vmem:[%s5030_s30 + $0x180] sm:$0xff]  ;;  %v4701_v59 = vld [vmem:[%s5030_s30 + $0x189] sm:$0xff] }
 0x334   : > { %v3091_v9 = vpop.f32.mrf.mxu1  ;;  %3700 = vmatmul.mubr.f32.gmra.mxu1 %v4746_v17  ;;  %v2788_v43 = vpop.f32.mrf.mxu0 }
 0x335   : > { %v6372_v23 = vadd.f32 %v3091_v9, %v2787_v56  ;;  %3704 = vmatprep.mubr.f32.mxu1 %v4795_v35  ;;  %v4748_v35 = vld [vmem:[%s5030_s30 + $0x182] sm:$0xff] }
 0x336   : > { %v3093_v30 = vpop.f32.mrf.mxu1  ;;  %v2791_v62 = vpop.f32.mrf.mxu0  ;;  %3400 = vmatmul.mubr.f32.gmra.mxu0 %v4651_v61  ;;  %v4797_v61 = vld [vmem:[%s5030_s30 + $0x18b] sm:$0xff] }
 0x337   : > { %v2792_v2 = vadd.f32 %v2791_v62, %v6043_v5  ;;  %3404 = vmatprep.mubr.f32.mxu0 %v4700_v27  ;;  %v4653_v43 = vld [vmem:[%s5030_s30 + $0x188] sm:$0xff]  ;;  %v4702_v30 = vld [vmem:[%s5030_s30 + $0x191] sm:$0xff] }
 0x338   : > { %v3096_v0 = vpop.f32.mrf.mxu1  ;;  %3705 = vmatmul.mubr.f32.gmra.mxu1 %v4747_v13  ;;  %v2793_v17 = vpop.f32.mrf.mxu0 }
 0x339   : > { %v6379_v42 = vadd.f32 %v3096_v0, %v2792_v2  ;;  %3709 = vmatprep.mubr.f32.mxu1 %v4796_v18  ;;  %v4749_v18 = vld [vmem:[%s5030_s30 + $0x18a] sm:$0xff] }
 0x33a   : > { %v3098_v56 = vpop.f32.mrf.mxu1  ;;  %v2796_v9 = vpop.f32.mrf.mxu0  ;;  %3405 = vmatmul.mubr.f32.gmra.mxu0 %v4652_v26  ;;  %v4798_v26 = vld [vmem:[%s5030_s30 + $0x193] sm:$0xff] }
 0x33b   : > { %v2797_v5 = vadd.f32 %v2796_v9, %v6050_v49  ;;  %3409 = vmatprep.mubr.f32.mxu0 %v4701_v59  ;;  %v4654_v17 = vld [vmem:[%s5030_s30 + $0x190] sm:$0xff]  ;;  %v4703_v56 = vld [vmem:[%s5030_s30 + $0x199] sm:$0xff] }
 0x33c   : > { %v3101_v27 = vpop.f32.mrf.mxu1  ;;  %3710 = vmatmul.mubr.f32.gmra.mxu1 %v4748_v35  ;;  %v2798_v13 = vpop.f32.mrf.mxu0 }
 0x33d   : > { %v6386_v62 = vadd.f32 %v3101_v27, %v2797_v5  ;;  %3714 = vmatprep.mubr.f32.mxu1 %v4797_v61  ;;  %v4750_v61 = vld [vmem:[%s5030_s30 + $0x192] sm:$0xff] }
 0x33e   : > { %v3103_v2 = vpop.f32.mrf.mxu1  ;;  %v2801_v0 = vpop.f32.mrf.mxu0  ;;  %3410 = vmatmul.mubr.f32.gmra.mxu0 %v4653_v43  ;;  %v4799_v43 = vld [vmem:[%s5030_s30 + $0x19b] sm:$0xff] }
 0x33f   : > { %v2802_v49 = vadd.f32 %v2801_v0, %v6057_v32  ;;  %3414 = vmatprep.mubr.f32.mxu0 %v4702_v30  ;;  %v4655_v13 = vld [vmem:[%s5030_s30 + $0x198] sm:$0xff]  ;;  %v4704_v2 = vld [vmem:[%s5030_s30 + $0x1a1] sm:$0xff] }
 0x340   : > { %v3106_v59 = vpop.f32.mrf.mxu1  ;;  %3715 = vmatmul.mubr.f32.gmra.mxu1 %v4749_v18  ;;  %v2803_v35 = vpop.f32.mrf.mxu0 }
 0x341   : > { %v6393_v9 = vadd.f32 %v3106_v59, %v2802_v49  ;;  %3719 = vmatprep.mubr.f32.mxu1 %v4798_v26  ;;  %v4751_v26 = vld [vmem:[%s5030_s30 + $0x19a] sm:$0xff] }
 0x342   : > { %v3108_v5 = vpop.f32.mrf.mxu1  ;;  %v2806_v27 = vpop.f32.mrf.mxu0  ;;  %3415 = vmatmul.mubr.f32.gmra.mxu0 %v4654_v17  ;;  %v4800_v17 = vld [vmem:[%s5030_s30 + $0x1a3] sm:$0xff] }
 0x343   : > { %v2807_v32 = vadd.f32 %v2806_v27, %v6064_v44  ;;  %3419 = vmatprep.mubr.f32.mxu0 %v4703_v56  ;;  %v4656_v35 = vld [vmem:[%s5030_s30 + $0x1a0] sm:$0xff]  ;;  %v4705_v5 = vld [vmem:[%s5030_s30 + $0x1a9] sm:$0xff] }
 0x344   : > { %v3111_v30 = vpop.f32.mrf.mxu1  ;;  %3720 = vmatmul.mubr.f32.gmra.mxu1 %v4750_v61  ;;  %v2808_v18 = vpop.f32.mrf.mxu0 }
 0x345   : > { %v6400_v0 = vadd.f32 %v3111_v30, %v2807_v32  ;;  %3724 = vmatprep.mubr.f32.mxu1 %v4799_v43  ;;  %v4752_v43 = vld [vmem:[%s5030_s30 + $0x1a2] sm:$0xff] }
 0x346   : > { %v3113_v49 = vpop.f32.mrf.mxu1  ;;  %v2811_v59 = vpop.f32.mrf.mxu0  ;;  %3420 = vmatmul.mubr.f32.gmra.mxu0 %v4655_v13  ;;  %v4801_v13 = vld [vmem:[%s5030_s30 + $0x1ab] sm:$0xff] }
 0x347   : > { %v2812_v44 = vadd.f32 %v2811_v59, %v6071_v63  ;;  %3424 = vmatprep.mubr.f32.mxu0 %v4704_v2  ;;  %v4657_v18 = vld [vmem:[%s5030_s30 + $0x1a8] sm:$0xff]  ;;  %v4706_v49 = vld [vmem:[%s5030_s30 + $0x1b1] sm:$0xff] }
 0x348   : > { %v3116_v56 = vpop.f32.mrf.mxu1  ;;  %3725 = vmatmul.mubr.f32.gmra.mxu1 %v4751_v26  ;;  %v2813_v61 = vpop.f32.mrf.mxu0 }
 0x349   : > { %v6407_v27 = vadd.f32 %v3116_v56, %v2812_v44  ;;  %3729 = vmatprep.mubr.f32.mxu1 %v4800_v17  ;;  %v4753_v17 = vld [vmem:[%s5030_s30 + $0x1aa] sm:$0xff] }
 0x34a   : > { %v3118_v32 = vpop.f32.mrf.mxu1  ;;  %v2816_v30 = vpop.f32.mrf.mxu0  ;;  %3425 = vmatmul.mubr.f32.gmra.mxu0 %v4656_v35  ;;  %v4802_v35 = vld [vmem:[%s5030_s30 + $0x1b3] sm:$0xff] }
 0x34b   : > { %v2817_v63 = vadd.f32 %v2816_v30, %v6078_v24  ;;  %3429 = vmatprep.mubr.f32.mxu0 %v4705_v5  ;;  %v4658_v61 = vld [vmem:[%s5030_s30 + $0x1b0] sm:$0xff]  ;;  %v4707_v32 = vld [vmem:[%s5030_s30 + $0x1b9] sm:$0xff] }
 0x34c   : > { %v3121_v2 = vpop.f32.mrf.mxu1  ;;  %3730 = vmatmul.mubr.f32.gmra.mxu1 %v4752_v43  ;;  %v2818_v26 = vpop.f32.mrf.mxu0 }
 0x34d   : > { %v6414_v59 = vadd.f32 %v3121_v2, %v2817_v63  ;;  %3734 = vmatprep.mubr.f32.mxu1 %v4801_v13  ;;  %v4754_v13 = vld [vmem:[%s5030_s30 + $0x1b2] sm:$0xff] }
 0x34e   : > { %v3123_v44 = vpop.f32.mrf.mxu1  ;;  %v2821_v56 = vpop.f32.mrf.mxu0  ;;  %3430 = vmatmul.mubr.f32.gmra.mxu0 %v4657_v18  ;;  %v4803_v18 = vld [vmem:[%s5030_s30 + $0x1bb] sm:$0xff] }
 0x34f   : > { %v2822_v24 = vadd.f32 %v2821_v56, %v6085_v48  ;;  %3434 = vmatprep.mubr.f32.mxu0 %v4706_v49  ;;  %v4659_v26 = vld [vmem:[%s5030_s30 + $0x1b8] sm:$0xff]  ;;  %v4708_v44 = vld [vmem:[%s5030_s30 + $0x1c1] sm:$0xff] }
 0x350   : > { %v3126_v5 = vpop.f32.mrf.mxu1  ;;  %3735 = vmatmul.mubr.f32.gmra.mxu1 %v4753_v17  ;;  %v2823_v43 = vpop.f32.mrf.mxu0 }
 0x351   : > { %v6421_v30 = vadd.f32 %v3126_v5, %v2822_v24  ;;  %3739 = vmatprep.mubr.f32.mxu1 %v4802_v35  ;;  %v4755_v35 = vld [vmem:[%s5030_s30 + $0x1ba] sm:$0xff]  ;;  %v4804_v43 = vld [vmem:[%s5030_s30 + $0x1c3] sm:$0xff] }
 0x352   : > { %v3128_v63 = vpop.f32.mrf.mxu1  ;;  %v2826_v2 = vpop.f32.mrf.mxu0  ;;  %3435 = vmatmul.mubr.f32.gmra.mxu0 %v4658_v61 }
 0x353   : > { %v2827_v48 = vadd.f32 %v2826_v2, %v6092_v6  ;;  %3439 = vmatprep.mubr.f32.mxu0 %v4707_v32  ;;  %v4660_v6 = vld [vmem:[%s5030_s30 + $0x1c0] sm:$0xff] }
 0x354   : > { %v3131_v49 = vpop.f32.mrf.mxu1  ;;  %3740 = vmatmul.mubr.f32.gmra.mxu1 %v4754_v13  ;;  %v2828_v17 = vpop.f32.mrf.mxu0  ;;  %v4756_v13 = vld [vmem:[%s5030_s30 + $0x1c2] sm:$0xff] }
 0x355   : > { %v6428_v56 = vadd.f32 %v3131_v49, %v2827_v48  ;;  %3744 = vmatprep.mubr.f32.mxu1 %v4803_v18 }
 0x356   : > { %v3133_v24 = vpop.f32.mrf.mxu1  ;;  %v2831_v5 = vpop.f32.mrf.mxu0  ;;  %3440 = vmatmul.mubr.f32.gmra.mxu0 %v4659_v26 }
 0x357   : > { %v2832_v61 = vadd.f32 %v2831_v5, %v6099_v29  ;;  %3444 = vmatprep.mubr.f32.mxu0 %v4708_v44 }
 0x358   : > { %v3136_v63 = vpop.f32.mrf.mxu1  ;;  %3745 = vmatmul.mubr.f32.gmra.mxu1 %v4755_v35  ;;  %v2833_v32 = vpop.f32.mrf.mxu0 }
 0x359   : > { %v6434_v2 = vadd.f32 %v3136_v63, %v2832_v61  ;;  %3749 = vmatprep.mubr.f32.mxu1 %v4804_v43 }
 0x35a   : > { %v3138_v17 = vpop.f32.mrf.mxu1  ;;  %v2836_v48 = vpop.f32.mrf.mxu0  ;;  %3445 = vmatmul.mubr.f32.gmra.mxu0 %v4660_v6 }
 0x35b   : > { %6561 = vst [vmem:[#allocation5_spill] sm:$0xff] %v6434_v2  ;;  %v2837_v18 = vadd.f32 %v2836_v48, %v6106_v54 }
 0x35c   : > { %v3141_v49 = vpop.f32.mrf.mxu1  ;;  %3750 = vmatmul.mubr.f32.gmra.mxu1 %v4756_v13  ;;  %v2838_v26 = vpop.f32.mrf.mxu0 }
 0x35d   : > { %v6438_v24 = vadd.f32 %v3141_v49, %v2837_v18 }
 0x35e   : > { %v3143_v29 = vpop.f32.mrf.mxu1  ;;  %v3211_v44 = vpop.f32.mrf.mxu0 }
 0x35f   : > { %v3212_v5 = vadd.f32 %v3211_v44, %v6113_v15 }
 0x360   : > { %v3516_v35 = vpop.f32.mrf.mxu1  ;;  %v3213_v32 = vpop.f32.mrf.mxu0 }
 0x361   : > { %v3517_v61 = vadd.f32 %v3516_v35, %v3212_v5 }
 0x362   : > { %v3518_v63 = vpop.f32.mrf.mxu1  ;;  %v3216_v43 = vpop.f32.mrf.mxu0 }
 0x363   : > { %v3217_v17 = vadd.f32 %v3216_v43, %v6120_v41  ;;  %3755 = vxpose.xlu0.b32.start [1/16] %v3517_v61, 128 }
 0x364   : > { %v3521_v6 = vpop.f32.mrf.mxu1  ;;  %v3218_v2 = vpop.f32.mrf.mxu0 }
 0x365   : > { %v3522_v54 = vadd.f32 %v3521_v6, %v3217_v17 }
 0x366   : > { %v3523_v48 = vpop.f32.mrf.mxu1  ;;  %v3221_v13 = vpop.f32.mrf.mxu0 }
 0x367   : > { %v3222_v18 = vadd.f32 %v3221_v13, %v6127_v12  ;;  %3756 = vxpose.xlu0.b32.cont [2/16] %v3522_v54, 128 }
 0x368   : > { %v3526_v49 = vpop.f32.mrf.mxu1  ;;  %v3223_v26 = vpop.f32.mrf.mxu0 }
 0x369   : > { %v3527_v29 = vadd.f32 %v3526_v49, %v3222_v18 }
 0x36a   : > { %v3528_v15 = vpop.f32.mrf.mxu1  ;;  %v3226_v44 = vpop.f32.mrf.mxu0 }
 0x36b   : > { %v3227_v5 = vadd.f32 %v3226_v44, %v6134_v37  ;;  %3757 = vxpose.xlu0.b32.cont [3/16] %v3527_v29, 128 }
 0x36c   : > { %v3531_v35 = vpop.f32.mrf.mxu1  ;;  %v3228_v32 = vpop.f32.mrf.mxu0 }
 0x36d   : > { %v3532_v41 = vadd.f32 %v3531_v35, %v3227_v5 }
 0x36e   : > { %v3533_v61 = vpop.f32.mrf.mxu1  ;;  %v3231_v63 = vpop.f32.mrf.mxu0 }
 0x36f   : > { %v3232_v2 = vadd.f32 %v3231_v63, %v6141_v8  ;;  %3758 = vxpose.xlu0.b32.cont [4/16] %v3532_v41, 128 }
 0x370   : > { %v3536_v43 = vpop.f32.mrf.mxu1  ;;  %v3233_v17 = vpop.f32.mrf.mxu0 }
 0x371   : > { %v3537_v12 = vadd.f32 %v3536_v43, %v3232_v2 }
 0x372   : > { %v3538_v6 = vpop.f32.mrf.mxu1  ;;  %v3236_v54 = vpop.f32.mrf.mxu0 }
 0x373   : > { %v3237_v48 = vadd.f32 %v3236_v54, %v6148_v40  ;;  %3759 = vxpose.xlu0.b32.cont [5/16] %v3537_v12, 128 }
 0x374   : > { %v3541_v13 = vpop.f32.mrf.mxu1  ;;  %v3238_v18 = vpop.f32.mrf.mxu0 }
 0x375   : > { %v3542_v37 = vadd.f32 %v3541_v13, %v3237_v48 }
 0x376   : > { %v3543_v49 = vpop.f32.mrf.mxu1  ;;  %v3241_v26 = vpop.f32.mrf.mxu0 }
 0x377   : > { %v3242_v29 = vadd.f32 %v3241_v26, %v6155_v14  ;;  %3760 = vxpose.xlu0.b32.cont [6/16] %v3542_v37, 128 }
 0x378   : > { %v3546_v15 = vpop.f32.mrf.mxu1  ;;  %v3243_v44 = vpop.f32.mrf.mxu0 }
 0x379   : > { %v3547_v8 = vadd.f32 %v3546_v15, %v3242_v29 }
 0x37a   : > { %v3548_v5 = vpop.f32.mrf.mxu1  ;;  %v3246_v35 = vpop.f32.mrf.mxu0 }
 0x37b   : > { %v3247_v32 = vadd.f32 %v3246_v35, %v6162_v52  ;;  %3761 = vxpose.xlu0.b32.cont [7/16] %v3547_v8, 128 }
 0x37c   : > { %v3551_v41 = vpop.f32.mrf.mxu1  ;;  %v3248_v61 = vpop.f32.mrf.mxu0 }
 0x37d   : > { %v3552_v40 = vadd.f32 %v3551_v41, %v3247_v32 }
 0x37e   : > { %v3553_v63 = vpop.f32.mrf.mxu1  ;;  %v3251_v2 = vpop.f32.mrf.mxu0 }
 0x37f   : > { %v3252_v43 = vadd.f32 %v3251_v2, %v6169_v31  ;;  %3762 = vxpose.xlu0.b32.cont [8/16] %v3552_v40, 128 }
 0x380   : > { %v3556_v17 = vpop.f32.mrf.mxu1  ;;  %v3253_v12 = vpop.f32.mrf.mxu0 }
 0x381   : > { %v3557_v14 = vadd.f32 %v3556_v17, %v3252_v43 }
 0x382   : > { %v3558_v6 = vpop.f32.mrf.mxu1  ;;  %v3256_v54 = vpop.f32.mrf.mxu0 }
 0x383   : > { %v3257_v48 = vadd.f32 %v3256_v54, %v6176_v16  ;;  %3763 = vxpose.xlu0.b32.cont [9/16] %v3557_v14, 128 }
 0x384   : > { %v3561_v13 = vpop.f32.mrf.mxu1  ;;  %v3258_v18 = vpop.f32.mrf.mxu0 }
 0x385   : > { %v3562_v52 = vadd.f32 %v3561_v13, %v3257_v48 }
 0x386   : > { %v3563_v37 = vpop.f32.mrf.mxu1  ;;  %v3261_v49 = vpop.f32.mrf.mxu0 }
 0x387   : > { %v3262_v26 = vadd.f32 %v3261_v49, %v6183_v50  ;;  %3764 = vxpose.xlu0.b32.cont [10/16] %v3562_v52, 128 }
 0x388   : > { %v3566_v29 = vpop.f32.mrf.mxu1  ;;  %v3263_v15 = vpop.f32.mrf.mxu0 }
 0x389   : > { %v3567_v31 = vadd.f32 %v3566_v29, %v3262_v26 }
 0x38a   : > { %v3568_v44 = vpop.f32.mrf.mxu1  ;;  %v3266_v8 = vpop.f32.mrf.mxu0 }
 0x38b   : > { %v3267_v5 = vadd.f32 %v3266_v8, %v6190_v57  ;;  %3765 = vxpose.xlu0.b32.cont [11/16] %v3567_v31, 128 }
 0x38c   : > { %v3571_v35 = vpop.f32.mrf.mxu1  ;;  %v3268_v32 = vpop.f32.mrf.mxu0 }
 0x38d   : > { %v3572_v16 = vadd.f32 %v3571_v35, %v3267_v5 }
 0x38e   : > { %v3573_v41 = vpop.f32.mrf.mxu1  ;;  %v3271_v61 = vpop.f32.mrf.mxu0 }
 0x38f   : > { %v3272_v40 = vadd.f32 %v3271_v61, %v6197_v22  ;;  %3766 = vxpose.xlu0.b32.cont [12/16] %v3572_v16, 128 }
 0x390   : > { %v3576_v63 = vpop.f32.mrf.mxu1  ;;  %v3273_v2 = vpop.f32.mrf.mxu0 }
 0x391   : > { %v3577_v50 = vadd.f32 %v3576_v63, %v3272_v40 }
 0x392   : > { %v3578_v43 = vpop.f32.mrf.mxu1  ;;  %v3276_v17 = vpop.f32.mrf.mxu0 }
 0x393   : > { %v3277_v12 = vadd.f32 %v3276_v17, %v6204_v34  ;;  %3767 = vxpose.xlu0.b32.cont [13/16] %v3577_v50, 128 }
 0x394   : > { %v3581_v14 = vpop.f32.mrf.mxu1  ;;  %v3278_v6 = vpop.f32.mrf.mxu0 }
 0x395   : > { %v3582_v57 = vadd.f32 %v3581_v14, %v3277_v12 }
 0x396   : > { %v3583_v54 = vpop.f32.mrf.mxu1  ;;  %v3281_v48 = vpop.f32.mrf.mxu0 }
 0x397   : > { %v3282_v13 = vadd.f32 %v3281_v48, %v6211_v46  ;;  %3768 = vxpose.xlu0.b32.cont [14/16] %v3582_v57, 128 }
 0x398   : > { %v3586_v18 = vpop.f32.mrf.mxu1  ;;  %v3283_v52 = vpop.f32.mrf.mxu0 }
 0x399   : > { %v3587_v22 = vadd.f32 %v3586_v18, %v3282_v13 }
 0x39a   : > { %v3588_v37 = vpop.f32.mrf.mxu1  ;;  %v3286_v49 = vpop.f32.mrf.mxu0 }
 0x39b   : > { %v3287_v26 = vadd.f32 %v3286_v49, %v6218_v58  ;;  %3769 = vxpose.xlu0.b32.cont [15/16] %v3587_v22, 128 }
 0x39c   : > { %v3591_v29 = vpop.f32.mrf.mxu1  ;;  %v3288_v15 = vpop.f32.mrf.mxu0 }
 0x39d   : > { %v3592_v34 = vadd.f32 %v3591_v29, %v3287_v26 }
 0x39e   : > { %v3593_v31 = vpop.f32.mrf.mxu1  ;;  %v3291_v44 = vpop.f32.mrf.mxu0 }
 0x39f   : > { %v3292_v8 = vadd.f32 %v3291_v44, %v6225_v7  ;;  %3770 = vxpose.xlu0.b32.end [16/16] %v3592_v34, 128 }
 0x3a0   : > { %v3596_v5 = vpop.f32.mrf.mxu1  ;;  %v3293_v35 = vpop.f32.mrf.mxu0 }
 0x3a1   : > { %v3597_v46 = vadd.f32 %v3596_v5, %v3292_v8 }
 0x3a2   : > { %v3598_v32 = vpop.f32.mrf.mxu1  ;;  %v3296_v16 = vpop.f32.mrf.mxu0 }
 0x3a3   : > { %v3297_v41 = vadd.f32 %v3296_v16, %v6232_v20  ;;  %3787 = vxpose.xlu1.b32.start [1/16] %v3597_v46, 128 }
 0x3a4   : > { %v3601_v61 = vpop.f32.mrf.mxu1  ;;  %v3298_v40 = vpop.f32.mrf.mxu0 }
 0x3a5   : > { %v3602_v58 = vadd.f32 %v3601_v61, %v3297_v41 }
 0x3a6   : > { %v3603_v63 = vpop.f32.mrf.mxu1  ;;  %v3301_v2 = vpop.f32.mrf.mxu0 }
 0x3a7   : > { %v3302_v50 = vadd.f32 %v3301_v2, %v6239_v33  ;;  %3788 = vxpose.xlu1.b32.cont [2/16] %v3602_v58, 128 }
 0x3a8   : > { %v3606_v43 = vpop.f32.mrf.mxu1  ;;  %v3303_v17 = vpop.f32.mrf.mxu0 }
 0x3a9   : > { %v3607_v7 = vadd.f32 %v3606_v43, %v3302_v50 }
 0x3aa   : > { %v3608_v12 = vpop.f32.mrf.mxu1  ;;  %v3306_v14 = vpop.f32.mrf.mxu0 }
 0x3ab   : > { %v3307_v6 = vadd.f32 %v3306_v14, %v6246_v47  ;;  %3789 = vxpose.xlu1.b32.cont [3/16] %v3607_v7, 128 }
 0x3ac   : > { %v3611_v57 = vpop.f32.mrf.mxu1  ;;  %v3308_v54 = vpop.f32.mrf.mxu0 }
 0x3ad   : > { %v3612_v20 = vadd.f32 %v3611_v57, %v3307_v6 }
 0x3ae   : > { %v3613_v48 = vpop.f32.mrf.mxu1  ;;  %v3311_v13 = vpop.f32.mrf.mxu0 }
 0x3af   : > { %v3312_v18 = vadd.f32 %v3311_v13, %v6253_v60  ;;  %3790 = vxpose.xlu1.b32.cont [4/16] %v3612_v20, 128 }
 0x3b0   : > { %v3616_v52 = vpop.f32.mrf.mxu1  ;;  %v3313_v22 = vpop.f32.mrf.mxu0 }
 0x3b1   : > { %v3617_v33 = vadd.f32 %v3616_v52, %v3312_v18 }
 0x3b2   : > { %v3618_v37 = vpop.f32.mrf.mxu1  ;;  %v3316_v49 = vpop.f32.mrf.mxu0 }
 0x3b3   : > { %v3317_v26 = vadd.f32 %v3316_v49, %v6260_v11  ;;  %3791 = vxpose.xlu1.b32.cont [5/16] %v3617_v33, 128 }
 0x3b4   : > { %v3621_v29 = vpop.f32.mrf.mxu1  ;;  %v3318_v15 = vpop.f32.mrf.mxu0 }
 0x3b5   : > { %v3622_v47 = vadd.f32 %v3621_v29, %v3317_v26 }
 0x3b6   : > { %v3623_v34 = vpop.f32.mrf.mxu1  ;;  %v3321_v31 = vpop.f32.mrf.mxu0 }
 0x3b7   : > { %v3322_v44 = vadd.f32 %v3321_v31, %v6267_v25  ;;  %3792 = vxpose.xlu1.b32.cont [6/16] %v3622_v47, 128 }
 0x3b8   : > { %v3626_v8 = vpop.f32.mrf.mxu1  ;;  %v3323_v5 = vpop.f32.mrf.mxu0 }
 0x3b9   : > { %v3627_v60 = vadd.f32 %v3626_v8, %v3322_v44 }
 0x3ba   : > { %v3628_v35 = vpop.f32.mrf.mxu1  ;;  %v3326_v46 = vpop.f32.mrf.mxu0 }
 0x3bb   : > { %v3327_v32 = vadd.f32 %v3326_v46, %v6274_v39  ;;  %3793 = vxpose.xlu1.b32.cont [7/16] %v3627_v60, 128 }
 0x3bc   : > { %v3631_v16 = vpop.f32.mrf.mxu1  ;;  %v3328_v41 = vpop.f32.mrf.mxu0 }
 0x3bd   : > { %v3632_v11 = vadd.f32 %v3631_v16, %v3327_v32 }
 0x3be   : > { %v3633_v61 = vpop.f32.mrf.mxu1  ;;  %v3331_v40 = vpop.f32.mrf.mxu0 }
 0x3bf   : > { %v3332_v58 = vadd.f32 %v3331_v40, %v6281_v53  ;;  %3794 = vxpose.xlu1.b32.cont [8/16] %v3632_v11, 128 }
 0x3c0   : > { %v3636_v63 = vpop.f32.mrf.mxu1  ;;  %v3333_v2 = vpop.f32.mrf.mxu0 }
 0x3c1   : > { %v3637_v25 = vadd.f32 %v3636_v63, %v3332_v58 }
 0x3c2   : > { %v3638_v50 = vpop.f32.mrf.mxu1  ;;  %v3336_v43 = vpop.f32.mrf.mxu0 }
 0x3c3   : > { %v3337_v17 = vadd.f32 %v3336_v43, %v6288_v4  ;;  %3795 = vxpose.xlu1.b32.cont [9/16] %v3637_v25, 128 }
 0x3c4   : > { %v3641_v7 = vpop.f32.mrf.mxu1  ;;  %v3338_v12 = vpop.f32.mrf.mxu0 }
 0x3c5   : > { %v3642_v39 = vadd.f32 %v3641_v7, %v3337_v17 }
 0x3c6   : > { %v3643_v14 = vpop.f32.mrf.mxu1  ;;  %v3341_v6 = vpop.f32.mrf.mxu0 }
 0x3c7   : > { %v3342_v57 = vadd.f32 %v3341_v6, %v6295_v19  ;;  %3796 = vxpose.xlu1.b32.cont [10/16] %v3642_v39, 128 }
 0x3c8   : > { %v3646_v54 = vpop.f32.mrf.mxu1  ;;  %v3343_v20 = vpop.f32.mrf.mxu0 }
 0x3c9   : > { %v3647_v53 = vadd.f32 %v3646_v54, %v3342_v57 }
 0x3ca   : > { %v3648_v48 = vpop.f32.mrf.mxu1  ;;  %v3346_v13 = vpop.f32.mrf.mxu0 }
 0x3cb   : > { %v3347_v18 = vadd.f32 %v3346_v13, %v6302_v36  ;;  %3797 = vxpose.xlu1.b32.cont [11/16] %v3647_v53, 128 }
 0x3cc   : > { %v3651_v52 = vpop.f32.mrf.mxu1  ;;  %v3348_v4 = vpop.f32.mrf.mxu0 }
 0x3cd   : > { %v3652_v22 = vadd.f32 %v3651_v52, %v3347_v18 }
 0x3ce   : > { %v3653_v33 = vpop.f32.mrf.mxu1  ;;  %v3351_v37 = vpop.f32.mrf.mxu0 }
 0x3cf   : > { %v3352_v49 = vadd.f32 %v3351_v37, %v6309_v51  ;;  %3798 = vxpose.xlu1.b32.cont [12/16] %v3652_v22, 128 }
 0x3d0   : > { %v3656_v19 = vpop.f32.mrf.mxu1  ;;  %v3353_v26 = vpop.f32.mrf.mxu0 }
 0x3d1   : > { %v3657_v29 = vadd.f32 %v3656_v19, %v3352_v49 }
 0x3d2   : > { %v3658_v15 = vpop.f32.mrf.mxu1  ;;  %v3356_v47 = vpop.f32.mrf.mxu0 }
 0x3d3   : > { %v3357_v34 = vadd.f32 %v3356_v47, %v6316_v3  ;;  %3799 = vxpose.xlu1.b32.cont [13/16] %v3657_v29, 128 }
 0x3d4   : > { %v3661_v36 = vpop.f32.mrf.mxu1  ;;  %v3358_v31 = vpop.f32.mrf.mxu0 }
 0x3d5   : > { %v3662_v44 = vadd.f32 %v3661_v36, %v3357_v34 }
 0x3d6   : > { %v3663_v8 = vpop.f32.mrf.mxu1  ;;  %v3361_v5 = vpop.f32.mrf.mxu0 }
 0x3d7   : > { %v3362_v60 = vadd.f32 %v3361_v5, %v6323_v21  ;;  %3800 = vxpose.xlu1.b32.cont [14/16] %v3662_v44, 128 }
 0x3d8   : > { %v3666_v51 = vpop.f32.mrf.mxu1  ;;  %v3363_v35 = vpop.f32.mrf.mxu0 }
 0x3d9   : > { %v3667_v46 = vadd.f32 %v3666_v51, %v3362_v60 }
 0x3da   : > { %v3668_v32 = vpop.f32.mrf.mxu1  ;;  %v3366_v16 = vpop.f32.mrf.mxu0 }
 0x3db   : > { %v3367_v41 = vadd.f32 %v3366_v16, %v6330_v38  ;;  %3801 = vxpose.xlu1.b32.cont [15/16] %v3667_v46, 128 }
 0x3dc   : > { %v3671_v3 = vpop.f32.mrf.mxu1  ;;  %v3368_v11 = vpop.f32.mrf.mxu0 }
 0x3dd   : > { %v3672_v61 = vadd.f32 %v3671_v3, %v3367_v41 }
 0x3de   : > { %v3673_v21 = vpop.f32.mrf.mxu1  ;;  %v3371_v40 = vpop.f32.mrf.mxu0 }
 0x3df   : > { %v3372_v58 = vadd.f32 %v3371_v40, %v6337_v55  ;;  %3802 = vxpose.xlu1.b32.end [16/16] %v3672_v61, 128  ;;  %v3771_v63 = vpop.trf.xlu0 }
 0x3e0   : > { %v3676_v2 = vpop.f32.mrf.mxu1  ;;  %v3373_v25 = vpop.f32.mrf.mxu0  ;;  %3851 = vst [vmem:[%s6477_s11] sm:$0xff] %v3771_v63 }
 0x3e1   : > { %v3677_v38 = vadd.f32 %v3676_v2, %v3372_v58 }
 0x3e2   : > { %v3678_v50 = vpop.f32.mrf.mxu1  ;;  %v3376_v43 = vpop.f32.mrf.mxu0 }
 0x3e3   : > { %v3377_v17 = vadd.f32 %v3376_v43, %v6344_v10  ;;  %3819 = vxpose.xlu0.b32.start [1/16] %v3677_v38, 128  ;;  %v3772_v7 = vpop.trf.xlu0 }
 0x3e4   : > { %v3681_v12 = vpop.f32.mrf.mxu1  ;;  %v3378_v39 = vpop.f32.mrf.mxu0  ;;  %3854 = vst [vmem:[%s6477_s11 + $0x18] sm:$0xff] %v3772_v7 }
 0x3e5   : > { %v3682_v14 = vadd.f32 %v3681_v12, %v3377_v17 }
 0x3e6   : > { %v3683_v6 = vpop.f32.mrf.mxu1  ;;  %v3381_v55 = vpop.f32.mrf.mxu0 }
 0x3e7   : > { %v3382_v57 = vadd.f32 %v3381_v55, %v6351_v28  ;;  %3820 = vxpose.xlu0.b32.cont [2/16] %v3682_v14, 128  ;;  %v3773_v54 = vpop.trf.xlu0 }
 0x3e8   : > { %v3686_v20 = vpop.f32.mrf.mxu1  ;;  %v3383_v53 = vpop.f32.mrf.mxu0  ;;  %3857 = vst [vmem:[%s6477_s11 + $0x30] sm:$0xff] %v3773_v54 }
 0x3e9   : > { %v3687_v48 = vadd.f32 %v3686_v20, %v3382_v57 }
 0x3ea   : > { %v3688_v13 = vpop.f32.mrf.mxu1  ;;  %v3386_v10 = vpop.f32.mrf.mxu0 }
 0x3eb   : > { %v3387_v18 = vadd.f32 %v3386_v10, %v6358_v45  ;;  %3821 = vxpose.xlu0.b32.cont [3/16] %v3687_v48, 128  ;;  %v3774_v52 = vpop.trf.xlu0 }
 0x3ec   : > { %v3691_v4 = vpop.f32.mrf.mxu1  ;;  %v3388_v22 = vpop.f32.mrf.mxu0  ;;  %3860 = vst [vmem:[%s6477_s11 + $0x48] sm:$0xff] %v3774_v52 }
 0x3ed   : > { %v3692_v33 = vadd.f32 %v3691_v4, %v3387_v18 }
 0x3ee   : > { %v3693_v37 = vpop.f32.mrf.mxu1  ;;  %v3391_v28 = vpop.f32.mrf.mxu0 }
 0x3ef   : > { %v3392_v49 = vadd.f32 %v3391_v28, %v6365_v1  ;;  %3822 = vxpose.xlu0.b32.cont [4/16] %v3692_v33, 128  ;;  %v3775_v19 = vpop.trf.xlu0 }
 0x3f0   : > { %v3696_v26 = vpop.f32.mrf.mxu1  ;;  %v3393_v29 = vpop.f32.mrf.mxu0  ;;  %3863 = vst [vmem:[%s6477_s11 + $0x60] sm:$0xff] %v3775_v19 }
 0x3f1   : > { %v3697_v15 = vadd.f32 %v3696_v26, %v3392_v49 }
 0x3f2   : > { %v3698_v47 = vpop.f32.mrf.mxu1  ;;  %v3396_v45 = vpop.f32.mrf.mxu0 }
 0x3f3   : > { %v3397_v34 = vadd.f32 %v3396_v45, %v6372_v23  ;;  %3823 = vxpose.xlu0.b32.cont [5/16] %v3697_v15, 128  ;;  %v3776_v36 = vpop.trf.xlu0 }
 0x3f4   : > { %v3701_v31 = vpop.f32.mrf.mxu1  ;;  %v3398_v44 = vpop.f32.mrf.mxu0  ;;  %3866 = vst [vmem:[%s6477_s11 + $0x78] sm:$0xff] %v3776_v36  ;;  %v6562_v36 = vld [vmem:[#allocation5_spill] sm:$0xff] }
 0x3f5   : > { %v3702_v8 = vadd.f32 %v3701_v31, %v3397_v34 }
 0x3f6   : > { %v3703_v5 = vpop.f32.mrf.mxu1  ;;  %v3401_v1 = vpop.f32.mrf.mxu0 }
 0x3f7   : > { %v3402_v60 = vadd.f32 %v3401_v1, %v6379_v42  ;;  %3824 = vxpose.xlu0.b32.cont [6/16] %v3702_v8, 128  ;;  %v3777_v51 = vpop.trf.xlu0 }
 0x3f8   : > { %v3706_v35 = vpop.f32.mrf.mxu1  ;;  %v3403_v46 = vpop.f32.mrf.mxu0  ;;  %3869 = vst [vmem:[%s6477_s11 + $0x90] sm:$0xff] %v3777_v51 }
 0x3f9   : > { %v3707_v32 = vadd.f32 %v3706_v35, %v3402_v60 }
 0x3fa   : > { %v3708_v16 = vpop.f32.mrf.mxu1  ;;  %v3406_v23 = vpop.f32.mrf.mxu0 }
 0x3fb   : > { %v3407_v41 = vadd.f32 %v3406_v23, %v6386_v62  ;;  %3825 = vxpose.xlu0.b32.cont [7/16] %v3707_v32, 128  ;;  %v3778_v3 = vpop.trf.xlu0 }
 0x3fc   : > { %v3711_v11 = vpop.f32.mrf.mxu1  ;;  %v3408_v61 = vpop.f32.mrf.mxu0  ;;  %3872 = vst [vmem:[%s6477_s11 + $0xa8] sm:$0xff] %v3778_v3 }
 0x3fd   : > { %v3712_v21 = vadd.f32 %v3711_v11, %v3407_v41 }
 0x3fe   : > { %v3713_v40 = vpop.f32.mrf.mxu1  ;;  %v3411_v42 = vpop.f32.mrf.mxu0 }
 0x3ff   : > { %v3412_v58 = vadd.f32 %v3411_v42, %v6393_v9  ;;  %3826 = vxpose.xlu0.b32.cont [8/16] %v3712_v21, 128  ;;  %v3779_v63 = vpop.trf.xlu0 }
 0x400   : > { %v3716_v2 = vpop.f32.mrf.mxu1  ;;  %v3413_v25 = vpop.f32.mrf.mxu0  ;;  %3875 = vst [vmem:[%s6477_s11 + $0xc0] sm:$0xff] %v3779_v63 }
 0x401   : > { %v3717_v38 = vadd.f32 %v3716_v2, %v3412_v58 }
 0x402   : > { %v3718_v50 = vpop.f32.mrf.mxu1  ;;  %v3416_v62 = vpop.f32.mrf.mxu0 }
 0x403   : > { %v3417_v43 = vadd.f32 %v3416_v62, %v6400_v0  ;;  %3827 = vxpose.xlu0.b32.cont [9/16] %v3717_v38, 128  ;;  %v3780_v17 = vpop.trf.xlu0 }
 0x404   : > { %v3721_v7 = vpop.f32.mrf.mxu1  ;;  %v3418_v12 = vpop.f32.mrf.mxu0  ;;  %3878 = vst [vmem:[%s6477_s11 + $0xd8] sm:$0xff] %v3780_v17 }
 0x405   : > { %v3722_v39 = vadd.f32 %v3721_v7, %v3417_v43 }
 0x406   : > { %v3723_v14 = vpop.f32.mrf.mxu1  ;;  %v3421_v9 = vpop.f32.mrf.mxu0 }
 0x407   : > { %v3422_v6 = vadd.f32 %v3421_v9, %v6407_v27  ;;  %3828 = vxpose.xlu0.b32.cont [10/16] %v3722_v39, 128  ;;  %v3781_v55 = vpop.trf.xlu0 }
 0x408   : > { %v3726_v57 = vpop.f32.mrf.mxu1  ;;  %v3423_v54 = vpop.f32.mrf.mxu0  ;;  %3881 = vst [vmem:[%s6477_s11 + $0xf0] sm:$0xff] %v3781_v55 }
 0x409   : > { %v3727_v20 = vadd.f32 %v3726_v57, %v3422_v6 }
 0x40a   : > { %v3728_v53 = vpop.f32.mrf.mxu1  ;;  %v3426_v0 = vpop.f32.mrf.mxu0 }
 0x40b   : > { %v3427_v48 = vadd.f32 %v3426_v0, %v6414_v59  ;;  %3829 = vxpose.xlu0.b32.cont [11/16] %v3727_v20, 128  ;;  %v3782_v13 = vpop.trf.xlu0 }
 0x40c   : > { %v3731_v10 = vpop.f32.mrf.mxu1  ;;  %v3428_v18 = vpop.f32.mrf.mxu0  ;;  %3884 = vst [vmem:[%s6477_s11 + $0x108] sm:$0xff] %v3782_v13 }
 0x40d   : > { %v3732_v52 = vadd.f32 %v3731_v10, %v3427_v48 }
 0x40e   : > { %v3733_v4 = vpop.f32.mrf.mxu1  ;;  %v3431_v27 = vpop.f32.mrf.mxu0 }
 0x40f   : > { %v3432_v22 = vadd.f32 %v3431_v27, %v6421_v30  ;;  %3830 = vxpose.xlu0.b32.cont [12/16] %v3732_v52, 128  ;;  %v3783_v33 = vpop.trf.xlu0 }
 0x410   : > { %v3736_v37 = vpop.f32.mrf.mxu1  ;;  %v3433_v28 = vpop.f32.mrf.mxu0  ;;  %3887 = vst [vmem:[%s6477_s11 + $0x120] sm:$0xff] %v3783_v33 }
 0x411   : > { %v3737_v49 = vadd.f32 %v3736_v37, %v3432_v22 }
 0x412   : > { %v3738_v19 = vpop.f32.mrf.mxu1  ;;  %v3436_v59 = vpop.f32.mrf.mxu0 }
 0x413   : > { %v3437_v26 = vadd.f32 %v3436_v59, %v6428_v56  ;;  %3831 = vxpose.xlu0.b32.cont [13/16] %v3737_v49, 128  ;;  %v3784_v29 = vpop.trf.xlu0 }
 0x414   : > { %v3741_v15 = vpop.f32.mrf.mxu1  ;;  %v3438_v47 = vpop.f32.mrf.mxu0  ;;  %3890 = vst [vmem:[%s6477_s11 + $0x138] sm:$0xff] %v3784_v29 }
 0x415   : > { %v3742_v45 = vadd.f32 %v3741_v15, %v3437_v26 }
 0x416   : > { %v3743_v34 = vpop.f32.mrf.mxu1  ;;  %v3441_v30 = vpop.f32.mrf.mxu0 }
 0x417   : > { %v3442_v31 = vadd.f32 %v3441_v30, %v6562_v36  ;;  %3832 = vxpose.xlu0.b32.cont [14/16] %v3742_v45, 128  ;;  %v3785_v44 = vpop.trf.xlu0 }
 0x418   : > { %v3746_v8 = vpop.f32.mrf.mxu1  ;;  %v3443_v5 = vpop.f32.mrf.mxu0  ;;  %3893 = vst [vmem:[%s6477_s11 + $0x150] sm:$0xff] %v3785_v44 }
 0x419   : > { %v3747_v1 = vadd.f32 %v3746_v8, %v3442_v31 }
 0x41a   : > { %v3748_v56 = vpop.f32.mrf.mxu1  ;;  %v3446_v60 = vpop.f32.mrf.mxu0 }
 0x41b   : > { %v3447_v51 = vadd.f32 %v3446_v60, %v6438_v24  ;;  %3833 = vxpose.xlu0.b32.cont [15/16] %v3747_v1, 128  ;;  %v3786_v35 = vpop.trf.xlu0 }
 0x41c   : > { %v3751_v46 = vpop.f32.mrf.mxu1  ;;  %v3448_v32 = vpop.f32.mrf.mxu0  ;;  %3896 = vst [vmem:[%s6477_s11 + $0x168] sm:$0xff] %v3786_v35 }
 0x41d   : > { %v3752_v16 = vadd.f32 %v3751_v46, %v3447_v51 }
 0x41e   : > { %v3753_v23 = vpop.f32.mrf.mxu1 }
 0x41f   : > { %3834 = vxpose.xlu0.b32.end [16/16] %v3752_v16, 128  ;;  %v3803_v41 = vpop.trf.xlu1 }
 0x420   : > { %3852 = vst [vmem:[%s6477_s11 + $0x8] sm:$0xff] %v3803_v41 }
 0x423   : > { %v3804_v3 = vpop.trf.xlu1 }
 0x424   : > { %3855 = vst [vmem:[%s6477_s11 + $0x20] sm:$0xff] %v3804_v3 }
 0x427   : > { %v3805_v24 = vpop.trf.xlu1 }
 0x428   : > { %3858 = vst [vmem:[%s6477_s11 + $0x38] sm:$0xff] %v3805_v24 }
 0x42b   : > { %v3806_v11 = vpop.trf.xlu1 }
 0x42c   : > { %3861 = vst [vmem:[%s6477_s11 + $0x50] sm:$0xff] %v3806_v11 }
 0x42f   : > { %v3807_v61 = vpop.trf.xlu1 }
 0x430   : > { %3864 = vst [vmem:[%s6477_s11 + $0x68] sm:$0xff] %v3807_v61 }
 0x433   : > { %v3808_v21 = vpop.trf.xlu1 }
 0x434   : > { %3867 = vst [vmem:[%s6477_s11 + $0x80] sm:$0xff] %v3808_v21 }
 0x437   : > { %v3809_v40 = vpop.trf.xlu1 }
 0x438   : > { %3870 = vst [vmem:[%s6477_s11 + $0x98] sm:$0xff] %v3809_v40 }
 0x43b   : > { %v3810_v42 = vpop.trf.xlu1 }
 0x43c   : > { %3873 = vst [vmem:[%s6477_s11 + $0xb0] sm:$0xff] %v3810_v42 }
 0x43f   : > { %v3811_v58 = vpop.trf.xlu1 }
 0x440   : > { %3876 = vst [vmem:[%s6477_s11 + $0xc8] sm:$0xff] %v3811_v58 }
 0x443   : > { %v3812_v63 = vpop.trf.xlu1 }
 0x444   : > { %3879 = vst [vmem:[%s6477_s11 + $0xe0] sm:$0xff] %v3812_v63 }
 0x447   : > { %v3813_v2 = vpop.trf.xlu1 }
 0x448   : > { %3882 = vst [vmem:[%s6477_s11 + $0xf8] sm:$0xff] %v3813_v2 }
 0x44b   : > { %v3814_v25 = vpop.trf.xlu1 }
 0x44c   : > { %3885 = vst [vmem:[%s6477_s11 + $0x110] sm:$0xff] %v3814_v25 }
 0x44f   : > { %v3815_v38 = vpop.trf.xlu1 }
 0x450   : > { %3888 = vst [vmem:[%s6477_s11 + $0x128] sm:$0xff] %v3815_v38 }
 0x453   : > { %v3816_v50 = vpop.trf.xlu1 }
 0x454   : > { %3891 = vst [vmem:[%s6477_s11 + $0x140] sm:$0xff] %v3816_v50 }
 0x457   : > { %v3817_v62 = vpop.trf.xlu1 }
 0x458   : > { %3894 = vst [vmem:[%s6477_s11 + $0x158] sm:$0xff] %v3817_v62 }
 0x45b   : > { %v3818_v43 = vpop.trf.xlu1 }
 0x45c   : > { %3897 = vst [vmem:[%s6477_s11 + $0x170] sm:$0xff] %v3818_v43 }
 0x45f   : > { %v3835_v17 = vpop.trf.xlu0 }
 0x460   : > { %3853 = vst [vmem:[%s6477_s11 + $0x10] sm:$0xff] %v3835_v17 }
 0x463   : > { %v3836_v7 = vpop.trf.xlu0 }
 0x464   : > { %3856 = vst [vmem:[%s6477_s11 + $0x28] sm:$0xff] %v3836_v7 }
 0x467   : > { %v3837_v12 = vpop.trf.xlu0 }
 0x468   : > { %3859 = vst [vmem:[%s6477_s11 + $0x40] sm:$0xff] %v3837_v12 }
 0x46b   : > { %v3838_v39 = vpop.trf.xlu0 }
 0x46c   : > { %3862 = vst [vmem:[%s6477_s11 + $0x58] sm:$0xff] %v3838_v39 }
 0x46f   : > { %v3839_v14 = vpop.trf.xlu0 }
 0x470   : > { %3865 = vst [vmem:[%s6477_s11 + $0x70] sm:$0xff] %v3839_v14 }
 0x473   : > { %v3840_v9 = vpop.trf.xlu0 }
 0x474   : > { %3868 = vst [vmem:[%s6477_s11 + $0x88] sm:$0xff] %v3840_v9 }
 0x477   : > { %v3841_v6 = vpop.trf.xlu0 }
 0x478   : > { %3871 = vst [vmem:[%s6477_s11 + $0xa0] sm:$0xff] %v3841_v6 }
 0x47b   : > { %v3842_v55 = vpop.trf.xlu0 }
 0x47c   : > { %3874 = vst [vmem:[%s6477_s11 + $0xb8] sm:$0xff] %v3842_v55 }
 0x47f   : > { %v3843_v57 = vpop.trf.xlu0 }
 0x480   : > { %3877 = vst [vmem:[%s6477_s11 + $0xd0] sm:$0xff] %v3843_v57 }
 0x483   : > { %v3844_v54 = vpop.trf.xlu0 }
 0x484   : > { %3880 = vst [vmem:[%s6477_s11 + $0xe8] sm:$0xff] %v3844_v54 }
 0x487   : > { %v3845_v20 = vpop.trf.xlu0 }
 0x488   : > { %3883 = vst [vmem:[%s6477_s11 + $0x100] sm:$0xff] %v3845_v20 }
 0x48b   : > { %v3846_v53 = vpop.trf.xlu0 }
 0x48c   : > { %3886 = vst [vmem:[%s6477_s11 + $0x118] sm:$0xff] %v3846_v53 }
 0x48f   : > { %v3847_v0 = vpop.trf.xlu0 }
 0x490   : > { %3889 = vst [vmem:[%s6477_s11 + $0x130] sm:$0xff] %v3847_v0 }
 0x493   : > { %v3848_v48 = vpop.trf.xlu0 }
 0x494   : > { %3892 = vst [vmem:[%s6477_s11 + $0x148] sm:$0xff] %v3848_v48 }
 0x497   : > { %v3849_v13 = vpop.trf.xlu0 }
 0x498   : > { %3895 = vst [vmem:[%s6477_s11 + $0x160] sm:$0xff] %v3849_v13 }
 0x49b   : > { %v3850_v10 = vpop.trf.xlu0 }
 0x49c   : > { %3898 = vst [vmem:[%s6477_s11 + $0x178] sm:$0xff] %v3850_v10 }
 0x49d PF: > { %s14_s14 = sadd.s32 1, %s4900_s14   ;;  %s6563_s12 = smov %s4896_s13 }
 0x49e   : > { %p11_p3 = scmp.ge.s32.totalorder %s14_s14, 4   ;;  %s6564_s13 = smov %s6566_s16 }
 0x4a0   :  { %13 = sbr.rel (!%p11_p3) target bundleno = 2 (0x2), region = 87 }
 0x4a5   :  { %3940 = vsyncpa [#allocation3], 1 }
 0x4a6   :  { %3942 = vsyncpa [#allocation3 + $0x1], 1 }

</bundles_post_ra>
